<compile_context>
chip_gen: v7x
topology: tpu7x:2x2x1
jax: 0.10.0
libtpu: 0.0.40
codegen_flags: <defaults>
</compile_context>

<pallas_src>
import functools

import jax
import jax.numpy as jnp
import numpy as np
from jax.experimental import pallas as pl
from jax.experimental.pallas import tpu as pltpu

_GEO_COLS = 11  # 3 (pos) + 3 (scales) + 4 (rot) + 1 (opacity)


def _round_up(x, m):
    return (x + m - 1) // m * m


def _deform_kernel(
    # row-tiled point-wise input: [tile, 8] f32 (xyz, t, 4 zero pads)
    h_ref,
    # trunk (feature_out): Linear(8->W) + (D-1) x [ReLU, Linear(W,W)]
    fw0_ref, fb0_ref, fwr_ref, fbr_ref,
    # fused head first layer [W, 4W+128]
    hw0_ref, hb0_ref,
    # merged block-diagonal second layer of ALL five heads [4W+128, slab]
    dw1_ref, db1_ref,
    # output: lane-dense delta slab [tile, slab] (3+3+4+1+sem used lanes)
    out_ref,
    *, depth,
):
    f32 = jnp.float32
    wdt = fwr_ref.dtype  # bf16 or f32 matmul operand dtype

    # trunk first layer kept in f32 (K=8 -> negligible FLOPs, exact coordinates)
    h = jnp.dot(h_ref[...], fw0_ref[...], preferred_element_type=f32) + fb0_ref[...]
    for d in range(depth - 1):  # static unrolled loop
        hd = jnp.maximum(h, 0.0).astype(wdt)
        h = jnp.dot(hd, fwr_ref[d], preferred_element_type=f32) + fbr_ref[d]

    # shared ReLU of trunk output, hoisted once for all five heads
    h_relu = jnp.maximum(h, 0.0).astype(wdt)

    # fused first layer of the five heads: one wide matmul [tile, W] @ [W, 4W+128]
    t = jnp.dot(h_relu, hw0_ref[...], preferred_element_type=f32) + hb0_ref[...]
    t = jnp.maximum(t, 0.0).astype(wdt)  # ReLU fused with the downcast, no slicing

    # merged block-diagonal second layer: one [tile, 4W+128] @ [4W+128, slab]
    out_ref[...] = (
        jnp.dot(t, dw1_ref[...], preferred_element_type=f32) + db1_ref[...]
    ).astype(out_ref.dtype)


def deform_network_forward(params, point, scales, rotations, opacity,
                           times_sel, semantic_feature, *,
                           tile=2048, use_bf16=True):
    """JAX wrapper: packs/fuses weights, pads rows, calls the Pallas kernel.

    tile: row tile (multiple of 256). 2048 is a good default on all generations
          (capped there to respect v7x's 64 MiB VMEM); shrinks automatically for
          small N so the row grid keeps >= 2 steps.
    use_bf16: cast matmul operands to bf16 and write the delta slab in bf16
          (f32 accumulation; all residual adds done in f32 in this wrapper).
    """
    N = point.shape[0]
    W = params["fw0"].shape[1]
    depth = params["fwr"].shape[0] + 1
    assert depth >= 2, "defor_depth must be >= 2 for this kernel"
    sem_dim = params["mw1"].shape[1]

    wdt = jnp.bfloat16 if use_bf16 else jnp.float32
    f32 = jnp.float32
    out_dt = jnp.bfloat16 if use_bf16 else jnp.float32
    slab = _round_up(_GEO_COLS + sem_dim, 128)  # lane-dense output width

    # ---- pack / fuse weights (tiny, trace-time work) ------------------------
    fw0 = jnp.pad(params["fw0"], ((0, 4), (0, 0))).astype(f32)           # [8, W]
    fb0 = params["fb0"].astype(f32)                                      # [1, W]
    fwr = params["fwr"].astype(wdt)                                      # [D-1, W, W]
    fbr = params["fbr"].astype(f32)                                      # [D-1, 1, W]

    # fused first layer of the 5 heads -> [W, 4W + 128]
    hw0 = jnp.concatenate([params["pw0"], params["sw0"], params["rw0"],
                           params["ow0"], params["mw0"]], axis=1).astype(wdt)
    hb0 = jnp.concatenate([params["pb0"], params["sb0"], params["rb0"],
                           params["ob0"], params["mb0"]], axis=1).astype(f32)

    # merged block-diagonal second layer of ALL heads -> [4W+128, slab]
    dw1 = jax.scipy.linalg.block_diag(params["pw1"], params["sw1"],
                                      params["rw1"], params["ow1"],
                                      params["mw1"])                      # [4W+128, 11+sem]
    dw1 = jnp.pad(dw1, ((0, 0), (0, slab - dw1.shape[1]))).astype(wdt)
    db1 = jnp.concatenate([params["pb1"], params["sb1"], params["rb1"],
                           params["ob1"], params["mb1"]], axis=1)         # [1, 11+sem]
    db1 = jnp.pad(db1, ((0, 0), (0, slab - db1.shape[1]))).astype(f32)

    # ---- row tile selection --------------------------------------------------
    tile = max(256, min(int(tile), 2048))        # cap for v7x's 64 MiB VMEM
    tile = min(tile, _round_up(N, 256))          # don't exceed padded N
    tile = _round_up(tile, 256)
    # keep >= 2 row-grid steps when N allows it (megacore / v7x dual-TC)
    while tile > 256 and (N + tile - 1) // tile < 2:
        tile //= 2
    tile = max(256, _round_up(tile, 256))
    n_pad = _round_up(N, tile)
    pad = n_pad - N

    # ---- build row-tiled input (f32: coordinates never truncated) -----------
    h8 = jnp.concatenate([point[:, :3], times_sel[:, :1]], axis=-1)       # [N, 4]
    h8 = jnp.pad(h8, ((0, pad), (0, 4))).astype(f32)                       # [n_pad, 8]

    weights = [fw0, fb0, fwr, fbr, hw0, hb0, dw1, db1]

    def row_spec(c):
        return pl.BlockSpec((tile, c), lambda i: (i, 0))

    def full_spec(shape):
        nd = len(shape)
        return pl.BlockSpec(shape, lambda i, _nd=nd: (0,) * _nd)

    delta = pl.pallas_call(
        functools.partial(_deform_kernel, depth=depth),
        grid=(n_pad // tile,),
        in_specs=[row_spec(8)] + [full_spec(w.shape) for w in weights],
        out_specs=row_spec(slab),
        out_shape=jax.ShapeDtypeStruct((n_pad, slab), out_dt),
        compiler_params=pltpu.CompilerParams(
            dimension_semantics=("parallel",),
            vmem_limit_bytes=64 * 1024 * 1024),
    )(h8, *weights)

    # ---- split lane-dense delta slab and add residuals in f32 ---------------
    d = delta[:N].astype(f32)
    pts = point[:, :3] + d[:, 0:3]
    scl = scales[:, :3] + d[:, 3:6]
    rot = rotations[:, :4] + d[:, 6:10]
    opa = opacity[:, :1] + d[:, 10:11]

    sem_flat = semantic_feature.reshape(N, -1)[:, :256]   # squeeze(1)[:, :256]
    assert sem_flat.shape[1] == sem_dim, (
        f"semantic feature width {sem_flat.shape[1]} != head output {sem_dim}")
    sem = (sem_flat.astype(f32) + d[:, _GEO_COLS:_GEO_COLS + sem_dim])[:, None, :]
    return pts, scl, rot, opa, sem


def _ref_forward(params, point, scales, rotations, opacity, times_sel, sem):
    """Pure-JAX f32 reference for correctness checking."""
    depth = params["fwr"].shape[0] + 1
    h = jnp.concatenate([point[:, :3], times_sel[:, :1]], axis=-1)
    h = h @ params["fw0"] + params["fb0"]
    for d in range(depth - 1):
        h = jnp.maximum(h, 0.0) @ params["fwr"][d] + params["fbr"][d]

    def head(p):
        t = jnp.maximum(h, 0.0) @ params[p + "w0"] + params[p + "b0"]
        t = jnp.maximum(t, 0.0) @ params[p + "w1"] + params[p + "b1"]
        return t

    pts = point[:, :3] + head("p")
    scl = scales[:, :3] + head("s")
    rot = rotations[:, :4] + head("r")
    opa = opacity[:, :1] + head("o")
    sem_out = sem.reshape(sem.shape[0], -1)[:, :256] + head("m")
    return pts, scl, rot, opa, sem_out[:, None, :]


def _make_params(key, W, depth, sem_dim):
    """Deterministic synthetic init (xavier_uniform weights, PyTorch-style biases)."""
    keys = iter(jax.random.split(key, 64))

    def linear(fan_in, fan_out):
        kw, kb = jax.random.split(next(keys))
        bound = (6.0 / (fan_in + fan_out)) ** 0.5
        w = jax.random.uniform(kw, (fan_in, fan_out), jnp.float32, -bound, bound)
        bb = 1.0 / (fan_in ** 0.5)
        b = jax.random.uniform(kb, (1, fan_out), jnp.float32, -bb, bb)
        return w, b

    p = {}
    p["fw0"], p["fb0"] = linear(4, W)
    fwr, fbr = [], []
    for _ in range(depth - 1):
        w, b = linear(W, W)
        fwr.append(w)
        fbr.append(b)
    p["fwr"] = jnp.stack(fwr)                    # [D-1, W, W]
    p["fbr"] = jnp.stack(fbr)                    # [D-1, 1, W]
    p["pw0"], p["pb0"] = linear(W, W); p["pw1"], p["pb1"] = linear(W, 3)
    p["sw0"], p["sb0"] = linear(W, W); p["sw1"], p["sb1"] = linear(W, 3)
    p["rw0"], p["rb0"] = linear(W, W); p["rw1"], p["rb1"] = linear(W, 4)
    p["ow0"], p["ob0"] = linear(W, W); p["ow1"], p["ob1"] = linear(W, 1)
    p["mw0"], p["mb0"] = linear(W, 128); p["mw1"], p["mb1"] = linear(128, sem_dim)
    return p


if __name__ == "__main__":
    # small net_width / defor_depth; N deliberately NOT a tile multiple to
    # exercise the ragged-N padding path (and to give a 2-step row grid).
    N, W, DEPTH, SEM = 2000, 128, 3, 128

    key = jax.random.PRNGKey(0)
    kparam, kp, ks, kr, ko, kt, kf = jax.random.split(key, 7)
    params = _make_params(kparam, W, DEPTH, SEM)

    point = jax.random.normal(kp, (N, 3), jnp.float32)
    scales = jax.random.normal(ks, (N, 3), jnp.float32)
    rotations = jax.random.normal(kr, (N, 4), jnp.float32)
    opacity = jax.random.normal(ko, (N, 1), jnp.float32)
    times_sel = jax.random.uniform(kt, (N, 1), jnp.float32)
    semantic_feature = jax.random.normal(kf, (N, 1, SEM), jnp.float32)

    refs = _ref_forward(params, point, scales, rotations, opacity,
                        times_sel, semantic_feature)

    # fast path: bf16 matmul operands + bf16 delta writeback (default)
    outs_bf16 = deform_network_forward(params, point, scales, rotations, opacity,
                                       times_sel, semantic_feature,
                                       tile=2048, use_bf16=True)
    outs_bf16 = jax.block_until_ready(outs_bf16)
    for o, r in zip(outs_bf16, refs):
        np.testing.assert_allclose(np.asarray(o), np.asarray(r),
                                   rtol=5e-2, atol=5e-2)

    # exact path: f32 matmul operands / f32 writeback, tight tolerance vs ref
    outs_f32 = deform_network_forward(params, point, scales, rotations, opacity,
                                      times_sel, semantic_feature,
                                      tile=2048, use_bf16=False)
    outs_f32 = jax.block_until_ready(outs_f32)
    for o, r in zip(outs_f32, refs):
        np.testing.assert_allclose(np.asarray(o), np.asarray(r),
                                   rtol=1e-4, atol=1e-4)

    print("KERNEL_OK")
</pallas_src>

<mosaic_0001>
module attributes {stable_mosaic.version = 11 : i64} {
  func.func @_deform_kernel(%arg0: i32, %arg1: memref<1024x8xf32, #tpu.memory_space<vmem>>, %arg2: memref<8x128xf32, #tpu.memory_space<vmem>>, %arg3: memref<1x128xf32, #tpu.memory_space<vmem>>, %arg4: memref<2x128x128xbf16, #tpu.memory_space<vmem>>, %arg5: memref<2x1x128xf32, #tpu.memory_space<vmem>>, %arg6: memref<128x640xbf16, #tpu.memory_space<vmem>>, %arg7: memref<1x640xf32, #tpu.memory_space<vmem>>, %arg8: memref<640x256xbf16, #tpu.memory_space<vmem>>, %arg9: memref<1x256xf32, #tpu.memory_space<vmem>>, %arg10: memref<1024x256xbf16, #tpu.memory_space<vmem>>) attributes {dimension_semantics = [#tpu.dimension_semantics<parallel>], iteration_bounds = array<i64: 2>, scalar_prefetch = 0 : i64, scratch_operands = 0 : i64, tpu.core_type = #tpu.core_type<tc>, window_params = [{transform_indices = @transform_0, window_bounds = array<i64: 1024, 8>}, {pipeline_mode = #tpu.pipeline_mode<synchronous>, transform_indices = @transform_1, window_bounds = array<i64: 8, 128>}, {pipeline_mode = #tpu.pipeline_mode<synchronous>, transform_indices = @transform_2, window_bounds = array<i64: 1, 128>}, {pipeline_mode = #tpu.pipeline_mode<synchronous>, transform_indices = @transform_3, window_bounds = array<i64: 2, 128, 128>}, {pipeline_mode = #tpu.pipeline_mode<synchronous>, transform_indices = @transform_4, window_bounds = array<i64: 2, 1, 128>}, {pipeline_mode = #tpu.pipeline_mode<synchronous>, transform_indices = @transform_5, window_bounds = array<i64: 128, 640>}, {pipeline_mode = #tpu.pipeline_mode<synchronous>, transform_indices = @transform_6, window_bounds = array<i64: 1, 640>}, {pipeline_mode = #tpu.pipeline_mode<synchronous>, transform_indices = @transform_7, window_bounds = array<i64: 640, 256>}, {pipeline_mode = #tpu.pipeline_mode<synchronous>, transform_indices = @transform_8, window_bounds = array<i64: 1, 256>}, {transform_indices = @transform_9, window_bounds = array<i64: 1024, 256>}]} {
    %c0 = arith.constant 0 : index
    %c0_0 = arith.constant 0 : index
    %0 = vector.load %arg1[%c0, %c0_0] : memref<1024x8xf32, #tpu.memory_space<vmem>>, vector<1024x8xf32>
    %c0_1 = arith.constant 0 : index
    %c0_2 = arith.constant 0 : index
    %1 = vector.load %arg2[%c0_1, %c0_2] : memref<8x128xf32, #tpu.memory_space<vmem>>, vector<8x128xf32>
    %cst = arith.constant dense<0.000000e+00> : vector<1024x128xf32>
    %2 = tpu.matmul %0, %1, %cst {dimension_numbers = #tpu.dot_dimension_numbers<[1], [0], [0], [1], [0, 0, 1, 1], [], []>} : vector<1024x8xf32>, vector<8x128xf32>, vector<1024x128xf32> -> vector<1024x128xf32>
    %c0_3 = arith.constant 0 : index
    %c0_4 = arith.constant 0 : index
    %3 = vector.load %arg3[%c0_3, %c0_4] : memref<1x128xf32, #tpu.memory_space<vmem>>, vector<1x128xf32>
    %4 = vector.broadcast %3 : vector<1x128xf32> to vector<1024x128xf32>
    %5 = arith.addf %2, %4 : vector<1024x128xf32>
    %cst_5 = arith.constant 0.000000e+00 : f32
    %6 = vector.broadcast %cst_5 : f32 to vector<1024x128xf32>
    %7 = arith.maximumf %5, %6 : vector<1024x128xf32>
    %8 = arith.truncf %7 : vector<1024x128xf32> to vector<1024x128xbf16>
    %c0_6 = arith.constant 0 : index
    %c0_7 = arith.constant 0 : index
    %c0_8 = arith.constant 0 : index
    %9 = vector.load %arg4[%c0_6, %c0_7, %c0_8] : memref<2x128x128xbf16, #tpu.memory_space<vmem>>, vector<1x128x128xbf16>
    %10 = vector.shape_cast %9 : vector<1x128x128xbf16> to vector<128x128xbf16>
    %cst_9 = arith.constant dense<0.000000e+00> : vector<1024x128xf32>
    %11 = tpu.matmul %8, %10, %cst_9 {dimension_numbers = #tpu.dot_dimension_numbers<[1], [0], [0], [1], [0, 0, 1, 1], [], []>} : vector<1024x128xbf16>, vector<128x128xbf16>, vector<1024x128xf32> -> vector<1024x128xf32>
    %c0_10 = arith.constant 0 : index
    %c0_11 = arith.constant 0 : index
    %c0_12 = arith.constant 0 : index
    %12 = vector.load %arg5[%c0_10, %c0_11, %c0_12] : memref<2x1x128xf32, #tpu.memory_space<vmem>>, vector<1x1x128xf32>
    %13 = vector.shape_cast %12 : vector<1x1x128xf32> to vector<1x128xf32>
    %14 = vector.broadcast %13 : vector<1x128xf32> to vector<1024x128xf32>
    %15 = arith.addf %11, %14 : vector<1024x128xf32>
    %cst_13 = arith.constant 0.000000e+00 : f32
    %16 = vector.broadcast %cst_13 : f32 to vector<1024x128xf32>
    %17 = arith.maximumf %15, %16 : vector<1024x128xf32>
    %18 = arith.truncf %17 : vector<1024x128xf32> to vector<1024x128xbf16>
    %c1 = arith.constant 1 : index
    %c0_14 = arith.constant 0 : index
    %c0_15 = arith.constant 0 : index
    %19 = vector.load %arg4[%c1, %c0_14, %c0_15] : memref<2x128x128xbf16, #tpu.memory_space<vmem>>, vector<1x128x128xbf16>
    %20 = vector.shape_cast %19 : vector<1x128x128xbf16> to vector<128x128xbf16>
    %cst_16 = arith.constant dense<0.000000e+00> : vector<1024x128xf32>
    %21 = tpu.matmul %18, %20, %cst_16 {dimension_numbers = #tpu.dot_dimension_numbers<[1], [0], [0], [1], [0, 0, 1, 1], [], []>} : vector<1024x128xbf16>, vector<128x128xbf16>, vector<1024x128xf32> -> vector<1024x128xf32>
    %c1_17 = arith.constant 1 : index
    %c0_18 = arith.constant 0 : index
    %c0_19 = arith.constant 0 : index
    %22 = vector.load %arg5[%c1_17, %c0_18, %c0_19] : memref<2x1x128xf32, #tpu.memory_space<vmem>>, vector<1x1x128xf32>
    %23 = vector.shape_cast %22 : vector<1x1x128xf32> to vector<1x128xf32>
    %24 = vector.broadcast %23 : vector<1x128xf32> to vector<1024x128xf32>
    %25 = arith.addf %21, %24 : vector<1024x128xf32>
    %cst_20 = arith.constant 0.000000e+00 : f32
    %26 = vector.broadcast %cst_20 : f32 to vector<1024x128xf32>
    %27 = arith.maximumf %25, %26 : vector<1024x128xf32>
    %28 = arith.truncf %27 : vector<1024x128xf32> to vector<1024x128xbf16>
    %c0_21 = arith.constant 0 : index
    %c0_22 = arith.constant 0 : index
    %29 = vector.load %arg6[%c0_21, %c0_22] : memref<128x640xbf16, #tpu.memory_space<vmem>>, vector<128x640xbf16>
    %cst_23 = arith.constant dense<0.000000e+00> : vector<1024x640xf32>
    %30 = tpu.matmul %28, %29, %cst_23 {dimension_numbers = #tpu.dot_dimension_numbers<[1], [0], [0], [1], [0, 0, 1, 1], [], []>} : vector<1024x128xbf16>, vector<128x640xbf16>, vector<1024x640xf32> -> vector<1024x640xf32>
    %c0_24 = arith.constant 0 : index
    %c0_25 = arith.constant 0 : index
    %31 = vector.load %arg7[%c0_24, %c0_25] : memref<1x640xf32, #tpu.memory_space<vmem>>, vector<1x640xf32>
    %32 = vector.broadcast %31 : vector<1x640xf32> to vector<1024x640xf32>
    %33 = arith.addf %30, %32 : vector<1024x640xf32>
    %cst_26 = arith.constant 0.000000e+00 : f32
    %34 = vector.broadcast %cst_26 : f32 to vector<1024x640xf32>
    %35 = arith.maximumf %33, %34 : vector<1024x640xf32>
    %36 = arith.truncf %35 : vector<1024x640xf32> to vector<1024x640xbf16>
    %c0_27 = arith.constant 0 : index
    %c0_28 = arith.constant 0 : index
    %37 = vector.load %arg8[%c0_27, %c0_28] : memref<640x256xbf16, #tpu.memory_space<vmem>>, vector<640x256xbf16>
    %cst_29 = arith.constant dense<0.000000e+00> : vector<1024x256xf32>
    %38 = tpu.matmul %36, %37, %cst_29 {dimension_numbers = #tpu.dot_dimension_numbers<[1], [0], [0], [1], [0, 0, 1, 1], [], []>} : vector<1024x640xbf16>, vector<640x256xbf16>, vector<1024x256xf32> -> vector<1024x256xf32>
    %c0_30 = arith.constant 0 : index
    %c0_31 = arith.constant 0 : index
    %39 = vector.load %arg9[%c0_30, %c0_31] : memref<1x256xf32, #tpu.memory_space<vmem>>, vector<1x256xf32>
    %40 = vector.broadcast %39 : vector<1x256xf32> to vector<1024x256xf32>
    %41 = arith.addf %38, %40 : vector<1024x256xf32>
    %42 = arith.truncf %41 : vector<1024x256xf32> to vector<1024x256xbf16>
    %c0_32 = arith.constant 0 : index
    %c0_33 = arith.constant 0 : index
    %43 = vector.load %arg10[%c0_32, %c0_33] : memref<1024x256xbf16, #tpu.memory_space<vmem>>, vector<1024x256xbf16>
    tpu.vector_store %arg10[%c0_32, %c0_33], %42 {strides = array<i32>} : memref<1024x256xbf16, #tpu.memory_space<vmem>>, vector<1024x256xbf16>,
    return
  }
  func.func @transform_0(%arg0: i32) -> (i32, i32) {
    %c0_i32 = arith.constant 0 : i32
    %c0_i32_0 = arith.constant 0 : i32
    return %arg0, %c0_i32 : i32, i32
  }
  func.func @transform_1(%arg0: i32) -> (i32, i32) {
    %c0_i32 = arith.constant 0 : i32
    %c0_i32_0 = arith.constant 0 : i32
    %c0_i32_1 = arith.constant 0 : i32
    return %c0_i32, %c0_i32_0 : i32, i32
  }
  func.func @transform_2(%arg0: i32) -> (i32, i32) {
    %c0_i32 = arith.constant 0 : i32
    %c0_i32_0 = arith.constant 0 : i32
    %c0_i32_1 = arith.constant 0 : i32
    return %c0_i32, %c0_i32_0 : i32, i32
  }
  func.func @transform_3(%arg0: i32) -> (i32, i32, i32) {
    %c0_i32 = arith.constant 0 : i32
    %c0_i32_0 = arith.constant 0 : i32
    %c0_i32_1 = arith.constant 0 : i32
    %c0_i32_2 = arith.constant 0 : i32
    return %c0_i32, %c0_i32_0, %c0_i32_1 : i32, i32, i32
  }
  func.func @transform_4(%arg0: i32) -> (i32, i32, i32) {
    %c0_i32 = arith.constant 0 : i32
    %c0_i32_0 = arith.constant 0 : i32
    %c0_i32_1 = arith.constant 0 : i32
    %c0_i32_2 = arith.constant 0 : i32
    return %c0_i32, %c0_i32_0, %c0_i32_1 : i32, i32, i32
  }
  func.func @transform_5(%arg0: i32) -> (i32, i32) {
    %c0_i32 = arith.constant 0 : i32
    %c0_i32_0 = arith.constant 0 : i32
    %c0_i32_1 = arith.constant 0 : i32
    return %c0_i32, %c0_i32_0 : i32, i32
  }
  func.func @transform_6(%arg0: i32) -> (i32, i32) {
    %c0_i32 = arith.constant 0 : i32
    %c0_i32_0 = arith.constant 0 : i32
    %c0_i32_1 = arith.constant 0 : i32
    return %c0_i32, %c0_i32_0 : i32, i32
  }
  func.func @transform_7(%arg0: i32) -> (i32, i32) {
    %c0_i32 = arith.constant 0 : i32
    %c0_i32_0 = arith.constant 0 : i32
    %c0_i32_1 = arith.constant 0 : i32
    return %c0_i32, %c0_i32_0 : i32, i32
  }
  func.func @transform_8(%arg0: i32) -> (i32, i32) {
    %c0_i32 = arith.constant 0 : i32
    %c0_i32_0 = arith.constant 0 : i32
    %c0_i32_1 = arith.constant 0 : i32
    return %c0_i32, %c0_i32_0 : i32, i32
  }
  func.func @transform_9(%arg0: i32) -> (i32, i32) {
    %c0_i32 = arith.constant 0 : i32
    %c0_i32_0 = arith.constant 0 : i32
    return %arg0, %c0_i32 : i32, i32
  }
}

</mosaic_0001>

<bundles_post_ra>
// kernel: tpu_custom_call.1
= control target key start
LH: loop header
LB: loop body
LE: loop exit
PB: predicated region body
PF: predicated region fallthrough
CT: control target
= control target key end

     0   :  { %s16626_s0 = inlined_call_operand.hbm [shape: f32[2048,8], index: 0, kind: input, shape index: {}]   ;;  %s16627_s1 = inlined_call_operand.hbm [shape: f32[8,128], index: 1, kind: input, shape index: {}]   ;;  %s16628_s2 = inlined_call_operand.hbm [shape: f32[1,128], index: 2, kind: input, shape index: {}]   ;;  %s16629_s3 = inlined_call_operand.hbm [shape: bf16[2,128,128], index: 3, kind: input, shape index: {}]   ;;  %s16630_s4 = inlined_call_operand.hbm [shape: f32[2,1,128], index: 4, kind: input, shape index: {}]   ;;  %s16631_s5 = inlined_call_operand.hbm [shape: bf16[128,640], index: 5, kind: input, shape index: {}]   ;;  %s16632_s6 = inlined_call_operand.hbm [shape: f32[1,640], index: 6, kind: input, shape index: {}]   ;;  %s16633_s7 = inlined_call_operand.hbm [shape: bf16[640,256], index: 7, kind: input, shape index: {}]   ;;  %s16634_s8 = inlined_call_operand.hbm [shape: f32[1,256], index: 8, kind: input, shape index: {}]   ;;  %s16635_s9 = inlined_call_operand.hbm [shape: bf16[2048,256], index: 9, kind: output, shape index: {}]  }
   0x1   :  { %16694 = sst [smem:[#allocation107_spill]] %s16627_s1 }
   0x2   :  { %14 = vsyncpa [#allocation3], 0 }
   0x3   :  { %16 = vsyncpa [#allocation3 + $0x1], 0 }
   0x4   :  { %17 = vsyncpa [#allocation6], 0 }
   0x5   :  { %18 = vsyncpa [#allocation9], 0 }
   0x6   :  { %19 = vsyncpa [#allocation12], 0 }
   0x7   :  { %20 = vsyncpa [#allocation15], 0 }
   0x8   :  { %21 = vsyncpa [#allocation4], 0 }
   0x9   :  { %23 = vsyncpa [#allocation4 + $0x1], 0  ;;  %s13307_s30 = smov 0   ;;  %s13309_s10 = smov 0  }
   0xa   :  { %s13311_s11 = smov 0   ;;  %s13313_s12 = smov 0  }
   0xb LB: > { %s13236_s13 = smov [#allocation5]   ;;  %s13328_s15 = sadd.s32 4294967295, %s13234_s12   ;;  %s13234_s12 = sphi %s13313_s12, %s17064_s12   ;;  %s13230_s11 = sphi %s13311_s11, %s17063_s11   ;;  %s13226_s10 = sphi %s13309_s10, %s17062_s10   ;;  %s13222_s30 = sphi %s13307_s30, %s17061_s30  }
   0xc   : > { %s267_s14 = sshll.u32 %s13236_s13, 4  ;;  %p10204_p0 = scmp.ge.s32.totalorder %s13234_s12, 1  ;;  %s268_s14 = int_to_ptr.vmem [resolvable:$true] %s267_s14 }
   0xd   : > { %p16636_p1 = scmp.eq.s32.totalorder %s13328_s15, 0  ;;  %p254_p2 = scmp.lt.s32.totalorder %s13234_s12, 3 }
   0xe   : > { %s13237_s17 = smov [#allocation8]   ;;  %s13238_s20 = smov [#allocation11]  }
   0xf   : > { %p13333_p3 = pnand %p10204_p0, %p254_p2  ;;  %s288_s18 = sshll.u32 %s13237_s17, 4  ;;  %s13340_s18 = int_to_ptr.vmem [resolvable:$true] %s288_s18 }
  0x10   : > { %s314_s21 = sshll.u32 %s13238_s20, 4  ;;  %s16697_s1 = sld [smem:[#allocation107_spill]]  ;;  %s13348_s21 = int_to_ptr.vmem [resolvable:$true] %s314_s21 }
  0x11   : > { %s16695_s16 = scalar_select %p13333_p3, 1, 0 }
  0x12   : > { %p12567_p5 = pneg %p13333_p3 }
  0x14   : > { %p13344_p6 = pnand %p12567_p5, %p16636_p1 }
  0x16   : > { %s12898_s24 = scalar_lea.hbm %s16697_s1, 128  ;;  %p13358_p8 = pneg %p13344_p6 }
  0x17   : > { %p12899_p7 = scmp.ne.s32.totalorder %s16697_s1, %s12898_s24  ;;  %p12905_p11 = scmp.lt.u32.totalorder %s12898_s24, %s16697_s1 }
  0x19   : > { %p12901_p9 = pnand %p13358_p8, %p12899_p7 }
  0x1b   : > { %p12902_p10 = pneg %p12901_p9 }
  0x1d   : > { %p12907_p12 = pnand %p12905_p11, %p12902_p10 }
  0x1f   : > { %12910 = shalt.err (!%p12907_p12)
}
  0x20   : > { %s12911_s13 = scalar_lea.vmem %s268_s14, 128  ;;  %p12919_p5 = scmp.lt.s32.totalorder %s268_s14, %s268_s14 }
  0x21   : > { %p12912_p13 = scmp.ne.s32.totalorder %s268_s14, %s12911_s13  ;;  %p12920_p4 = scmp.lt.s32.totalorder %s12911_s13, %s12911_s13 }
  0x23   : > { %p12914_p0 = pnand %p12912_p13, %p13358_p8  ;;  %p12921_p1 = por %p12920_p4, %p12919_p5 }
  0x25   : > { %p12915_p2 = pneg %p12914_p0 }
  0x27   : > { %p12922_p3 = pnand %p12921_p1, %p12915_p2 }
  0x29   : > { %12925 = shalt.err (!%p12922_p3)
}
  0x2a   : > { %12570 = dma.hbm_to_vmem [thread:$0]  (!%p13344_p6), %s16697_s1, 128, %s268_s14, [#allocation6]  }
  0x2b   : > { %s12926_s24 = scalar_lea.hbm %s16629_s3, 2048 }
  0x2c   : > { %p12927_p7 = scmp.ne.s32.totalorder %s16629_s3, %s12926_s24  ;;  %p12933_p1 = scmp.lt.u32.totalorder %s12926_s24, %s16629_s3 }
  0x2e   : > { %p12929_p9 = pnand %p12927_p7, %p13358_p8 }
  0x30   : > { %p12930_p4 = pneg %p12929_p9 }
  0x32   : > { %p12935_p3 = pnand %p12933_p1, %p12930_p4 }
  0x34   : > { %12938 = shalt.err (!%p12935_p3)
}
  0x35   : > { %s12939_s14 = scalar_lea.vmem %s13340_s18, 2048  ;;  %p12947_p13 = scmp.lt.s32.totalorder %s13340_s18, %s13340_s18 }
  0x36   : > { %p12940_p10 = scmp.ne.s32.totalorder %s13340_s18, %s12939_s14  ;;  %p12948_p0 = scmp.lt.s32.totalorder %s12939_s14, %s12939_s14 }
  0x38   : > { %p12942_p11 = pnand %p12940_p10, %p13358_p8  ;;  %p12949_p2 = por %p12948_p0, %p12947_p13 }
  0x3a   : > { %p12943_p12 = pneg %p12942_p11 }
  0x3c   : > { %p12950_p5 = pnand %p12949_p2, %p12943_p12 }
  0x3e   : > { %12953 = shalt.err (!%p12950_p5)
}
  0x3f   : > { %s13239_s13 = smov 64   ;;  %s13240_s17 = smov 4  }
  0x40   : > { %12576 = dma.hbm_to_vmem [thread:$0]  (!%p13344_p6), %s16629_s3, 2048, %s13340_s18, [#allocation9], %s13239_s13, %s13239_s13, %s13240_s17  }
  0x41   : > { %s12954_s25 = scalar_lea.hbm %s16631_s5, 5120 }
  0x42   : > { %p12955_p7 = scmp.ne.s32.totalorder %s16631_s5, %s12954_s25  ;;  %p12961_p1 = scmp.lt.u32.totalorder %s12954_s25, %s16631_s5 }
  0x44   : > { %p12957_p9 = pnand %p12955_p7, %p13358_p8 }
  0x46   : > { %p12958_p4 = pneg %p12957_p9 }
  0x48   : > { %p12963_p3 = pnand %p12961_p1, %p12958_p4 }
  0x4a   : > { %12966 = shalt.err (!%p12963_p3)
}
  0x4b   : > { %s12967_s18 = scalar_lea.vmem %s13348_s21, 5120  ;;  %p12975_p13 = scmp.lt.s32.totalorder %s13348_s21, %s13348_s21 }
  0x4c   : > { %p12968_p10 = scmp.ne.s32.totalorder %s13348_s21, %s12967_s18  ;;  %p12976_p0 = scmp.lt.s32.totalorder %s12967_s18, %s12967_s18 }
  0x4e   : > { %p12970_p11 = pnand %p12968_p10, %p13358_p8  ;;  %p12977_p2 = por %p12976_p0, %p12975_p13 }
  0x50   : > { %p12971_p12 = pneg %p12970_p11 }
  0x52   : > { %p12978_p5 = pnand %p12977_p2, %p12971_p12 }
  0x54   : > { %12981 = shalt.err (!%p12978_p5)
}
  0x55   : > { %s13241_s13 = smov 320   ;;  %s13242_s17 = smov 20  }
  0x56   : > { %12582 = dma.hbm_to_vmem [thread:$0]  (!%p13344_p6), %s16631_s5, 5120, %s13348_s21, [#allocation12], %s13241_s13, %s13241_s13, %s13242_s17  }
  0x57   : > { %s13243_s23 = smov [#allocation14]   ;;  %s12982_s28 = scalar_lea.hbm %s16633_s7, 10240 }
  0x58   : > { %s338_s24 = sshll.u32 %s13243_s23, 4  ;;  %p12983_p7 = scmp.ne.s32.totalorder %s16633_s7, %s12982_s28  ;;  %s339_s24 = int_to_ptr.vmem [resolvable:$true] %s338_s24 }
  0x59   : > { %p12989_p1 = scmp.lt.u32.totalorder %s12982_s28, %s16633_s7 }
  0x5a   : > { %p12985_p9 = pnand %p12983_p7, %p13358_p8 }
  0x5c   : > { %p12986_p4 = pneg %p12985_p9 }
  0x5e   : > { %p12991_p3 = pnand %p12989_p1, %p12986_p4 }
  0x60   : > { %12994 = shalt.err (!%p12991_p3)
}
  0x61   : > { %s12995_s21 = scalar_lea.vmem %s339_s24, 10240  ;;  %p13003_p13 = scmp.lt.s32.totalorder %s339_s24, %s339_s24 }
  0x62   : > { %p12996_p10 = scmp.ne.s32.totalorder %s339_s24, %s12995_s21  ;;  %p13004_p0 = scmp.lt.s32.totalorder %s12995_s21, %s12995_s21 }
  0x64   : > { %p12998_p11 = pnand %p12996_p10, %p13358_p8  ;;  %p13005_p2 = por %p13004_p0, %p13003_p13 }
  0x66   : > { %p12999_p12 = pneg %p12998_p11 }
  0x68   : > { %p13006_p5 = pnand %p13005_p2, %p12999_p12 }
  0x6a   : > { %13009 = shalt.err (!%p13006_p5)
}
  0x6b   : > { %s16638_s13 = smov 128   ;;  %s16639_s17 = smov 8  }
  0x6c   : > { %12588 = dma.hbm_to_vmem [thread:$0]  (!%p13344_p6), %s16633_s7, 10240, %s339_s24, [#allocation15], %s16638_s13, %s16638_s13, %s16639_s17  }
  0x6d   : > { %s13246_s22 = smov [#allocation7]   ;;  %s13247_s25 = smov [#allocation10]  }
  0x6e   : > { %s278_s23 = sshll.u32 %s13246_s22, 4  ;;  %s301_s26 = sshll.u32 %s13247_s25, 4  ;;  %s279_s23 = int_to_ptr.vmem [resolvable:$true] %s278_s23  ;;  %s13441_s26 = int_to_ptr.vmem [resolvable:$true] %s301_s26 }
  0x6f   : > { %s13010_s14 = scalar_lea.hbm %s16628_s2, 16 }
  0x70   : > { %p13011_p7 = scmp.ne.s32.totalorder %s16628_s2, %s13010_s14  ;;  %p13017_p1 = scmp.lt.u32.totalorder %s13010_s14, %s16628_s2 }
  0x72   : > { %p13013_p9 = pnand %p13011_p7, %p13358_p8 }
  0x74   : > { %p13014_p4 = pneg %p13013_p9 }
  0x76   : > { %p13019_p3 = pnand %p13017_p1, %p13014_p4 }
  0x78   : > { %13022 = shalt.err (!%p13019_p3)
}
  0x79   : > { %s13023_s20 = scalar_lea.vmem %s279_s23, 16  ;;  %s13030_s22 = scalar_lea.vmem %s279_s23, 32 }
  0x7a   : > { %p13024_p10 = scmp.ne.s32.totalorder %s279_s23, %s13023_s20  ;;  %p13031_p13 = scmp.lt.s32.totalorder %s279_s23, %s279_s23 }
  0x7b   : > { %p13032_p0 = scmp.lt.s32.totalorder %s13030_s22, %s13023_s20 }
  0x7c   : > { %p13026_p11 = pnand %p13024_p10, %p13358_p8 }
  0x7d   : > { %p13033_p2 = por %p13032_p0, %p13031_p13 }
  0x7e   : > { %p13027_p12 = pneg %p13026_p11 }
  0x80   : > { %p13034_p5 = pnand %p13033_p2, %p13027_p12 }
  0x82   : > { %13037 = shalt.err (!%p13034_p5)
}
  0x83   : > { %12573 = dma.hbm_to_vmem [thread:$0]  (!%p13344_p6), %s16628_s2, 16, %s279_s23, [#allocation6]  }
  0x84   : > { %s13038_s18 = scalar_lea.hbm %s16630_s4, 32 }
  0x85   : > { %p13039_p7 = scmp.ne.s32.totalorder %s16630_s4, %s13038_s18  ;;  %p13045_p1 = scmp.lt.u32.totalorder %s13038_s18, %s16630_s4 }
  0x87   : > { %p13041_p9 = pnand %p13039_p7, %p13358_p8 }
  0x89   : > { %p13042_p4 = pneg %p13041_p9 }
  0x8b   : > { %p13047_p3 = pnand %p13045_p1, %p13042_p4 }
  0x8d   : > { %13050 = shalt.err (!%p13047_p3)
}
  0x8e   : > { %s13051_s23 = scalar_lea.vmem %s13441_s26, 32  ;;  %p13059_p13 = scmp.lt.s32.totalorder %s13441_s26, %s13441_s26 }
  0x8f   : > { %p13052_p10 = scmp.ne.s32.totalorder %s13441_s26, %s13051_s23  ;;  %p13060_p0 = scmp.lt.s32.totalorder %s13051_s23, %s13051_s23 }
  0x91   : > { %p13054_p11 = pnand %p13052_p10, %p13358_p8  ;;  %p13061_p2 = por %p13060_p0, %p13059_p13 }
  0x93   : > { %p13055_p12 = pneg %p13054_p11 }
  0x95   : > { %p13062_p5 = pnand %p13061_p2, %p13055_p12 }
  0x97   : > { %13065 = shalt.err (!%p13062_p5)
}
  0x98   : > { %s13248_s22 = smov 16   ;;  %s13249_s25 = smov 1  }
  0x99   : > { %12579 = dma.hbm_to_vmem [thread:$0]  (!%p13344_p6), %s16630_s4, 32, %s13441_s26, [#allocation9], %s13248_s22, %s13248_s22, %s13249_s25  }
  0x9a   : > { %s13250_s14 = smov [#allocation13]   ;;  %s13251_s21 = smov [#allocation16]  }
  0x9b   : > { %s328_s18 = sshll.u32 %s13250_s14, 4  ;;  %s352_s1 = sshll.u32 %s13251_s21, 4  ;;  %s329_s18 = int_to_ptr.vmem [resolvable:$true] %s328_s18  ;;  %s13484_s1 = int_to_ptr.vmem [resolvable:$true] %s352_s1 }
  0x9c   : > { %s13066_s23 = scalar_lea.hbm %s16632_s6, 80 }
  0x9d   : > { %p13067_p7 = scmp.ne.s32.totalorder %s16632_s6, %s13066_s23  ;;  %p13073_p1 = scmp.lt.u32.totalorder %s13066_s23, %s16632_s6 }
  0x9f   : > { %p13069_p9 = pnand %p13067_p7, %p13358_p8 }
  0xa1   : > { %p13070_p4 = pneg %p13069_p9 }
  0xa3   : > { %p13075_p3 = pnand %p13073_p1, %p13070_p4 }
  0xa5   : > { %13078 = shalt.err (!%p13075_p3)
}
  0xa6   : > { %s13079_s22 = scalar_lea.vmem %s329_s18, 80  ;;  %s13086_s25 = scalar_lea.vmem %s329_s18, 96 }
  0xa7   : > { %p13080_p10 = scmp.ne.s32.totalorder %s329_s18, %s13079_s22  ;;  %p13087_p13 = scmp.lt.s32.totalorder %s329_s18, %s329_s18 }
  0xa8   : > { %p13088_p0 = scmp.lt.s32.totalorder %s13086_s25, %s13079_s22 }
  0xa9   : > { %p13082_p11 = pnand %p13080_p10, %p13358_p8 }
  0xaa   : > { %p13089_p2 = por %p13088_p0, %p13087_p13 }
  0xab   : > { %p13083_p12 = pneg %p13082_p11 }
  0xad   : > { %p13090_p5 = pnand %p13089_p2, %p13083_p12 }
  0xaf   : > { %13093 = shalt.err (!%p13090_p5)
}
  0xb0   : > { %12585 = dma.hbm_to_vmem [thread:$0]  (!%p13344_p6), %s16632_s6, 80, %s329_s18, [#allocation12]  }
  0xb1   : > { %s13094_s21 = scalar_lea.hbm %s16634_s8, 32 }
  0xb2   : > { %p13095_p7 = scmp.ne.s32.totalorder %s16634_s8, %s13094_s21  ;;  %p13101_p1 = scmp.lt.u32.totalorder %s13094_s21, %s16634_s8 }
  0xb4   : > { %p13097_p9 = pnand %p13095_p7, %p13358_p8 }
  0xb6   : > { %p13098_p4 = pneg %p13097_p9 }
  0xb8   : > { %p13103_p3 = pnand %p13101_p1, %p13098_p4 }
  0xba   : > { %13106 = shalt.err (!%p13103_p3)
}
  0xbb   : > { %s13107_s18 = scalar_lea.vmem %s13484_s1, 32  ;;  %p13115_p13 = scmp.lt.s32.totalorder %s13484_s1, %s13484_s1 }
  0xbc   : > { %p13108_p10 = scmp.ne.s32.totalorder %s13484_s1, %s13107_s18  ;;  %p13116_p0 = scmp.lt.s32.totalorder %s13107_s18, %s13107_s18 }
  0xbe   : > { %p13110_p11 = pnand %p13108_p10, %p13358_p8  ;;  %p13117_p2 = por %p13116_p0, %p13115_p13 }
  0xc0   : > { %p13111_p12 = pneg %p13110_p11 }
  0xc2   : > { %p13118_p5 = pnand %p13117_p2, %p13111_p12 }
  0xc4   : > { %13121 = shalt.err (!%p13118_p5)
}
  0xc5   : > { %12591 = dma.hbm_to_vmem [thread:$0]  (!%p13344_p6), %s16634_s8, 32, %s13484_s1, [#allocation15]  }
  0xc6   : > { %s10203_s19 = sadd.s32 4294967294, %s13234_s12   ;;  %s13529_s27 = sadd.s32 1, %s13234_s12  }
  0xc7   : > { %s33_s25 = ssub.s32 %s13234_s12, %s13529_s27  ;;  %s36_s13 = sadd.s32 1, %s13230_s11 }
  0xc8   : > { %p34_p8 = scmp.eq.s32.totalorder %s33_s25, 0  ;;  %p43_p7 = scmp.ne.s32.totalorder %s13230_s11, %s13226_s10 }
  0xc9   : > { %p44_p9 = scmp.eq.s32.totalorder %s13234_s12, 0  ;;  %p49_p4 = scmp.ne.s32.totalorder %s13226_s10, %s13222_s30 }
  0xca   : > { %s13540_s17 = scalar_select %p34_p8, %s13230_s11, %s36_s13  }
  0xcb   : > { %p13542_p1 = por %p44_p9, %p43_p7  ;;  %p16700_p3 = scmp.eq.s32.totalorder %s13328_s15, 0 }
  0xcc   : > { %p241_p10 = scmp.eq.s32.totalorder %s13328_s15, 1  ;;  %p247_p11 = scmp.eq.s32.totalorder %s10203_s19, 1 }
  0xcd   : > { %p13548_p6 = por %p16700_p3, %p49_p4  ;;  %p12608_p12 = scmp.lt.s32.totalorder %s13234_s12, 2 }
  0xce   : > { %s363_s14 = sand.u32 1, %s13230_s11   ;;  %p13555_p13 = por %p241_p10, %p43_p7 }
  0xcf   : > { %p13559_p0 = por %p247_p11, %p49_p4  ;;  %s10214_s20 = sshll.u32 %s363_s14, 10 }
  0xd0   : > { %s16702_s21 = scalar_select %p13555_p13, 1, 0 }
  0xd1   : > { %s16703_s24 = scalar_select %p13559_p0, 1, 0 }
  0xd2   : > { %s10629_s23 = sshll.u32 %s13234_s12, 14  ;;  %s367_s22 = scalar_lea.vmem [#allocation2], %s10214_s20 }
  0xd3   : > { %s13567_s26 = scalar_lea.hbm %s16626_s0, %s10629_s23  ;;  %s374_s19 = sshll.u32 %s367_s22, 4  ;;  %s13569_s19 = int_to_ptr.vmem [resolvable:$true] %s374_s19 }
  0xd4   : > { %p13573_p2 = pnand %p12608_p12, %p13542_p1  ;;  %s13577_s13 = scalar_lea.sflag [#allocation3], %s363_s14 }
  0xd5   : > { %s13122_s28 = scalar_lea.hbm %s13567_s26, 16384  ;;  %s13127_s29 = scalar_lea.hbm %s16626_s0, 32768 }
  0xd6   : > { %p13123_p5 = scmp.ne.s32.totalorder %s13567_s26, %s13122_s28  ;;  %p13124_p8 = pneg %p13573_p2 }
  0xd7   : > { %p13128_p4 = scmp.lt.u32.totalorder %s13567_s26, %s16626_s0  ;;  %p13129_p1 = scmp.lt.u32.totalorder %s13127_s29, %s13122_s28 }
  0xd8   : > { %p13125_p7 = pnand %p13124_p8, %p13123_p5  ;;  %p13131_p10 = scmp.lt.u32.totalorder %s13122_s28, %s13567_s26 }
  0xd9   : > { %p13130_p3 = por %p13129_p1, %p13128_p4 }
  0xda   : > { %p13126_p9 = pneg %p13125_p7 }
  0xdb   : > { %p13132_p11 = por %p13131_p10, %p13130_p3 }
  0xdd   : > { %p13133_p12 = pnand %p13132_p11, %p13126_p9 }
  0xdf   : > { %13136 = shalt.err (!%p13133_p12)
}
  0xe0   : > { %s13137_s14 = scalar_lea.vmem %s13569_s19, 16384  ;;  %s13252_s20 = smov [#allocation2]  }
  0xe1   : > { %p13138_p5 = scmp.ne.s32.totalorder %s13569_s19, %s13137_s14  ;;  %s13142_s23 = sshll.u32 %s13252_s20, 4  ;;  %s13143_s23 = int_to_ptr.vmem [resolvable:$false] %s13142_s23 }
  0xe2   : > { %s13144_s18 = scalar_lea.vmem %s13143_s23, 32768  ;;  %p13145_p13 = scmp.lt.s32.totalorder %s13569_s19, %s13143_s23 }
  0xe3   : > { %p13140_p7 = pnand %p13138_p5, %p13124_p8  ;;  %p13146_p4 = scmp.lt.s32.totalorder %s13144_s18, %s13137_s14 }
  0xe5   : > { %p13141_p0 = pneg %p13140_p7  ;;  %p13147_p1 = por %p13146_p4, %p13145_p13 }
  0xe7   : > { %p13148_p3 = pnand %p13147_p1, %p13141_p0 }
  0xe9   : > { %13151 = shalt.err (!%p13148_p3)
}
  0xea   : > { %s16705_s28 = smov 8   ;;  %s16706_s29 = smov 128  }
  0xeb   : > { %12595 = dma.hbm_to_vmem [thread:$0]  (!%p13573_p2), %s13567_s26, 16384, %s13569_s19, %s13577_s13, %s16706_s29, %s16706_s29, %s16705_s28  }
  0xec   : > { %p16707_p8 = scmp.ne.s32.totalorder %s16695_s16, 0 }
  0xee   : > { %386 = sbr.rel (%p16707_p8) target bundleno = 2915 (0xb63), region = 56 }
  0xf5   : > { %s13611_s22 = sand.u32 1, %s13226_s10  }
  0xf6   : > { %s10218_s14 = sshll.u32 %s13611_s22, 10  ;;  %s389_s20 = scalar_lea.sflag [#allocation3], %s13611_s22 }
  0xf7   : > { %s13617_s25 = scalar_lea.vmem [#allocation2], %s10218_s14 }
  0xf8   : > { %13197 = dma.done.wait (%p13548_p6), %s389_s20, 16384  }
  0xf9   : > { %13199 = vsyncadd (%p13548_p6), %s389_s20, 4294950912  ;;  %p16708_p13 = scmp.eq.s32.totalorder %s13328_s15, 0 }
  0xfb   : > { %13201 = dma.done.wait (%p16708_p13), [#allocation6], 144   ;;  %p16709_p0 = pmov %p16708_p13 }
  0xfd   : > { %13203 = vsyncadd (%p16709_p0), [#allocation6], 4294967152  ;;  %p16710_p2 = pmov %p16709_p0 }
  0xfe   : > { %p16711_p9 = pmov %p16709_p0 }
  0xff   : > { %13205 = dma.done.wait (%p16710_p2), [#allocation9], 2080  }
 0x100   : > { %13207 = vsyncadd (%p16711_p9), [#allocation9], 4294965216  ;;  %p16712_p10 = pmov %p16709_p0 }
 0x101   : > { %p16713_p11 = pmov %p16709_p0 }
 0x102   : > { %13209 = dma.done.wait (%p16712_p10), [#allocation12], 5200  }
 0x103   : > { %13211 = vsyncadd (%p16713_p11), [#allocation12], 4294962096  ;;  %p16714_p6 = pmov %p16709_p0 }
 0x104   : > { %p16715_p12 = pmov %p16709_p0 }
 0x105   : > { %13213 = dma.done.wait (%p16714_p6), [#allocation15], 10272  }
 0x106   : > { %13215 = vsyncadd (%p16715_p12), [#allocation15], 4294957024  ;;  %vm598_vm0 = vcmask 64512   ;;  %v590_v0 = vld [vmem:[#allocation5] sm:$0xff]  ;;  %v463_v2 = vld [vmem:[%s13617_s25 + $0x8] sm:$0xff]  ;;  %s15719_s16 = scalar_lea.vmem [#allocation17], %s10218_s14 }
 0x107   : > { %v462_v1 = vld [vmem:[%s13617_s25] sm:$0xff]  ;;  %11105 = vmatprep.subr.mxu0 %v590_v0  ;;  %v464_v3 = vld [vmem:[%s13617_s25 + $0x10] sm:$0xff]  ;;  %v465_v4 = vld [vmem:[%s13617_s25 + $0x18] sm:$0xff]  ;;  %s10759_s1 = sshll.u32 %s13328_s15, 14  ;;  %s10054_s26 = sshll.u32 %s15719_s16, 4  ;;  %s16580_s26 = int_to_ptr.vmem [resolvable:$true] %s10054_s26 }
 0x108   : > { %11107 = vmatprep.mubr.msk.f32.mxu0 %vm598_vm0, %v462_v1  ;;  %11106 = vmatpush3.msra.mxu0 %v590_v0  ;;  %v466_v5 = vld [vmem:[%s13617_s25 + $0x20] sm:$0xff]  ;;  %v467_v6 = vld [vmem:[%s13617_s25 + $0x28] sm:$0xff]  ;;  %v468_v7 = vld [vmem:[%s13617_s25 + $0x30] sm:$0xff]  ;;  %s16578_s23 = scalar_lea.hbm %s16635_s9, %s10759_s1  ;;  %s10040_s18 = scalar_lea.sflag [#allocation4], %s13611_s22 }
 0x109   : > { %11108 = vmatmul.mubr.msk.f32.vlgmr.msra.gmra.mrb[0].mxu0 %vm598_vm0, %v463_v2  ;;  %v469_v8 = vld [vmem:[%s13617_s25 + $0x38] sm:$0xff]  ;;  %v470_v9 = vld [vmem:[%s13617_s25 + $0x40] sm:$0xff]  ;;  %v471_v10 = vld [vmem:[%s13617_s25 + $0x48] sm:$0xff]  ;;  %s13152_s15 = scalar_lea.vmem %s16580_s26, 16384  ;;  %p17058_p7 = scmp.ne.s32.totalorder %s16702_s21, 0 }
 0x10a   : > { %11110 = vmatprep.mubr.msk.f32.mxu0 %vm598_vm0, %v464_v3  ;;  %v472_v11 = vld [vmem:[%s13617_s25 + $0x50] sm:$0xff]  ;;  %v473_v14 = vld [vmem:[%s13617_s25 + $0x58] sm:$0xff]  ;;  %v474_v16 = vld [vmem:[%s13617_s25 + $0x60] sm:$0xff]  ;;  %p13153_p5 = scmp.ne.s32.totalorder %s16580_s26, %s13152_s15  ;;  %s13254_s28 = smov [#allocation17]  }
 0x10b   : > { %v12669_v12 = vld [vmem:[#allocation8 + $0x40] sm:$0xff]   ;;  %v12671_v15 = vld [vmem:[#allocation8 + $0x8] sm:$0xff]   ;;  %v12672_v18 = vld [vmem:[#allocation8 + $0x10] sm:$0xff]   ;;  %s13156_s29 = sshll.u32 %s13254_s28, 4  ;;  %s13157_s29 = int_to_ptr.vmem [resolvable:$false] %s13156_s29 }
 0x10c   : > { %v12670_v13 = vld [vmem:[#allocation8] sm:$0xff]   ;;  %11443 = vmatprep.subr.bf16.mxu0 %v12669_v12  ;;  %v12673_v20 = vld [vmem:[#allocation8 + $0x18] sm:$0xff]   ;;  %v477_v21 = vld [vmem:[%s13617_s25 + $0x78] sm:$0xff]  ;;  %p13154_p4 = pnand %p13153_p5, %p17058_p7  ;;  %s13158_s14 = scalar_lea.vmem %s13157_s29, 32768 }
 0x10d   : > { %11111 = vmatmul.mubr.msk.f32.gmra.mrb[2].mxu0 %vm598_vm0, %v465_v4  ;;  %11299 = vmatprep.subr.bf16.mxu1 %v12670_v13  ;;  %v475_v17 = vld [vmem:[%s13617_s25 + $0x68] sm:$0xff]  ;;  %v476_v19 = vld [vmem:[%s13617_s25 + $0x70] sm:$0xff]  ;;  %v478_v22 = vld [vmem:[%s13617_s25 + $0x80] sm:$0xff]  ;;  %p13159_p3 = scmp.lt.s32.totalorder %s16580_s26, %s13157_s29  ;;  %p13160_p8 = scmp.lt.s32.totalorder %s13158_s14, %s13152_s15 }
 0x10e   : > { %11113 = vmatprep.mubr.msk.f32.mxu0 %vm598_vm0, %v466_v5  ;;  %11444 = vmatpush3.bf16.msra.mxu0 %v12669_v12  ;;  %v12674_v23 = vld [vmem:[#allocation8 + $0x20] sm:$0xff]   ;;  %v481_v26 = vld [vmem:[%s13617_s25 + $0x98] sm:$0xff]  ;;  %v482_v27 = vld [vmem:[%s13617_s25 + $0xa0] sm:$0xff]  ;;  %p13155_p1 = pneg %p13154_p4 }
 0x10f   : > { %11300 = vmatpush3.bf16.msra.mxu1 %v12670_v13  ;;  %v479_v24 = vld [vmem:[%s13617_s25 + $0x88] sm:$0xff]  ;;  %v480_v25 = vld [vmem:[%s13617_s25 + $0x90] sm:$0xff]  ;;  %v485_v30 = vld [vmem:[%s13617_s25 + $0xb8] sm:$0xff]  ;;  %p13161_p13 = por %p13160_p8, %p13159_p3 }
 0x110   : > { %11301 = vmatprep.subr.bf16.mxu1 %v12671_v15  ;;  %v483_v28 = vld [vmem:[%s13617_s25 + $0xa8] sm:$0xff]  ;;  %v484_v29 = vld [vmem:[%s13617_s25 + $0xb0] sm:$0xff]  ;;  %v486_v31 = vld [vmem:[%s13617_s25 + $0xc0] sm:$0xff] }
 0x111   : > { %11114 = vmatmul.mubr.msk.f32.gmra.mrb[4].mxu0 %vm598_vm0, %v467_v6  ;;  %v487_v32 = vld [vmem:[%s13617_s25 + $0xc8] sm:$0xff]  ;;  %v488_v33 = vld [vmem:[%s13617_s25 + $0xd0] sm:$0xff]  ;;  %v489_v34 = vld [vmem:[%s13617_s25 + $0xd8] sm:$0xff]  ;;  %p13162_p0 = pnand %p13161_p13, %p13155_p1 }
 0x112   : > { %11116 = vmatprep.mubr.msk.f32.mxu0 %vm598_vm0, %v468_v7  ;;  %v490_v35 = vld [vmem:[%s13617_s25 + $0xe0] sm:$0xff]  ;;  %v491_v36 = vld [vmem:[%s13617_s25 + $0xe8] sm:$0xff]  ;;  %v492_v37 = vld [vmem:[%s13617_s25 + $0xf0] sm:$0xff] }
 0x113   : > { %11302 = vmatpush3.bf16.msra.mxu1 %v12671_v15  ;;  %v493_v38 = vld [vmem:[%s13617_s25 + $0xf8] sm:$0xff]  ;;  %v494_v39 = vld [vmem:[%s13617_s25 + $0x100] sm:$0xff]  ;;  %v495_v40 = vld [vmem:[%s13617_s25 + $0x108] sm:$0xff] }
 0x114   : > { %11303 = vmatprep.subr.bf16.mxu1 %v12672_v18  ;;  %v496_v41 = vld [vmem:[%s13617_s25 + $0x110] sm:$0xff]  ;;  %v497_v42 = vld [vmem:[%s13617_s25 + $0x118] sm:$0xff]  ;;  %v498_v43 = vld [vmem:[%s13617_s25 + $0x120] sm:$0xff] }
 0x115   : > { %11117 = vmatmul.mubr.msk.f32.gmra.mrb[6].mxu0 %vm598_vm0, %v469_v8  ;;  %v499_v44 = vld [vmem:[%s13617_s25 + $0x128] sm:$0xff]  ;;  %v500_v45 = vld [vmem:[%s13617_s25 + $0x130] sm:$0xff]  ;;  %v501_v46 = vld [vmem:[%s13617_s25 + $0x138] sm:$0xff] }
 0x116   : > { %11119 = vmatprep.mubr.msk.f32.mxu0 %vm598_vm0, %v470_v9  ;;  %v502_v47 = vld [vmem:[%s13617_s25 + $0x140] sm:$0xff]  ;;  %v503_v48 = vld [vmem:[%s13617_s25 + $0x148] sm:$0xff]  ;;  %v504_v49 = vld [vmem:[%s13617_s25 + $0x150] sm:$0xff] }
 0x117   : > { %11304 = vmatpush3.bf16.msra.mxu1 %v12672_v18  ;;  %v505_v50 = vld [vmem:[%s13617_s25 + $0x158] sm:$0xff]  ;;  %v506_v52 = vld [vmem:[%s13617_s25 + $0x160] sm:$0xff]  ;;  %v507_v53 = vld [vmem:[%s13617_s25 + $0x168] sm:$0xff] }
 0x118   : > { %11305 = vmatprep.subr.bf16.mxu1 %v12673_v20  ;;  %v12675_v51 = vld [vmem:[#allocation8 + $0x28] sm:$0xff]   ;;  %v12676_v54 = vld [vmem:[#allocation8 + $0x30] sm:$0xff]   ;;  %v12677_v56 = vld [vmem:[#allocation8 + $0x38] sm:$0xff]  }
 0x119   : > { %11120 = vmatmul.mubr.msk.f32.gmra.mrb[8].mxu0 %vm598_vm0, %v471_v10  ;;  %v508_v55 = vld [vmem:[%s13617_s25 + $0x170] sm:$0xff]  ;;  %v509_v57 = vld [vmem:[%s13617_s25 + $0x178] sm:$0xff]  ;;  %v510_v58 = vld [vmem:[%s13617_s25 + $0x180] sm:$0xff] }
 0x11a   : > { %11122 = vmatprep.mubr.msk.f32.mxu0 %vm598_vm0, %v472_v11  ;;  %v12678_v59 = vld [vmem:[#allocation8 + $0x48] sm:$0xff]   ;;  %v511_v60 = vld [vmem:[%s13617_s25 + $0x188] sm:$0xff]  ;;  %v514_v63 = vld [vmem:[%s13617_s25 + $0x1a0] sm:$0xff] }
 0x11b   : > { %11306 = vmatpush3.bf16.msra.mxu1 %v12673_v20  ;;  %11445 = vmatprep.subr.bf16.mxu0 %v12678_v59  ;;  %v512_v61 = vld [vmem:[%s13617_s25 + $0x190] sm:$0xff]  ;;  %v513_v62 = vld [vmem:[%s13617_s25 + $0x198] sm:$0xff]  ;;  %v515_v0 = vld [vmem:[%s13617_s25 + $0x1a8] sm:$0xff] }
 0x11c   : > { %11307 = vmatprep.subr.bf16.mxu1 %v12674_v23  ;;  %11446 = vmatpush3.bf16.msra.mxu0 %v12678_v59  ;;  %v516_v1 = vld [vmem:[%s13617_s25 + $0x1b0] sm:$0xff]  ;;  %v517_v2 = vld [vmem:[%s13617_s25 + $0x1b8] sm:$0xff]  ;;  %v518_v3 = vld [vmem:[%s13617_s25 + $0x1c0] sm:$0xff] }
 0x11d   : > { %11123 = vmatmul.mubr.msk.f32.gmra.mrb[10].mxu0 %vm598_vm0, %v473_v14  ;;  %v519_v4 = vld [vmem:[%s13617_s25 + $0x1c8] sm:$0xff]  ;;  %v520_v5 = vld [vmem:[%s13617_s25 + $0x1d0] sm:$0xff]  ;;  %v12679_v6 = vld [vmem:[#allocation8 + $0x50] sm:$0xff]  }
 0x11e   : > { %11125 = vmatprep.mubr.msk.f32.mxu0 %vm598_vm0, %v474_v16  ;;  %v521_v7 = vld [vmem:[%s13617_s25 + $0x1d8] sm:$0xff]  ;;  %v522_v8 = vld [vmem:[%s13617_s25 + $0x1e0] sm:$0xff]  ;;  %11447 = vmatprep.subr.bf16.mxu0 %v12679_v6  ;;  %v523_v9 = vld [vmem:[%s13617_s25 + $0x1e8] sm:$0xff] }
 0x11f   : > { %11308 = vmatpush3.bf16.msra.mxu1 %v12674_v23  ;;  %v524_v10 = vld [vmem:[%s13617_s25 + $0x1f0] sm:$0xff]  ;;  %v525_v11 = vld [vmem:[%s13617_s25 + $0x1f8] sm:$0xff]  ;;  %v526_v12 = vld [vmem:[%s13617_s25 + $0x200] sm:$0xff] }
 0x120   : > { %11309 = vmatprep.subr.bf16.mxu1 %v12675_v51  ;;  %11448 = vmatpush3.bf16.msra.mxu0 %v12679_v6  ;;  %v527_v13 = vld [vmem:[%s13617_s25 + $0x208] sm:$0xff]  ;;  %v528_v14 = vld [vmem:[%s13617_s25 + $0x210] sm:$0xff]  ;;  %v529_v16 = vld [vmem:[%s13617_s25 + $0x218] sm:$0xff] }
 0x121   : > { %11126 = vmatmul.mubr.msk.f32.gmra.mrb[12].mxu0 %vm598_vm0, %v475_v17  ;;  %v12680_v15 = vld [vmem:[#allocation8 + $0x58] sm:$0xff]   ;;  %v533_v20 = vld [vmem:[%s13617_s25 + $0x238] sm:$0xff]  ;;  %v536_v23 = vld [vmem:[%s13617_s25 + $0x250] sm:$0xff] }
 0x122   : > { %11128 = vmatprep.mubr.msk.f32.mxu0 %vm598_vm0, %v476_v19  ;;  %v530_v17 = vld [vmem:[%s13617_s25 + $0x220] sm:$0xff]  ;;  %11449 = vmatprep.subr.bf16.mxu0 %v12680_v15  ;;  %v531_v18 = vld [vmem:[%s13617_s25 + $0x228] sm:$0xff]  ;;  %v532_v19 = vld [vmem:[%s13617_s25 + $0x230] sm:$0xff] }
 0x123   : > { %11310 = vmatpush3.bf16.msra.mxu1 %v12675_v51  ;;  %v12686_v51 = vld [vmem:[#allocation11 + $0x4] ss:$20 sps:$4 sm:$0xff]   ;;  %v567_v59 = vld [vmem:[%s13617_s25 + $0x348] sm:$0xff] }
 0x124   : > { %11311 = vmatprep.subr.bf16.mxu1 %v12676_v54  ;;  %11450 = vmatpush3.bf16.msra.mxu0 %v12680_v15  ;;  %v572_v6 = vld [vmem:[%s13617_s25 + $0x370] sm:$0xff]  ;;  %v574_v15 = vld [vmem:[%s13617_s25 + $0x380] sm:$0xff] }
 0x125   : > { %11129 = vmatmul.mubr.msk.f32.gmra.mrb[14].mxu0 %vm598_vm0, %v477_v21  ;;  %v534_v21 = vld [vmem:[%s13617_s25 + $0x240] sm:$0xff] }
 0x126   : > { %11131 = vmatprep.mubr.msk.f32.mxu0 %vm598_vm0, %v478_v22  ;;  %v535_v22 = vld [vmem:[%s13617_s25 + $0x248] sm:$0xff] }
 0x127   : > { %11312 = vmatpush3.bf16.msra.mxu1 %v12676_v54  ;;  %v562_v54 = vld [vmem:[%s13617_s25 + $0x320] sm:$0xff] }
 0x128   : > { %11313 = vmatprep.subr.bf16.mxu1 %v12677_v56 }
 0x129   : > { %11132 = vmatmul.mubr.msk.f32.gmra.mrb[16].mxu0 %vm598_vm0, %v479_v24  ;;  %v12681_v24 = vld [vmem:[#allocation8 + $0x60] sm:$0xff]  }
 0x12a   : > { %11134 = vmatprep.mubr.msk.f32.mxu0 %vm598_vm0, %v480_v25  ;;  %v537_v25 = vld [vmem:[%s13617_s25 + $0x258] sm:$0xff]  ;;  %11451 = vmatprep.subr.bf16.mxu0 %v12681_v24 }
 0x12b   : > { %11314 = vmatpush3.bf16.msra.mxu1 %v12677_v56  ;;  %11452 = vmatpush3.bf16.msra.mxu0 %v12681_v24  ;;  %v564_v56 = vld [vmem:[%s13617_s25 + $0x330] sm:$0xff] }
 0x12c   : > { %3781 = vmatprep.subr.bf16.mxu1 %v12686_v51 }
 0x12d   : > { %11135 = vmatmul.mubr.msk.f32.gmra.mrb[18].mxu0 %vm598_vm0, %v481_v26  ;;  %v538_v26 = vld [vmem:[%s13617_s25 + $0x260] sm:$0xff] }
 0x12e   : > { %11137 = vmatprep.mubr.msk.f32.mxu0 %vm598_vm0, %v482_v27  ;;  %v539_v27 = vld [vmem:[%s13617_s25 + $0x268] sm:$0xff] }
 0x131   : > { %11138 = vmatmul.mubr.msk.f32.gmra.mrb[20].mxu0 %vm598_vm0, %v483_v28  ;;  %v540_v28 = vld [vmem:[%s13617_s25 + $0x270] sm:$0xff] }
 0x132   : > { %11140 = vmatprep.mubr.msk.f32.mxu0 %vm598_vm0, %v484_v29  ;;  %v541_v29 = vld [vmem:[%s13617_s25 + $0x278] sm:$0xff] }
 0x135   : > { %11141 = vmatmul.mubr.msk.f32.gmra.mrb[22].mxu0 %vm598_vm0, %v485_v30  ;;  %v542_v30 = vld [vmem:[%s13617_s25 + $0x280] sm:$0xff] }
 0x136   : > { %11143 = vmatprep.mubr.msk.f32.mxu0 %vm598_vm0, %v486_v31  ;;  %v543_v31 = vld [vmem:[%s13617_s25 + $0x288] sm:$0xff] }
 0x139   : > { %11144 = vmatmul.mubr.msk.f32.gmra.mrb[24].mxu0 %vm598_vm0, %v487_v32  ;;  %v544_v32 = vld [vmem:[%s13617_s25 + $0x290] sm:$0xff] }
 0x13a   : > { %11146 = vmatprep.mubr.msk.f32.mxu0 %vm598_vm0, %v488_v33  ;;  %v12682_v33 = vld [vmem:[#allocation8 + $0x68] sm:$0xff]  }
 0x13b   : > { %11453 = vmatprep.subr.bf16.mxu0 %v12682_v33 }
 0x13c   : > { %11454 = vmatpush3.bf16.msra.mxu0 %v12682_v33 }
 0x13d   : > { %11147 = vmatmul.mubr.msk.f32.gmra.mrb[26].mxu0 %vm598_vm0, %v489_v34  ;;  %v545_v34 = vld [vmem:[%s13617_s25 + $0x298] sm:$0xff] }
 0x13e   : > { %11149 = vmatprep.mubr.msk.f32.mxu0 %vm598_vm0, %v490_v35  ;;  %v546_v35 = vld [vmem:[%s13617_s25 + $0x2a0] sm:$0xff] }
 0x141   : > { %11150 = vmatmul.mubr.msk.f32.gmra.mrb[28].mxu0 %vm598_vm0, %v491_v36  ;;  %v547_v36 = vld [vmem:[%s13617_s25 + $0x2a8] sm:$0xff] }
 0x142   : > { %11152 = vmatprep.mubr.msk.f32.mxu0 %vm598_vm0, %v492_v37  ;;  %v548_v37 = vld [vmem:[%s13617_s25 + $0x2b0] sm:$0xff] }
 0x145   : > { %11153 = vmatmul.mubr.msk.f32.gmra.mrb[30].mxu0 %vm598_vm0, %v493_v38  ;;  %v549_v38 = vld [vmem:[%s13617_s25 + $0x2b8] sm:$0xff] }
 0x146   : > { %11155 = vmatprep.mubr.msk.f32.mxu0 %vm598_vm0, %v494_v39  ;;  %v550_v39 = vld [vmem:[%s13617_s25 + $0x2c0] sm:$0xff] }
 0x149   : > { %11156 = vmatmul.mubr.msk.f32.gmra.mrb[32].mxu0 %vm598_vm0, %v495_v40  ;;  %v551_v40 = vld [vmem:[%s13617_s25 + $0x2c8] sm:$0xff] }
 0x14a   : > { %11158 = vmatprep.mubr.msk.f32.mxu0 %vm598_vm0, %v496_v41  ;;  %v552_v41 = vld [vmem:[%s13617_s25 + $0x2d0] sm:$0xff] }
 0x14d   : > { %11159 = vmatmul.mubr.msk.f32.gmra.mrb[34].mxu0 %vm598_vm0, %v497_v42  ;;  %v12683_v42 = vld [vmem:[#allocation8 + $0x70] sm:$0xff]  }
 0x14e   : > { %11161 = vmatprep.mubr.msk.f32.mxu0 %vm598_vm0, %v498_v43  ;;  %v553_v43 = vld [vmem:[%s13617_s25 + $0x2d8] sm:$0xff]  ;;  %11455 = vmatprep.subr.bf16.mxu0 %v12683_v42 }
 0x14f   : > { %11456 = vmatpush3.bf16.msra.mxu0 %v12683_v42 }
 0x151   : > { %11162 = vmatmul.mubr.msk.f32.gmra.mrb[36].mxu0 %vm598_vm0, %v499_v44  ;;  %v554_v44 = vld [vmem:[%s13617_s25 + $0x2e0] sm:$0xff] }
 0x152   : > { %11164 = vmatprep.mubr.msk.f32.mxu0 %vm598_vm0, %v500_v45  ;;  %v555_v45 = vld [vmem:[%s13617_s25 + $0x2e8] sm:$0xff] }
 0x155   : > { %11165 = vmatmul.mubr.msk.f32.gmra.mrb[38].mxu0 %vm598_vm0, %v501_v46  ;;  %v556_v46 = vld [vmem:[%s13617_s25 + $0x2f0] sm:$0xff] }
 0x156   : > { %11167 = vmatprep.mubr.msk.f32.mxu0 %vm598_vm0, %v502_v47  ;;  %v557_v47 = vld [vmem:[%s13617_s25 + $0x2f8] sm:$0xff] }
 0x159   : > { %11168 = vmatmul.mubr.msk.f32.gmra.mrb[40].mxu0 %vm598_vm0, %v503_v48  ;;  %v558_v48 = vld [vmem:[%s13617_s25 + $0x300] sm:$0xff] }
 0x15a   : > { %11170 = vmatprep.mubr.msk.f32.mxu0 %vm598_vm0, %v504_v49  ;;  %v559_v49 = vld [vmem:[%s13617_s25 + $0x308] sm:$0xff] }
 0x15d   : > { %11171 = vmatmul.mubr.msk.f32.gmra.mrb[42].mxu0 %vm598_vm0, %v505_v50  ;;  %v560_v50 = vld [vmem:[%s13617_s25 + $0x310] sm:$0xff] }
 0x15e   : > { %11173 = vmatprep.mubr.msk.f32.mxu0 %vm598_vm0, %v506_v52  ;;  %v12687_v52 = vld [vmem:[#allocation8 + $0x78] sm:$0xff]  }
 0x15f   : > { %11457 = vmatprep.subr.bf16.mxu0 %v12687_v52 }
 0x160   : > { %11458 = vmatpush3.bf16.msra.mxu0 %v12687_v52  ;;  %v582_v52 = vld [vmem:[%s13617_s25 + $0x3c0] sm:$0xff] }
 0x161   : > { %11174 = vmatmul.mubr.msk.f32.gmra.mrb[44].mxu0 %vm598_vm0, %v507_v53  ;;  %v561_v53 = vld [vmem:[%s13617_s25 + $0x318] sm:$0xff] }
 0x162   : > { %11176 = vmatprep.mubr.msk.f32.mxu0 %vm598_vm0, %v508_v55  ;;  %v563_v55 = vld [vmem:[%s13617_s25 + $0x328] sm:$0xff] }
 0x165   : > { %11177 = vmatmul.mubr.msk.f32.gmra.mrb[46].mxu0 %vm598_vm0, %v509_v57  ;;  %v565_v57 = vld [vmem:[%s13617_s25 + $0x338] sm:$0xff] }
 0x166   : > { %11179 = vmatprep.mubr.msk.f32.mxu0 %vm598_vm0, %v510_v58  ;;  %v566_v58 = vld [vmem:[%s13617_s25 + $0x340] sm:$0xff] }
 0x169   : > { %11180 = vmatmul.mubr.msk.f32.gmra.mrb[48].mxu0 %vm598_vm0, %v511_v60  ;;  %v568_v60 = vld [vmem:[%s13617_s25 + $0x350] sm:$0xff] }
 0x16a   : > { %11182 = vmatprep.mubr.msk.f32.mxu0 %vm598_vm0, %v512_v61  ;;  %v13852_v61 = vld [vmem:[#allocation7] ss:$0 sm:$0xff] }
 0x16d   : > { %11183 = vmatmul.mubr.msk.f32.gmra.mrb[50].mxu0 %vm598_vm0, %v513_v62  ;;  %v569_v62 = vld [vmem:[%s13617_s25 + $0x358] sm:$0xff] }
 0x16e   : > { %11185 = vmatprep.mubr.msk.f32.mxu0 %vm598_vm0, %v514_v63  ;;  %v570_v63 = vld [vmem:[%s13617_s25 + $0x360] sm:$0xff] }
 0x171   : > { %11186 = vmatmul.mubr.msk.f32.gmra.mrb[52].mxu0 %vm598_vm0, %v515_v0 }
 0x172   : > { %11188 = vmatprep.mubr.msk.f32.mxu0 %vm598_vm0, %v516_v1 }
 0x175   : > { %11189 = vmatmul.mubr.msk.f32.gmra.mrb[54].mxu0 %vm598_vm0, %v517_v2 }
 0x176   : > { %11191 = vmatprep.mubr.msk.f32.mxu0 %vm598_vm0, %v518_v3 }
 0x179   : > { %11192 = vmatmul.mubr.msk.f32.gmra.mrb[56].mxu0 %vm598_vm0, %v519_v4  ;;  %v571_v4 = vld [vmem:[%s13617_s25 + $0x368] sm:$0xff] }
 0x17a   : > { %11194 = vmatprep.mubr.msk.f32.mxu0 %vm598_vm0, %v520_v5 }
 0x17d   : > { %11195 = vmatmul.mubr.msk.f32.gmra.mrb[58].mxu0 %vm598_vm0, %v521_v7 }
 0x17e   : > { %11197 = vmatprep.mubr.msk.f32.mxu0 %vm598_vm0, %v522_v8 }
 0x181   : > { %11198 = vmatmul.mubr.msk.f32.gmra.mrb[60].mxu0 %vm598_vm0, %v523_v9 }
 0x182   : > { %11200 = vmatprep.mubr.msk.f32.mxu0 %vm598_vm0, %v524_v10 }
 0x185   : > { %11201 = vmatmul.mubr.msk.f32.gmra.mrb[62].mxu0 %vm598_vm0, %v525_v11 }
 0x186   : > { %11203 = vmatprep.mubr.msk.f32.mxu0 %vm598_vm0, %v526_v12 }
 0x189   : > { %11204 = vmatmul.mubr.msk.f32.gmra.mrb[64].mxu0 %vm598_vm0, %v527_v13  ;;  %v573_v13 = vld [vmem:[%s13617_s25 + $0x378] sm:$0xff] }
 0x18a   : > { %11206 = vmatprep.mubr.msk.f32.mxu0 %vm598_vm0, %v528_v14 }
 0x18d   : > { %11207 = vmatmul.mubr.msk.f32.gmra.mrb[66].mxu0 %vm598_vm0, %v529_v16 }
 0x18e   : > { %11209 = vmatprep.mubr.msk.f32.mxu0 %vm598_vm0, %v530_v17 }
 0x191   : > { %11210 = vmatmul.mubr.msk.f32.gmra.mrb[68].mxu0 %vm598_vm0, %v531_v18 }
 0x192   : > { %11212 = vmatprep.mubr.msk.f32.mxu0 %vm598_vm0, %v532_v19 }
 0x195   : > { %11213 = vmatmul.mubr.msk.f32.gmra.mrb[70].mxu0 %vm598_vm0, %v533_v20  ;;  %v12684_v20 = vld [vmem:[#allocation11] ss:$20 sps:$4 sm:$0xff]  }
 0x196   : > { %11215 = vmatprep.mubr.msk.f32.mxu0 %vm598_vm0, %v534_v21 }
 0x199   : > { %11216 = vmatmul.mubr.msk.f32.gmra.mrb[72].mxu0 %vm598_vm0, %v535_v22 }
 0x19a   : > { %11218 = vmatprep.mubr.msk.f32.mxu0 %vm598_vm0, %v536_v23  ;;  %v575_v23 = vld [vmem:[%s13617_s25 + $0x388] sm:$0xff] }
 0x19d   : > { %11219 = vmatmul.mubr.msk.f32.gmra.mrb[74].mxu0 %vm598_vm0, %v537_v25  ;;  %v576_v25 = vld [vmem:[%s13617_s25 + $0x390] sm:$0xff] }
 0x19e   : > { %11221 = vmatprep.mubr.msk.f32.mxu0 %vm598_vm0, %v538_v26 }
 0x1a1   : > { %11222 = vmatmul.mubr.msk.f32.gmra.mrb[76].mxu0 %vm598_vm0, %v539_v27 }
 0x1a2   : > { %11224 = vmatprep.mubr.msk.f32.mxu0 %vm598_vm0, %v540_v28 }
 0x1a5   : > { %11225 = vmatmul.mubr.msk.f32.gmra.mrb[78].mxu0 %vm598_vm0, %v541_v29 }
 0x1a6   : > { %11227 = vmatprep.mubr.msk.f32.mxu0 %vm598_vm0, %v542_v30 }
 0x1a9   : > { %11228 = vmatmul.mubr.msk.f32.gmra.mrb[80].mxu0 %vm598_vm0, %v543_v31 }
 0x1aa   : > { %11230 = vmatprep.mubr.msk.f32.mxu0 %vm598_vm0, %v544_v32  ;;  %v577_v32 = vld [vmem:[%s13617_s25 + $0x398] sm:$0xff] }
 0x1ad   : > { %11231 = vmatmul.mubr.msk.f32.gmra.mrb[82].mxu0 %vm598_vm0, %v545_v34  ;;  %v578_v34 = vld [vmem:[%s13617_s25 + $0x3a0] sm:$0xff] }
 0x1ae   : > { %11233 = vmatprep.mubr.msk.f32.mxu0 %vm598_vm0, %v546_v35 }
 0x1b1   : > { %11234 = vmatmul.mubr.msk.f32.gmra.mrb[84].mxu0 %vm598_vm0, %v547_v36 }
 0x1b2   : > { %11236 = vmatprep.mubr.msk.f32.mxu0 %vm598_vm0, %v548_v37 }
 0x1b5   : > { %11237 = vmatmul.mubr.msk.f32.gmra.mrb[86].mxu0 %vm598_vm0, %v549_v38 }
 0x1b6   : > { %11239 = vmatprep.mubr.msk.f32.mxu0 %vm598_vm0, %v550_v39 }
 0x1b9   : > { %11240 = vmatmul.mubr.msk.f32.gmra.mrb[88].mxu0 %vm598_vm0, %v551_v40 }
 0x1ba   : > { %11242 = vmatprep.mubr.msk.f32.mxu0 %vm598_vm0, %v552_v41  ;;  %v579_v41 = vld [vmem:[%s13617_s25 + $0x3a8] sm:$0xff] }
 0x1bd   : > { %11243 = vmatmul.mubr.msk.f32.gmra.mrb[90].mxu0 %vm598_vm0, %v553_v43  ;;  %v580_v43 = vld [vmem:[%s13617_s25 + $0x3b0] sm:$0xff] }
 0x1be   : > { %11245 = vmatprep.mubr.msk.f32.mxu0 %vm598_vm0, %v554_v44 }
 0x1c1   : > { %11246 = vmatmul.mubr.msk.f32.gmra.mrb[92].mxu0 %vm598_vm0, %v555_v45 }
 0x1c2   : > { %11248 = vmatprep.mubr.msk.f32.mxu0 %vm598_vm0, %v556_v46 }
 0x1c5   : > { %11249 = vmatmul.mubr.msk.f32.gmra.mrb[94].mxu0 %vm598_vm0, %v557_v47 }
 0x1c6   : > { %11251 = vmatprep.mubr.msk.f32.mxu0 %vm598_vm0, %v558_v48 }
 0x1c9   : > { %11252 = vmatmul.mubr.msk.f32.gmra.mrb[96].mxu0 %vm598_vm0, %v559_v49 }
 0x1ca   : > { %11254 = vmatprep.mubr.msk.f32.mxu0 %vm598_vm0, %v560_v50  ;;  %v581_v50 = vld [vmem:[%s13617_s25 + $0x3b8] sm:$0xff] }
 0x1cd   : > { %11255 = vmatmul.mubr.msk.f32.gmra.mrb[98].mxu0 %vm598_vm0, %v561_v53 }
 0x1ce   : > { %11257 = vmatprep.mubr.msk.f32.mxu0 %vm598_vm0, %v562_v54 }
 0x1d1   : > { %11258 = vmatmul.mubr.msk.f32.gmra.mrb[100].mxu0 %vm598_vm0, %v563_v55 }
 0x1d2   : > { %11260 = vmatprep.mubr.msk.f32.mxu0 %vm598_vm0, %v564_v56 }
 0x1d5   : > { %11261 = vmatmul.mubr.msk.f32.gmra.mrb[102].mxu0 %vm598_vm0, %v565_v57 }
 0x1d6   : > { %11263 = vmatprep.mubr.msk.f32.mxu0 %vm598_vm0, %v566_v58 }
 0x1d9   : > { %11264 = vmatmul.mubr.msk.f32.gmra.mrb[104].mxu0 %vm598_vm0, %v567_v59  ;;  %v583_v59 = vld [vmem:[%s13617_s25 + $0x3c8] sm:$0xff] }
 0x1da   : > { %11266 = vmatprep.mubr.msk.f32.mxu0 %vm598_vm0, %v568_v60 }
 0x1dc   : > { %v11109_v0 = vpop.f32.mrb[0].mxu0 }
 0x1dd   : > { %v1049_v1 = vpop.f32.mrb[1].mxu0  ;;  %v1055_v2 = vadd.f32 %v11109_v0, %v13852_v61  ;;  %11267 = vmatmul.mubr.msk.f32.gmra.mrb[106].mxu0 %vm598_vm0, %v569_v62  ;;  %v584_v62 = vld [vmem:[%s13617_s25 + $0x3d0] sm:$0xff] }
 0x1de   : > { %v1050_v3 = vadd.f32 %v13852_v61, %v1049_v1  ;;  %11269 = vmatprep.mubr.msk.f32.mxu0 %vm598_vm0, %v570_v63 }
 0x1df   : > { %v1689_v5 = vmax.f32 %v1055_v2, 0.0 }
 0x1e0   : > { %v11112_v7 = vpop.f32.mrb[2].mxu0  ;;  %v1688_v8 = vmax.f32 %v1050_v3, 0.0 }
 0x1e1   : > { %v1059_v9 = vpop.f32.mrb[3].mxu0  ;;  %v1065_v10 = vadd.f32 %v11112_v7, %v13852_v61  ;;  %11270 = vmatmul.mubr.msk.f32.gmra.mrb[108].mxu0 %vm598_vm0, %v571_v4  ;;  %v586_v7 = vld [vmem:[%s13617_s25 + $0x3e0] sm:$0xff] }
 0x1e2   : > { %v1816_v11 = vpack.c.bf16 %v1689_v5, %v1688_v8  ;;  %v1060_v12 = vadd.f32 %v13852_v61, %v1059_v9  ;;  %11272 = vmatprep.mubr.msk.f32.mxu0 %vm598_vm0, %v572_v6  ;;  %v585_v5 = vld [vmem:[%s13617_s25 + $0x3d8] sm:$0xff] }
 0x1e3   : > { %v1691_v14 = vmax.f32 %v1065_v10, 0.0 }
 0x1e4   : > { %11315 = vmatprep.mubr.bf16.mxu1 %v1816_v11  ;;  %v11115_v16 = vpop.f32.mrb[4].mxu0  ;;  %v1690_v17 = vmax.f32 %v1060_v12, 0.0 }
 0x1e5   : > { %v1069_v18 = vpop.f32.mrb[5].mxu0  ;;  %v1075_v19 = vadd.f32 %v11115_v16, %v13852_v61  ;;  %11273 = vmatmul.mubr.msk.f32.gmra.mrb[110].mxu0 %vm598_vm0, %v573_v13  ;;  %v588_v16 = vld [vmem:[%s13617_s25 + $0x3f0] sm:$0xff] }
 0x1e6   : > { %v1817_v21 = vpack.c.bf16 %v1691_v14, %v1690_v17  ;;  %v1070_v22 = vadd.f32 %v13852_v61, %v1069_v18  ;;  %11275 = vmatprep.mubr.msk.f32.mxu0 %vm598_vm0, %v574_v15  ;;  %v587_v14 = vld [vmem:[%s13617_s25 + $0x3e8] sm:$0xff] }
 0x1e7   : > { %v1693_v24 = vmax.f32 %v1075_v19, 0.0 }
 0x1e8   : > { %v11118_v26 = vpop.f32.mrb[6].mxu0  ;;  %11316 = vmatmul.mubr.bf16.vlgmr.msra.gmra.mrb[0].mxu1 %v1817_v21  ;;  %v1692_v27 = vmax.f32 %v1070_v22, 0.0 }
 0x1e9   : > { %v1079_v28 = vpop.f32.mrb[7].mxu0  ;;  %v1085_v29 = vadd.f32 %v11118_v26, %v13852_v61  ;;  %11276 = vmatmul.mubr.msk.f32.gmra.mrb[112].mxu0 %vm598_vm0, %v575_v23  ;;  %3782 = vmatpush1.bf16.msra.mxu1 %v12684_v20  ;;  %v589_v23 = vld [vmem:[%s13617_s25 + $0x3f8] sm:$0xff] }
 0x1ea   : > { %v1818_v30 = vpack.c.bf16 %v1693_v24, %v1692_v27  ;;  %v1080_v31 = vadd.f32 %v13852_v61, %v1079_v28  ;;  %11278 = vmatprep.mubr.msk.f32.mxu0 %vm598_vm0, %v576_v25 }
 0x1eb   : > { %v1695_v33 = vmax.f32 %v1085_v29, 0.0 }
 0x1ec   : > { %11319 = vmatprep.mubr.bf16.mxu1 %v1818_v30  ;;  %v1694_v35 = vmax.f32 %v1080_v31, 0.0  ;;  %v11121_v36 = vpop.f32.mrb[8].mxu0 }
 0x1ed   : > { %v1089_v37 = vpop.f32.mrb[9].mxu0  ;;  %v1095_v38 = vadd.f32 %v11121_v36, %v13852_v61  ;;  %11279 = vmatmul.mubr.msk.f32.gmra.mrb[114].mxu0 %vm598_vm0, %v577_v32 }
 0x1ee   : > { %v1819_v39 = vpack.c.bf16 %v1695_v33, %v1694_v35  ;;  %v1090_v40 = vadd.f32 %v13852_v61, %v1089_v37  ;;  %11281 = vmatprep.mubr.msk.f32.mxu0 %vm598_vm0, %v578_v34 }
 0x1ef   : > { %v1697_v42 = vmax.f32 %v1095_v38, 0.0 }
 0x1f0   : > { %11320 = vmatmul.mubr.bf16.gmra.mrb[4].mxu1 %v1819_v39  ;;  %v11124_v44 = vpop.f32.mrb[10].mxu0  ;;  %v1696_v45 = vmax.f32 %v1090_v40, 0.0 }
 0x1f1   : > { %v1099_v46 = vpop.f32.mrb[11].mxu0  ;;  %v1105_v47 = vadd.f32 %v11124_v44, %v13852_v61  ;;  %11282 = vmatmul.mubr.msk.f32.gmra.mrb[116].mxu0 %vm598_vm0, %v579_v41 }
 0x1f2   : > { %v1820_v48 = vpack.c.bf16 %v1697_v42, %v1696_v45  ;;  %v1100_v49 = vadd.f32 %v13852_v61, %v1099_v46  ;;  %11284 = vmatprep.mubr.msk.f32.mxu0 %vm598_vm0, %v580_v43 }
 0x1f3   : > { %v1699_v51 = vmax.f32 %v1105_v47, 0.0 }
 0x1f4   : > { %11323 = vmatprep.mubr.bf16.mxu1 %v1820_v48  ;;  %v1698_v53 = vmax.f32 %v1100_v49, 0.0  ;;  %v11127_v54 = vpop.f32.mrb[12].mxu0 }
 0x1f5   : > { %v1109_v55 = vpop.f32.mrb[13].mxu0  ;;  %v1115_v56 = vadd.f32 %v11127_v54, %v13852_v61  ;;  %11285 = vmatmul.mubr.msk.f32.gmra.mrb[118].mxu0 %vm598_vm0, %v581_v50 }
 0x1f6   : > { %v1821_v57 = vpack.c.bf16 %v1699_v51, %v1698_v53  ;;  %v1110_v58 = vadd.f32 %v13852_v61, %v1109_v55  ;;  %11287 = vmatprep.mubr.msk.f32.mxu0 %vm598_vm0, %v582_v52 }
 0x1f7   : > { %v1701_v60 = vmax.f32 %v1115_v56, 0.0 }
 0x1f8   : > { %11324 = vmatmul.mubr.bf16.gmra.mrb[8].mxu1 %v1821_v57  ;;  %v11130_v63 = vpop.f32.mrb[14].mxu0  ;;  %v1700_v0 = vmax.f32 %v1110_v58, 0.0 }
 0x1f9   : > { %v1119_v1 = vpop.f32.mrb[15].mxu0  ;;  %v1125_v2 = vadd.f32 %v11130_v63, %v13852_v61  ;;  %11288 = vmatmul.mubr.msk.f32.gmra.mrb[120].mxu0 %vm598_vm0, %v583_v59 }
 0x1fa   : > { %v1822_v3 = vpack.c.bf16 %v1701_v60, %v1700_v0  ;;  %v1120_v4 = vadd.f32 %v13852_v61, %v1119_v1  ;;  %11290 = vmatprep.mubr.msk.f32.mxu0 %vm598_vm0, %v584_v62 }
 0x1fb   : > { %v1703_v6 = vmax.f32 %v1125_v2, 0.0 }
 0x1fc   : > { %11327 = vmatprep.mubr.bf16.mxu1 %v1822_v3  ;;  %v1702_v8 = vmax.f32 %v1120_v4, 0.0  ;;  %v11133_v9 = vpop.f32.mrb[16].mxu0 }
 0x1fd   : > { %v1129_v10 = vpop.f32.mrb[17].mxu0  ;;  %v1135_v11 = vadd.f32 %v11133_v9, %v13852_v61  ;;  %11291 = vmatmul.mubr.msk.f32.gmra.mrb[122].mxu0 %vm598_vm0, %v585_v5 }
 0x1fe   : > { %v1823_v12 = vpack.c.bf16 %v1703_v6, %v1702_v8  ;;  %v1130_v13 = vadd.f32 %v13852_v61, %v1129_v10  ;;  %11293 = vmatprep.mubr.msk.f32.mxu0 %vm598_vm0, %v586_v7 }
 0x1ff   : > { %v1705_v15 = vmax.f32 %v1135_v11, 0.0 }
 0x200   : > { %11328 = vmatmul.mubr.bf16.gmra.mrb[12].mxu1 %v1823_v12  ;;  %v11136_v17 = vpop.f32.mrb[18].mxu0  ;;  %v1704_v18 = vmax.f32 %v1130_v13, 0.0 }
 0x201   : > { %v1139_v19 = vpop.f32.mrb[19].mxu0  ;;  %v1145_v20 = vadd.f32 %v11136_v17, %v13852_v61  ;;  %11294 = vmatmul.mubr.msk.f32.gmra.mrb[124].mxu0 %vm598_vm0, %v587_v14 }
 0x202   : > { %v1824_v21 = vpack.c.bf16 %v1705_v15, %v1704_v18  ;;  %v1140_v22 = vadd.f32 %v13852_v61, %v1139_v19  ;;  %11296 = vmatprep.mubr.msk.f32.mxu0 %vm598_vm0, %v588_v16 }
 0x203   : > { %v1707_v24 = vmax.f32 %v1145_v20, 0.0 }
 0x204   : > { %11331 = vmatprep.mubr.bf16.mxu1 %v1824_v21  ;;  %v1706_v25 = vmax.f32 %v1140_v22, 0.0  ;;  %v11139_v26 = vpop.f32.mrb[20].mxu0 }
 0x205   : > { %v1149_v27 = vpop.f32.mrb[21].mxu0  ;;  %v1155_v28 = vadd.f32 %v11139_v26, %v13852_v61  ;;  %11297 = vmatmul.mubr.msk.f32.gmra.mrb[126].mxu0 %vm598_vm0, %v589_v23 }
 0x206   : > { %v1825_v29 = vpack.c.bf16 %v1707_v24, %v1706_v25  ;;  %v1150_v30 = vadd.f32 %v13852_v61, %v1149_v27 }
 0x207   : > { %v1709_v31 = vmax.f32 %v1155_v28, 0.0 }
 0x208   : > { %11332 = vmatmul.mubr.bf16.gmra.mrb[16].mxu1 %v1825_v29  ;;  %v11142_v32 = vpop.f32.mrb[22].mxu0  ;;  %v1708_v33 = vmax.f32 %v1150_v30, 0.0 }
 0x209   : > { %v1159_v34 = vpop.f32.mrb[23].mxu0  ;;  %v1165_v35 = vadd.f32 %v11142_v32, %v13852_v61 }
 0x20a   : > { %v1826_v36 = vpack.c.bf16 %v1709_v31, %v1708_v33  ;;  %v1160_v37 = vadd.f32 %v13852_v61, %v1159_v34 }
 0x20b   : > { %v1711_v38 = vmax.f32 %v1165_v35, 0.0 }
 0x20c   : > { %11335 = vmatprep.mubr.bf16.mxu1 %v1826_v36  ;;  %v1710_v39 = vmax.f32 %v1160_v37, 0.0  ;;  %v11145_v40 = vpop.f32.mrb[24].mxu0 }
 0x20d   : > { %v1169_v41 = vpop.f32.mrb[25].mxu0  ;;  %v1175_v42 = vadd.f32 %v11145_v40, %v13852_v61 }
 0x20e   : > { %v1827_v43 = vpack.c.bf16 %v1711_v38, %v1710_v39  ;;  %v1170_v44 = vadd.f32 %v13852_v61, %v1169_v41 }
 0x20f   : > { %v1713_v45 = vmax.f32 %v1175_v42, 0.0 }
 0x210   : > { %11336 = vmatmul.mubr.bf16.gmra.mrb[20].mxu1 %v1827_v43  ;;  %v11148_v46 = vpop.f32.mrb[26].mxu0  ;;  %v1712_v47 = vmax.f32 %v1170_v44, 0.0 }
 0x211   : > { %v1179_v48 = vpop.f32.mrb[27].mxu0  ;;  %v1185_v49 = vadd.f32 %v11148_v46, %v13852_v61 }
 0x212   : > { %v1828_v50 = vpack.c.bf16 %v1713_v45, %v1712_v47  ;;  %v1180_v51 = vadd.f32 %v13852_v61, %v1179_v48 }
 0x213   : > { %v1715_v52 = vmax.f32 %v1185_v49, 0.0 }
 0x214   : > { %11339 = vmatprep.mubr.bf16.mxu1 %v1828_v50  ;;  %v1714_v53 = vmax.f32 %v1180_v51, 0.0  ;;  %v11151_v54 = vpop.f32.mrb[28].mxu0 }
 0x215   : > { %v1189_v55 = vpop.f32.mrb[29].mxu0  ;;  %v1195_v56 = vadd.f32 %v11151_v54, %v13852_v61 }
 0x216   : > { %v1829_v57 = vpack.c.bf16 %v1715_v52, %v1714_v53  ;;  %v1190_v58 = vadd.f32 %v13852_v61, %v1189_v55 }
 0x217   : > { %v1717_v59 = vmax.f32 %v1195_v56, 0.0 }
 0x218   : > { %11340 = vmatmul.mubr.bf16.gmra.mrb[24].mxu1 %v1829_v57  ;;  %v11154_v60 = vpop.f32.mrb[30].mxu0  ;;  %v1716_v62 = vmax.f32 %v1190_v58, 0.0 }
 0x219   : > { %v1199_v63 = vpop.f32.mrb[31].mxu0  ;;  %v1205_v0 = vadd.f32 %v11154_v60, %v13852_v61 }
 0x21a   : > { %v1830_v1 = vpack.c.bf16 %v1717_v59, %v1716_v62  ;;  %v1200_v2 = vadd.f32 %v13852_v61, %v1199_v63 }
 0x21b   : > { %v1719_v3 = vmax.f32 %v1205_v0, 0.0 }
 0x21c   : > { %11343 = vmatprep.mubr.bf16.mxu1 %v1830_v1  ;;  %v1718_v4 = vmax.f32 %v1200_v2, 0.0  ;;  %v11157_v5 = vpop.f32.mrb[32].mxu0 }
 0x21d   : > { %v1209_v6 = vpop.f32.mrb[33].mxu0  ;;  %v1215_v7 = vadd.f32 %v11157_v5, %v13852_v61 }
 0x21e   : > { %v1831_v8 = vpack.c.bf16 %v1719_v3, %v1718_v4  ;;  %v1210_v9 = vadd.f32 %v13852_v61, %v1209_v6 }
 0x21f   : > { %v1721_v10 = vmax.f32 %v1215_v7, 0.0 }
 0x220   : > { %11344 = vmatmul.mubr.bf16.gmra.mrb[28].mxu1 %v1831_v8  ;;  %v11160_v11 = vpop.f32.mrb[34].mxu0  ;;  %v1720_v12 = vmax.f32 %v1210_v9, 0.0 }
 0x221   : > { %v1219_v13 = vpop.f32.mrb[35].mxu0  ;;  %v1225_v14 = vadd.f32 %v11160_v11, %v13852_v61  ;;  %v12690_v11 = vld [vmem:[#allocation11 + $0x2c] ss:$20 sps:$4 sm:$0xff]  }
 0x222   : > { %v1832_v15 = vpack.c.bf16 %v1721_v10, %v1720_v12  ;;  %v1220_v16 = vadd.f32 %v13852_v61, %v1219_v13  ;;  %v12688_v10 = vld [vmem:[#allocation11 + $0x28] ss:$20 sps:$4 sm:$0xff]   ;;  %3783 = vmatprep.subr.bf16.mxu1 %v12690_v11 }
 0x223   : > { %v1723_v17 = vmax.f32 %v1225_v14, 0.0  ;;  %3784 = vmatpush1.bf16.msra.mxu1 %v12688_v10 }
 0x224   : > { %11347 = vmatprep.mubr.bf16.mxu1 %v1832_v15  ;;  %v1722_v18 = vmax.f32 %v1220_v16, 0.0  ;;  %v11163_v19 = vpop.f32.mrb[36].mxu0 }
 0x225   : > { %v1229_v20 = vpop.f32.mrb[37].mxu0  ;;  %v1235_v21 = vadd.f32 %v11163_v19, %v13852_v61 }
 0x226   : > { %v1833_v22 = vpack.c.bf16 %v1723_v17, %v1722_v18  ;;  %v1230_v23 = vadd.f32 %v13852_v61, %v1229_v20 }
 0x227   : > { %v1725_v24 = vmax.f32 %v1235_v21, 0.0 }
 0x228   : > { %11348 = vmatmul.mubr.bf16.gmra.mrb[32].mxu1 %v1833_v22  ;;  %v11166_v25 = vpop.f32.mrb[38].mxu0  ;;  %v1724_v26 = vmax.f32 %v1230_v23, 0.0 }
 0x229   : > { %v1239_v27 = vpop.f32.mrb[39].mxu0  ;;  %v1245_v28 = vadd.f32 %v11166_v25, %v13852_v61 }
 0x22a   : > { %v1834_v29 = vpack.c.bf16 %v1725_v24, %v1724_v26  ;;  %v1240_v30 = vadd.f32 %v13852_v61, %v1239_v27 }
 0x22b   : > { %v1727_v31 = vmax.f32 %v1245_v28, 0.0 }
 0x22c   : > { %11351 = vmatprep.mubr.bf16.mxu1 %v1834_v29  ;;  %v1726_v32 = vmax.f32 %v1240_v30, 0.0  ;;  %v11169_v33 = vpop.f32.mrb[40].mxu0 }
 0x22d   : > { %v1249_v34 = vpop.f32.mrb[41].mxu0  ;;  %v1255_v35 = vadd.f32 %v11169_v33, %v13852_v61 }
 0x22e   : > { %v1835_v36 = vpack.c.bf16 %v1727_v31, %v1726_v32  ;;  %v1250_v37 = vadd.f32 %v13852_v61, %v1249_v34 }
 0x22f   : > { %v1729_v38 = vmax.f32 %v1255_v35, 0.0 }
 0x230   : > { %11352 = vmatmul.mubr.bf16.gmra.mrb[36].mxu1 %v1835_v36  ;;  %v11172_v39 = vpop.f32.mrb[42].mxu0  ;;  %v1728_v40 = vmax.f32 %v1250_v37, 0.0 }
 0x231   : > { %v1259_v41 = vpop.f32.mrb[43].mxu0  ;;  %v1265_v42 = vadd.f32 %v11172_v39, %v13852_v61 }
 0x232   : > { %v1836_v43 = vpack.c.bf16 %v1729_v38, %v1728_v40  ;;  %v1260_v44 = vadd.f32 %v13852_v61, %v1259_v41 }
 0x233   : > { %v1731_v45 = vmax.f32 %v1265_v42, 0.0 }
 0x234   : > { %11355 = vmatprep.mubr.bf16.mxu1 %v1836_v43  ;;  %v1730_v46 = vmax.f32 %v1260_v44, 0.0  ;;  %v11175_v47 = vpop.f32.mrb[44].mxu0 }
 0x235   : > { %v1269_v48 = vpop.f32.mrb[45].mxu0  ;;  %v1275_v49 = vadd.f32 %v11175_v47, %v13852_v61  ;;  %v12691_v47 = vld [vmem:[#allocation11 + $0x50] ss:$20 sps:$4 sm:$0xff]  }
 0x236   : > { %v1837_v50 = vpack.c.bf16 %v1731_v45, %v1730_v46  ;;  %v1270_v51 = vadd.f32 %v13852_v61, %v1269_v48  ;;  %v12693_v48 = vld [vmem:[#allocation11 + $0x54] ss:$20 sps:$4 sm:$0xff]  }
 0x237   : > { %v1733_v52 = vmax.f32 %v1275_v49, 0.0  ;;  %3785 = vmatprep.subr.bf16.mxu1 %v12693_v48 }
 0x238   : > { %11356 = vmatmul.mubr.bf16.gmra.mrb[40].mxu1 %v1837_v50  ;;  %v11178_v53 = vpop.f32.mrb[46].mxu0  ;;  %v1732_v54 = vmax.f32 %v1270_v51, 0.0 }
 0x239   : > { %v1279_v55 = vpop.f32.mrb[47].mxu0  ;;  %v1285_v56 = vadd.f32 %v11178_v53, %v13852_v61  ;;  %3786 = vmatpush1.bf16.msra.mxu1 %v12691_v47 }
 0x23a   : > { %v1838_v57 = vpack.c.bf16 %v1733_v52, %v1732_v54  ;;  %v1280_v58 = vadd.f32 %v13852_v61, %v1279_v55 }
 0x23b   : > { %v1735_v59 = vmax.f32 %v1285_v56, 0.0 }
 0x23c   : > { %11359 = vmatprep.mubr.bf16.mxu1 %v1838_v57  ;;  %v1734_v60 = vmax.f32 %v1280_v58, 0.0  ;;  %v11181_v62 = vpop.f32.mrb[48].mxu0 }
 0x23d   : > { %v1289_v63 = vpop.f32.mrb[49].mxu0  ;;  %v1295_v0 = vadd.f32 %v11181_v62, %v13852_v61 }
 0x23e   : > { %v1839_v1 = vpack.c.bf16 %v1735_v59, %v1734_v60  ;;  %v1290_v2 = vadd.f32 %v13852_v61, %v1289_v63 }
 0x23f   : > { %v1737_v3 = vmax.f32 %v1295_v0, 0.0 }
 0x240   : > { %11360 = vmatmul.mubr.bf16.gmra.mrb[44].mxu1 %v1839_v1  ;;  %v11184_v4 = vpop.f32.mrb[50].mxu0  ;;  %v1736_v5 = vmax.f32 %v1290_v2, 0.0 }
 0x241   : > { %v1299_v6 = vpop.f32.mrb[51].mxu0  ;;  %v1305_v7 = vadd.f32 %v11184_v4, %v13852_v61 }
 0x242   : > { %v1840_v8 = vpack.c.bf16 %v1737_v3, %v1736_v5  ;;  %v1300_v9 = vadd.f32 %v13852_v61, %v1299_v6 }
 0x243   : > { %v1739_v12 = vmax.f32 %v1305_v7, 0.0 }
 0x244   : > { %11363 = vmatprep.mubr.bf16.mxu1 %v1840_v8  ;;  %v1738_v13 = vmax.f32 %v1300_v9, 0.0  ;;  %v11187_v14 = vpop.f32.mrb[52].mxu0 }
 0x245   : > { %v1309_v15 = vpop.f32.mrb[53].mxu0  ;;  %v1315_v16 = vadd.f32 %v11187_v14, %v13852_v61  ;;  %v12694_v14 = vld [vmem:[#allocation11 + $0x78] ss:$20 sps:$4 sm:$0xff]  }
 0x246   : > { %v1841_v17 = vpack.c.bf16 %v1739_v12, %v1738_v13  ;;  %v1310_v18 = vadd.f32 %v13852_v61, %v1309_v15  ;;  %v12696_v15 = vld [vmem:[#allocation11 + $0x7c] ss:$20 sps:$4 sm:$0xff]  }
 0x247   : > { %v1741_v19 = vmax.f32 %v1315_v16, 0.0  ;;  %3787 = vmatprep.subr.bf16.mxu1 %v12696_v15 }
 0x248   : > { %11364 = vmatmul.mubr.bf16.gmra.mrb[48].mxu1 %v1841_v17  ;;  %v11190_v20 = vpop.f32.mrb[54].mxu0  ;;  %v1740_v21 = vmax.f32 %v1310_v18, 0.0 }
 0x249   : > { %v1319_v22 = vpop.f32.mrb[55].mxu0  ;;  %v1325_v23 = vadd.f32 %v11190_v20, %v13852_v61  ;;  %3788 = vmatpush1.bf16.msra.mxu1 %v12694_v14 }
 0x24a   : > { %v1842_v24 = vpack.c.bf16 %v1741_v19, %v1740_v21  ;;  %v1320_v25 = vadd.f32 %v13852_v61, %v1319_v22 }
 0x24b   : > { %v1743_v26 = vmax.f32 %v1325_v23, 0.0 }
 0x24c   : > { %11367 = vmatprep.mubr.bf16.mxu1 %v1842_v24  ;;  %v1742_v27 = vmax.f32 %v1320_v25, 0.0  ;;  %v11193_v28 = vpop.f32.mrb[56].mxu0 }
 0x24d   : > { %v1329_v29 = vpop.f32.mrb[57].mxu0  ;;  %v1335_v30 = vadd.f32 %v11193_v28, %v13852_v61 }
 0x24e   : > { %v1843_v31 = vpack.c.bf16 %v1743_v26, %v1742_v27  ;;  %v1330_v32 = vadd.f32 %v13852_v61, %v1329_v29 }
 0x24f   : > { %v1745_v33 = vmax.f32 %v1335_v30, 0.0 }
 0x250   : > { %11368 = vmatmul.mubr.bf16.gmra.mrb[52].mxu1 %v1843_v31  ;;  %v11196_v34 = vpop.f32.mrb[58].mxu0  ;;  %v1744_v35 = vmax.f32 %v1330_v32, 0.0 }
 0x251   : > { %v1339_v36 = vpop.f32.mrb[59].mxu0  ;;  %v1345_v37 = vadd.f32 %v11196_v34, %v13852_v61 }
 0x252   : > { %v1844_v38 = vpack.c.bf16 %v1745_v33, %v1744_v35  ;;  %v1340_v39 = vadd.f32 %v13852_v61, %v1339_v36 }
 0x253   : > { %v1747_v40 = vmax.f32 %v1345_v37, 0.0 }
 0x254   : > { %11371 = vmatprep.mubr.bf16.mxu1 %v1844_v38  ;;  %v1746_v41 = vmax.f32 %v1340_v39, 0.0  ;;  %v11199_v42 = vpop.f32.mrb[60].mxu0 }
 0x255   : > { %v1349_v43 = vpop.f32.mrb[61].mxu0  ;;  %v1355_v44 = vadd.f32 %v11199_v42, %v13852_v61 }
 0x256   : > { %v1845_v45 = vpack.c.bf16 %v1747_v40, %v1746_v41  ;;  %v1350_v46 = vadd.f32 %v13852_v61, %v1349_v43 }
 0x257   : > { %v1749_v49 = vmax.f32 %v1355_v44, 0.0  ;;  %v12697_v44 = vld [vmem:[#allocation11 + $0xa0] ss:$20 sps:$4 sm:$0xff]  }
 0x258   : > { %11372 = vmatmul.mubr.bf16.gmra.mrb[56].mxu1 %v1845_v45  ;;  %v11202_v50 = vpop.f32.mrb[62].mxu0  ;;  %v1748_v51 = vmax.f32 %v1350_v46, 0.0  ;;  %v12699_v45 = vld [vmem:[#allocation11 + $0xa4] ss:$20 sps:$4 sm:$0xff]  }
 0x259   : > { %v1359_v52 = vpop.f32.mrb[63].mxu0  ;;  %v1365_v53 = vadd.f32 %v11202_v50, %v13852_v61  ;;  %3789 = vmatprep.subr.bf16.mxu1 %v12699_v45 }
 0x25a   : > { %v1846_v54 = vpack.c.bf16 %v1749_v49, %v1748_v51  ;;  %v1360_v55 = vadd.f32 %v13852_v61, %v1359_v52  ;;  %3790 = vmatpush1.bf16.msra.mxu1 %v12697_v44 }
 0x25b   : > { %v1751_v56 = vmax.f32 %v1365_v53, 0.0 }
 0x25c   : > { %11375 = vmatprep.mubr.bf16.mxu1 %v1846_v54  ;;  %v1750_v57 = vmax.f32 %v1360_v55, 0.0  ;;  %v11205_v58 = vpop.f32.mrb[64].mxu0 }
 0x25d   : > { %v1369_v59 = vpop.f32.mrb[65].mxu0  ;;  %v1375_v60 = vadd.f32 %v11205_v58, %v13852_v61 }
 0x25e   : > { %v1847_v62 = vpack.c.bf16 %v1751_v56, %v1750_v57  ;;  %v1370_v63 = vadd.f32 %v13852_v61, %v1369_v59 }
 0x25f   : > { %v1753_v0 = vmax.f32 %v1375_v60, 0.0 }
 0x260   : > { %11376 = vmatmul.mubr.bf16.gmra.mrb[60].mxu1 %v1847_v62  ;;  %v11208_v1 = vpop.f32.mrb[66].mxu0  ;;  %v1752_v2 = vmax.f32 %v1370_v63, 0.0 }
 0x261   : > { %v1379_v3 = vpop.f32.mrb[67].mxu0  ;;  %v1385_v4 = vadd.f32 %v11208_v1, %v13852_v61 }
 0x262   : > { %v1848_v5 = vpack.c.bf16 %v1753_v0, %v1752_v2  ;;  %v1380_v6 = vadd.f32 %v13852_v61, %v1379_v3 }
 0x263   : > { %v1755_v7 = vmax.f32 %v1385_v4, 0.0 }
 0x264   : > { %11379 = vmatprep.mubr.bf16.mxu1 %v1848_v5  ;;  %v1754_v8 = vmax.f32 %v1380_v6, 0.0  ;;  %v11211_v9 = vpop.f32.mrb[68].mxu0 }
 0x265   : > { %v1389_v10 = vpop.f32.mrb[69].mxu0  ;;  %v1395_v11 = vadd.f32 %v11211_v9, %v13852_v61 }
 0x266   : > { %v1849_v12 = vpack.c.bf16 %v1755_v7, %v1754_v8  ;;  %v1390_v13 = vadd.f32 %v13852_v61, %v1389_v10 }
 0x267   : > { %v1757_v16 = vmax.f32 %v1395_v11, 0.0  ;;  %v12700_v11 = vld [vmem:[#allocation11 + $0xc8] ss:$20 sps:$4 sm:$0xff]  }
 0x268   : > { %11380 = vmatmul.mubr.bf16.gmra.mrb[64].mxu1 %v1849_v12  ;;  %v11214_v17 = vpop.f32.mrb[70].mxu0  ;;  %v1756_v18 = vmax.f32 %v1390_v13, 0.0  ;;  %v12702_v12 = vld [vmem:[#allocation11 + $0xcc] ss:$20 sps:$4 sm:$0xff]  }
 0x269   : > { %v1399_v19 = vpop.f32.mrb[71].mxu0  ;;  %v1405_v20 = vadd.f32 %v11214_v17, %v13852_v61  ;;  %3791 = vmatprep.subr.bf16.mxu1 %v12702_v12 }
 0x26a   : > { %v1850_v21 = vpack.c.bf16 %v1757_v16, %v1756_v18  ;;  %v1400_v22 = vadd.f32 %v13852_v61, %v1399_v19  ;;  %3792 = vmatpush1.bf16.msra.mxu1 %v12700_v11 }
 0x26b   : > { %v1759_v23 = vmax.f32 %v1405_v20, 0.0 }
 0x26c   : > { %11383 = vmatprep.mubr.bf16.mxu1 %v1850_v21  ;;  %v1758_v24 = vmax.f32 %v1400_v22, 0.0  ;;  %v11217_v25 = vpop.f32.mrb[72].mxu0 }
 0x26d   : > { %v1409_v26 = vpop.f32.mrb[73].mxu0  ;;  %v1415_v27 = vadd.f32 %v11217_v25, %v13852_v61 }
 0x26e   : > { %v1851_v28 = vpack.c.bf16 %v1759_v23, %v1758_v24  ;;  %v1410_v29 = vadd.f32 %v13852_v61, %v1409_v26 }
 0x26f   : > { %v1761_v30 = vmax.f32 %v1415_v27, 0.0 }
 0x270   : > { %11384 = vmatmul.mubr.bf16.gmra.mrb[68].mxu1 %v1851_v28  ;;  %v11220_v31 = vpop.f32.mrb[74].mxu0  ;;  %v1760_v32 = vmax.f32 %v1410_v29, 0.0 }
 0x271   : > { %v1419_v33 = vpop.f32.mrb[75].mxu0  ;;  %v1425_v34 = vadd.f32 %v11220_v31, %v13852_v61 }
 0x272   : > { %v1852_v35 = vpack.c.bf16 %v1761_v30, %v1760_v32  ;;  %v1420_v36 = vadd.f32 %v13852_v61, %v1419_v33 }
 0x273   : > { %v1763_v37 = vmax.f32 %v1425_v34, 0.0 }
 0x274   : > { %11387 = vmatprep.mubr.bf16.mxu1 %v1852_v35  ;;  %v1762_v38 = vmax.f32 %v1420_v36, 0.0  ;;  %v11223_v39 = vpop.f32.mrb[76].mxu0 }
 0x275   : > { %v1429_v40 = vpop.f32.mrb[77].mxu0  ;;  %v1435_v41 = vadd.f32 %v11223_v39, %v13852_v61 }
 0x276   : > { %v1853_v42 = vpack.c.bf16 %v1763_v37, %v1762_v38  ;;  %v1430_v43 = vadd.f32 %v13852_v61, %v1429_v40 }
 0x277   : > { %v1765_v46 = vmax.f32 %v1435_v41, 0.0  ;;  %v12703_v41 = vld [vmem:[#allocation11 + $0xf0] ss:$20 sps:$4 sm:$0xff]  }
 0x278   : > { %11388 = vmatmul.mubr.bf16.gmra.mrb[72].mxu1 %v1853_v42  ;;  %v11226_v47 = vpop.f32.mrb[78].mxu0  ;;  %v1764_v48 = vmax.f32 %v1430_v43, 0.0  ;;  %v12705_v42 = vld [vmem:[#allocation11 + $0xf4] ss:$20 sps:$4 sm:$0xff]  }
 0x279   : > { %v1439_v49 = vpop.f32.mrb[79].mxu0  ;;  %v1445_v50 = vadd.f32 %v11226_v47, %v13852_v61  ;;  %3793 = vmatprep.subr.bf16.mxu1 %v12705_v42 }
 0x27a   : > { %v1854_v51 = vpack.c.bf16 %v1765_v46, %v1764_v48  ;;  %v1440_v52 = vadd.f32 %v13852_v61, %v1439_v49  ;;  %3794 = vmatpush1.bf16.msra.mxu1 %v12703_v41  ;;  %v14007_v41 = vld [vmem:[#allocation10] ss:$0 sm:$0xff] }
 0x27b   : > { %v1767_v53 = vmax.f32 %v1445_v50, 0.0 }
 0x27c   : > { %11391 = vmatprep.mubr.bf16.mxu1 %v1854_v51  ;;  %v1766_v54 = vmax.f32 %v1440_v52, 0.0  ;;  %v11229_v55 = vpop.f32.mrb[80].mxu0 }
 0x27d   : > { %v1449_v56 = vpop.f32.mrb[81].mxu0  ;;  %v1455_v57 = vadd.f32 %v11229_v55, %v13852_v61 }
 0x27e   : > { %v1855_v58 = vpack.c.bf16 %v1767_v53, %v1766_v54  ;;  %v1450_v59 = vadd.f32 %v13852_v61, %v1449_v56 }
 0x27f   : > { %v1769_v60 = vmax.f32 %v1455_v57, 0.0 }
 0x280   : > { %11392 = vmatmul.mubr.bf16.gmra.mrb[76].mxu1 %v1855_v58  ;;  %v11232_v62 = vpop.f32.mrb[82].mxu0  ;;  %v1768_v63 = vmax.f32 %v1450_v59, 0.0 }
 0x281   : > { %v1459_v0 = vpop.f32.mrb[83].mxu0  ;;  %v1465_v1 = vadd.f32 %v11232_v62, %v13852_v61 }
 0x282   : > { %v1856_v2 = vpack.c.bf16 %v1769_v60, %v1768_v63  ;;  %v1460_v3 = vadd.f32 %v13852_v61, %v1459_v0 }
 0x283   : > { %v1771_v4 = vmax.f32 %v1465_v1, 0.0 }
 0x284   : > { %11395 = vmatprep.mubr.bf16.mxu1 %v1856_v2  ;;  %v1770_v5 = vmax.f32 %v1460_v3, 0.0  ;;  %v11235_v6 = vpop.f32.mrb[84].mxu0 }
 0x285   : > { %v1469_v7 = vpop.f32.mrb[85].mxu0  ;;  %v1475_v8 = vadd.f32 %v11235_v6, %v13852_v61 }
 0x286   : > { %v1857_v9 = vpack.c.bf16 %v1771_v4, %v1770_v5  ;;  %v1470_v10 = vadd.f32 %v13852_v61, %v1469_v7 }
 0x287   : > { %v1773_v13 = vmax.f32 %v1475_v8, 0.0  ;;  %v12706_v8 = vld [vmem:[#allocation11 + $0x118] ss:$20 sps:$4 sm:$0xff]  }
 0x288   : > { %11396 = vmatmul.mubr.bf16.gmra.mrb[80].mxu1 %v1857_v9  ;;  %v11238_v14 = vpop.f32.mrb[86].mxu0  ;;  %v1772_v15 = vmax.f32 %v1470_v10, 0.0  ;;  %v12708_v9 = vld [vmem:[#allocation11 + $0x11c] ss:$20 sps:$4 sm:$0xff]  }
 0x289   : > { %v1479_v16 = vpop.f32.mrb[87].mxu0  ;;  %v1485_v17 = vadd.f32 %v11238_v14, %v13852_v61  ;;  %3795 = vmatprep.subr.bf16.mxu1 %v12708_v9 }
 0x28a   : > { %v1858_v18 = vpack.c.bf16 %v1773_v13, %v1772_v15  ;;  %v1480_v19 = vadd.f32 %v13852_v61, %v1479_v16  ;;  %3796 = vmatpush1.bf16.msra.mxu1 %v12706_v8 }
 0x28b   : > { %v1775_v20 = vmax.f32 %v1485_v17, 0.0 }
 0x28c   : > { %11399 = vmatprep.mubr.bf16.mxu1 %v1858_v18  ;;  %v1774_v21 = vmax.f32 %v1480_v19, 0.0  ;;  %v11241_v22 = vpop.f32.mrb[88].mxu0 }
 0x28d   : > { %v1489_v23 = vpop.f32.mrb[89].mxu0  ;;  %v1495_v24 = vadd.f32 %v11241_v22, %v13852_v61 }
 0x28e   : > { %v1859_v25 = vpack.c.bf16 %v1775_v20, %v1774_v21  ;;  %v1490_v26 = vadd.f32 %v13852_v61, %v1489_v23 }
 0x28f   : > { %v1777_v27 = vmax.f32 %v1495_v24, 0.0 }
 0x290   : > { %11400 = vmatmul.mubr.bf16.gmra.mrb[84].mxu1 %v1859_v25  ;;  %v11244_v28 = vpop.f32.mrb[90].mxu0  ;;  %v1776_v29 = vmax.f32 %v1490_v26, 0.0 }
 0x291   : > { %v1499_v30 = vpop.f32.mrb[91].mxu0  ;;  %v1505_v31 = vadd.f32 %v11244_v28, %v13852_v61 }
 0x292   : > { %v1860_v32 = vpack.c.bf16 %v1777_v27, %v1776_v29  ;;  %v1500_v33 = vadd.f32 %v13852_v61, %v1499_v30 }
 0x293   : > { %v1779_v34 = vmax.f32 %v1505_v31, 0.0 }
 0x294   : > { %11403 = vmatprep.mubr.bf16.mxu1 %v1860_v32  ;;  %v1778_v35 = vmax.f32 %v1500_v33, 0.0  ;;  %v11247_v36 = vpop.f32.mrb[92].mxu0 }
 0x295   : > { %v1509_v37 = vpop.f32.mrb[93].mxu0  ;;  %v1515_v38 = vadd.f32 %v11247_v36, %v13852_v61 }
 0x296   : > { %v1861_v39 = vpack.c.bf16 %v1779_v34, %v1778_v35  ;;  %v1510_v40 = vadd.f32 %v13852_v61, %v1509_v37 }
 0x297   : > { %v1781_v43 = vmax.f32 %v1515_v38, 0.0 }
 0x298   : > { %11404 = vmatmul.mubr.bf16.gmra.mrb[88].mxu1 %v1861_v39  ;;  %v11250_v44 = vpop.f32.mrb[94].mxu0  ;;  %v1780_v45 = vmax.f32 %v1510_v40, 0.0 }
 0x299   : > { %v1519_v46 = vpop.f32.mrb[95].mxu0  ;;  %v1525_v47 = vadd.f32 %v11250_v44, %v13852_v61 }
 0x29a   : > { %v1862_v48 = vpack.c.bf16 %v1781_v43, %v1780_v45  ;;  %v1520_v49 = vadd.f32 %v13852_v61, %v1519_v46  ;;  %v14009_v43 = vld [vmem:[#allocation7] ss:$0 sm:$0xff] }
 0x29b   : > { %v1783_v50 = vmax.f32 %v1525_v47, 0.0 }
 0x29c   : > { %11407 = vmatprep.mubr.bf16.mxu1 %v1862_v48  ;;  %v1782_v51 = vmax.f32 %v1520_v49, 0.0  ;;  %v11253_v52 = vpop.f32.mrb[96].mxu0 }
 0x29d   : > { %v1529_v53 = vpop.f32.mrb[97].mxu0  ;;  %v1535_v54 = vadd.f32 %v11253_v52, %v13852_v61 }
 0x29e   : > { %v1863_v55 = vpack.c.bf16 %v1783_v50, %v1782_v51  ;;  %v1530_v56 = vadd.f32 %v13852_v61, %v1529_v53 }
 0x29f   : > { %v1785_v57 = vmax.f32 %v1535_v54, 0.0 }
 0x2a0   : > { %11408 = vmatmul.mubr.bf16.gmra.mrb[92].mxu1 %v1863_v55  ;;  %v11256_v58 = vpop.f32.mrb[98].mxu0  ;;  %v1784_v59 = vmax.f32 %v1530_v56, 0.0 }
 0x2a1   : > { %v1539_v60 = vpop.f32.mrb[99].mxu0  ;;  %v1545_v62 = vadd.f32 %v11256_v58, %v13852_v61 }
 0x2a2   : > { %v1864_v63 = vpack.c.bf16 %v1785_v57, %v1784_v59  ;;  %v1540_v0 = vadd.f32 %v13852_v61, %v1539_v60 }
 0x2a3   : > { %v1787_v1 = vmax.f32 %v1545_v62, 0.0 }
 0x2a4   : > { %v11259_v2 = vpop.f32.mrb[100].mxu0  ;;  %11411 = vmatprep.mubr.bf16.mxu1 %v1864_v63  ;;  %v1786_v3 = vmax.f32 %v1540_v0, 0.0 }
 0x2a5   : > { %v1549_v4 = vpop.f32.mrb[101].mxu0  ;;  %v1555_v5 = vadd.f32 %v11259_v2, %v13852_v61 }
 0x2a6   : > { %v1865_v6 = vpack.c.bf16 %v1787_v1, %v1786_v3  ;;  %v1550_v7 = vadd.f32 %v13852_v61, %v1549_v4 }
 0x2a7   : > { %v1789_v10 = vmax.f32 %v1555_v5, 0.0 }
 0x2a8   : > { %v11262_v11 = vpop.f32.mrb[102].mxu0  ;;  %11412 = vmatmul.mubr.bf16.gmra.mrb[96].mxu1 %v1865_v6  ;;  %v1788_v12 = vmax.f32 %v1550_v7, 0.0 }
 0x2a9   : > { %v1559_v13 = vpop.f32.mrb[103].mxu0  ;;  %v1565_v14 = vadd.f32 %v11262_v11, %v13852_v61 }
 0x2aa   : > { %v1866_v15 = vpack.c.bf16 %v1789_v10, %v1788_v12  ;;  %v1560_v16 = vadd.f32 %v13852_v61, %v1559_v13 }
 0x2ab   : > { %v1791_v17 = vmax.f32 %v1565_v14, 0.0 }
 0x2ac   : > { %v11265_v18 = vpop.f32.mrb[104].mxu0  ;;  %11415 = vmatprep.mubr.bf16.mxu1 %v1866_v15  ;;  %v1790_v19 = vmax.f32 %v1560_v16, 0.0 }
 0x2ad   : > { %v1569_v20 = vpop.f32.mrb[105].mxu0  ;;  %v1575_v21 = vadd.f32 %v11265_v18, %v13852_v61 }
 0x2ae   : > { %v1867_v22 = vpack.c.bf16 %v1791_v17, %v1790_v19  ;;  %v1570_v23 = vadd.f32 %v13852_v61, %v1569_v20 }
 0x2af   : > { %v1793_v24 = vmax.f32 %v1575_v21, 0.0 }
 0x2b0   : > { %v11268_v25 = vpop.f32.mrb[106].mxu0  ;;  %11416 = vmatmul.mubr.bf16.gmra.mrb[100].mxu1 %v1867_v22  ;;  %v1792_v26 = vmax.f32 %v1570_v23, 0.0 }
 0x2b1   : > { %v1579_v27 = vpop.f32.mrb[107].mxu0  ;;  %v1585_v28 = vadd.f32 %v11268_v25, %v13852_v61 }
 0x2b2   : > { %v1868_v29 = vpack.c.bf16 %v1793_v24, %v1792_v26  ;;  %v1580_v30 = vadd.f32 %v13852_v61, %v1579_v27 }
 0x2b3   : > { %v1795_v31 = vmax.f32 %v1585_v28, 0.0 }
 0x2b4   : > { %v11271_v32 = vpop.f32.mrb[108].mxu0  ;;  %11419 = vmatprep.mubr.bf16.mxu1 %v1868_v29  ;;  %v1794_v33 = vmax.f32 %v1580_v30, 0.0 }
 0x2b5   : > { %v1589_v34 = vpop.f32.mrb[109].mxu0  ;;  %v1595_v35 = vadd.f32 %v11271_v32, %v13852_v61 }
 0x2b6   : > { %v1869_v36 = vpack.c.bf16 %v1795_v31, %v1794_v33  ;;  %v1590_v37 = vadd.f32 %v13852_v61, %v1589_v34 }
 0x2b7   : > { %v1797_v38 = vmax.f32 %v1595_v35, 0.0 }
 0x2b8   : > { %v11274_v39 = vpop.f32.mrb[110].mxu0  ;;  %11420 = vmatmul.mubr.bf16.gmra.mrb[104].mxu1 %v1869_v36  ;;  %v1796_v40 = vmax.f32 %v1590_v37, 0.0 }
 0x2b9   : > { %v1599_v42 = vpop.f32.mrb[111].mxu0  ;;  %v1605_v44 = vadd.f32 %v14009_v43, %v11274_v39 }
 0x2ba   : > { %v1870_v45 = vpack.c.bf16 %v1797_v38, %v1796_v40  ;;  %v1600_v46 = vadd.f32 %v14009_v43, %v1599_v42 }
 0x2bb   : > { %v11317_v47 = vpop.f32.mrb[0].mxu1  ;;  %v1799_v48 = vmax.f32 %v1605_v44, 0.0 }
 0x2bc   : > { %v1994_v49 = vadd.f32 %v11317_v47, %v14007_v41  ;;  %v1985_v50 = vpop.f32.mrb[1].mxu1  ;;  %v11277_v61 = vpop.f32.mrb[112].mxu0  ;;  %11423 = vmatprep.mubr.bf16.mxu1 %v1870_v45  ;;  %v1798_v51 = vmax.f32 %v1600_v46, 0.0 }
 0x2bd   : > { %v1986_v52 = vadd.f32 %v14007_v41, %v1985_v50  ;;  %v11318_v53 = vpop.f32.mrb[2].mxu1  ;;  %v1609_v54 = vpop.f32.mrb[113].mxu0  ;;  %v1615_v55 = vadd.f32 %v14009_v43, %v11277_v61 }
 0x2be   : > { %v1997_v56 = vadd.f32 %v11318_v53, %v14007_v41  ;;  %v1988_v57 = vpop.f32.mrb[3].mxu1  ;;  %v1871_v58 = vpack.c.bf16 %v1799_v48, %v1798_v51  ;;  %v1610_v59 = vadd.f32 %v14009_v43, %v1609_v54  ;;  %v2498_v63 = vmax.f32 %v1994_v49, 0.0 }
 0x2bf   : > { %v1989_v60 = vadd.f32 %v14007_v41, %v1988_v57  ;;  %v1801_v62 = vmax.f32 %v1615_v55, 0.0  ;;  %v2496_v3 = vmax.f32 %v1986_v52, 0.0 }
 0x2c0   : > { %v2499_v0 = vmax.f32 %v1997_v56, 0.0  ;;  %v11280_v1 = vpop.f32.mrb[114].mxu0  ;;  %11424 = vmatmul.mubr.bf16.gmra.mrb[108].mxu1 %v1871_v58  ;;  %v1800_v2 = vmax.f32 %v1610_v59, 0.0 }
 0x2c1   : > { %v2497_v4 = vmax.f32 %v1989_v60, 0.0  ;;  %v1619_v5 = vpop.f32.mrb[115].mxu0  ;;  %v1625_v6 = vadd.f32 %v14009_v43, %v11280_v1 }
 0x2c2   : > { %v2625_v7 = vpack.c.bf16 %v2499_v0, %v2498_v63  ;;  %v1872_v8 = vpack.c.bf16 %v1801_v62, %v1800_v2  ;;  %v1620_v9 = vadd.f32 %v14009_v43, %v1619_v5 }
 0x2c3   : > { %v11321_v10 = vpop.f32.mrb[4].mxu1  ;;  %v2624_v11 = vpack.c.bf16 %v2497_v4, %v2496_v3  ;;  %v1803_v12 = vmax.f32 %v1625_v6, 0.0 }
 0x2c4   : > { %v2010_v13 = vadd.f32 %v11321_v10, %v14007_v41  ;;  %v2001_v14 = vpop.f32.mrb[5].mxu1  ;;  %v11283_v15 = vpop.f32.mrb[116].mxu0  ;;  %11427 = vmatprep.mubr.bf16.mxu1 %v1872_v8  ;;  %v1802_v16 = vmax.f32 %v1620_v9, 0.0 }
 0x2c5   : > { %v2002_v17 = vadd.f32 %v14007_v41, %v2001_v14  ;;  %v11322_v18 = vpop.f32.mrb[6].mxu1  ;;  %11459 = vmatprep.mubr.bf16.mxu0 %v2624_v11  ;;  %v1629_v19 = vpop.f32.mrb[117].mxu0  ;;  %v1635_v20 = vadd.f32 %v14009_v43, %v11283_v15 }
 0x2c6   : > { %v2502_v21 = vmax.f32 %v2010_v13, 0.0  ;;  %v2013_v22 = vadd.f32 %v11322_v18, %v14007_v41  ;;  %v2004_v23 = vpop.f32.mrb[7].mxu1  ;;  %11460 = vmatmul.mubr.bf16.vlgmr.msra.gmra.mrb[128].mxu0 %v2625_v7  ;;  %v1873_v24 = vpack.c.bf16 %v1803_v12, %v1802_v16  ;;  %v1630_v25 = vadd.f32 %v14009_v43, %v1629_v19 }
 0x2c7   : > { %v2500_v26 = vmax.f32 %v2002_v17, 0.0  ;;  %v2005_v27 = vadd.f32 %v14007_v41, %v2004_v23  ;;  %v1805_v28 = vmax.f32 %v1635_v20, 0.0 }
 0x2c8   : > { %v2503_v29 = vmax.f32 %v2013_v22, 0.0  ;;  %v11286_v30 = vpop.f32.mrb[118].mxu0  ;;  %11428 = vmatmul.mubr.bf16.gmra.mrb[112].mxu1 %v1873_v24  ;;  %v1804_v31 = vmax.f32 %v1630_v25, 0.0 }
 0x2c9   : > { %v2501_v32 = vmax.f32 %v2005_v27, 0.0  ;;  %v1639_v33 = vpop.f32.mrb[119].mxu0  ;;  %v1645_v34 = vadd.f32 %v14009_v43, %v11286_v30 }
 0x2ca   : > { %v2627_v35 = vpack.c.bf16 %v2503_v29, %v2502_v21  ;;  %v1874_v36 = vpack.c.bf16 %v1805_v28, %v1804_v31  ;;  %v1640_v37 = vadd.f32 %v14009_v43, %v1639_v33 }
 0x2cb   : > { %v2626_v38 = vpack.c.bf16 %v2501_v32, %v2500_v26  ;;  %v11325_v39 = vpop.f32.mrb[8].mxu1  ;;  %v1807_v40 = vmax.f32 %v1645_v34, 0.0 }
 0x2cc   : > { %v2026_v42 = vadd.f32 %v11325_v39, %v14007_v41  ;;  %v2017_v44 = vpop.f32.mrb[9].mxu1  ;;  %v11289_v45 = vpop.f32.mrb[120].mxu0  ;;  %11431 = vmatprep.mubr.bf16.mxu1 %v1874_v36  ;;  %v1806_v46 = vmax.f32 %v1640_v37, 0.0 }
 0x2cd   : > { %11463 = vmatprep.mubr.bf16.mxu0 %v2626_v38  ;;  %v2018_v47 = vadd.f32 %v14007_v41, %v2017_v44  ;;  %v11326_v48 = vpop.f32.mrb[10].mxu1  ;;  %v1649_v49 = vpop.f32.mrb[121].mxu0  ;;  %v1655_v50 = vadd.f32 %v14009_v43, %v11289_v45 }
 0x2ce   : > { %11464 = vmatmul.mubr.bf16.gmra.mrb[132].mxu0 %v2627_v35  ;;  %v2506_v61 = vmax.f32 %v2026_v42, 0.0  ;;  %v2029_v51 = vadd.f32 %v11326_v48, %v14007_v41  ;;  %v2020_v52 = vpop.f32.mrb[11].mxu1  ;;  %v1875_v53 = vpack.c.bf16 %v1807_v40, %v1806_v46  ;;  %v1650_v54 = vadd.f32 %v14009_v43, %v1649_v49 }
 0x2cf   : > { %v2504_v55 = vmax.f32 %v2018_v47, 0.0  ;;  %v2021_v56 = vadd.f32 %v14007_v41, %v2020_v52  ;;  %v1809_v57 = vmax.f32 %v1655_v50, 0.0 }
 0x2d0   : > { %v2507_v58 = vmax.f32 %v2029_v51, 0.0  ;;  %v11292_v59 = vpop.f32.mrb[122].mxu0  ;;  %11432 = vmatmul.mubr.bf16.gmra.mrb[116].mxu1 %v1875_v53  ;;  %v1808_v60 = vmax.f32 %v1650_v54, 0.0 }
 0x2d1   : > { %v2505_v62 = vmax.f32 %v2021_v56, 0.0  ;;  %v1659_v63 = vpop.f32.mrb[123].mxu0  ;;  %v1665_v0 = vadd.f32 %v14009_v43, %v11292_v59 }
 0x2d2   : > { %v2629_v1 = vpack.c.bf16 %v2507_v58, %v2506_v61  ;;  %v1876_v2 = vpack.c.bf16 %v1809_v57, %v1808_v60  ;;  %v1660_v3 = vadd.f32 %v14009_v43, %v1659_v63 }
 0x2d3   : > { %v2628_v4 = vpack.c.bf16 %v2505_v62, %v2504_v55  ;;  %v11329_v5 = vpop.f32.mrb[12].mxu1  ;;  %v1811_v6 = vmax.f32 %v1665_v0, 0.0 }
 0x2d4   : > { %v2042_v7 = vadd.f32 %v11329_v5, %v14007_v41  ;;  %v2033_v8 = vpop.f32.mrb[13].mxu1  ;;  %v11295_v9 = vpop.f32.mrb[124].mxu0  ;;  %11435 = vmatprep.mubr.bf16.mxu1 %v1876_v2  ;;  %v1810_v10 = vmax.f32 %v1660_v3, 0.0 }
 0x2d5   : > { %11467 = vmatprep.mubr.bf16.mxu0 %v2628_v4  ;;  %v2034_v11 = vadd.f32 %v14007_v41, %v2033_v8  ;;  %v11330_v12 = vpop.f32.mrb[14].mxu1  ;;  %v1669_v13 = vpop.f32.mrb[125].mxu0  ;;  %v1675_v14 = vadd.f32 %v14009_v43, %v11295_v9 }
 0x2d6   : > { %11468 = vmatmul.mubr.bf16.gmra.mrb[136].mxu0 %v2629_v1  ;;  %v2510_v15 = vmax.f32 %v2042_v7, 0.0  ;;  %v2045_v16 = vadd.f32 %v11330_v12, %v14007_v41  ;;  %v2036_v17 = vpop.f32.mrb[15].mxu1  ;;  %v1877_v18 = vpack.c.bf16 %v1811_v6, %v1810_v10  ;;  %v1670_v19 = vadd.f32 %v14009_v43, %v1669_v13 }
 0x2d7   : > { %v2508_v20 = vmax.f32 %v2034_v11, 0.0  ;;  %v2037_v21 = vadd.f32 %v14007_v41, %v2036_v17  ;;  %v1813_v22 = vmax.f32 %v1675_v14, 0.0 }
 0x2d8   : > { %v2511_v23 = vmax.f32 %v2045_v16, 0.0  ;;  %v11298_v24 = vpop.f32.mrb[126].mxu0  ;;  %11436 = vmatmul.mubr.bf16.gmra.mrb[120].mxu1 %v1877_v18  ;;  %v1812_v25 = vmax.f32 %v1670_v19, 0.0 }
 0x2d9   : > { %v2509_v26 = vmax.f32 %v2037_v21, 0.0  ;;  %v1679_v27 = vpop.f32.mrb[127].mxu0  ;;  %v1685_v28 = vadd.f32 %v14009_v43, %v11298_v24 }
 0x2da   : > { %v2631_v29 = vpack.c.bf16 %v2511_v23, %v2510_v15  ;;  %v1878_v30 = vpack.c.bf16 %v1813_v22, %v1812_v25  ;;  %v1680_v31 = vadd.f32 %v14009_v43, %v1679_v27 }
 0x2db   : > { %v2630_v32 = vpack.c.bf16 %v2509_v26, %v2508_v20  ;;  %v11333_v33 = vpop.f32.mrb[16].mxu1  ;;  %v1815_v34 = vmax.f32 %v1685_v28, 0.0 }
 0x2dc   : > { %v2058_v35 = vadd.f32 %v11333_v33, %v14007_v41  ;;  %v2049_v36 = vpop.f32.mrb[17].mxu1  ;;  %11439 = vmatprep.mubr.bf16.mxu1 %v1878_v30  ;;  %v1814_v37 = vmax.f32 %v1680_v31, 0.0 }
 0x2dd   : > { %11471 = vmatprep.mubr.bf16.mxu0 %v2630_v32  ;;  %v2050_v38 = vadd.f32 %v14007_v41, %v2049_v36  ;;  %v11334_v39 = vpop.f32.mrb[18].mxu1 }
 0x2de   : > { %11472 = vmatmul.mubr.bf16.gmra.mrb[140].mxu0 %v2631_v29  ;;  %v2514_v40 = vmax.f32 %v2058_v35, 0.0  ;;  %v2061_v42 = vadd.f32 %v11334_v39, %v14007_v41  ;;  %v2052_v44 = vpop.f32.mrb[19].mxu1  ;;  %v1879_v45 = vpack.c.bf16 %v1815_v34, %v1814_v37 }
 0x2df   : > { %v2512_v46 = vmax.f32 %v2050_v38, 0.0  ;;  %v2053_v43 = vadd.f32 %v14007_v41, %v2052_v44 }
 0x2e0   : > { %v2515_v47 = vmax.f32 %v2061_v42, 0.0  ;;  %11440 = vmatmul.mubr.bf16.gmra.mrb[124].mxu1 %v1879_v45 }
 0x2e1   : > { %v2513_v48 = vmax.f32 %v2053_v43, 0.0 }
 0x2e2   : > { %v2633_v49 = vpack.c.bf16 %v2515_v47, %v2514_v40 }
 0x2e3   : > { %v2632_v50 = vpack.c.bf16 %v2513_v48, %v2512_v46  ;;  %v11337_v61 = vpop.f32.mrb[20].mxu1 }
 0x2e4   : > { %v2074_v51 = vadd.f32 %v11337_v61, %v14007_v41  ;;  %v2065_v52 = vpop.f32.mrb[21].mxu1 }
 0x2e5   : > { %11475 = vmatprep.mubr.bf16.mxu0 %v2632_v50  ;;  %v2066_v53 = vadd.f32 %v14007_v41, %v2065_v52  ;;  %v11338_v54 = vpop.f32.mrb[22].mxu1 }
 0x2e6   : > { %11476 = vmatmul.mubr.bf16.gmra.mrb[144].mxu0 %v2633_v49  ;;  %v2518_v55 = vmax.f32 %v2074_v51, 0.0  ;;  %v2077_v56 = vadd.f32 %v11338_v54, %v14007_v41  ;;  %v2068_v57 = vpop.f32.mrb[23].mxu1 }
 0x2e7   : > { %v2516_v58 = vmax.f32 %v2066_v53, 0.0  ;;  %v2069_v59 = vadd.f32 %v14007_v41, %v2068_v57 }
 0x2e8   : > { %v2519_v60 = vmax.f32 %v2077_v56, 0.0 }
 0x2e9   : > { %v2517_v62 = vmax.f32 %v2069_v59, 0.0 }
 0x2ea   : > { %v2635_v63 = vpack.c.bf16 %v2519_v60, %v2518_v55 }
 0x2eb   : > { %v2634_v0 = vpack.c.bf16 %v2517_v62, %v2516_v58  ;;  %v11341_v1 = vpop.f32.mrb[24].mxu1 }
 0x2ec   : > { %v2090_v2 = vadd.f32 %v11341_v1, %v14007_v41  ;;  %v2081_v3 = vpop.f32.mrb[25].mxu1 }
 0x2ed   : > { %11479 = vmatprep.mubr.bf16.mxu0 %v2634_v0  ;;  %v2082_v4 = vadd.f32 %v14007_v41, %v2081_v3  ;;  %v11342_v5 = vpop.f32.mrb[26].mxu1 }
 0x2ee   : > { %11480 = vmatmul.mubr.bf16.gmra.mrb[148].mxu0 %v2635_v63  ;;  %v2522_v6 = vmax.f32 %v2090_v2, 0.0  ;;  %v2093_v7 = vadd.f32 %v11342_v5, %v14007_v41  ;;  %v2084_v8 = vpop.f32.mrb[27].mxu1 }
 0x2ef   : > { %v2520_v9 = vmax.f32 %v2082_v4, 0.0  ;;  %v2085_v10 = vadd.f32 %v14007_v41, %v2084_v8 }
 0x2f0   : > { %v2523_v11 = vmax.f32 %v2093_v7, 0.0 }
 0x2f1   : > { %v2521_v12 = vmax.f32 %v2085_v10, 0.0 }
 0x2f2   : > { %v2637_v13 = vpack.c.bf16 %v2523_v11, %v2522_v6 }
 0x2f3   : > { %v2636_v14 = vpack.c.bf16 %v2521_v12, %v2520_v9  ;;  %v11345_v15 = vpop.f32.mrb[28].mxu1 }
 0x2f4   : > { %v2106_v16 = vadd.f32 %v11345_v15, %v14007_v41  ;;  %v2097_v17 = vpop.f32.mrb[29].mxu1 }
 0x2f5   : > { %11483 = vmatprep.mubr.bf16.mxu0 %v2636_v14  ;;  %v2098_v18 = vadd.f32 %v14007_v41, %v2097_v17  ;;  %v11346_v19 = vpop.f32.mrb[30].mxu1 }
 0x2f6   : > { %11484 = vmatmul.mubr.bf16.gmra.mrb[152].mxu0 %v2637_v13  ;;  %v2526_v20 = vmax.f32 %v2106_v16, 0.0  ;;  %v2109_v21 = vadd.f32 %v11346_v19, %v14007_v41  ;;  %v2100_v22 = vpop.f32.mrb[31].mxu1 }
 0x2f7   : > { %v2524_v23 = vmax.f32 %v2098_v18, 0.0  ;;  %v2101_v24 = vadd.f32 %v14007_v41, %v2100_v22 }
 0x2f8   : > { %v2527_v25 = vmax.f32 %v2109_v21, 0.0 }
 0x2f9   : > { %v2525_v26 = vmax.f32 %v2101_v24, 0.0 }
 0x2fa   : > { %v2639_v27 = vpack.c.bf16 %v2527_v25, %v2526_v20 }
 0x2fb   : > { %v2638_v28 = vpack.c.bf16 %v2525_v26, %v2524_v23  ;;  %v11349_v29 = vpop.f32.mrb[32].mxu1 }
 0x2fc   : > { %v2122_v30 = vadd.f32 %v11349_v29, %v14007_v41  ;;  %v2113_v31 = vpop.f32.mrb[33].mxu1 }
 0x2fd   : > { %11487 = vmatprep.mubr.bf16.mxu0 %v2638_v28  ;;  %v2114_v32 = vadd.f32 %v14007_v41, %v2113_v31  ;;  %v11350_v33 = vpop.f32.mrb[34].mxu1 }
 0x2fe   : > { %11488 = vmatmul.mubr.bf16.gmra.mrb[156].mxu0 %v2639_v27  ;;  %v2530_v34 = vmax.f32 %v2122_v30, 0.0  ;;  %v2125_v35 = vadd.f32 %v11350_v33, %v14007_v41  ;;  %v2116_v36 = vpop.f32.mrb[35].mxu1 }
 0x2ff   : > { %v2528_v37 = vmax.f32 %v2114_v32, 0.0  ;;  %v2117_v38 = vadd.f32 %v14007_v41, %v2116_v36  ;;  %v12711_v36 = vld [vmem:[#allocation11 + $0xc] ss:$20 sps:$4 sm:$0xff]  }
 0x300   : > { %v2531_v39 = vmax.f32 %v2125_v35, 0.0  ;;  %v16645_v35 = vmov 0   ;;  %4454 = vmatprep.subr.bf16.mxu1 %v12711_v36 }
 0x301   : > { %v2529_v40 = vmax.f32 %v2117_v38, 0.0  ;;  %3813 = vmatprep.mubr.bf16.mxu1 %v16645_v35 }
 0x302   : > { %v2641_v42 = vpack.c.bf16 %v2531_v39, %v2530_v34 }
 0x303   : > { %v2640_v44 = vpack.c.bf16 %v2529_v40, %v2528_v37  ;;  %v11353_v45 = vpop.f32.mrb[36].mxu1 }
 0x304   : > { %v2138_v46 = vadd.f32 %v11353_v45, %v14007_v41  ;;  %v2129_v43 = vpop.f32.mrb[37].mxu1 }
 0x305   : > { %11491 = vmatprep.mubr.bf16.mxu0 %v2640_v44  ;;  %v2130_v47 = vadd.f32 %v14007_v41, %v2129_v43  ;;  %v11354_v48 = vpop.f32.mrb[38].mxu1 }
 0x306   : > { %11492 = vmatmul.mubr.bf16.gmra.mrb[160].mxu0 %v2641_v42  ;;  %v2534_v49 = vmax.f32 %v2138_v46, 0.0  ;;  %v2141_v50 = vadd.f32 %v11354_v48, %v14007_v41  ;;  %v2132_v61 = vpop.f32.mrb[39].mxu1 }
 0x307   : > { %v2532_v51 = vmax.f32 %v2130_v47, 0.0  ;;  %v2133_v52 = vadd.f32 %v14007_v41, %v2132_v61 }
 0x308   : > { %v2535_v53 = vmax.f32 %v2141_v50, 0.0 }
 0x309   : > { %v2533_v54 = vmax.f32 %v2133_v52, 0.0 }
 0x30a   : > { %v2643_v55 = vpack.c.bf16 %v2535_v53, %v2534_v49 }
 0x30b   : > { %v2642_v56 = vpack.c.bf16 %v2533_v54, %v2532_v51  ;;  %v11357_v57 = vpop.f32.mrb[40].mxu1 }
 0x30c   : > { %v2154_v58 = vadd.f32 %v11357_v57, %v14007_v41  ;;  %v2145_v59 = vpop.f32.mrb[41].mxu1 }
 0x30d   : > { %11495 = vmatprep.mubr.bf16.mxu0 %v2642_v56  ;;  %v2146_v60 = vadd.f32 %v14007_v41, %v2145_v59  ;;  %v11358_v62 = vpop.f32.mrb[42].mxu1 }
 0x30e   : > { %11496 = vmatmul.mubr.bf16.gmra.mrb[164].mxu0 %v2643_v55  ;;  %v2538_v63 = vmax.f32 %v2154_v58, 0.0  ;;  %v2157_v0 = vadd.f32 %v11358_v62, %v14007_v41  ;;  %v2148_v1 = vpop.f32.mrb[43].mxu1 }
 0x30f   : > { %v2536_v2 = vmax.f32 %v2146_v60, 0.0  ;;  %v2149_v3 = vadd.f32 %v14007_v41, %v2148_v1 }
 0x310   : > { %v2539_v4 = vmax.f32 %v2157_v0, 0.0 }
 0x311   : > { %v2537_v5 = vmax.f32 %v2149_v3, 0.0 }
 0x312   : > { %v2645_v6 = vpack.c.bf16 %v2539_v4, %v2538_v63 }
 0x313   : > { %v2644_v7 = vpack.c.bf16 %v2537_v5, %v2536_v2  ;;  %v11361_v8 = vpop.f32.mrb[44].mxu1 }
 0x314   : > { %v2170_v9 = vadd.f32 %v11361_v8, %v14007_v41  ;;  %v2161_v10 = vpop.f32.mrb[45].mxu1 }
 0x315   : > { %11499 = vmatprep.mubr.bf16.mxu0 %v2644_v7  ;;  %v2162_v11 = vadd.f32 %v14007_v41, %v2161_v10  ;;  %v11362_v12 = vpop.f32.mrb[46].mxu1 }
 0x316   : > { %11500 = vmatmul.mubr.bf16.gmra.mrb[168].mxu0 %v2645_v6  ;;  %v2542_v13 = vmax.f32 %v2170_v9, 0.0  ;;  %v2173_v14 = vadd.f32 %v11362_v12, %v14007_v41  ;;  %v2164_v15 = vpop.f32.mrb[47].mxu1 }
 0x317   : > { %v2540_v16 = vmax.f32 %v2162_v11, 0.0  ;;  %v2165_v17 = vadd.f32 %v14007_v41, %v2164_v15 }
 0x318   : > { %v2543_v18 = vmax.f32 %v2173_v14, 0.0 }
 0x319   : > { %v2541_v19 = vmax.f32 %v2165_v17, 0.0 }
 0x31a   : > { %v2647_v20 = vpack.c.bf16 %v2543_v18, %v2542_v13 }
 0x31b   : > { %v2646_v21 = vpack.c.bf16 %v2541_v19, %v2540_v16  ;;  %v11365_v22 = vpop.f32.mrb[48].mxu1 }
 0x31c   : > { %v2186_v23 = vadd.f32 %v11365_v22, %v14007_v41  ;;  %v2177_v24 = vpop.f32.mrb[49].mxu1 }
 0x31d   : > { %11503 = vmatprep.mubr.bf16.mxu0 %v2646_v21  ;;  %v2178_v25 = vadd.f32 %v14007_v41, %v2177_v24  ;;  %v11366_v26 = vpop.f32.mrb[50].mxu1 }
 0x31e   : > { %11504 = vmatmul.mubr.bf16.gmra.mrb[172].mxu0 %v2647_v20  ;;  %v2546_v27 = vmax.f32 %v2186_v23, 0.0  ;;  %v2189_v28 = vadd.f32 %v11366_v26, %v14007_v41  ;;  %v2180_v29 = vpop.f32.mrb[51].mxu1 }
 0x31f   : > { %v2544_v30 = vmax.f32 %v2178_v25, 0.0  ;;  %v2181_v31 = vadd.f32 %v14007_v41, %v2180_v29 }
 0x320   : > { %v2547_v32 = vmax.f32 %v2189_v28, 0.0 }
 0x321   : > { %v2545_v33 = vmax.f32 %v2181_v31, 0.0 }
 0x322   : > { %v2649_v34 = vpack.c.bf16 %v2547_v32, %v2546_v27 }
 0x323   : > { %v2648_v37 = vpack.c.bf16 %v2545_v33, %v2544_v30  ;;  %v11369_v38 = vpop.f32.mrb[52].mxu1 }
 0x324   : > { %v2202_v39 = vadd.f32 %v11369_v38, %v14007_v41  ;;  %v2193_v40 = vpop.f32.mrb[53].mxu1 }
 0x325   : > { %11507 = vmatprep.mubr.bf16.mxu0 %v2648_v37  ;;  %v2194_v42 = vadd.f32 %v14007_v41, %v2193_v40  ;;  %v11370_v44 = vpop.f32.mrb[54].mxu1 }
 0x326   : > { %11508 = vmatmul.mubr.bf16.gmra.mrb[176].mxu0 %v2649_v34  ;;  %v2550_v45 = vmax.f32 %v2202_v39, 0.0  ;;  %v2205_v46 = vadd.f32 %v11370_v44, %v14007_v41  ;;  %v2196_v43 = vpop.f32.mrb[55].mxu1 }
 0x327   : > { %v2548_v47 = vmax.f32 %v2194_v42, 0.0  ;;  %v2197_v48 = vadd.f32 %v14007_v41, %v2196_v43 }
 0x328   : > { %v2551_v49 = vmax.f32 %v2205_v46, 0.0 }
 0x329   : > { %v2549_v50 = vmax.f32 %v2197_v48, 0.0 }
 0x32a   : > { %v2651_v61 = vpack.c.bf16 %v2551_v49, %v2550_v45 }
 0x32b   : > { %v2650_v51 = vpack.c.bf16 %v2549_v50, %v2548_v47  ;;  %v11373_v52 = vpop.f32.mrb[56].mxu1 }
 0x32c   : > { %v2218_v53 = vadd.f32 %v11373_v52, %v14007_v41  ;;  %v2209_v54 = vpop.f32.mrb[57].mxu1 }
 0x32d   : > { %11511 = vmatprep.mubr.bf16.mxu0 %v2650_v51  ;;  %v2210_v55 = vadd.f32 %v14007_v41, %v2209_v54  ;;  %v11374_v56 = vpop.f32.mrb[58].mxu1 }
 0x32e   : > { %11512 = vmatmul.mubr.bf16.gmra.mrb[180].mxu0 %v2651_v61  ;;  %v2554_v57 = vmax.f32 %v2218_v53, 0.0  ;;  %v2221_v58 = vadd.f32 %v11374_v56, %v14007_v41  ;;  %v2212_v59 = vpop.f32.mrb[59].mxu1 }
 0x32f   : > { %v2552_v60 = vmax.f32 %v2210_v55, 0.0  ;;  %v2213_v62 = vadd.f32 %v14007_v41, %v2212_v59 }
 0x330   : > { %v2555_v63 = vmax.f32 %v2221_v58, 0.0 }
 0x331   : > { %v2553_v0 = vmax.f32 %v2213_v62, 0.0 }
 0x332   : > { %v2653_v1 = vpack.c.bf16 %v2555_v63, %v2554_v57 }
 0x333   : > { %v2652_v2 = vpack.c.bf16 %v2553_v0, %v2552_v60  ;;  %v11377_v3 = vpop.f32.mrb[60].mxu1 }
 0x334   : > { %v2234_v4 = vadd.f32 %v11377_v3, %v14007_v41  ;;  %v2225_v5 = vpop.f32.mrb[61].mxu1 }
 0x335   : > { %11515 = vmatprep.mubr.bf16.mxu0 %v2652_v2  ;;  %v2226_v6 = vadd.f32 %v14007_v41, %v2225_v5  ;;  %v11378_v7 = vpop.f32.mrb[62].mxu1 }
 0x336   : > { %11516 = vmatmul.mubr.bf16.gmra.mrb[184].mxu0 %v2653_v1  ;;  %v2558_v8 = vmax.f32 %v2234_v4, 0.0  ;;  %v2237_v9 = vadd.f32 %v11378_v7, %v14007_v41  ;;  %v2228_v10 = vpop.f32.mrb[63].mxu1 }
 0x337   : > { %v2556_v11 = vmax.f32 %v2226_v6, 0.0  ;;  %v2229_v12 = vadd.f32 %v14007_v41, %v2228_v10 }
 0x338   : > { %v2559_v13 = vmax.f32 %v2237_v9, 0.0 }
 0x339   : > { %v2557_v14 = vmax.f32 %v2229_v12, 0.0 }
 0x33a   : > { %v2655_v15 = vpack.c.bf16 %v2559_v13, %v2558_v8 }
 0x33b   : > { %v2654_v16 = vpack.c.bf16 %v2557_v14, %v2556_v11  ;;  %v11381_v17 = vpop.f32.mrb[64].mxu1 }
 0x33c   : > { %v2250_v18 = vadd.f32 %v11381_v17, %v14007_v41  ;;  %v2241_v19 = vpop.f32.mrb[65].mxu1 }
 0x33d   : > { %11519 = vmatprep.mubr.bf16.mxu0 %v2654_v16  ;;  %v2242_v20 = vadd.f32 %v14007_v41, %v2241_v19  ;;  %v11382_v21 = vpop.f32.mrb[66].mxu1 }
 0x33e   : > { %11520 = vmatmul.mubr.bf16.gmra.mrb[188].mxu0 %v2655_v15  ;;  %v2562_v22 = vmax.f32 %v2250_v18, 0.0  ;;  %v2253_v23 = vadd.f32 %v11382_v21, %v14007_v41  ;;  %v2244_v24 = vpop.f32.mrb[67].mxu1 }
 0x33f   : > { %v2560_v25 = vmax.f32 %v2242_v20, 0.0  ;;  %v2245_v26 = vadd.f32 %v14007_v41, %v2244_v24 }
 0x340   : > { %v2563_v27 = vmax.f32 %v2253_v23, 0.0 }
 0x341   : > { %v2561_v28 = vmax.f32 %v2245_v26, 0.0 }
 0x342   : > { %v2657_v29 = vpack.c.bf16 %v2563_v27, %v2562_v22 }
 0x343   : > { %v2656_v30 = vpack.c.bf16 %v2561_v28, %v2560_v25  ;;  %v11385_v31 = vpop.f32.mrb[68].mxu1 }
 0x344   : > { %v2266_v32 = vadd.f32 %v11385_v31, %v14007_v41  ;;  %v2257_v33 = vpop.f32.mrb[69].mxu1 }
 0x345   : > { %11523 = vmatprep.mubr.bf16.mxu0 %v2656_v30  ;;  %v2258_v34 = vadd.f32 %v14007_v41, %v2257_v33  ;;  %v11386_v36 = vpop.f32.mrb[70].mxu1 }
 0x346   : > { %11524 = vmatmul.mubr.bf16.gmra.mrb[192].mxu0 %v2657_v29  ;;  %v2269_v37 = vadd.f32 %v11386_v36, %v14007_v41  ;;  %v2260_v38 = vpop.f32.mrb[71].mxu1  ;;  %v2566_v39 = vmax.f32 %v2266_v32, 0.0 }
 0x347   : > { %v2564_v40 = vmax.f32 %v2258_v34, 0.0  ;;  %v2261_v42 = vadd.f32 %v14007_v41, %v2260_v38 }
 0x348   : > { %v2567_v44 = vmax.f32 %v2269_v37, 0.0 }
 0x349   : > { %v2565_v45 = vmax.f32 %v2261_v42, 0.0 }
 0x34a   : > { %v2659_v43 = vpack.c.bf16 %v2567_v44, %v2566_v39 }
 0x34b   : > { %v2658_v46 = vpack.c.bf16 %v2565_v45, %v2564_v40  ;;  %v11389_v47 = vpop.f32.mrb[72].mxu1 }
 0x34c   : > { %v2282_v48 = vadd.f32 %v11389_v47, %v14007_v41  ;;  %v2273_v49 = vpop.f32.mrb[73].mxu1 }
 0x34d   : > { %11527 = vmatprep.mubr.bf16.mxu0 %v2658_v46  ;;  %v2274_v50 = vadd.f32 %v14007_v41, %v2273_v49  ;;  %v11390_v61 = vpop.f32.mrb[74].mxu1  ;;  %v14122_v49 = vld [vmem:[#allocation10 + $0x1] ss:$0 sm:$0xff] }
 0x34e   : > { %11528 = vmatmul.mubr.bf16.gmra.mrb[196].mxu0 %v2659_v43  ;;  %v2285_v51 = vadd.f32 %v11390_v61, %v14007_v41  ;;  %v2276_v52 = vpop.f32.mrb[75].mxu1  ;;  %v2570_v54 = vmax.f32 %v2282_v48, 0.0 }
 0x34f   : > { %v2277_v53 = vadd.f32 %v14007_v41, %v2276_v52  ;;  %v2568_v55 = vmax.f32 %v2274_v50, 0.0 }
 0x350   : > { %v2571_v56 = vmax.f32 %v2285_v51, 0.0 }
 0x351   : > { %v2569_v57 = vmax.f32 %v2277_v53, 0.0 }
 0x352   : > { %v2661_v59 = vpack.c.bf16 %v2571_v56, %v2570_v54 }
 0x353   : > { %v2660_v58 = vpack.c.bf16 %v2569_v57, %v2568_v55  ;;  %v11393_v60 = vpop.f32.mrb[76].mxu1 }
 0x354   : > { %v2298_v62 = vadd.f32 %v11393_v60, %v14007_v41  ;;  %v2289_v63 = vpop.f32.mrb[77].mxu1 }
 0x355   : > { %11531 = vmatprep.mubr.bf16.mxu0 %v2660_v58  ;;  %v2290_v0 = vadd.f32 %v14007_v41, %v2289_v63  ;;  %v11394_v1 = vpop.f32.mrb[78].mxu1 }
 0x356   : > { %11532 = vmatmul.mubr.bf16.gmra.mrb[200].mxu0 %v2661_v59  ;;  %v2301_v2 = vadd.f32 %v11394_v1, %v14007_v41  ;;  %v2292_v3 = vpop.f32.mrb[79].mxu1  ;;  %v2574_v5 = vmax.f32 %v2298_v62, 0.0 }
 0x357   : > { %v2293_v4 = vadd.f32 %v14007_v41, %v2292_v3  ;;  %v2572_v6 = vmax.f32 %v2290_v0, 0.0 }
 0x358   : > { %v2575_v7 = vmax.f32 %v2301_v2, 0.0 }
 0x359   : > { %v2573_v8 = vmax.f32 %v2293_v4, 0.0 }
 0x35a   : > { %v2663_v10 = vpack.c.bf16 %v2575_v7, %v2574_v5  ;;  %v12709_v5 = vld [vmem:[#allocation11 + $0x8] ss:$20 sps:$4 sm:$0xff]  }
 0x35b   : > { %v2662_v9 = vpack.c.bf16 %v2573_v8, %v2572_v6  ;;  %v11397_v11 = vpop.f32.mrb[80].mxu1 }
 0x35c   : > { %v2314_v12 = vadd.f32 %v11397_v11, %v14007_v41  ;;  %v2305_v13 = vpop.f32.mrb[81].mxu1 }
 0x35d   : > { %11535 = vmatprep.mubr.bf16.mxu0 %v2662_v9  ;;  %v2306_v14 = vadd.f32 %v14007_v41, %v2305_v13  ;;  %v11398_v15 = vpop.f32.mrb[82].mxu1  ;;  %v12714_v9 = vld [vmem:[#allocation11 + $0x34] ss:$20 sps:$4 sm:$0xff]  }
 0x35e   : > { %11536 = vmatmul.mubr.bf16.gmra.mrb[204].mxu0 %v2663_v10  ;;  %v2317_v16 = vadd.f32 %v11398_v15, %v14007_v41  ;;  %v2308_v17 = vpop.f32.mrb[83].mxu1  ;;  %v2578_v19 = vmax.f32 %v2314_v12, 0.0 }
 0x35f   : > { %v2309_v18 = vadd.f32 %v14007_v41, %v2308_v17  ;;  %v2576_v20 = vmax.f32 %v2306_v14, 0.0 }
 0x360   : > { %v2579_v21 = vmax.f32 %v2317_v16, 0.0 }
 0x361   : > { %v2577_v22 = vmax.f32 %v2309_v18, 0.0 }
 0x362   : > { %v2665_v24 = vpack.c.bf16 %v2579_v21, %v2578_v19  ;;  %v12712_v19 = vld [vmem:[#allocation11 + $0x30] ss:$20 sps:$4 sm:$0xff]  }
 0x363   : > { %v2664_v23 = vpack.c.bf16 %v2577_v22, %v2576_v20  ;;  %v11401_v25 = vpop.f32.mrb[84].mxu1 }
 0x364   : > { %v2330_v26 = vadd.f32 %v11401_v25, %v14007_v41  ;;  %v2321_v27 = vpop.f32.mrb[85].mxu1 }
 0x365   : > { %11539 = vmatprep.mubr.bf16.mxu0 %v2664_v23  ;;  %v2322_v28 = vadd.f32 %v14007_v41, %v2321_v27  ;;  %v11402_v29 = vpop.f32.mrb[86].mxu1 }
 0x366   : > { %11540 = vmatmul.mubr.bf16.gmra.mrb[208].mxu0 %v2665_v24  ;;  %v2333_v30 = vadd.f32 %v11402_v29, %v14007_v41  ;;  %v2324_v31 = vpop.f32.mrb[87].mxu1  ;;  %v2582_v33 = vmax.f32 %v2330_v26, 0.0  ;;  %v12717_v24 = vld [vmem:[#allocation11 + $0x5c] ss:$20 sps:$4 sm:$0xff]  }
 0x367   : > { %v2325_v32 = vadd.f32 %v14007_v41, %v2324_v31  ;;  %v2580_v34 = vmax.f32 %v2322_v28, 0.0 }
 0x368   : > { %v2583_v36 = vmax.f32 %v2333_v30, 0.0 }
 0x369   : > { %v2581_v37 = vmax.f32 %v2325_v32, 0.0 }
 0x36a   : > { %v2667_v39 = vpack.c.bf16 %v2583_v36, %v2582_v33 }
 0x36b   : > { %v2666_v38 = vpack.c.bf16 %v2581_v37, %v2580_v34  ;;  %v11405_v40 = vpop.f32.mrb[88].mxu1  ;;  %v12715_v34 = vld [vmem:[#allocation11 + $0x58] ss:$20 sps:$4 sm:$0xff]  }
 0x36c   : > { %v2346_v42 = vadd.f32 %v11405_v40, %v14007_v41  ;;  %v2337_v44 = vpop.f32.mrb[89].mxu1 }
 0x36d   : > { %11543 = vmatprep.mubr.bf16.mxu0 %v2666_v38  ;;  %v2338_v45 = vadd.f32 %v14007_v41, %v2337_v44  ;;  %v11406_v46 = vpop.f32.mrb[90].mxu1 }
 0x36e   : > { %11544 = vmatmul.mubr.bf16.gmra.mrb[212].mxu0 %v2667_v39  ;;  %v2349_v43 = vadd.f32 %v11406_v46, %v14007_v41  ;;  %v2340_v47 = vpop.f32.mrb[91].mxu1  ;;  %v2586_v50 = vmax.f32 %v2346_v42, 0.0 }
 0x36f   : > { %v2341_v48 = vadd.f32 %v14007_v41, %v2340_v47  ;;  %v2584_v61 = vmax.f32 %v2338_v45, 0.0 }
 0x370   : > { %v2587_v51 = vmax.f32 %v2349_v43, 0.0 }
 0x371   : > { %v2585_v52 = vmax.f32 %v2341_v48, 0.0 }
 0x372   : > { %v2669_v59 = vpack.c.bf16 %v2587_v51, %v2586_v50  ;;  %v14151_v50 = vld [vmem:[#allocation10] ss:$0 sm:$0xff] }
 0x373   : > { %v2668_v58 = vpack.c.bf16 %v2585_v52, %v2584_v61  ;;  %v11409_v0 = vpop.f32.mrb[92].mxu1 }
 0x374   : > { %v2362_v14 = vadd.f32 %v11409_v0, %v14007_v41  ;;  %v2353_v15 = vpop.f32.mrb[93].mxu1 }
 0x375   : > { %11547 = vmatprep.mubr.bf16.mxu0 %v2668_v58  ;;  %v2354_v20 = vadd.f32 %v14007_v41, %v2353_v15  ;;  %v11410_v21 = vpop.f32.mrb[94].mxu1 }
 0x376   : > { %11548 = vmatmul.mubr.bf16.gmra.mrb[216].mxu0 %v2669_v59  ;;  %v2365_v25 = vadd.f32 %v11410_v21, %v14007_v41  ;;  %v2356_v26 = vpop.f32.mrb[95].mxu1  ;;  %v2590_v30 = vmax.f32 %v2362_v14, 0.0 }
 0x377   : > { %v2357_v28 = vadd.f32 %v14007_v41, %v2356_v26  ;;  %v2588_v31 = vmax.f32 %v2354_v20, 0.0 }
 0x378   : > { %v2591_v32 = vmax.f32 %v2365_v25, 0.0 }
 0x379   : > { %v2589_v36 = vmax.f32 %v2357_v28, 0.0 }
 0x37a   : > { %v2671_v46 = vpack.c.bf16 %v2591_v32, %v2590_v30 }
 0x37b   : > { %v2670_v44 = vpack.c.bf16 %v2589_v36, %v2588_v31  ;;  %v11413_v45 = vpop.f32.mrb[96].mxu1 }
 0x37c   : > { %v2378_v61 = vadd.f32 %v14151_v50, %v11413_v45  ;;  %v2369_v51 = vpop.f32.mrb[97].mxu1 }
 0x37d   : > { %11551 = vmatprep.mubr.bf16.mxu0 %v2670_v44 }
 0x37e   : > { %11552 = vmatmul.mubr.bf16.gmra.mrb[220].mxu0 %v2671_v46  ;;  %v12718_v46 = vld [vmem:[#allocation14] ss:$8 sps:$4 sm:$0xff]  }
 0x399   : > { %v11461_v53 = vpop.f32.mrb[128].mxu0 }
 0x39a   : > { %v2795_v54 = vpop.f32.mrb[129].mxu0  ;;  %v2804_v55 = vadd.f32 %v11461_v53, %v14122_v49 }
 0x39b   : > { %v2796_v56 = vadd.f32 %v14122_v49, %v2795_v54  ;;  %v11462_v57 = vpop.f32.mrb[130].mxu0  ;;  %v2370_v54 = vadd.f32 %v14151_v50, %v2369_v51 }
 0x39c   : > { %v2798_v60 = vpop.f32.mrb[131].mxu0  ;;  %v2807_v62 = vadd.f32 %v11462_v57, %v14122_v49  ;;  %v3308_v1 = vmax.f32 %v2804_v55, 0.0  ;;  %v11414_v55 = vpop.f32.mrb[98].mxu1 }
 0x39d   : > { %v2799_v63 = vadd.f32 %v14122_v49, %v2798_v60  ;;  %v3306_v3 = vmax.f32 %v2796_v56, 0.0  ;;  %v2381_v57 = vadd.f32 %v14151_v50, %v11414_v55  ;;  %v2372_v58 = vpop.f32.mrb[99].mxu1  ;;  %v2594_v60 = vmax.f32 %v2378_v61, 0.0 }
 0x39e   : > { %v3309_v2 = vmax.f32 %v2807_v62, 0.0  ;;  %v2592_v62 = vmax.f32 %v2370_v54, 0.0 }
 0x39f   : > { %v3307_v4 = vmax.f32 %v2799_v63, 0.0  ;;  %v2373_v63 = vadd.f32 %v14151_v50, %v2372_v58 }
 0x3a0   : > { %v14128_v6 = vpack.c.bf16 %v3309_v2, %v3308_v1  ;;  %v2595_v1 = vmax.f32 %v2381_v57, 0.0 }
 0x3a1   : > { %v14130_v7 = vpack.c.bf16 %v3307_v4, %v3306_v3  ;;  %v11465_v8 = vpop.f32.mrb[132].mxu0  ;;  %v2593_v4 = vmax.f32 %v2373_v63, 0.0 }
 0x3a2   : > { %v2811_v10 = vpop.f32.mrb[133].mxu0  ;;  %v2820_v11 = vadd.f32 %v11465_v8, %v14122_v49 }
 0x3a3   : > { %v11466_v12 = vpop.f32.mrb[134].mxu0  ;;  %3814 = vmatmul.mubr.bf16.vlgmr.msra.gmra.mrb[128].mxu1 %v14130_v7  ;;  %v2812_v13 = vadd.f32 %v14122_v49, %v2811_v10 }
 0x3a4   : > { %4455 = vmatpush1.bf16.msra.mxu1 %v12709_v5  ;;  %v2814_v16 = vpop.f32.mrb[135].mxu0  ;;  %3823 = vmatprep.mubr.bf16.mxu1 %v16645_v35  ;;  %v2823_v17 = vadd.f32 %v11466_v12, %v14122_v49  ;;  %v3312_v18 = vmax.f32 %v2820_v11, 0.0  ;;  %v11417_v11 = vpop.f32.mrb[100].mxu1  ;;  %v2672_v12 = vpack.c.bf16 %v2593_v4, %v2592_v62 }
 0x3a5   : > { %v2815_v22 = vadd.f32 %v14122_v49, %v2814_v16  ;;  %v3310_v23 = vmax.f32 %v2812_v13, 0.0  ;;  %4456 = vmatprep.subr.bf16.mxu1 %v12714_v9  ;;  %v2673_v13 = vpack.c.bf16 %v2595_v1, %v2594_v60 }
 0x3a6   : > { %v3313_v27 = vmax.f32 %v2823_v17, 0.0  ;;  %v2394_v17 = vadd.f32 %v14151_v50, %v11417_v11  ;;  %11555 = vmatprep.mubr.bf16.mxu0 %v2672_v12 }
 0x3a7   : > { %v3311_v29 = vmax.f32 %v2815_v22, 0.0  ;;  %11556 = vmatmul.mubr.bf16.gmra.mrb[224].mxu0 %v2673_v13 }
 0x3a8   : > { %v14142_v33 = vpack.c.bf16 %v3313_v27, %v3312_v18  ;;  %4457 = vmatpush1.bf16.msra.mxu1 %v12712_v19  ;;  %v2385_v18 = vpop.f32.mrb[101].mxu1  ;;  %v2598_v27 = vmax.f32 %v2394_v17, 0.0 }
 0x3a9   : > { %v11469_v37 = vpop.f32.mrb[136].mxu0  ;;  %v14144_v38 = vpack.c.bf16 %v3311_v29, %v3310_v23  ;;  %4458 = vmatprep.subr.bf16.mxu1 %v12717_v24  ;;  %v2386_v21 = vadd.f32 %v14151_v50, %v2385_v18  ;;  %v11418_v22 = vpop.f32.mrb[102].mxu1 }
 0x3aa   : > { %v2836_v39 = vadd.f32 %v11469_v37, %v14122_v49  ;;  %v2827_v40 = vpop.f32.mrb[137].mxu0  ;;  %v2397_v24 = vadd.f32 %v14151_v50, %v11418_v22  ;;  %v2388_v25 = vpop.f32.mrb[103].mxu1 }
 0x3ab   : > { %3824 = vmatmul.mubr.bf16.gmra.mrb[132].mxu1 %v14128_v6  ;;  %v2828_v41 = vadd.f32 %v14122_v49, %v2827_v40  ;;  %v11470_v42 = vpop.f32.mrb[138].mxu0  ;;  %v2596_v28 = vmax.f32 %v2386_v21, 0.0  ;;  %v2389_v29 = vadd.f32 %v14151_v50, %v2388_v25 }
 0x3ac   : > { %3833 = vmatprep.mubr.bf16.mxu1 %v16645_v35  ;;  %v2839_v43 = vadd.f32 %v11470_v42, %v14122_v49  ;;  %v2830_v47 = vpop.f32.mrb[139].mxu0  ;;  %v3316_v48 = vmax.f32 %v2836_v39, 0.0  ;;  %4459 = vmatpush1.bf16.msra.mxu1 %v12715_v34  ;;  %v2599_v31 = vmax.f32 %v2397_v24, 0.0  ;;  %v11421_v42 = vpop.f32.mrb[104].mxu1 }
 0x3ad   : > { %v2831_v52 = vadd.f32 %v14122_v49, %v2830_v47  ;;  %v3314_v53 = vmax.f32 %v2828_v41, 0.0  ;;  %v2597_v36 = vmax.f32 %v2389_v29, 0.0  ;;  %v2410_v51 = vadd.f32 %v14151_v50, %v11421_v42 }
 0x3ae   : > { %v3317_v56 = vmax.f32 %v2839_v43, 0.0  ;;  %v2675_v45 = vpack.c.bf16 %v2599_v31, %v2598_v27  ;;  %v12720_v43 = vld [vmem:[#allocation14 + $0x4] ss:$8 sps:$4 sm:$0xff]  }
 0x3af   : > { %v3315_v59 = vmax.f32 %v2831_v52, 0.0  ;;  %v2674_v44 = vpack.c.bf16 %v2597_v36, %v2596_v28  ;;  %v2401_v52 = vpop.f32.mrb[105].mxu1  ;;  %7124 = vmatprep.subr.bf16.mxu0 %v12720_v43  ;;  %v2602_v62 = vmax.f32 %v2410_v51, 0.0  ;;  %v12726_v28 = vld [vmem:[#allocation14 + $0x24] ss:$8 sps:$4 sm:$0xff]  }
 0x3b0   : > { %v14158_v0 = vpack.c.bf16 %v3317_v56, %v3316_v48  ;;  %v2402_v55 = vadd.f32 %v14151_v50, %v2401_v52  ;;  %v11422_v56 = vpop.f32.mrb[106].mxu1  ;;  %7125 = vmatpush1.bf16.msra.mxu0 %v12718_v46  ;;  %v12724_v36 = vld [vmem:[#allocation14 + $0x20] ss:$8 sps:$4 sm:$0xff]   ;;  %v12727_v52 = vld [vmem:[#allocation14 + $0x30] ss:$8 sps:$4 sm:$0xff]  }
 0x3b1   : > { %v11473_v2 = vpop.f32.mrb[140].mxu0  ;;  %v14160_v3 = vpack.c.bf16 %v3315_v59, %v3314_v53  ;;  %11559 = vmatprep.mubr.bf16.mxu0 %v2674_v44  ;;  %v2413_v58 = vadd.f32 %v14151_v50, %v11422_v56  ;;  %v2404_v59 = vpop.f32.mrb[107].mxu1 }
 0x3b2   : > { %v2852_v5 = vadd.f32 %v11473_v2, %v14122_v49  ;;  %v2843_v8 = vpop.f32.mrb[141].mxu0  ;;  %11560 = vmatmul.mubr.bf16.gmra.mrb[228].mxu0 %v2675_v45  ;;  %v2600_v63 = vmax.f32 %v2402_v55, 0.0  ;;  %v2405_v1 = vadd.f32 %v14151_v50, %v2404_v59 }
 0x3b3   : > { %3834 = vmatmul.mubr.bf16.gmra.mrb[136].mxu1 %v14144_v38  ;;  %v2844_v9 = vadd.f32 %v14122_v49, %v2843_v8  ;;  %v11474_v10 = vpop.f32.mrb[142].mxu0  ;;  %v2603_v4 = vmax.f32 %v2413_v58, 0.0 }
 0x3b4   : > { %3843 = vmatprep.mubr.bf16.mxu1 %v16645_v35  ;;  %v2855_v14 = vadd.f32 %v11474_v10, %v14122_v49  ;;  %v2846_v15 = vpop.f32.mrb[143].mxu0  ;;  %v3320_v16 = vmax.f32 %v2852_v5, 0.0 }
 0x3b5   : > { %v2847_v19 = vadd.f32 %v14122_v49, %v2846_v15  ;;  %v3318_v20 = vmax.f32 %v2844_v9, 0.0  ;;  %v2601_v9 = vmax.f32 %v2405_v1, 0.0  ;;  %v12723_v15 = vld [vmem:[#allocation14 + $0x14] ss:$8 sps:$4 sm:$0xff]   ;;  %v2677_v18 = vpack.c.bf16 %v2603_v4, %v2602_v62 }
 0x3b6   : > { %v3321_v23 = vmax.f32 %v2855_v14, 0.0  ;;  %v12721_v14 = vld [vmem:[#allocation14 + $0x10] ss:$8 sps:$4 sm:$0xff]   ;;  %7126 = vmatprep.subr.bf16.mxu0 %v12723_v15 }
 0x3b7   : > { %v3319_v26 = vmax.f32 %v2847_v19, 0.0  ;;  %v2676_v17 = vpack.c.bf16 %v2601_v9, %v2600_v63  ;;  %7127 = vmatpush1.bf16.msra.mxu0 %v12721_v14  ;;  %v12732_v9 = vld [vmem:[#allocation14 + $0x44] ss:$8 sps:$4 sm:$0xff]  }
 0x3b8   : > { %v14172_v30 = vpack.c.bf16 %v3321_v23, %v3320_v16  ;;  %v11425_v16 = vpop.f32.mrb[108].mxu1  ;;  %7128 = vmatprep.subr.bf16.mxu0 %v12726_v28  ;;  %v12735_v28 = vld [vmem:[#allocation14 + $0x54] ss:$8 sps:$4 sm:$0xff]  }
 0x3b9   : > { %v11477_v32 = vpop.f32.mrb[144].mxu0  ;;  %v14174_v34 = vpack.c.bf16 %v3319_v26, %v3318_v20  ;;  %v2426_v22 = vadd.f32 %v14151_v50, %v11425_v16  ;;  %v2417_v23 = vpop.f32.mrb[109].mxu1  ;;  %11563 = vmatprep.mubr.bf16.mxu0 %v2676_v17 }
 0x3ba   : > { %v2868_v37 = vadd.f32 %v11477_v32, %v14122_v49  ;;  %v2859_v39 = vpop.f32.mrb[145].mxu0  ;;  %v2418_v26 = vadd.f32 %v14151_v50, %v2417_v23  ;;  %v11426_v27 = vpop.f32.mrb[110].mxu1  ;;  %11564 = vmatmul.mubr.bf16.gmra.mrb[232].mxu0 %v2677_v18 }
 0x3bb   : > { %3844 = vmatmul.mubr.bf16.gmra.mrb[140].mxu1 %v14142_v33  ;;  %v2860_v40 = vadd.f32 %v14122_v49, %v2859_v39  ;;  %v11478_v41 = vpop.f32.mrb[146].mxu0  ;;  %v2429_v31 = vadd.f32 %v14151_v50, %v11426_v27  ;;  %v2420_v32 = vpop.f32.mrb[111].mxu1  ;;  %v2606_v39 = vmax.f32 %v2426_v22, 0.0  ;;  %7129 = vmatpush1.bf16.msra.mxu0 %v12724_v36  ;;  %v12733_v27 = vld [vmem:[#allocation14 + $0x50] ss:$8 sps:$4 sm:$0xff]  }
 0x3bc   : > { %3853 = vmatprep.mubr.bf16.mxu1 %v16645_v35  ;;  %v2871_v47 = vadd.f32 %v11478_v41, %v14122_v49  ;;  %v2862_v48 = vpop.f32.mrb[147].mxu0  ;;  %v3324_v61 = vmax.f32 %v2868_v37, 0.0  ;;  %v2421_v41 = vadd.f32 %v14151_v50, %v2420_v32 }
 0x3bd   : > { %v2863_v53 = vadd.f32 %v14122_v49, %v2862_v48  ;;  %v3322_v54 = vmax.f32 %v2860_v40, 0.0  ;;  %v2604_v40 = vmax.f32 %v2418_v26, 0.0  ;;  %v2607_v44 = vmax.f32 %v2429_v31, 0.0 }
 0x3be   : > { %v3325_v57 = vmax.f32 %v2871_v47, 0.0  ;;  %v2605_v43 = vmax.f32 %v2421_v41, 0.0 }
 0x3bf   : > { %v3323_v60 = vmax.f32 %v2863_v53, 0.0  ;;  %v12729_v53 = vld [vmem:[#allocation14 + $0x34] ss:$8 sps:$4 sm:$0xff]   ;;  %v2679_v56 = vpack.c.bf16 %v2607_v44, %v2606_v39 }
 0x3c0   : > { %v14186_v2 = vpack.c.bf16 %v3325_v57, %v3324_v61  ;;  %v2678_v55 = vpack.c.bf16 %v2605_v43, %v2604_v40  ;;  %7130 = vmatprep.subr.bf16.mxu0 %v12729_v53  ;;  %v12736_v53 = vld [vmem:[#allocation14 + $0x60] ss:$8 sps:$4 sm:$0xff]  }
 0x3c1   : > { %v11481_v5 = vpop.f32.mrb[148].mxu0  ;;  %v14188_v8 = vpack.c.bf16 %v3323_v60, %v3322_v54  ;;  %v11429_v54 = vpop.f32.mrb[112].mxu1  ;;  %7131 = vmatpush1.bf16.msra.mxu0 %v12727_v52 }
 0x3c2   : > { %v2884_v10 = vadd.f32 %v11481_v5, %v14122_v49  ;;  %v2875_v11 = vpop.f32.mrb[149].mxu0  ;;  %v2442_v60 = vadd.f32 %v14151_v50, %v11429_v54  ;;  %v2433_v62 = vpop.f32.mrb[113].mxu1  ;;  %11567 = vmatprep.mubr.bf16.mxu0 %v2678_v55  ;;  %7132 = vmatprep.subr.bf16.mxu0 %v12732_v9 }
 0x3c3   : > { %3854 = vmatmul.mubr.bf16.gmra.mrb[144].mxu1 %v14160_v3  ;;  %v2876_v12 = vadd.f32 %v14122_v49, %v2875_v11  ;;  %v11482_v13 = vpop.f32.mrb[150].mxu0  ;;  %v2434_v4 = vadd.f32 %v14151_v50, %v2433_v62  ;;  %v11430_v5 = vpop.f32.mrb[114].mxu1  ;;  %11568 = vmatmul.mubr.bf16.gmra.mrb[236].mxu0 %v2679_v56 }
 0x3c4   : > { %3863 = vmatprep.mubr.bf16.mxu1 %v16645_v35  ;;  %v2887_v19 = vadd.f32 %v11482_v13, %v14122_v49  ;;  %v2878_v20 = vpop.f32.mrb[151].mxu0  ;;  %v3328_v21 = vmax.f32 %v2884_v10, 0.0  ;;  %v2445_v11 = vadd.f32 %v14151_v50, %v11430_v5  ;;  %v12730_v13 = vld [vmem:[#allocation14 + $0x40] ss:$8 sps:$4 sm:$0xff]   ;;  %v2610_v15 = vmax.f32 %v2442_v60, 0.0 }
 0x3c5   : > { %v2879_v24 = vadd.f32 %v14122_v49, %v2878_v20  ;;  %v3326_v25 = vmax.f32 %v2876_v12, 0.0  ;;  %v2436_v12 = vpop.f32.mrb[115].mxu1  ;;  %v2608_v16 = vmax.f32 %v2434_v4, 0.0  ;;  %7133 = vmatpush1.bf16.msra.mxu0 %v12730_v13 }
 0x3c6   : > { %v3329_v29 = vmax.f32 %v2887_v19, 0.0  ;;  %v2437_v17 = vadd.f32 %v14151_v50, %v2436_v12  ;;  %v2611_v19 = vmax.f32 %v2445_v11, 0.0  ;;  %7134 = vmatprep.subr.bf16.mxu0 %v12735_v28  ;;  %v12741_v11 = vld [vmem:[#allocation14 + $0x74] ss:$8 sps:$4 sm:$0xff]  }
 0x3c7   : > { %v3327_v37 = vmax.f32 %v2879_v24, 0.0 }
 0x3c8   : > { %v14200_v42 = vpack.c.bf16 %v3329_v29, %v3328_v21  ;;  %v2609_v22 = vmax.f32 %v2437_v17, 0.0  ;;  %v11433_v29 = vpop.f32.mrb[116].mxu1  ;;  %v2681_v32 = vpack.c.bf16 %v2611_v19, %v2610_v15 }
 0x3c9   : > { %v11485_v45 = vpop.f32.mrb[152].mxu0  ;;  %v14202_v46 = vpack.c.bf16 %v3327_v37, %v3326_v25  ;;  %v2458_v40 = vadd.f32 %v14151_v50, %v11433_v29  ;;  %v2449_v41 = vpop.f32.mrb[117].mxu1  ;;  %7135 = vmatpush1.bf16.msra.mxu0 %v12733_v27  ;;  %v12745_v27 = vld [vmem:[#allocation11 + $0x80] ss:$20 sps:$4 sm:$0xff]  }
 0x3ca   : > { %v2900_v47 = vadd.f32 %v11485_v45, %v14122_v49  ;;  %v2891_v48 = vpop.f32.mrb[153].mxu0  ;;  %v2680_v31 = vpack.c.bf16 %v2609_v22, %v2608_v16  ;;  %v2450_v43 = vadd.f32 %v14151_v50, %v2449_v41 }
 0x3cb   : > { %3864 = vmatmul.mubr.bf16.gmra.mrb[148].mxu1 %v14158_v0  ;;  %v2892_v61 = vadd.f32 %v14122_v49, %v2891_v48  ;;  %v11486_v51 = vpop.f32.mrb[154].mxu0  ;;  %v12738_v48 = vld [vmem:[#allocation14 + $0x64] ss:$8 sps:$4 sm:$0xff]   ;;  %v2614_v55 = vmax.f32 %v2458_v40, 0.0 }
 0x3cc   : > { %3873 = vmatprep.mubr.bf16.mxu1 %v16645_v35  ;;  %v2903_v57 = vadd.f32 %v11486_v51, %v14122_v49  ;;  %v2894_v58 = vpop.f32.mrb[155].mxu0  ;;  %v3332_v59 = vmax.f32 %v2900_v47, 0.0  ;;  %v11434_v47 = vpop.f32.mrb[118].mxu1  ;;  %11571 = vmatprep.mubr.bf16.mxu0 %v2680_v31  ;;  %v2612_v56 = vmax.f32 %v2450_v43, 0.0 }
 0x3cd   : > { %v2895_v63 = vadd.f32 %v14122_v49, %v2894_v58  ;;  %v3330_v1 = vmax.f32 %v2892_v61, 0.0  ;;  %v2461_v51 = vadd.f32 %v14151_v50, %v11434_v47  ;;  %v2452_v52 = vpop.f32.mrb[119].mxu1  ;;  %11572 = vmatmul.mubr.bf16.gmra.mrb[240].mxu0 %v2681_v32  ;;  %7136 = vmatprep.subr.bf16.mxu0 %v12738_v48  ;;  %v12742_v32 = vld [vmem:[#allocation14 + $0x80] ss:$8 sps:$4 sm:$0xff]  }
 0x3ce   : > { %v3333_v10 = vmax.f32 %v2903_v57, 0.0  ;;  %v2453_v57 = vadd.f32 %v14151_v50, %v2452_v52  ;;  %7137 = vmatpush1.bf16.msra.mxu0 %v12736_v53  ;;  %v11437_v12 = vpop.f32.mrb[120].mxu1 }
 0x3cf   : > { %v3331_v14 = vmax.f32 %v2895_v63, 0.0  ;;  %v2474_v19 = vadd.f32 %v14151_v50, %v11437_v12  ;;  %7138 = vmatprep.subr.bf16.mxu0 %v12741_v11 }
 0x3d0   : > { %v14214_v18 = vpack.c.bf16 %v3333_v10, %v3332_v59  ;;  %v2615_v59 = vmax.f32 %v2461_v51, 0.0  ;;  %v2613_v63 = vmax.f32 %v2453_v57, 0.0  ;;  %v12739_v10 = vld [vmem:[#allocation14 + $0x70] ss:$8 sps:$4 sm:$0xff]  }
 0x3d1   : > { %v11489_v20 = vpop.f32.mrb[156].mxu0  ;;  %v14216_v21 = vpack.c.bf16 %v3331_v14, %v3330_v1 }
 0x3d2   : > { %v2916_v23 = vadd.f32 %v11489_v20, %v14122_v49  ;;  %v2907_v24 = vpop.f32.mrb[157].mxu0  ;;  %v2682_v13 = vpack.c.bf16 %v2613_v63, %v2612_v56  ;;  %v2683_v14 = vpack.c.bf16 %v2615_v59, %v2614_v55  ;;  %v2465_v20 = vpop.f32.mrb[121].mxu1  ;;  %7139 = vmatpush1.bf16.msra.mxu0 %v12739_v10  ;;  %v12750_v55 = vld [vmem:[#allocation14 + $0x94] ss:$8 sps:$4 sm:$0xff]  }
 0x3d3   : > { %3874 = vmatmul.mubr.bf16.gmra.mrb[152].mxu1 %v14174_v34  ;;  %v2908_v25 = vadd.f32 %v14122_v49, %v2907_v24  ;;  %v11490_v26 = vpop.f32.mrb[158].mxu0  ;;  %v2466_v24 = vadd.f32 %v14151_v50, %v2465_v20 }
 0x3d4   : > { %3883 = vmatprep.mubr.bf16.mxu1 %v16645_v35  ;;  %v2919_v36 = vadd.f32 %v11490_v26, %v14122_v49  ;;  %v2910_v37 = vpop.f32.mrb[159].mxu0  ;;  %v3336_v39 = vmax.f32 %v2916_v23, 0.0  ;;  %11575 = vmatprep.mubr.bf16.mxu0 %v2682_v13  ;;  %v12744_v26 = vld [vmem:[#allocation14 + $0x84] ss:$8 sps:$4 sm:$0xff]  }
 0x3d5   : > { %v2911_v44 = vadd.f32 %v14122_v49, %v2910_v37  ;;  %v3334_v45 = vmax.f32 %v2908_v25, 0.0  ;;  %v11438_v25 = vpop.f32.mrb[122].mxu1  ;;  %v2616_v40 = vmax.f32 %v2466_v24, 0.0  ;;  %11576 = vmatmul.mubr.bf16.gmra.mrb[244].mxu0 %v2683_v14  ;;  %7140 = vmatprep.subr.bf16.mxu0 %v12744_v26  ;;  %v12753_v13 = vld [vmem:[#allocation14 + $0xa4] ss:$8 sps:$4 sm:$0xff]  }
 0x3d6   : > { %v3337_v61 = vmax.f32 %v2919_v36, 0.0  ;;  %v2477_v29 = vadd.f32 %v14151_v50, %v11438_v25  ;;  %v2468_v31 = vpop.f32.mrb[123].mxu1  ;;  %v12747_v36 = vld [vmem:[#allocation11 + $0x84] ss:$20 sps:$4 sm:$0xff]   ;;  %7141 = vmatpush1.bf16.msra.mxu0 %v12742_v32 }
 0x3d7   : > { %v3335_v54 = vmax.f32 %v2911_v44, 0.0  ;;  %v2469_v41 = vadd.f32 %v14151_v50, %v2468_v31  ;;  %4460 = vmatprep.subr.bf16.mxu1 %v12747_v36  ;;  %v11441_v56 = vpop.f32.mrb[124].mxu1  ;;  %7142 = vmatprep.subr.bf16.mxu0 %v12750_v55 }
 0x3d8   : > { %v14228_v58 = vpack.c.bf16 %v3337_v61, %v3336_v39  ;;  %v2618_v39 = vmax.f32 %v2474_v19, 0.0  ;;  %4461 = vmatpush1.bf16.msra.mxu1 %v12745_v27 }
 0x3d9   : > { %v11493_v60 = vpop.f32.mrb[160].mxu0  ;;  %v14230_v62 = vpack.c.bf16 %v3335_v54, %v3334_v45  ;;  %v2619_v45 = vmax.f32 %v2477_v29, 0.0  ;;  %v2617_v48 = vmax.f32 %v2469_v41, 0.0  ;;  %v12748_v54 = vld [vmem:[#allocation14 + $0x90] ss:$8 sps:$4 sm:$0xff]  }
 0x3da   : > { %16716 = vst [vmem:[#allocation24_spill] sm:$0xff] %v14228_v58  ;;  %v2932_v1 = vadd.f32 %v11493_v60, %v14122_v49  ;;  %v2923_v4 = vpop.f32.mrb[161].mxu0  ;;  %7143 = vmatpush1.bf16.msra.mxu0 %v12748_v54 }
 0x3db   : > { %16717 = vst [vmem:[#allocation25_spill] sm:$0xff] %v14230_v62  ;;  %3884 = vmatmul.mubr.bf16.gmra.mrb[156].mxu1 %v14172_v30  ;;  %v2924_v5 = vadd.f32 %v14122_v49, %v2923_v4  ;;  %v11494_v9 = vpop.f32.mrb[162].mxu0  ;;  %v2684_v57 = vpack.c.bf16 %v2617_v48, %v2616_v40  ;;  %v2685_v59 = vpack.c.bf16 %v2619_v45, %v2618_v39  ;;  %v12759_v48 = vld [vmem:[#allocation14 + $0xc4] ss:$8 sps:$4 sm:$0xff]  }
 0x3dc   : > { %3893 = vmatprep.mubr.bf16.mxu1 %v16645_v35  ;;  %v2935_v15 = vadd.f32 %v11494_v9, %v14122_v49  ;;  %v2926_v16 = vpop.f32.mrb[163].mxu0  ;;  %v3340_v17 = vmax.f32 %v2932_v1, 0.0  ;;  %v2490_v4 = vadd.f32 %v14151_v50, %v11441_v56  ;;  %7144 = vmatprep.subr.bf16.mxu0 %v12753_v13 }
 0x3dd   : > { %v2927_v22 = vadd.f32 %v14122_v49, %v2926_v16  ;;  %v3338_v23 = vmax.f32 %v2924_v5, 0.0  ;;  %v2481_v5 = vpop.f32.mrb[125].mxu1  ;;  %11579 = vmatprep.mubr.bf16.mxu0 %v2684_v57 }
 0x3de   : > { %v3341_v28 = vmax.f32 %v2935_v15, 0.0  ;;  %v2482_v11 = vadd.f32 %v14151_v50, %v2481_v5  ;;  %v11442_v12 = vpop.f32.mrb[126].mxu1  ;;  %v2622_v20 = vmax.f32 %v2490_v4, 0.0  ;;  %11580 = vmatmul.mubr.bf16.gmra.mrb[248].mxu0 %v2685_v59  ;;  %v12760_v4 = vld [vmem:[#allocation14 + $0xd0] ss:$8 sps:$4 sm:$0xff]  }
 0x3df   : > { %v3339_v37 = vmax.f32 %v2927_v22, 0.0  ;;  %v2493_v15 = vadd.f32 %v14151_v50, %v11442_v12  ;;  %v2484_v16 = vpop.f32.mrb[127].mxu1  ;;  %v12762_v5 = vld [vmem:[#allocation14 + $0xd4] ss:$8 sps:$4 sm:$0xff]  }
 0x3e0   : > { %v14242_v44 = vpack.c.bf16 %v3341_v28, %v3340_v17  ;;  %v12751_v17 = vld [vmem:[#allocation14 + $0xa0] ss:$8 sps:$4 sm:$0xff]   ;;  %v2620_v22 = vmax.f32 %v2482_v11, 0.0 }
 0x3e1   : > { %v11497_v43 = vpop.f32.mrb[164].mxu0  ;;  %v14244_v47 = vpack.c.bf16 %v3339_v37, %v3338_v23  ;;  %v2485_v23 = vadd.f32 %v14151_v50, %v2484_v16  ;;  %v2623_v25 = vmax.f32 %v2493_v15, 0.0  ;;  %7145 = vmatpush1.bf16.msra.mxu0 %v12751_v17  ;;  %v12754_v37 = vld [vmem:[#allocation14 + $0xb0] ss:$8 sps:$4 sm:$0xff]   ;;  %v12756_v50 = vld [vmem:[#allocation14 + $0xb4] ss:$8 sps:$4 sm:$0xff]  }
 0x3e2   : > { %16718 = vst [vmem:[#allocation26_spill] sm:$0xff] %v14242_v44  ;;  %v2948_v61 = vadd.f32 %v11497_v43, %v14122_v49  ;;  %v2939_v51 = vpop.f32.mrb[165].mxu0  ;;  %7146 = vmatprep.subr.bf16.mxu0 %v12756_v50  ;;  %v12765_v16 = vld [vmem:[#allocation14 + $0xe4] ss:$8 sps:$4 sm:$0xff]  }
 0x3e3   : > { %16719 = vst [vmem:[#allocation27_spill] sm:$0xff] %v14244_v47  ;;  %3894 = vmatmul.mubr.bf16.gmra.mrb[160].mxu1 %v14188_v8  ;;  %v2940_v52 = vadd.f32 %v14122_v49, %v2939_v51  ;;  %v11498_v53 = vpop.f32.mrb[166].mxu0  ;;  %v2621_v28 = vmax.f32 %v2485_v23, 0.0  ;;  %v2687_v40 = vpack.c.bf16 %v2623_v25, %v2622_v20 }
 0x3e4   : > { %3903 = vmatprep.mubr.bf16.mxu1 %v16645_v35  ;;  %v2951_v60 = vadd.f32 %v11498_v53, %v14122_v49  ;;  %v2942_v63 = vpop.f32.mrb[167].mxu0  ;;  %v3344_v1 = vmax.f32 %v2948_v61, 0.0  ;;  %v12757_v53 = vld [vmem:[#allocation14 + $0xc0] ss:$8 sps:$4 sm:$0xff]  }
 0x3e5   : > { %v2943_v9 = vadd.f32 %v14122_v49, %v2942_v63  ;;  %v3342_v10 = vmax.f32 %v2940_v52, 0.0  ;;  %v2686_v39 = vpack.c.bf16 %v2621_v28, %v2620_v22  ;;  %7147 = vmatpush1.bf16.msra.mxu0 %v12754_v37  ;;  %v12766_v37 = vld [vmem:[#allocation14 + $0xf0] ss:$8 sps:$4 sm:$0xff]  }
 0x3e6   : > { %v3345_v14 = vmax.f32 %v2951_v60, 0.0  ;;  %7148 = vmatprep.subr.bf16.mxu0 %v12759_v48 }
 0x3e7   : > { %v3343_v19 = vmax.f32 %v2943_v9, 0.0  ;;  %11583 = vmatprep.mubr.bf16.mxu0 %v2686_v39 }
 0x3e8   : > { %v14256_v24 = vpack.c.bf16 %v3345_v14, %v3344_v1  ;;  %11584 = vmatmul.mubr.bf16.gmra.mrb[252].mxu0 %v2687_v40 }
 0x3e9   : > { %v11501_v26 = vpop.f32.mrb[168].mxu0  ;;  %v14258_v27 = vpack.c.bf16 %v3343_v19, %v3342_v10  ;;  %7149 = vmatpush1.bf16.msra.mxu0 %v12757_v53  ;;  %v12763_v19 = vld [vmem:[#allocation14 + $0xe0] ss:$8 sps:$4 sm:$0xff]  }
 0x3ea   : > { %16720 = vst [vmem:[#allocation28_spill] sm:$0xff] %v14256_v24  ;;  %v2964_v29 = vadd.f32 %v11501_v26, %v14122_v49  ;;  %v2955_v31 = vpop.f32.mrb[169].mxu0  ;;  %7150 = vmatprep.subr.bf16.mxu0 %v12762_v5 }
 0x3eb   : > { %16721 = vst [vmem:[#allocation29_spill] sm:$0xff] %v14258_v27  ;;  %3904 = vmatmul.mubr.bf16.gmra.mrb[164].mxu1 %v14186_v2  ;;  %v2956_v32 = vadd.f32 %v14122_v49, %v2955_v31  ;;  %v11502_v36 = vpop.f32.mrb[170].mxu0 }
 0x3ec   : > { %3913 = vmatprep.mubr.bf16.mxu1 %v16645_v35  ;;  %v2967_v41 = vadd.f32 %v11502_v36, %v14122_v49  ;;  %v2958_v45 = vpop.f32.mrb[171].mxu0  ;;  %v3348_v43 = vmax.f32 %v2964_v29, 0.0  ;;  %v12768_v29 = vld [vmem:[#allocation14 + $0xf4] ss:$8 sps:$4 sm:$0xff]  }
 0x3ed   : > { %v2959_v61 = vadd.f32 %v14122_v49, %v2958_v45  ;;  %v3346_v51 = vmax.f32 %v2956_v32, 0.0  ;;  %7151 = vmatpush1.bf16.msra.mxu0 %v12760_v4 }
 0x3ee   : > { %v3349_v52 = vmax.f32 %v2967_v41, 0.0  ;;  %7152 = vmatprep.subr.bf16.mxu0 %v12765_v16 }
 0x3ef   : > { %v3347_v54 = vmax.f32 %v2959_v61, 0.0 }
 0x3f0   : > { %v14266_v55 = vpack.c.bf16 %v3349_v52, %v3348_v43 }
 0x3f1   : > { %v11505_v56 = vpop.f32.mrb[172].mxu0  ;;  %v14268_v57 = vpack.c.bf16 %v3347_v54, %v3346_v51  ;;  %7153 = vmatpush1.bf16.msra.mxu0 %v12763_v19 }
 0x3f2   : > { %16722 = vst [vmem:[#allocation30_spill] sm:$0xff] %v14266_v55  ;;  %v2980_v59 = vadd.f32 %v11505_v56, %v14122_v49  ;;  %v2971_v60 = vpop.f32.mrb[173].mxu0  ;;  %7154 = vmatprep.subr.bf16.mxu0 %v12768_v29 }
 0x3f3   : > { %16723 = vst [vmem:[#allocation31_spill] sm:$0xff] %v14268_v57  ;;  %3914 = vmatmul.mubr.bf16.gmra.mrb[168].mxu1 %v14202_v46  ;;  %v2972_v63 = vadd.f32 %v14122_v49, %v2971_v60  ;;  %v11506_v1 = vpop.f32.mrb[174].mxu0 }
 0x3f4   : > { %3923 = vmatprep.mubr.bf16.mxu1 %v16645_v35  ;;  %v2983_v9 = vadd.f32 %v11506_v1, %v14122_v49  ;;  %v2974_v10 = vpop.f32.mrb[175].mxu0  ;;  %v3352_v11 = vmax.f32 %v2980_v59, 0.0 }
 0x3f5   : > { %v2975_v12 = vadd.f32 %v14122_v49, %v2974_v10  ;;  %v3350_v13 = vmax.f32 %v2972_v63, 0.0  ;;  %7155 = vmatpush1.bf16.msra.mxu0 %v12766_v37 }
 0x3f6   : > { %v3353_v14 = vmax.f32 %v2983_v9, 0.0 }
 0x3f7   : > { %v3351_v15 = vmax.f32 %v2975_v12, 0.0 }
 0x3f8   : > { %v14276_v17 = vpack.c.bf16 %v3353_v14, %v3352_v11 }
 0x3f9   : > { %v11509_v20 = vpop.f32.mrb[176].mxu0  ;;  %v14278_v22 = vpack.c.bf16 %v3351_v15, %v3350_v13 }
 0x3fa   : > { %16724 = vst [vmem:[#allocation32_spill] sm:$0xff] %v14276_v17  ;;  %v2996_v23 = vadd.f32 %v11509_v20, %v14122_v49  ;;  %v2987_v25 = vpop.f32.mrb[177].mxu0 }
 0x3fb   : > { %16725 = vst [vmem:[#allocation33_spill] sm:$0xff] %v14278_v22  ;;  %3924 = vmatmul.mubr.bf16.gmra.mrb[172].mxu1 %v14200_v42  ;;  %v2988_v26 = vadd.f32 %v14122_v49, %v2987_v25  ;;  %v11510_v28 = vpop.f32.mrb[178].mxu0 }
 0x3fc   : > { %3933 = vmatprep.mubr.bf16.mxu1 %v16645_v35  ;;  %v2999_v31 = vadd.f32 %v11510_v28, %v14122_v49  ;;  %v2990_v32 = vpop.f32.mrb[179].mxu0  ;;  %v3356_v36 = vmax.f32 %v2996_v23, 0.0 }
 0x3fd   : > { %v2991_v50 = vadd.f32 %v14122_v49, %v2990_v32  ;;  %v3354_v39 = vmax.f32 %v2988_v26, 0.0 }
 0x3fe   : > { %v3357_v40 = vmax.f32 %v2999_v31, 0.0 }
 0x3ff   : > { %v3355_v41 = vmax.f32 %v2991_v50, 0.0 }
 0x400   : > { %v14286_v45 = vpack.c.bf16 %v3357_v40, %v3356_v36 }
 0x401   : > { %v11513_v43 = vpop.f32.mrb[180].mxu0  ;;  %v14288_v48 = vpack.c.bf16 %v3355_v41, %v3354_v39 }
 0x402   : > { %16726 = vst [vmem:[#allocation34_spill] sm:$0xff] %v14286_v45  ;;  %v3012_v61 = vadd.f32 %v11513_v43, %v14122_v49  ;;  %v3003_v51 = vpop.f32.mrb[181].mxu0 }
 0x403   : > { %16727 = vst [vmem:[#allocation35_spill] sm:$0xff] %v14288_v48  ;;  %3934 = vmatmul.mubr.bf16.gmra.mrb[176].mxu1 %v14216_v21  ;;  %v3004_v52 = vadd.f32 %v14122_v49, %v3003_v51  ;;  %v11514_v53 = vpop.f32.mrb[182].mxu0 }
 0x404   : > { %3943 = vmatprep.mubr.bf16.mxu1 %v16645_v35  ;;  %v3015_v54 = vadd.f32 %v11514_v53, %v14122_v49  ;;  %v3006_v56 = vpop.f32.mrb[183].mxu0  ;;  %v3360_v59 = vmax.f32 %v3012_v61, 0.0 }
 0x405   : > { %v3007_v60 = vadd.f32 %v14122_v49, %v3006_v56  ;;  %v3358_v63 = vmax.f32 %v3004_v52, 0.0 }
 0x406   : > { %v3361_v1 = vmax.f32 %v3015_v54, 0.0 }
 0x407   : > { %v3359_v4 = vmax.f32 %v3007_v60, 0.0 }
 0x408   : > { %v14296_v5 = vpack.c.bf16 %v3361_v1, %v3360_v59 }
 0x409   : > { %v11517_v9 = vpop.f32.mrb[184].mxu0  ;;  %v14298_v10 = vpack.c.bf16 %v3359_v4, %v3358_v63 }
 0x40a   : > { %16728 = vst [vmem:[#allocation36_spill] sm:$0xff] %v14296_v5  ;;  %v3028_v11 = vadd.f32 %v11517_v9, %v14122_v49  ;;  %v3019_v12 = vpop.f32.mrb[185].mxu0 }
 0x40b   : > { %16729 = vst [vmem:[#allocation37_spill] sm:$0xff] %v14298_v10  ;;  %3944 = vmatmul.mubr.bf16.gmra.mrb[180].mxu1 %v14214_v18  ;;  %v3020_v13 = vadd.f32 %v14122_v49, %v3019_v12  ;;  %v11518_v14 = vpop.f32.mrb[186].mxu0 }
 0x40c   : > { %3953 = vmatprep.mubr.bf16.mxu1 %v16645_v35  ;;  %v3031_v15 = vadd.f32 %v11518_v14, %v14122_v49  ;;  %v3022_v16 = vpop.f32.mrb[187].mxu0  ;;  %v3364_v19 = vmax.f32 %v3028_v11, 0.0 }
 0x40d   : > { %v3023_v20 = vadd.f32 %v14122_v49, %v3022_v16  ;;  %v3362_v23 = vmax.f32 %v3020_v13, 0.0 }
 0x40e   : > { %v3365_v25 = vmax.f32 %v3031_v15, 0.0 }
 0x40f   : > { %v3363_v26 = vmax.f32 %v3023_v20, 0.0 }
 0x410   : > { %v14306_v28 = vpack.c.bf16 %v3365_v25, %v3364_v19 }
 0x411   : > { %v11521_v29 = vpop.f32.mrb[188].mxu0  ;;  %v14308_v31 = vpack.c.bf16 %v3363_v26, %v3362_v23 }
 0x412   : > { %16730 = vst [vmem:[#allocation38_spill] sm:$0xff] %v14306_v28  ;;  %v3044_v32 = vadd.f32 %v11521_v29, %v14122_v49  ;;  %v3035_v36 = vpop.f32.mrb[189].mxu0 }
 0x413   : > { %16731 = vst [vmem:[#allocation39_spill] sm:$0xff] %v14308_v31  ;;  %3954 = vmatmul.mubr.bf16.gmra.mrb[184].mxu1 %v14230_v62  ;;  %v3036_v37 = vadd.f32 %v14122_v49, %v3035_v36  ;;  %v11522_v50 = vpop.f32.mrb[190].mxu0  ;;  %v12769_v36 = vld [vmem:[#allocation11 + $0xa8] ss:$20 sps:$4 sm:$0xff]  }
 0x414   : > { %3963 = vmatprep.mubr.bf16.mxu1 %v16645_v35  ;;  %v3047_v39 = vadd.f32 %v11522_v50, %v14122_v49  ;;  %v3038_v40 = vpop.f32.mrb[191].mxu0  ;;  %v3368_v41 = vmax.f32 %v3044_v32, 0.0 }
 0x415   : > { %v3039_v43 = vadd.f32 %v14122_v49, %v3038_v40  ;;  %v3366_v61 = vmax.f32 %v3036_v37, 0.0  ;;  %v12771_v37 = vld [vmem:[#allocation11 + $0xac] ss:$20 sps:$4 sm:$0xff]  }
 0x416   : > { %v3369_v51 = vmax.f32 %v3047_v39, 0.0  ;;  %v14335_v39 = vld [vmem:[#allocation10 + $0x1] ss:$0 sm:$0xff]  ;;  %4462 = vmatprep.subr.bf16.mxu1 %v12771_v37 }
 0x417   : > { %v3367_v52 = vmax.f32 %v3039_v43, 0.0  ;;  %4463 = vmatpush1.bf16.msra.mxu1 %v12769_v36 }
 0x418   : > { %v14316_v53 = vpack.c.bf16 %v3369_v51, %v3368_v41 }
 0x419   : > { %v11525_v54 = vpop.f32.mrb[192].mxu0  ;;  %v14318_v56 = vpack.c.bf16 %v3367_v52, %v3366_v61 }
 0x41a   : > { %16732 = vst [vmem:[#allocation40_spill] sm:$0xff] %v14316_v53  ;;  %v3060_v59 = vadd.f32 %v11525_v54, %v14122_v49  ;;  %v3051_v60 = vpop.f32.mrb[193].mxu0 }
 0x41b   : > { %16733 = vst [vmem:[#allocation41_spill] sm:$0xff] %v14318_v56  ;;  %3964 = vmatmul.mubr.bf16.gmra.mrb[188].mxu1 %v14228_v58  ;;  %v3052_v63 = vadd.f32 %v14122_v49, %v3051_v60  ;;  %v11526_v1 = vpop.f32.mrb[194].mxu0 }
 0x41c   : > { %3973 = vmatprep.mubr.bf16.mxu1 %v16645_v35  ;;  %v3372_v4 = vmax.f32 %v3060_v59, 0.0  ;;  %v3063_v9 = vadd.f32 %v11526_v1, %v14122_v49  ;;  %v3054_v11 = vpop.f32.mrb[195].mxu0 }
 0x41d   : > { %v3370_v12 = vmax.f32 %v3052_v63, 0.0  ;;  %v3055_v13 = vadd.f32 %v14122_v49, %v3054_v11 }
 0x41e   : > { %v3373_v14 = vmax.f32 %v3063_v9, 0.0 }
 0x41f   : > { %v3371_v15 = vmax.f32 %v3055_v13, 0.0 }
 0x420   : > { %v14326_v16 = vpack.c.bf16 %v3373_v14, %v3372_v4 }
 0x421   : > { %v14328_v19 = vpack.c.bf16 %v3371_v15, %v3370_v12  ;;  %v11529_v20 = vpop.f32.mrb[196].mxu0 }
 0x422   : > { %16734 = vst [vmem:[#allocation42_spill] sm:$0xff] %v14326_v16  ;;  %v3067_v23 = vpop.f32.mrb[197].mxu0  ;;  %v3076_v29 = vadd.f32 %v11529_v20, %v14122_v49 }
 0x423   : > { %16735 = vst [vmem:[#allocation43_spill] sm:$0xff] %v14328_v19  ;;  %3974 = vmatmul.mubr.bf16.gmra.mrb[192].mxu1 %v14244_v47  ;;  %v11530_v25 = vpop.f32.mrb[198].mxu0  ;;  %v3068_v32 = vadd.f32 %v14122_v49, %v3067_v23 }
 0x424   : > { %3983 = vmatprep.mubr.bf16.mxu1 %v16645_v35  ;;  %v3070_v26 = vpop.f32.mrb[199].mxu0  ;;  %v3079_v50 = vadd.f32 %v11530_v25, %v14122_v49  ;;  %v3376_v41 = vmax.f32 %v3076_v29, 0.0 }
 0x425   : > { %v3071_v40 = vadd.f32 %v14335_v39, %v3070_v26  ;;  %v3374_v43 = vmax.f32 %v3068_v32, 0.0 }
 0x426   : > { %v3377_v61 = vmax.f32 %v3079_v50, 0.0 }
 0x427   : > { %v3375_v51 = vmax.f32 %v3071_v40, 0.0 }
 0x428   : > { %v14338_v52 = vpack.c.bf16 %v3377_v61, %v3376_v41 }
 0x429   : > { %v14340_v54 = vpack.c.bf16 %v3375_v51, %v3374_v43  ;;  %v11533_v59 = vpop.f32.mrb[200].mxu0 }
 0x42a   : > { %16736 = vst [vmem:[#allocation44_spill] sm:$0xff] %v14338_v52  ;;  %v3083_v49 = vpop.f32.mrb[201].mxu0  ;;  %v3092_v1 = vadd.f32 %v14335_v39, %v11533_v59 }
 0x42b   : > { %16737 = vst [vmem:[#allocation45_spill] sm:$0xff] %v14340_v54  ;;  %3984 = vmatmul.mubr.bf16.gmra.mrb[196].mxu1 %v14242_v44  ;;  %v11534_v60 = vpop.f32.mrb[202].mxu0  ;;  %v3084_v4 = vadd.f32 %v14335_v39, %v3083_v49 }
 0x42c   : > { %3993 = vmatprep.mubr.bf16.mxu1 %v16645_v35  ;;  %v3086_v63 = vpop.f32.mrb[203].mxu0  ;;  %v3095_v9 = vadd.f32 %v14335_v39, %v11534_v60  ;;  %v3380_v12 = vmax.f32 %v3092_v1, 0.0 }
 0x42d   : > { %v3087_v11 = vadd.f32 %v14335_v39, %v3086_v63  ;;  %v3378_v13 = vmax.f32 %v3084_v4, 0.0 }
 0x42e   : > { %v3381_v14 = vmax.f32 %v3095_v9, 0.0 }
 0x42f   : > { %v3379_v15 = vmax.f32 %v3087_v11, 0.0 }
 0x430   : > { %v14350_v20 = vpack.c.bf16 %v3381_v14, %v3380_v12 }
 0x431   : > { %v14352_v23 = vpack.c.bf16 %v3379_v15, %v3378_v13  ;;  %v11537_v25 = vpop.f32.mrb[204].mxu0 }
 0x432   : > { %v3099_v26 = vpop.f32.mrb[205].mxu0  ;;  %v3108_v36 = vadd.f32 %v14335_v39, %v11537_v25 }
 0x433   : > { %3994 = vmatmul.mubr.bf16.gmra.mrb[200].mxu1 %v14258_v27  ;;  %16738 = vst [vmem:[#allocation46_spill] sm:$0xff] %v14352_v23  ;;  %v11538_v29 = vpop.f32.mrb[206].mxu0  ;;  %v3100_v37 = vadd.f32 %v14335_v39, %v3099_v26 }
 0x434   : > { %4003 = vmatprep.mubr.bf16.mxu1 %v16645_v35  ;;  %v3102_v32 = vpop.f32.mrb[207].mxu0  ;;  %v3111_v50 = vadd.f32 %v14335_v39, %v11538_v29  ;;  %v3384_v41 = vmax.f32 %v3108_v36, 0.0 }
 0x435   : > { %v3103_v40 = vadd.f32 %v14335_v39, %v3102_v32  ;;  %v3382_v43 = vmax.f32 %v3100_v37, 0.0 }
 0x436   : > { %v3385_v61 = vmax.f32 %v3111_v50, 0.0 }
 0x437   : > { %v3383_v51 = vmax.f32 %v3103_v40, 0.0 }
 0x438   : > { %v14362_v59 = vpack.c.bf16 %v3385_v61, %v3384_v41  ;;  %v12772_v61 = vld [vmem:[#allocation11 + $0xd0] ss:$20 sps:$4 sm:$0xff]  }
 0x439   : > { %v14364_v49 = vpack.c.bf16 %v3383_v51, %v3382_v43  ;;  %v11541_v60 = vpop.f32.mrb[208].mxu0  ;;  %v12774_v51 = vld [vmem:[#allocation11 + $0xd4] ss:$20 sps:$4 sm:$0xff]  }
 0x43a   : > { %v3115_v63 = vpop.f32.mrb[209].mxu0  ;;  %v3124_v9 = vadd.f32 %v14335_v39, %v11541_v60  ;;  %4464 = vmatprep.subr.bf16.mxu1 %v12774_v51 }
 0x43b   : > { %4004 = vmatmul.mubr.bf16.gmra.mrb[204].mxu1 %v14256_v24  ;;  %v11542_v1 = vpop.f32.mrb[210].mxu0  ;;  %v3116_v11 = vadd.f32 %v14335_v39, %v3115_v63 }
 0x43c   : > { %4013 = vmatprep.mubr.bf16.mxu1 %v16645_v35  ;;  %v3118_v4 = vpop.f32.mrb[211].mxu0  ;;  %v3127_v12 = vadd.f32 %v14335_v39, %v11542_v1  ;;  %v3388_v14 = vmax.f32 %v3124_v9, 0.0  ;;  %v3548_v1 = vlaneseq  ;;  %4465 = vmatpush1.bf16.msra.mxu1 %v12772_v61 }
 0x43d   : > { %v3119_v13 = vadd.f32 %v14335_v39, %v3118_v4  ;;  %v3386_v15 = vmax.f32 %v3116_v11, 0.0 }
 0x43e   : > { %v3389_v25 = vmax.f32 %v3127_v12, 0.0 }
 0x43f   : > { %v3387_v26 = vmax.f32 %v3119_v13, 0.0 }
 0x440   : > { %v14374_v29 = vpack.c.bf16 %v3389_v25, %v3388_v14 }
 0x441   : > { %v14376_v32 = vpack.c.bf16 %v3387_v26, %v3386_v15  ;;  %v11545_v36 = vpop.f32.mrb[212].mxu0  ;;  %v14391_v15 = vshrl.u32 %v3548_v1, 7  ;;  %v3546_v26 = vld [vmem:[#allocation13] sm:$0x1f] }
 0x442   : > { %v3131_v37 = vpop.f32.mrb[213].mxu0  ;;  %v3140_v41 = vadd.f32 %v14335_v39, %v11545_v36 }
 0x443   : > { %4014 = vmatmul.mubr.bf16.gmra.mrb[208].mxu1 %v14268_v57  ;;  %v11546_v50 = vpop.f32.mrb[214].mxu0  ;;  %v3132_v43 = vadd.f32 %v14335_v39, %v3131_v37  ;;  %16739 = vst [vmem:[#allocation47_spill] sm:$0xff] %v14391_v15  ;;  %v16641_v25 = vsub.s32 0, %v14391_v15  ;;  %v16644_v36 = vsub.s32 1, %v14391_v15 }
 0x444   : > { %4023 = vmatprep.mubr.bf16.mxu1 %v16645_v35  ;;  %v3134_v40 = vpop.f32.mrb[215].mxu0  ;;  %v3143_v60 = vadd.f32 %v14335_v39, %v11546_v50  ;;  %v3392_v4 = vmax.f32 %v3140_v41, 0.0 }
 0x445   : > { %v3135_v63 = vadd.f32 %v14335_v39, %v3134_v40  ;;  %v3390_v9 = vmax.f32 %v3132_v43, 0.0  ;;  %v14399_v40 = vrot.slane %v3546_v26, %v16641_v25  ;;  %v14403_v43 = vrot.slane %v3546_v26, %v16644_v36 }
 0x446   : > { %v3393_v11 = vmax.f32 %v3143_v60, 0.0 }
 0x447   : > { %v3391_v12 = vmax.f32 %v3135_v63, 0.0 }
 0x448   : > { %v14386_v13 = vpack.c.bf16 %v3393_v11, %v3392_v4 }
 0x449   : > { %v14388_v14 = vpack.c.bf16 %v3391_v12, %v3390_v9  ;;  %v11549_v37 = vpop.f32.mrb[216].mxu0 }
 0x44a   : > { %v3147_v50 = vpop.f32.mrb[217].mxu0  ;;  %v3156_v51 = vadd.f32 %v14335_v39, %v11549_v37 }
 0x44b   : > { %4024 = vmatmul.mubr.bf16.gmra.mrb[212].mxu1 %v14266_v55  ;;  %v11550_v41 = vpop.f32.mrb[218].mxu0  ;;  %v3148_v60 = vadd.f32 %v14335_v39, %v3147_v50 }
 0x44c   : > { %4033 = vmatprep.mubr.bf16.mxu1 %v16645_v35  ;;  %v3150_v61 = vpop.f32.mrb[219].mxu0  ;;  %v3159_v63 = vadd.f32 %v14335_v39, %v11550_v41  ;;  %v3396_v12 = vmax.f32 %v3156_v51, 0.0 }
 0x44d   : > { %v3151_v1 = vadd.f32 %v14335_v39, %v3150_v61  ;;  %v3394_v25 = vmax.f32 %v3148_v60, 0.0 }
 0x453   : > { %4034 = vmatmul.mubr.bf16.gmra.mrb[216].mxu1 %v14278_v22 }
 0x454   : > { %4043 = vmatprep.mubr.bf16.mxu1 %v16645_v35 }
 0x45b   : > { %4044 = vmatmul.mubr.bf16.gmra.mrb[220].mxu1 %v14276_v17 }
 0x45c   : > { %4053 = vmatprep.mubr.bf16.mxu1 %v16645_v35 }
 0x463   : > { %4054 = vmatmul.mubr.bf16.gmra.mrb[224].mxu1 %v14288_v48 }
 0x464   : > { %4063 = vmatprep.mubr.bf16.mxu1 %v16645_v35 }
 0x46b   : > { %4064 = vmatmul.mubr.bf16.gmra.mrb[228].mxu1 %v14286_v45 }
 0x46c   : > { %4073 = vmatprep.mubr.bf16.mxu1 %v16645_v35 }
 0x473   : > { %4074 = vmatmul.mubr.bf16.gmra.mrb[232].mxu1 %v14298_v10  ;;  %v3397_v10 = vmax.f32 %v3159_v63, 0.0  ;;  %v16740_v63 = vmov 0  }
 0x474   : > { %4083 = vmatprep.mubr.bf16.mxu1 %v16645_v35  ;;  %v3395_v35 = vmax.f32 %v3151_v1, 0.0 }
 0x475   : > { %v14413_v45 = vpack.c.bf16 %v3397_v10, %v3396_v12 }
 0x476   : > { %v3815_v4 = vpop.f32.mrb[128].mxu1  ;;  %v14416_v41 = vpack.c.bf16 %v3395_v35, %v3394_v25 }
 0x477   : > { %v3816_v9 = vadd.f32 %v3815_v4, %v14399_v40  ;;  %v3817_v11 = vpop.f32.mrb[129].mxu1 }
 0x478   : > { %v3818_v26 = vadd.f32 %v3817_v11, %v14403_v43  ;;  %v3819_v36 = vpop.f32.mrb[130].mxu1 }
 0x479   : > { %v3820_v15 = vadd.f32 %v3819_v36, %v14399_v40  ;;  %v3821_v37 = vpop.f32.mrb[131].mxu1  ;;  %v5672_v61 = vmax.f32 %v3816_v9, 0.0 }
 0x47a   : > { %v3822_v50 = vadd.f32 %v3821_v37, %v14403_v43  ;;  %v5673_v51 = vmax.f32 %v3818_v26, 0.0 }
 0x47b   : > { %v5677_v48 = vmax.f32 %v3820_v15, 0.0  ;;  %4084 = vmatmul.mubr.bf16.gmra.mrb[236].mxu1 %v14296_v5  ;;  %v11553_v15 = vpop.f32.mrb[220].mxu0 }
 0x47c   : > { %v5678_v60 = vmax.f32 %v3822_v50, 0.0  ;;  %4093 = vmatprep.mubr.bf16.mxu1 %v16740_v63  ;;  %v3163_v26 = vpop.f32.mrb[221].mxu0 }
 0x47d   : > { %v6312_v4 = vpack.c.bf16 %v5677_v48, %v5672_v61  ;;  %v11554_v48 = vpop.f32.mrb[222].mxu0 }
 0x47e   : > { %v3825_v11 = vpop.f32.mrb[132].mxu1  ;;  %v6313_v1 = vpack.c.bf16 %v5678_v60, %v5673_v51 }
 0x47f   : > { %v3826_v36 = vadd.f32 %v3825_v11, %v14399_v40  ;;  %v3827_v17 = vpop.f32.mrb[133].mxu1  ;;  %v3172_v11 = vadd.f32 %v14335_v39, %v11553_v15 }
 0x480   : > { %v3828_v10 = vadd.f32 %v3827_v17, %v14403_v43  ;;  %v3829_v12 = vpop.f32.mrb[134].mxu1  ;;  %7156 = vmatprep.mubr.bf16.mxu0 %v6313_v1  ;;  %v3166_v17 = vpop.f32.mrb[223].mxu0  ;;  %v3164_v1 = vadd.f32 %v14335_v39, %v3163_v26 }
 0x481   : > { %v3830_v35 = vadd.f32 %v3829_v12, %v14399_v40  ;;  %v3831_v25 = vpop.f32.mrb[135].mxu1  ;;  %7157 = vmatmul.mubr.bf16.vlgmr.msra.gmra.mrb[0].mxu0 %v6312_v4  ;;  %v5682_v37 = vmax.f32 %v3826_v36, 0.0  ;;  %v3175_v4 = vadd.f32 %v14335_v39, %v11554_v48  ;;  %v3167_v36 = vadd.f32 %v14335_v39, %v3166_v17 }
 0x482   : > { %v3832_v9 = vadd.f32 %v3831_v25, %v14403_v43  ;;  %v5683_v61 = vmax.f32 %v3828_v10, 0.0  ;;  %v3400_v5 = vmax.f32 %v3172_v11, 0.0  ;;  %v3398_v10 = vmax.f32 %v3164_v1, 0.0 }
 0x483   : > { %v5687_v50 = vmax.f32 %v3830_v35, 0.0  ;;  %4094 = vmatmul.mubr.bf16.gmra.mrb[240].mxu1 %v14308_v31 }
 0x484   : > { %v5688_v51 = vmax.f32 %v3832_v9, 0.0  ;;  %4103 = vmatprep.mubr.bf16.mxu1 %v16740_v63  ;;  %v3401_v9 = vmax.f32 %v3175_v4, 0.0 }
 0x485   : > { %v6317_v60 = vpack.c.bf16 %v5687_v50, %v5682_v37  ;;  %v3399_v37 = vmax.f32 %v3167_v36, 0.0 }
 0x486   : > { %v3835_v12 = vpop.f32.mrb[136].mxu1  ;;  %v6318_v25 = vpack.c.bf16 %v5688_v51, %v5683_v61  ;;  %v14433_v50 = vpack.c.bf16 %v3401_v9, %v3400_v5 }
 0x487   : > { %v3836_v35 = vadd.f32 %v3835_v12, %v14399_v40  ;;  %v3837_v31 = vpop.f32.mrb[137].mxu1  ;;  %v14436_v61 = vpack.c.bf16 %v3399_v37, %v3398_v10 }
 0x488   : > { %v3838_v22 = vadd.f32 %v3837_v31, %v14403_v43  ;;  %v3839_v55 = vpop.f32.mrb[138].mxu1  ;;  %7166 = vmatprep.mubr.bf16.mxu0 %v6318_v25  ;;  %v11557_v31 = vpop.f32.mrb[224].mxu0 }
 0x489   : > { %v3840_v15 = vadd.f32 %v3839_v55, %v14399_v40  ;;  %v3841_v26 = vpop.f32.mrb[139].mxu1  ;;  %7167 = vmatmul.mubr.bf16.gmra.mrb[4].mxu0 %v6317_v60  ;;  %v5692_v51 = vmax.f32 %v3836_v35, 0.0  ;;  %v3188_v55 = vadd.f32 %v14335_v39, %v11557_v31  ;;  %v3179_v12 = vpop.f32.mrb[225].mxu0 }
 0x48a   : > { %v3842_v48 = vadd.f32 %v3841_v26, %v14403_v43  ;;  %v5693_v11 = vmax.f32 %v3838_v22, 0.0  ;;  %v3180_v25 = vadd.f32 %v14335_v39, %v3179_v12  ;;  %v11558_v36 = vpop.f32.mrb[226].mxu0 }
 0x48b   : > { %v5697_v17 = vmax.f32 %v3840_v15, 0.0  ;;  %4104 = vmatmul.mubr.bf16.gmra.mrb[244].mxu1 %v14306_v28  ;;  %v3404_v9 = vmax.f32 %v3188_v55, 0.0  ;;  %v3191_v37 = vadd.f32 %v14335_v39, %v11558_v36  ;;  %v3182_v22 = vpop.f32.mrb[227].mxu0 }
 0x48c   : > { %v5698_v1 = vmax.f32 %v3842_v48, 0.0  ;;  %4113 = vmatprep.mubr.bf16.mxu1 %v16740_v63  ;;  %v3402_v48 = vmax.f32 %v3180_v25, 0.0  ;;  %v11561_v25 = vpop.f32.mrb[228].mxu0 }
 0x48d   : > { %v6322_v4 = vpack.c.bf16 %v5697_v17, %v5692_v51  ;;  %v3183_v51 = vadd.f32 %v14335_v39, %v3182_v22 }
 0x48e   : > { %v3845_v60 = vpop.f32.mrb[140].mxu1  ;;  %v6323_v5 = vpack.c.bf16 %v5698_v1, %v5693_v11  ;;  %v3405_v1 = vmax.f32 %v3191_v37, 0.0  ;;  %v3195_v37 = vpop.f32.mrb[229].mxu0 }
 0x48f   : > { %v3846_v10 = vadd.f32 %v3845_v60, %v14399_v40  ;;  %v3847_v35 = vpop.f32.mrb[141].mxu1  ;;  %v3403_v12 = vmax.f32 %v3183_v51, 0.0  ;;  %v11562_v51 = vpop.f32.mrb[230].mxu0 }
 0x490   : > { %v3848_v15 = vadd.f32 %v3847_v35, %v14403_v43  ;;  %v3849_v26 = vpop.f32.mrb[142].mxu1  ;;  %7176 = vmatprep.mubr.bf16.mxu0 %v6323_v5  ;;  %v14449_v36 = vpack.c.bf16 %v3405_v1, %v3404_v9 }
 0x491   : > { %v3850_v17 = vadd.f32 %v3849_v26, %v14399_v40  ;;  %v3851_v11 = vpop.f32.mrb[143].mxu1  ;;  %7177 = vmatmul.mubr.bf16.gmra.mrb[8].mxu0 %v6322_v4  ;;  %v5702_v60 = vmax.f32 %v3846_v10, 0.0  ;;  %v14452_v5 = vpack.c.bf16 %v3403_v12, %v3402_v48  ;;  %v3204_v4 = vadd.f32 %v14335_v39, %v11561_v25 }
 0x492   : > { %v3852_v31 = vadd.f32 %v3851_v11, %v14403_v43  ;;  %v5703_v35 = vmax.f32 %v3848_v15, 0.0  ;;  %v3196_v10 = vadd.f32 %v14335_v39, %v3195_v37  ;;  %v3207_v15 = vadd.f32 %v14335_v39, %v11562_v51 }
 0x493   : > { %v5707_v55 = vmax.f32 %v3850_v17, 0.0  ;;  %4114 = vmatmul.mubr.bf16.gmra.mrb[248].mxu1 %v14318_v56  ;;  %v3408_v1 = vmax.f32 %v3204_v4, 0.0 }
 0x494   : > { %v5708_v28 = vmax.f32 %v3852_v31, 0.0  ;;  %4123 = vmatprep.mubr.bf16.mxu1 %v16740_v63  ;;  %v3198_v31 = vpop.f32.mrb[231].mxu0 }
 0x495   : > { %v6327_v22 = vpack.c.bf16 %v5707_v55, %v5702_v60  ;;  %v3406_v60 = vmax.f32 %v3196_v10, 0.0  ;;  %v3199_v55 = vadd.f32 %v14335_v39, %v3198_v31  ;;  %v11565_v10 = vpop.f32.mrb[232].mxu0 }
 0x496   : > { %v3855_v26 = vpop.f32.mrb[144].mxu1  ;;  %v6328_v11 = vpack.c.bf16 %v5708_v28, %v5703_v35  ;;  %v3409_v35 = vmax.f32 %v3207_v15, 0.0  ;;  %v3211_v15 = vpop.f32.mrb[233].mxu0 }
 0x497   : > { %v3856_v17 = vadd.f32 %v3855_v26, %v14399_v40  ;;  %v3857_v9 = vpop.f32.mrb[145].mxu1  ;;  %v3407_v26 = vmax.f32 %v3199_v55, 0.0  ;;  %v11566_v55 = vpop.f32.mrb[234].mxu0 }
 0x498   : > { %v3858_v48 = vadd.f32 %v3857_v9, %v14403_v43  ;;  %v3859_v12 = vpop.f32.mrb[146].mxu1  ;;  %7186 = vmatprep.mubr.bf16.mxu0 %v6328_v11  ;;  %v14463_v51 = vpack.c.bf16 %v3409_v35, %v3408_v1 }
 0x499   : > { %v3860_v25 = vadd.f32 %v3859_v12, %v14399_v40  ;;  %v3861_v28 = vpop.f32.mrb[147].mxu1  ;;  %7187 = vmatmul.mubr.bf16.gmra.mrb[12].mxu0 %v6327_v22  ;;  %v5712_v56 = vmax.f32 %v3856_v17, 0.0  ;;  %v14466_v11 = vpack.c.bf16 %v3407_v26, %v3406_v60  ;;  %v3220_v22 = vadd.f32 %v14335_v39, %v11565_v10 }
 0x49a   : > { %v3862_v37 = vadd.f32 %v3861_v28, %v14403_v43  ;;  %v5713_v9 = vmax.f32 %v3858_v48, 0.0  ;;  %v3212_v17 = vadd.f32 %v14335_v39, %v3211_v15  ;;  %v3223_v48 = vadd.f32 %v14335_v39, %v11566_v55 }
 0x49b   : > { %v5717_v4 = vmax.f32 %v3860_v25, 0.0  ;;  %4124 = vmatmul.mubr.bf16.gmra.mrb[252].mxu1 %v14316_v53  ;;  %v3412_v35 = vmax.f32 %v3220_v22, 0.0 }
 0x49c   : > { %v5718_v57 = vmax.f32 %v3862_v37, 0.0  ;;  %4133 = vmatprep.mubr.bf16.mxu1 %v16740_v63  ;;  %v3214_v37 = vpop.f32.mrb[235].mxu0 }
 0x49d   : > { %v6332_v31 = vpack.c.bf16 %v5717_v4, %v5712_v56  ;;  %v3410_v56 = vmax.f32 %v3212_v17, 0.0  ;;  %v3215_v4 = vadd.f32 %v14335_v39, %v3214_v37  ;;  %v11569_v17 = vpop.f32.mrb[236].mxu0 }
 0x49e   : > { %v3865_v12 = vpop.f32.mrb[148].mxu1  ;;  %v6333_v28 = vpack.c.bf16 %v5718_v57, %v5713_v9  ;;  %v3413_v9 = vmax.f32 %v3223_v48, 0.0  ;;  %v3236_v48 = vadd.f32 %v14335_v39, %v11569_v17 }
 0x49f   : > { %v3866_v25 = vadd.f32 %v3865_v12, %v14399_v40  ;;  %v3867_v1 = vpop.f32.mrb[149].mxu1  ;;  %v3411_v12 = vmax.f32 %v3215_v4, 0.0 }
 0x4a0   : > { %v3868_v60 = vadd.f32 %v3867_v1, %v14403_v43  ;;  %v3869_v26 = vpop.f32.mrb[150].mxu1  ;;  %7196 = vmatprep.mubr.bf16.mxu0 %v6333_v28  ;;  %v14477_v55 = vpack.c.bf16 %v3413_v9, %v3412_v35  ;;  %v3416_v9 = vmax.f32 %v3236_v48, 0.0 }
 0x4a1   : > { %v3870_v10 = vadd.f32 %v3869_v26, %v14399_v40  ;;  %v3871_v57 = vpop.f32.mrb[151].mxu1  ;;  %7197 = vmatmul.mubr.bf16.gmra.mrb[16].mxu0 %v6332_v31  ;;  %v5722_v53 = vmax.f32 %v3866_v25, 0.0  ;;  %v14480_v28 = vpack.c.bf16 %v3411_v12, %v3410_v56  ;;  %v12775_v26 = vld [vmem:[#allocation11 + $0xf8] ss:$20 sps:$4 sm:$0xff]   ;;  %v12777_v31 = vld [vmem:[#allocation11 + $0xfc] ss:$20 sps:$4 sm:$0xff]  }
 0x4a2   : > { %v3872_v15 = vadd.f32 %v3871_v57, %v14403_v43  ;;  %v5723_v1 = vmax.f32 %v3868_v60, 0.0  ;;  %v3227_v57 = vpop.f32.mrb[237].mxu0  ;;  %4466 = vmatprep.subr.bf16.mxu1 %v12777_v31 }
 0x4a3   : > { %v5727_v22 = vmax.f32 %v3870_v10, 0.0  ;;  %4134 = vmatmul.mubr.bf16.gmra.mrb[0].mxu1 %v14328_v19  ;;  %v3228_v10 = vadd.f32 %v14335_v39, %v3227_v57  ;;  %v11570_v19 = vpop.f32.mrb[238].mxu0 }
 0x4a4   : > { %v5728_v24 = vmax.f32 %v3872_v15, 0.0  ;;  %4143 = vmatprep.mubr.bf16.mxu1 %v16740_v63  ;;  %v3239_v56 = vadd.f32 %v14335_v39, %v11570_v19  ;;  %v3230_v15 = vpop.f32.mrb[239].mxu0  ;;  %4467 = vmatpush1.bf16.msra.mxu1 %v12775_v26 }
 0x4a5   : > { %v6337_v37 = vpack.c.bf16 %v5727_v22, %v5722_v53  ;;  %v3414_v22 = vmax.f32 %v3228_v10, 0.0  ;;  %v3231_v17 = vadd.f32 %v14335_v39, %v3230_v15  ;;  %v11573_v10 = vpop.f32.mrb[240].mxu0 }
 0x4a6   : > { %v3875_v4 = vpop.f32.mrb[152].mxu1  ;;  %v6338_v25 = vpack.c.bf16 %v5728_v24, %v5723_v1  ;;  %v3417_v57 = vmax.f32 %v3239_v56, 0.0  ;;  %v3243_v56 = vpop.f32.mrb[241].mxu0 }
 0x4a7   : > { %v3876_v35 = vadd.f32 %v3875_v4, %v14399_v40  ;;  %v3877_v60 = vpop.f32.mrb[153].mxu1  ;;  %v3415_v31 = vmax.f32 %v3231_v17, 0.0  ;;  %v11574_v17 = vpop.f32.mrb[242].mxu0 }
 0x4a8   : > { %v3878_v53 = vadd.f32 %v3877_v60, %v14403_v43  ;;  %v3879_v12 = vpop.f32.mrb[154].mxu1  ;;  %7206 = vmatprep.mubr.bf16.mxu0 %v6338_v25  ;;  %v14491_v19 = vpack.c.bf16 %v3417_v57, %v3416_v9 }
 0x4a9   : > { %v3880_v24 = vadd.f32 %v3879_v12, %v14399_v40  ;;  %v3881_v1 = vpop.f32.mrb[155].mxu1  ;;  %7207 = vmatmul.mubr.bf16.gmra.mrb[20].mxu0 %v6337_v37  ;;  %v5732_v48 = vmax.f32 %v3876_v35, 0.0  ;;  %v14494_v26 = vpack.c.bf16 %v3415_v31, %v3414_v22  ;;  %v3252_v37 = vadd.f32 %v14335_v39, %v11573_v10 }
 0x4aa   : > { %v3882_v4 = vadd.f32 %v3881_v1, %v14403_v43  ;;  %v5733_v60 = vmax.f32 %v3878_v53, 0.0  ;;  %v3244_v35 = vadd.f32 %v14335_v39, %v3243_v56  ;;  %v3255_v53 = vadd.f32 %v14335_v39, %v11574_v17 }
 0x4ab   : > { %v5737_v27 = vmax.f32 %v3880_v24, 0.0  ;;  %4144 = vmatmul.mubr.bf16.gmra.mrb[4].mxu1 %v14326_v16  ;;  %v3420_v57 = vmax.f32 %v3252_v37, 0.0 }
 0x4ac   : > { %v5738_v25 = vmax.f32 %v3882_v4, 0.0  ;;  %4153 = vmatprep.mubr.bf16.mxu1 %v16740_v63  ;;  %v3246_v4 = vpop.f32.mrb[243].mxu0 }
 0x4ad   : > { %v6342_v15 = vpack.c.bf16 %v5737_v27, %v5732_v48  ;;  %v3418_v27 = vmax.f32 %v3244_v35, 0.0  ;;  %v3247_v48 = vadd.f32 %v14335_v39, %v3246_v4  ;;  %v11577_v35 = vpop.f32.mrb[244].mxu0 }
 0x4ae   : > { %v3885_v12 = vpop.f32.mrb[156].mxu1  ;;  %v6343_v1 = vpack.c.bf16 %v5738_v25, %v5733_v60  ;;  %v3421_v25 = vmax.f32 %v3255_v53, 0.0  ;;  %v3259_v53 = vpop.f32.mrb[245].mxu0 }
 0x4af   : > { %v3886_v24 = vadd.f32 %v3885_v12, %v14399_v40  ;;  %v3887_v9 = vpop.f32.mrb[157].mxu1  ;;  %v3419_v12 = vmax.f32 %v3247_v48, 0.0  ;;  %v11578_v48 = vpop.f32.mrb[246].mxu0 }
 0x4b0   : > { %v3888_v22 = vadd.f32 %v3887_v9, %v14403_v43  ;;  %v3889_v31 = vpop.f32.mrb[158].mxu1  ;;  %7216 = vmatprep.mubr.bf16.mxu0 %v6343_v1  ;;  %v14505_v17 = vpack.c.bf16 %v3421_v25, %v3420_v57 }
 0x4b1   : > { %v3890_v10 = vadd.f32 %v3889_v31, %v14399_v40  ;;  %v3891_v60 = vpop.f32.mrb[159].mxu1  ;;  %7217 = vmatmul.mubr.bf16.gmra.mrb[24].mxu0 %v6342_v15  ;;  %v5742_v16 = vmax.f32 %v3886_v24, 0.0  ;;  %v14508_v1 = vpack.c.bf16 %v3419_v12, %v3418_v27  ;;  %v3268_v15 = vadd.f32 %v14335_v39, %v11577_v35 }
 0x4b2   : > { %v3892_v56 = vadd.f32 %v3891_v60, %v14403_v43  ;;  %v5743_v9 = vmax.f32 %v3888_v22, 0.0  ;;  %v3260_v24 = vadd.f32 %v14335_v39, %v3259_v53  ;;  %v3271_v22 = vadd.f32 %v14335_v39, %v11578_v48 }
 0x4b3   : > { %v5747_v37 = vmax.f32 %v3890_v10, 0.0  ;;  %4154 = vmatmul.mubr.bf16.gmra.mrb[8].mxu1 %v14340_v54  ;;  %v3424_v25 = vmax.f32 %v3268_v15, 0.0 }
 0x4b4   : > { %v5748_v44 = vmax.f32 %v3892_v56, 0.0  ;;  %4163 = vmatprep.mubr.bf16.mxu1 %v16740_v63  ;;  %v3262_v56 = vpop.f32.mrb[247].mxu0 }
 0x4b5   : > { %v6347_v4 = vpack.c.bf16 %v5747_v37, %v5742_v16  ;;  %v3422_v16 = vmax.f32 %v3260_v24, 0.0  ;;  %v3263_v37 = vadd.f32 %v14335_v39, %v3262_v56  ;;  %v11581_v24 = vpop.f32.mrb[248].mxu0 }
 0x4b6   : > { %v3895_v31 = vpop.f32.mrb[160].mxu1  ;;  %v6348_v60 = vpack.c.bf16 %v5748_v44, %v5743_v9  ;;  %v3425_v9 = vmax.f32 %v3271_v22, 0.0  ;;  %v3275_v22 = vpop.f32.mrb[249].mxu0 }
 0x4b7   : > { %v3896_v10 = vadd.f32 %v3895_v31, %v14399_v40  ;;  %v3897_v57 = vpop.f32.mrb[161].mxu1  ;;  %v3423_v31 = vmax.f32 %v3263_v37, 0.0  ;;  %v11582_v37 = vpop.f32.mrb[250].mxu0 }
 0x4b8   : > { %v3898_v27 = vadd.f32 %v3897_v57, %v14403_v43  ;;  %v3899_v12 = vpop.f32.mrb[162].mxu1  ;;  %7226 = vmatprep.mubr.bf16.mxu0 %v6348_v60  ;;  %v14519_v48 = vpack.c.bf16 %v3425_v9, %v3424_v25 }
 0x4b9   : > { %v3900_v35 = vadd.f32 %v3899_v12, %v14399_v40  ;;  %v3901_v44 = vpop.f32.mrb[163].mxu1  ;;  %7227 = vmatmul.mubr.bf16.gmra.mrb[28].mxu0 %v6347_v4  ;;  %v5752_v54 = vmax.f32 %v3896_v10, 0.0  ;;  %v14522_v60 = vpack.c.bf16 %v3423_v31, %v3422_v16  ;;  %v3284_v4 = vadd.f32 %v14335_v39, %v11581_v24 }
 0x4ba   : > { %v3902_v53 = vadd.f32 %v3901_v44, %v14403_v43  ;;  %v5753_v57 = vmax.f32 %v3898_v27, 0.0  ;;  %v3276_v10 = vadd.f32 %v14335_v39, %v3275_v22  ;;  %v3287_v27 = vadd.f32 %v14335_v39, %v11582_v37 }
 0x4bb   : > { %v5757_v15 = vmax.f32 %v3900_v35, 0.0  ;;  %4164 = vmatmul.mubr.bf16.gmra.mrb[12].mxu1 %v14338_v52  ;;  %v3428_v9 = vmax.f32 %v3284_v4, 0.0 }
 0x4bc   : > { %v5758_v47 = vmax.f32 %v3902_v53, 0.0  ;;  %4173 = vmatprep.mubr.bf16.mxu1 %v16740_v63  ;;  %v3278_v53 = vpop.f32.mrb[251].mxu0 }
 0x4bd   : > { %v6352_v56 = vpack.c.bf16 %v5757_v15, %v5752_v54  ;;  %v3426_v54 = vmax.f32 %v3276_v10, 0.0  ;;  %v3279_v15 = vadd.f32 %v14335_v39, %v3278_v53  ;;  %v11585_v10 = vpop.f32.mrb[252].mxu0 }
 0x4be   : > { %v3905_v12 = vpop.f32.mrb[164].mxu1  ;;  %v6353_v44 = vpack.c.bf16 %v5758_v47, %v5753_v57  ;;  %v3429_v57 = vmax.f32 %v3287_v27, 0.0  ;;  %v3291_v27 = vpop.f32.mrb[253].mxu0 }
 0x4bf   : > { %v3906_v35 = vadd.f32 %v3905_v12, %v14399_v40  ;;  %v3907_v25 = vpop.f32.mrb[165].mxu1  ;;  %v3427_v12 = vmax.f32 %v3279_v15, 0.0  ;;  %v11586_v15 = vpop.f32.mrb[254].mxu0 }
 0x4c0   : > { %v3908_v16 = vadd.f32 %v3907_v25, %v14403_v43  ;;  %v3909_v31 = vpop.f32.mrb[166].mxu1  ;;  %7236 = vmatprep.mubr.bf16.mxu0 %v6353_v44  ;;  %v14533_v37 = vpack.c.bf16 %v3429_v57, %v3428_v9 }
 0x4c1   : > { %v3910_v24 = vadd.f32 %v3909_v31, %v14399_v40  ;;  %v3911_v47 = vpop.f32.mrb[167].mxu1  ;;  %7237 = vmatmul.mubr.bf16.gmra.mrb[32].mxu0 %v6352_v56  ;;  %v5762_v52 = vmax.f32 %v3906_v35, 0.0  ;;  %v14536_v44 = vpack.c.bf16 %v3427_v12, %v3426_v54  ;;  %v3300_v56 = vadd.f32 %v14335_v39, %v11585_v10 }
 0x4c2   : > { %v3912_v22 = vadd.f32 %v3911_v47, %v14403_v43  ;;  %v5763_v25 = vmax.f32 %v3908_v16, 0.0  ;;  %v3292_v35 = vadd.f32 %v14335_v39, %v3291_v27  ;;  %v3303_v16 = vadd.f32 %v14335_v39, %v11586_v15 }
 0x4c3   : > { %v5767_v4 = vmax.f32 %v3910_v24, 0.0  ;;  %4174 = vmatmul.mubr.bf16.gmra.mrb[16].mxu1 %v14352_v23  ;;  %v3432_v57 = vmax.f32 %v3300_v56, 0.0 }
 0x4c4   : > { %v5768_v58 = vmax.f32 %v3912_v22, 0.0  ;;  %4183 = vmatprep.mubr.bf16.mxu1 %v16740_v63  ;;  %v3294_v22 = vpop.f32.mrb[255].mxu0 }
 0x4c5   : > { %v6357_v53 = vpack.c.bf16 %v5767_v4, %v5762_v52  ;;  %v3430_v52 = vmax.f32 %v3292_v35, 0.0  ;;  %v3295_v4 = vadd.f32 %v14335_v39, %v3294_v22 }
 0x4c6   : > { %v3915_v31 = vpop.f32.mrb[168].mxu1  ;;  %v6358_v47 = vpack.c.bf16 %v5768_v58, %v5763_v25  ;;  %v3433_v25 = vmax.f32 %v3303_v16, 0.0 }
 0x4c7   : > { %v3916_v24 = vadd.f32 %v3915_v31, %v14399_v40  ;;  %v3917_v9 = vpop.f32.mrb[169].mxu1  ;;  %v3431_v31 = vmax.f32 %v3295_v4, 0.0 }
 0x4c8   : > { %v3918_v54 = vadd.f32 %v3917_v9, %v14403_v43  ;;  %v3919_v12 = vpop.f32.mrb[170].mxu1  ;;  %7246 = vmatprep.mubr.bf16.mxu0 %v6358_v47  ;;  %v14547_v15 = vpack.c.bf16 %v3433_v25, %v3432_v57 }
 0x4c9   : > { %v3920_v10 = vadd.f32 %v3919_v12, %v14399_v40  ;;  %v3921_v58 = vpop.f32.mrb[171].mxu1  ;;  %7247 = vmatmul.mubr.bf16.gmra.mrb[36].mxu0 %v6357_v53  ;;  %v5772_v23 = vmax.f32 %v3916_v24, 0.0  ;;  %v14550_v47 = vpack.c.bf16 %v3431_v31, %v3430_v52 }
 0x4ca   : > { %v3922_v27 = vadd.f32 %v3921_v58, %v14403_v43  ;;  %v5773_v9 = vmax.f32 %v3918_v54, 0.0 }
 0x4cb   : > { %v5777_v56 = vmax.f32 %v3920_v10, 0.0  ;;  %4184 = vmatmul.mubr.bf16.gmra.mrb[20].mxu1 %v14350_v20 }
 0x4cc   : > { %v5778_v62 = vmax.f32 %v3922_v27, 0.0  ;;  %4193 = vmatprep.mubr.bf16.mxu1 %v16740_v63 }
 0x4cd   : > { %v6362_v39 = vpack.c.bf16 %v5777_v56, %v5772_v23 }
 0x4ce   : > { %v3925_v35 = vpop.f32.mrb[172].mxu1  ;;  %v6363_v22 = vpack.c.bf16 %v5778_v62, %v5773_v9 }
 0x4cf   : > { %v3926_v53 = vadd.f32 %v3925_v35, %v14399_v40  ;;  %v3927_v16 = vpop.f32.mrb[173].mxu1 }
 0x4d0   : > { %v3928_v12 = vadd.f32 %v3927_v16, %v14403_v43  ;;  %v3929_v24 = vpop.f32.mrb[174].mxu1  ;;  %7256 = vmatprep.mubr.bf16.mxu0 %v6363_v22 }
 0x4d1   : > { %v3930_v4 = vadd.f32 %v3929_v24, %v14399_v40  ;;  %v3931_v57 = vpop.f32.mrb[175].mxu1  ;;  %7257 = vmatmul.mubr.bf16.gmra.mrb[40].mxu0 %v6362_v39  ;;  %v5782_v10 = vmax.f32 %v3926_v53, 0.0 }
 0x4d2   : > { %v3932_v54 = vadd.f32 %v3931_v57, %v14403_v43  ;;  %v5783_v23 = vmax.f32 %v3928_v12, 0.0 }
 0x4d3   : > { %v5787_v58 = vmax.f32 %v3930_v4, 0.0  ;;  %4194 = vmatmul.mubr.bf16.gmra.mrb[24].mxu1 %v14364_v49 }
 0x4d4   : > { %v5788_v52 = vmax.f32 %v3932_v54, 0.0  ;;  %4203 = vmatprep.mubr.bf16.mxu1 %v16740_v63 }
 0x4d5   : > { %v6367_v62 = vpack.c.bf16 %v5787_v58, %v5782_v10 }
 0x4d6   : > { %v3935_v25 = vpop.f32.mrb[176].mxu1  ;;  %v6368_v27 = vpack.c.bf16 %v5788_v52, %v5783_v23 }
 0x4d7   : > { %v3936_v31 = vadd.f32 %v3935_v25, %v14399_v40  ;;  %v3937_v56 = vpop.f32.mrb[177].mxu1 }
 0x4d8   : > { %v3938_v9 = vadd.f32 %v3937_v56, %v14403_v43  ;;  %v3939_v35 = vpop.f32.mrb[178].mxu1  ;;  %7266 = vmatprep.mubr.bf16.mxu0 %v6368_v27 }
 0x4d9   : > { %v3940_v39 = vadd.f32 %v3939_v35, %v14399_v40  ;;  %v3941_v22 = vpop.f32.mrb[179].mxu1  ;;  %7267 = vmatmul.mubr.bf16.gmra.mrb[44].mxu0 %v6367_v62  ;;  %v5792_v16 = vmax.f32 %v3936_v31, 0.0 }
 0x4da   : > { %v3942_v53 = vadd.f32 %v3941_v22, %v14403_v43  ;;  %v5793_v24 = vmax.f32 %v3938_v9, 0.0 }
 0x4db   : > { %v5797_v12 = vmax.f32 %v3940_v39, 0.0  ;;  %4204 = vmatmul.mubr.bf16.gmra.mrb[28].mxu1 %v14362_v59 }
 0x4dc   : > { %v5798_v4 = vmax.f32 %v3942_v53, 0.0  ;;  %4213 = vmatprep.mubr.bf16.mxu1 %v16740_v63  ;;  %v12778_v53 = vld [vmem:[#allocation11 + $0x120] ss:$20 sps:$4 sm:$0xff]  }
 0x4dd   : > { %v6372_v57 = vpack.c.bf16 %v5797_v12, %v5792_v16  ;;  %v12780_v16 = vld [vmem:[#allocation11 + $0x124] ss:$20 sps:$4 sm:$0xff]  }
 0x4de   : > { %v3945_v54 = vpop.f32.mrb[180].mxu1  ;;  %v6373_v10 = vpack.c.bf16 %v5798_v4, %v5793_v24  ;;  %4468 = vmatprep.subr.bf16.mxu1 %v12780_v16 }
 0x4df   : > { %v3946_v58 = vadd.f32 %v3945_v54, %v14399_v40  ;;  %v3947_v23 = vpop.f32.mrb[181].mxu1  ;;  %4469 = vmatpush1.bf16.msra.mxu1 %v12778_v53 }
 0x4e0   : > { %v3948_v52 = vadd.f32 %v3947_v23, %v14403_v43  ;;  %v3949_v25 = vpop.f32.mrb[182].mxu1  ;;  %7276 = vmatprep.mubr.bf16.mxu0 %v6373_v10 }
 0x4e1   : > { %v3950_v62 = vadd.f32 %v3949_v25, %v14399_v40  ;;  %v3951_v27 = vpop.f32.mrb[183].mxu1  ;;  %7277 = vmatmul.mubr.bf16.gmra.mrb[48].mxu0 %v6372_v57  ;;  %v5802_v56 = vmax.f32 %v3946_v58, 0.0 }
 0x4e2   : > { %v3952_v31 = vadd.f32 %v3951_v27, %v14403_v43  ;;  %v5803_v35 = vmax.f32 %v3948_v52, 0.0 }
 0x4e3   : > { %v5807_v9 = vmax.f32 %v3950_v62, 0.0  ;;  %4214 = vmatmul.mubr.bf16.gmra.mrb[32].mxu1 %v14376_v32 }
 0x4e4   : > { %v5808_v39 = vmax.f32 %v3952_v31, 0.0  ;;  %4223 = vmatprep.mubr.bf16.mxu1 %v16740_v63 }
 0x4e5   : > { %v6377_v22 = vpack.c.bf16 %v5807_v9, %v5802_v56 }
 0x4e6   : > { %v3955_v12 = vpop.f32.mrb[184].mxu1  ;;  %v6378_v24 = vpack.c.bf16 %v5808_v39, %v5803_v35 }
 0x4e7   : > { %v3956_v4 = vadd.f32 %v3955_v12, %v14399_v40  ;;  %v3957_v54 = vpop.f32.mrb[185].mxu1 }
 0x4e8   : > { %v3958_v57 = vadd.f32 %v3957_v54, %v14403_v43  ;;  %v3959_v10 = vpop.f32.mrb[186].mxu1  ;;  %7286 = vmatprep.mubr.bf16.mxu0 %v6378_v24 }
 0x4e9   : > { %v3960_v58 = vadd.f32 %v3959_v10, %v14399_v40  ;;  %v3961_v23 = vpop.f32.mrb[187].mxu1  ;;  %7287 = vmatmul.mubr.bf16.gmra.mrb[52].mxu0 %v6377_v22  ;;  %v5812_v25 = vmax.f32 %v3956_v4, 0.0 }
 0x4ea   : > { %v3962_v52 = vadd.f32 %v3961_v23, %v14403_v43  ;;  %v5813_v27 = vmax.f32 %v3958_v57, 0.0 }
 0x4eb   : > { %v5817_v62 = vmax.f32 %v3960_v58, 0.0  ;;  %4224 = vmatmul.mubr.bf16.gmra.mrb[36].mxu1 %v14374_v29 }
 0x4ec   : > { %v5818_v31 = vmax.f32 %v3962_v52, 0.0  ;;  %4233 = vmatprep.mubr.bf16.mxu1 %v16740_v63  ;;  %v12781_v52 = vld [vmem:[#allocation14 + $0x100] ss:$8 sps:$4 sm:$0xff]  }
 0x4ed   : > { %v6382_v56 = vpack.c.bf16 %v5817_v62, %v5812_v25  ;;  %v12783_v25 = vld [vmem:[#allocation14 + $0x104] ss:$8 sps:$4 sm:$0xff]  }
 0x4ee   : > { %v3965_v9 = vpop.f32.mrb[188].mxu1  ;;  %v6383_v35 = vpack.c.bf16 %v5818_v31, %v5813_v27  ;;  %7797 = vmatprep.subr.bf16.mxu0 %v12783_v25 }
 0x4ef   : > { %v3966_v39 = vadd.f32 %v3965_v9, %v14399_v40  ;;  %v3967_v53 = vpop.f32.mrb[189].mxu1  ;;  %7798 = vmatpush1.bf16.msra.mxu0 %v12781_v52 }
 0x4f0   : > { %v3968_v16 = vadd.f32 %v3967_v53, %v14403_v43  ;;  %v3969_v12 = vpop.f32.mrb[190].mxu1  ;;  %7296 = vmatprep.mubr.bf16.mxu0 %v6383_v35 }
 0x4f1   : > { %v3970_v22 = vadd.f32 %v3969_v12, %v14399_v40  ;;  %v3971_v24 = vpop.f32.mrb[191].mxu1  ;;  %7297 = vmatmul.mubr.bf16.gmra.mrb[56].mxu0 %v6382_v56  ;;  %v5822_v54 = vmax.f32 %v3966_v39, 0.0 }
 0x4f2   : > { %v3972_v4 = vadd.f32 %v3971_v24, %v14403_v43  ;;  %v5823_v10 = vmax.f32 %v3968_v16, 0.0 }
 0x4f3   : > { %v5827_v57 = vmax.f32 %v3970_v22, 0.0  ;;  %4234 = vmatmul.mubr.bf16.gmra.mrb[40].mxu1 %v14388_v14 }
 0x4f4   : > { %v5828_v58 = vmax.f32 %v3972_v4, 0.0  ;;  %4243 = vmatprep.mubr.bf16.mxu1 %v16740_v63 }
 0x4f5   : > { %v6387_v23 = vpack.c.bf16 %v5827_v57, %v5822_v54 }
 0x4f6   : > { %v3975_v62 = vpop.f32.mrb[192].mxu1  ;;  %v6388_v27 = vpack.c.bf16 %v5828_v58, %v5823_v10 }
 0x4f7   : > { %v3976_v31 = vadd.f32 %v3975_v62, %v14399_v40  ;;  %v3977_v9 = vpop.f32.mrb[193].mxu1 }
 0x4f8   : > { %v3978_v56 = vadd.f32 %v3977_v9, %v14403_v43  ;;  %v3979_v35 = vpop.f32.mrb[194].mxu1  ;;  %7306 = vmatprep.mubr.bf16.mxu0 %v6388_v27 }
 0x4f9   : > { %v3980_v39 = vadd.f32 %v3979_v35, %v14399_v40  ;;  %v3981_v53 = vpop.f32.mrb[195].mxu1  ;;  %7307 = vmatmul.mubr.bf16.gmra.mrb[60].mxu0 %v6387_v23  ;;  %v5832_v12 = vmax.f32 %v3976_v31, 0.0 }
 0x4fa   : > { %v3982_v16 = vadd.f32 %v3981_v53, %v14403_v43  ;;  %v5833_v24 = vmax.f32 %v3978_v56, 0.0 }
 0x4fb   : > { %v5837_v22 = vmax.f32 %v3980_v39, 0.0  ;;  %4244 = vmatmul.mubr.bf16.gmra.mrb[44].mxu1 %v14386_v13 }
 0x4fc   : > { %v5838_v4 = vmax.f32 %v3982_v16, 0.0  ;;  %4253 = vmatprep.mubr.bf16.mxu1 %v16740_v63  ;;  %v12784_v16 = vld [vmem:[#allocation14 + $0x110] ss:$8 sps:$4 sm:$0xff]  }
 0x4fd   : > { %v6392_v54 = vpack.c.bf16 %v5837_v22, %v5832_v12  ;;  %v12786_v12 = vld [vmem:[#allocation14 + $0x114] ss:$8 sps:$4 sm:$0xff]  }
 0x4fe   : > { %v3985_v57 = vpop.f32.mrb[196].mxu1  ;;  %v6393_v10 = vpack.c.bf16 %v5838_v4, %v5833_v24  ;;  %7799 = vmatprep.subr.bf16.mxu0 %v12786_v12 }
 0x4ff   : > { %v3986_v58 = vadd.f32 %v3985_v57, %v14399_v40  ;;  %v3987_v52 = vpop.f32.mrb[197].mxu1  ;;  %7800 = vmatpush1.bf16.msra.mxu0 %v12784_v16 }
 0x500   : > { %v3988_v25 = vadd.f32 %v3987_v52, %v14403_v43  ;;  %v3989_v62 = vpop.f32.mrb[198].mxu1  ;;  %7316 = vmatprep.mubr.bf16.mxu0 %v6393_v10 }
 0x501   : > { %v3990_v23 = vadd.f32 %v3989_v62, %v14399_v40  ;;  %v3991_v27 = vpop.f32.mrb[199].mxu1  ;;  %7317 = vmatmul.mubr.bf16.gmra.mrb[64].mxu0 %v6392_v54  ;;  %v5842_v9 = vmax.f32 %v3986_v58, 0.0 }
 0x502   : > { %v3992_v31 = vadd.f32 %v3991_v27, %v14403_v43  ;;  %v5843_v35 = vmax.f32 %v3988_v25, 0.0 }
 0x503   : > { %v5847_v56 = vmax.f32 %v3990_v23, 0.0  ;;  %4254 = vmatmul.mubr.bf16.gmra.mrb[48].mxu1 %v14416_v41 }
 0x504   : > { %v5848_v39 = vmax.f32 %v3992_v31, 0.0  ;;  %4263 = vmatprep.mubr.bf16.mxu1 %v16740_v63 }
 0x505   : > { %v6397_v53 = vpack.c.bf16 %v5847_v56, %v5842_v9 }
 0x506   : > { %v3995_v22 = vpop.f32.mrb[200].mxu1  ;;  %v6398_v24 = vpack.c.bf16 %v5848_v39, %v5843_v35 }
 0x507   : > { %v3996_v4 = vadd.f32 %v3995_v22, %v14399_v40  ;;  %v3997_v57 = vpop.f32.mrb[201].mxu1 }
 0x508   : > { %v3998_v54 = vadd.f32 %v3997_v57, %v14403_v43  ;;  %v3999_v10 = vpop.f32.mrb[202].mxu1  ;;  %7326 = vmatprep.mubr.bf16.mxu0 %v6398_v24 }
 0x509   : > { %v4000_v58 = vadd.f32 %v3999_v10, %v14399_v40  ;;  %v4001_v52 = vpop.f32.mrb[203].mxu1  ;;  %7327 = vmatmul.mubr.bf16.gmra.mrb[68].mxu0 %v6397_v53  ;;  %v5852_v62 = vmax.f32 %v3996_v4, 0.0 }
 0x50a   : > { %v4002_v25 = vadd.f32 %v4001_v52, %v14403_v43  ;;  %v5853_v27 = vmax.f32 %v3998_v54, 0.0 }
 0x50b   : > { %v5857_v23 = vmax.f32 %v4000_v58, 0.0  ;;  %4264 = vmatmul.mubr.bf16.gmra.mrb[52].mxu1 %v14413_v45 }
 0x50c   : > { %v5858_v31 = vmax.f32 %v4002_v25, 0.0  ;;  %4273 = vmatprep.mubr.bf16.mxu1 %v16740_v63  ;;  %v12787_v25 = vld [vmem:[#allocation14 + $0x120] ss:$8 sps:$4 sm:$0xff]  }
 0x50d   : > { %v6402_v9 = vpack.c.bf16 %v5857_v23, %v5852_v62  ;;  %v12789_v62 = vld [vmem:[#allocation14 + $0x124] ss:$8 sps:$4 sm:$0xff]  }
 0x50e   : > { %v4005_v56 = vpop.f32.mrb[204].mxu1  ;;  %v6403_v35 = vpack.c.bf16 %v5858_v31, %v5853_v27  ;;  %7801 = vmatprep.subr.bf16.mxu0 %v12789_v62 }
 0x50f   : > { %v4006_v39 = vadd.f32 %v4005_v56, %v14399_v40  ;;  %v4007_v16 = vpop.f32.mrb[205].mxu1  ;;  %7802 = vmatpush1.bf16.msra.mxu0 %v12787_v25 }
 0x510   : > { %v4008_v12 = vadd.f32 %v4007_v16, %v14403_v43  ;;  %v4009_v22 = vpop.f32.mrb[206].mxu1  ;;  %7336 = vmatprep.mubr.bf16.mxu0 %v6403_v35 }
 0x511   : > { %v4010_v53 = vadd.f32 %v4009_v22, %v14399_v40  ;;  %v4011_v24 = vpop.f32.mrb[207].mxu1  ;;  %7337 = vmatmul.mubr.bf16.gmra.mrb[72].mxu0 %v6402_v9  ;;  %v5862_v57 = vmax.f32 %v4006_v39, 0.0 }
 0x512   : > { %v4012_v4 = vadd.f32 %v4011_v24, %v14403_v43  ;;  %v5863_v10 = vmax.f32 %v4008_v12, 0.0 }
 0x513   : > { %v5867_v54 = vmax.f32 %v4010_v53, 0.0  ;;  %4274 = vmatmul.mubr.bf16.gmra.mrb[56].mxu1 %v14436_v61 }
 0x514   : > { %v5868_v58 = vmax.f32 %v4012_v4, 0.0  ;;  %4283 = vmatprep.mubr.bf16.mxu1 %v16740_v63 }
 0x515   : > { %v6407_v52 = vpack.c.bf16 %v5867_v54, %v5862_v57 }
 0x516   : > { %v4015_v23 = vpop.f32.mrb[208].mxu1  ;;  %v6408_v27 = vpack.c.bf16 %v5868_v58, %v5863_v10 }
 0x517   : > { %v4016_v31 = vadd.f32 %v4015_v23, %v14399_v40  ;;  %v4017_v56 = vpop.f32.mrb[209].mxu1 }
 0x518   : > { %v4018_v9 = vadd.f32 %v4017_v56, %v14403_v43  ;;  %v4019_v35 = vpop.f32.mrb[210].mxu1  ;;  %7346 = vmatprep.mubr.bf16.mxu0 %v6408_v27 }
 0x519   : > { %v4020_v39 = vadd.f32 %v4019_v35, %v14399_v40  ;;  %v4021_v16 = vpop.f32.mrb[211].mxu1  ;;  %7347 = vmatmul.mubr.bf16.gmra.mrb[76].mxu0 %v6407_v52  ;;  %v5872_v22 = vmax.f32 %v4016_v31, 0.0 }
 0x51a   : > { %v4022_v12 = vadd.f32 %v4021_v16, %v14403_v43  ;;  %v5873_v24 = vmax.f32 %v4018_v9, 0.0 }
 0x51b   : > { %v5877_v53 = vmax.f32 %v4020_v39, 0.0  ;;  %4284 = vmatmul.mubr.bf16.gmra.mrb[60].mxu1 %v14433_v50 }
 0x51c   : > { %v5878_v4 = vmax.f32 %v4022_v12, 0.0  ;;  %4293 = vmatprep.mubr.bf16.mxu1 %v16740_v63  ;;  %v14618_v12 = vld [vmem:[#allocation11 + $0x10] ss:$20 sps:$4 sm:$0xff]  }
 0x51d   : > { %v6412_v57 = vpack.c.bf16 %v5877_v53, %v5872_v22  ;;  %v12791_v22 = vld [vmem:[#allocation14 + $0x130] ss:$8 sps:$4 sm:$0xff]   ;;  %v12793_v53 = vld [vmem:[#allocation14 + $0x134] ss:$8 sps:$4 sm:$0xff]   ;;  %11587 = vmatprep.subr.bf16.mxu1 %v14618_v12 }
 0x51e   : > { %v4025_v54 = vpop.f32.mrb[212].mxu1  ;;  %v6413_v10 = vpack.c.bf16 %v5878_v4, %v5873_v24  ;;  %7803 = vmatprep.subr.bf16.mxu0 %v12793_v53 }
 0x51f   : > { %v4026_v58 = vadd.f32 %v4025_v54, %v14399_v40  ;;  %v4027_v25 = vpop.f32.mrb[213].mxu1  ;;  %7804 = vmatpush1.bf16.msra.mxu0 %v12791_v22 }
 0x520   : > { %v4028_v62 = vadd.f32 %v4027_v25, %v14403_v43  ;;  %v4029_v23 = vpop.f32.mrb[214].mxu1  ;;  %7356 = vmatprep.mubr.bf16.mxu0 %v6413_v10 }
 0x521   : > { %v4030_v52 = vadd.f32 %v4029_v23, %v14399_v40  ;;  %v4031_v27 = vpop.f32.mrb[215].mxu1  ;;  %7357 = vmatmul.mubr.bf16.gmra.mrb[80].mxu0 %v6412_v57  ;;  %v5882_v56 = vmax.f32 %v4026_v58, 0.0 }
 0x522   : > { %v4032_v31 = vadd.f32 %v4031_v27, %v14403_v43  ;;  %v5883_v35 = vmax.f32 %v4028_v62, 0.0 }
 0x523   : > { %v5887_v9 = vmax.f32 %v4030_v52, 0.0  ;;  %4294 = vmatmul.mubr.bf16.gmra.mrb[64].mxu1 %v14452_v5 }
 0x524   : > { %v5888_v39 = vmax.f32 %v4032_v31, 0.0  ;;  %4303 = vmatprep.mubr.bf16.mxu1 %v16740_v63 }
 0x525   : > { %v6417_v16 = vpack.c.bf16 %v5887_v9, %v5882_v56 }
 0x526   : > { %v4035_v24 = vpop.f32.mrb[216].mxu1  ;;  %v6418_v4 = vpack.c.bf16 %v5888_v39, %v5883_v35 }
 0x527   : > { %v4036_v54 = vadd.f32 %v4035_v24, %v14399_v40  ;;  %v4037_v57 = vpop.f32.mrb[217].mxu1 }
 0x528   : > { %v4038_v10 = vadd.f32 %v4037_v57, %v14403_v43  ;;  %v4039_v58 = vpop.f32.mrb[218].mxu1  ;;  %7366 = vmatprep.mubr.bf16.mxu0 %v6418_v4 }
 0x529   : > { %v4040_v25 = vadd.f32 %v4039_v58, %v14399_v40  ;;  %v4041_v62 = vpop.f32.mrb[219].mxu1  ;;  %7367 = vmatmul.mubr.bf16.gmra.mrb[84].mxu0 %v6417_v16  ;;  %v5892_v52 = vmax.f32 %v4036_v54, 0.0 }
 0x52a   : > { %v4042_v23 = vadd.f32 %v4041_v62, %v14403_v43  ;;  %v5893_v31 = vmax.f32 %v4038_v10, 0.0 }
 0x52b   : > { %v5897_v27 = vmax.f32 %v4040_v25, 0.0  ;;  %4304 = vmatmul.mubr.bf16.gmra.mrb[68].mxu1 %v14449_v36 }
 0x52c   : > { %v5898_v56 = vmax.f32 %v4042_v23, 0.0  ;;  %4313 = vmatprep.mubr.bf16.mxu1 %v16740_v63 }
 0x52d   : > { %v6422_v9 = vpack.c.bf16 %v5897_v27, %v5892_v52  ;;  %v12794_v52 = vld [vmem:[#allocation14 + $0x140] ss:$8 sps:$4 sm:$0xff]   ;;  %v12796_v27 = vld [vmem:[#allocation14 + $0x144] ss:$8 sps:$4 sm:$0xff]  }
 0x52e   : > { %v4045_v35 = vpop.f32.mrb[220].mxu1  ;;  %v6423_v39 = vpack.c.bf16 %v5898_v56, %v5893_v31  ;;  %7805 = vmatprep.subr.bf16.mxu0 %v12796_v27 }
 0x52f   : > { %v4046_v53 = vadd.f32 %v4045_v35, %v14399_v40  ;;  %v4047_v22 = vpop.f32.mrb[221].mxu1  ;;  %7806 = vmatpush1.bf16.msra.mxu0 %v12794_v52 }
 0x530   : > { %v4048_v24 = vadd.f32 %v4047_v22, %v14403_v43  ;;  %v4049_v4 = vpop.f32.mrb[222].mxu1  ;;  %7376 = vmatprep.mubr.bf16.mxu0 %v6423_v39 }
 0x531   : > { %v4050_v16 = vadd.f32 %v4049_v4, %v14399_v40  ;;  %v4051_v54 = vpop.f32.mrb[223].mxu1  ;;  %7377 = vmatmul.mubr.bf16.gmra.mrb[88].mxu0 %v6422_v9  ;;  %v5902_v10 = vmax.f32 %v4046_v53, 0.0 }
 0x532   : > { %v4052_v57 = vadd.f32 %v4051_v54, %v14403_v43  ;;  %v5903_v25 = vmax.f32 %v4048_v24, 0.0 }
 0x533   : > { %v5907_v58 = vmax.f32 %v4050_v16, 0.0  ;;  %4314 = vmatmul.mubr.bf16.gmra.mrb[72].mxu1 %v14466_v11 }
 0x534   : > { %v5908_v62 = vmax.f32 %v4052_v57, 0.0  ;;  %4323 = vmatprep.mubr.bf16.mxu1 %v16740_v63 }
 0x535   : > { %v6427_v23 = vpack.c.bf16 %v5907_v58, %v5902_v10 }
 0x536   : > { %v4055_v31 = vpop.f32.mrb[224].mxu1  ;;  %v6428_v56 = vpack.c.bf16 %v5908_v62, %v5903_v25 }
 0x537   : > { %v4056_v35 = vadd.f32 %v4055_v31, %v14399_v40  ;;  %v4057_v39 = vpop.f32.mrb[225].mxu1 }
 0x538   : > { %v4058_v9 = vadd.f32 %v4057_v39, %v14403_v43  ;;  %v4059_v22 = vpop.f32.mrb[226].mxu1  ;;  %7386 = vmatprep.mubr.bf16.mxu0 %v6428_v56 }
 0x539   : > { %v4060_v53 = vadd.f32 %v4059_v22, %v14399_v40  ;;  %v4061_v24 = vpop.f32.mrb[227].mxu1  ;;  %7387 = vmatmul.mubr.bf16.gmra.mrb[92].mxu0 %v6427_v23  ;;  %v5912_v16 = vmax.f32 %v4056_v35, 0.0 }
 0x53a   : > { %v4062_v4 = vadd.f32 %v4061_v24, %v14403_v43  ;;  %v5913_v57 = vmax.f32 %v4058_v9, 0.0 }
 0x53b   : > { %v5917_v54 = vmax.f32 %v4060_v53, 0.0  ;;  %4324 = vmatmul.mubr.bf16.gmra.mrb[76].mxu1 %v14463_v51 }
 0x53c   : > { %v5918_v10 = vmax.f32 %v4062_v4, 0.0  ;;  %4333 = vmatprep.mubr.bf16.mxu1 %v16740_v63 }
 0x53d   : > { %v6432_v58 = vpack.c.bf16 %v5917_v54, %v5912_v16  ;;  %v12797_v16 = vld [vmem:[#allocation14 + $0x150] ss:$8 sps:$4 sm:$0xff]   ;;  %v12799_v54 = vld [vmem:[#allocation14 + $0x154] ss:$8 sps:$4 sm:$0xff]  }
 0x53e   : > { %v4065_v25 = vpop.f32.mrb[228].mxu1  ;;  %v6433_v62 = vpack.c.bf16 %v5918_v10, %v5913_v57  ;;  %7807 = vmatprep.subr.bf16.mxu0 %v12799_v54 }
 0x53f   : > { %v4066_v27 = vadd.f32 %v4065_v25, %v14399_v40  ;;  %v4067_v52 = vpop.f32.mrb[229].mxu1  ;;  %7808 = vmatpush1.bf16.msra.mxu0 %v12797_v16 }
 0x540   : > { %v4068_v31 = vadd.f32 %v4067_v52, %v14403_v43  ;;  %v4069_v56 = vpop.f32.mrb[230].mxu1  ;;  %7396 = vmatprep.mubr.bf16.mxu0 %v6433_v62 }
 0x541   : > { %v4070_v23 = vadd.f32 %v4069_v56, %v14399_v40  ;;  %v4071_v35 = vpop.f32.mrb[231].mxu1  ;;  %7397 = vmatmul.mubr.bf16.gmra.mrb[96].mxu0 %v6432_v58  ;;  %v5922_v9 = vmax.f32 %v4066_v27, 0.0 }
 0x542   : > { %v4072_v39 = vadd.f32 %v4071_v35, %v14403_v43  ;;  %v5923_v53 = vmax.f32 %v4068_v31, 0.0 }
 0x543   : > { %v5927_v22 = vmax.f32 %v4070_v23, 0.0  ;;  %4334 = vmatmul.mubr.bf16.gmra.mrb[80].mxu1 %v14480_v28 }
 0x544   : > { %v5928_v24 = vmax.f32 %v4072_v39, 0.0  ;;  %4343 = vmatprep.mubr.bf16.mxu1 %v16740_v63 }
 0x545   : > { %v6437_v4 = vpack.c.bf16 %v5927_v22, %v5922_v9 }
 0x546   : > { %v4075_v57 = vpop.f32.mrb[232].mxu1  ;;  %v6438_v10 = vpack.c.bf16 %v5928_v24, %v5923_v53 }
 0x547   : > { %v4076_v25 = vadd.f32 %v4075_v57, %v14399_v40  ;;  %v4077_v62 = vpop.f32.mrb[233].mxu1 }
 0x548   : > { %v4078_v58 = vadd.f32 %v4077_v62, %v14403_v43  ;;  %v4079_v52 = vpop.f32.mrb[234].mxu1  ;;  %7406 = vmatprep.mubr.bf16.mxu0 %v6438_v10 }
 0x549   : > { %v4080_v27 = vadd.f32 %v4079_v52, %v14399_v40  ;;  %v4081_v31 = vpop.f32.mrb[235].mxu1  ;;  %7407 = vmatmul.mubr.bf16.gmra.mrb[100].mxu0 %v6437_v4  ;;  %v5932_v23 = vmax.f32 %v4076_v25, 0.0 }
 0x54a   : > { %v4082_v56 = vadd.f32 %v4081_v31, %v14403_v43  ;;  %v5933_v39 = vmax.f32 %v4078_v58, 0.0 }
 0x54b   : > { %v5937_v35 = vmax.f32 %v4080_v27, 0.0  ;;  %4344 = vmatmul.mubr.bf16.gmra.mrb[84].mxu1 %v14477_v55 }
 0x54c   : > { %v5938_v9 = vmax.f32 %v4082_v56, 0.0  ;;  %4353 = vmatprep.mubr.bf16.mxu1 %v16740_v63 }
 0x54d   : > { %v6442_v22 = vpack.c.bf16 %v5937_v35, %v5932_v23 }
 0x54e   : > { %v4085_v53 = vpop.f32.mrb[236].mxu1  ;;  %v6443_v24 = vpack.c.bf16 %v5938_v9, %v5933_v39 }
 0x54f   : > { %v4086_v54 = vadd.f32 %v4085_v53, %v14399_v40  ;;  %v4087_v16 = vpop.f32.mrb[237].mxu1 }
 0x550   : > { %v4088_v57 = vadd.f32 %v4087_v16, %v14403_v43  ;;  %v4089_v10 = vpop.f32.mrb[238].mxu1  ;;  %7416 = vmatprep.mubr.bf16.mxu0 %v6443_v24  ;;  %v12800_v16 = vld [vmem:[#allocation14 + $0x160] ss:$8 sps:$4 sm:$0xff]  }
 0x551   : > { %v4090_v4 = vadd.f32 %v4089_v10, %v14399_v40  ;;  %v4091_v25 = vpop.f32.mrb[239].mxu1  ;;  %7417 = vmatmul.mubr.bf16.gmra.mrb[104].mxu0 %v6442_v22  ;;  %v5942_v58 = vmax.f32 %v4086_v54, 0.0  ;;  %v12802_v10 = vld [vmem:[#allocation14 + $0x164] ss:$8 sps:$4 sm:$0xff]  }
 0x552   : > { %v4092_v62 = vadd.f32 %v4091_v25, %v14403_v43  ;;  %v5943_v27 = vmax.f32 %v4088_v57, 0.0  ;;  %7809 = vmatprep.subr.bf16.mxu0 %v12802_v10 }
 0x553   : > { %v5947_v52 = vmax.f32 %v4090_v4, 0.0  ;;  %4354 = vmatmul.mubr.bf16.gmra.mrb[88].mxu1 %v14494_v26  ;;  %7810 = vmatpush1.bf16.msra.mxu0 %v12800_v16 }
 0x554   : > { %v5948_v31 = vmax.f32 %v4092_v62, 0.0  ;;  %4363 = vmatprep.mubr.bf16.mxu1 %v16740_v63 }
 0x555   : > { %v6447_v56 = vpack.c.bf16 %v5947_v52, %v5942_v58 }
 0x556   : > { %v4095_v23 = vpop.f32.mrb[240].mxu1  ;;  %v6448_v35 = vpack.c.bf16 %v5948_v31, %v5943_v27 }
 0x557   : > { %v4096_v39 = vadd.f32 %v4095_v23, %v14399_v40  ;;  %v4097_v9 = vpop.f32.mrb[241].mxu1 }
 0x558   : > { %v4098_v53 = vadd.f32 %v4097_v9, %v14403_v43  ;;  %v4099_v24 = vpop.f32.mrb[242].mxu1  ;;  %7426 = vmatprep.mubr.bf16.mxu0 %v6448_v35 }
 0x559   : > { %v4100_v22 = vadd.f32 %v4099_v24, %v14399_v40  ;;  %v4101_v54 = vpop.f32.mrb[243].mxu1  ;;  %7427 = vmatmul.mubr.bf16.gmra.mrb[108].mxu0 %v6447_v56  ;;  %v5952_v4 = vmax.f32 %v4096_v39, 0.0 }
 0x55a   : > { %v4102_v57 = vadd.f32 %v4101_v54, %v14403_v43  ;;  %v5953_v62 = vmax.f32 %v4098_v53, 0.0 }
 0x55b   : > { %v5957_v25 = vmax.f32 %v4100_v22, 0.0  ;;  %4364 = vmatmul.mubr.bf16.gmra.mrb[92].mxu1 %v14491_v19 }
 0x55c   : > { %v5958_v58 = vmax.f32 %v4102_v57, 0.0  ;;  %4373 = vmatprep.mubr.bf16.mxu1 %v16740_v63 }
 0x55d   : > { %v6452_v52 = vpack.c.bf16 %v5957_v25, %v5952_v4 }
 0x55e   : > { %v4105_v27 = vpop.f32.mrb[244].mxu1  ;;  %v6453_v31 = vpack.c.bf16 %v5958_v58, %v5953_v62 }
 0x55f   : > { %v4106_v23 = vadd.f32 %v4105_v27, %v14399_v40  ;;  %v4107_v56 = vpop.f32.mrb[245].mxu1 }
 0x560   : > { %v4108_v35 = vadd.f32 %v4107_v56, %v14403_v43  ;;  %v4109_v9 = vpop.f32.mrb[246].mxu1  ;;  %7436 = vmatprep.mubr.bf16.mxu0 %v6453_v31 }
 0x561   : > { %v4110_v39 = vadd.f32 %v4109_v9, %v14399_v40  ;;  %v4111_v24 = vpop.f32.mrb[247].mxu1  ;;  %7437 = vmatmul.mubr.bf16.gmra.mrb[112].mxu0 %v6452_v52  ;;  %v5962_v22 = vmax.f32 %v4106_v23, 0.0  ;;  %v12806_v9 = vld [vmem:[#allocation14 + $0x174] ss:$8 sps:$4 sm:$0xff]  }
 0x562   : > { %v4112_v53 = vadd.f32 %v4111_v24, %v14403_v43  ;;  %v5963_v16 = vmax.f32 %v4108_v35, 0.0  ;;  %v12804_v35 = vld [vmem:[#allocation14 + $0x170] ss:$8 sps:$4 sm:$0xff]   ;;  %7811 = vmatprep.subr.bf16.mxu0 %v12806_v9 }
 0x563   : > { %v5967_v54 = vmax.f32 %v4110_v39, 0.0  ;;  %4374 = vmatmul.mubr.bf16.gmra.mrb[96].mxu1 %v14508_v1  ;;  %7812 = vmatpush1.bf16.msra.mxu0 %v12804_v35 }
 0x564   : > { %v5968_v10 = vmax.f32 %v4112_v53, 0.0  ;;  %4383 = vmatprep.mubr.bf16.mxu1 %v16740_v63 }
 0x565   : > { %v6457_v57 = vpack.c.bf16 %v5967_v54, %v5962_v22 }
 0x566   : > { %v4115_v4 = vpop.f32.mrb[248].mxu1  ;;  %v6458_v25 = vpack.c.bf16 %v5968_v10, %v5963_v16 }
 0x567   : > { %v4116_v62 = vadd.f32 %v4115_v4, %v14399_v40  ;;  %v4117_v58 = vpop.f32.mrb[249].mxu1 }
 0x568   : > { %v4118_v27 = vadd.f32 %v4117_v58, %v14403_v43  ;;  %v4119_v31 = vpop.f32.mrb[250].mxu1  ;;  %7446 = vmatprep.mubr.bf16.mxu0 %v6458_v25 }
 0x569   : > { %v4120_v52 = vadd.f32 %v4119_v31, %v14399_v40  ;;  %v4121_v23 = vpop.f32.mrb[251].mxu1  ;;  %7447 = vmatmul.mubr.bf16.gmra.mrb[116].mxu0 %v6457_v57  ;;  %v5972_v39 = vmax.f32 %v4116_v62, 0.0 }
 0x56a   : > { %v4122_v56 = vadd.f32 %v4121_v23, %v14403_v43  ;;  %v5973_v53 = vmax.f32 %v4118_v27, 0.0 }
 0x56b   : > { %v5977_v24 = vmax.f32 %v4120_v52, 0.0  ;;  %4384 = vmatmul.mubr.bf16.gmra.mrb[100].mxu1 %v14505_v17 }
 0x56c   : > { %v5978_v22 = vmax.f32 %v4122_v56, 0.0  ;;  %4393 = vmatprep.mubr.bf16.mxu1 %v16740_v63 }
 0x56d   : > { %v6462_v54 = vpack.c.bf16 %v5977_v24, %v5972_v39 }
 0x56e   : > { %v4125_v16 = vpop.f32.mrb[252].mxu1  ;;  %v6463_v10 = vpack.c.bf16 %v5978_v22, %v5973_v53 }
 0x56f   : > { %v4126_v4 = vadd.f32 %v4125_v16, %v14399_v40  ;;  %v4127_v57 = vpop.f32.mrb[253].mxu1 }
 0x570   : > { %v4128_v25 = vadd.f32 %v4127_v57, %v14403_v43  ;;  %v4129_v58 = vpop.f32.mrb[254].mxu1  ;;  %7456 = vmatprep.mubr.bf16.mxu0 %v6463_v10 }
 0x571   : > { %v4130_v62 = vadd.f32 %v4129_v58, %v14399_v40  ;;  %v4131_v31 = vpop.f32.mrb[255].mxu1  ;;  %7457 = vmatmul.mubr.bf16.gmra.mrb[120].mxu0 %v6462_v54  ;;  %v5982_v52 = vmax.f32 %v4126_v4, 0.0 }
 0x572   : > { %v4132_v27 = vadd.f32 %v4131_v31, %v14403_v43  ;;  %v5983_v56 = vmax.f32 %v4128_v25, 0.0 }
 0x573   : > { %v5987_v23 = vmax.f32 %v4130_v62, 0.0  ;;  %4394 = vmatmul.mubr.bf16.gmra.mrb[104].mxu1 %v14522_v60 }
 0x574   : > { %v5988_v35 = vmax.f32 %v4132_v27, 0.0  ;;  %4403 = vmatprep.mubr.bf16.mxu1 %v16740_v63 }
 0x575   : > { %v6467_v9 = vpack.c.bf16 %v5987_v23, %v5982_v52  ;;  %v12807_v52 = vld [vmem:[#allocation14 + $0x180] ss:$8 sps:$4 sm:$0xff]   ;;  %v12809_v23 = vld [vmem:[#allocation14 + $0x184] ss:$8 sps:$4 sm:$0xff]  }
 0x576   : > { %v4135_v39 = vpop.f32.mrb[0].mxu1  ;;  %v6468_v24 = vpack.c.bf16 %v5988_v35, %v5983_v56  ;;  %7813 = vmatprep.subr.bf16.mxu0 %v12809_v23 }
 0x577   : > { %v4136_v53 = vadd.f32 %v4135_v39, %v14399_v40  ;;  %v4137_v22 = vpop.f32.mrb[1].mxu1  ;;  %7814 = vmatpush1.bf16.msra.mxu0 %v12807_v52 }
 0x578   : > { %v4138_v16 = vadd.f32 %v4137_v22, %v14403_v43  ;;  %v4139_v10 = vpop.f32.mrb[2].mxu1  ;;  %7466 = vmatprep.mubr.bf16.mxu0 %v6468_v24 }
 0x579   : > { %v4140_v54 = vadd.f32 %v4139_v10, %v14399_v40  ;;  %v4141_v4 = vpop.f32.mrb[3].mxu1  ;;  %7467 = vmatmul.mubr.bf16.gmra.mrb[124].mxu0 %v6467_v9  ;;  %v5992_v25 = vmax.f32 %v4136_v53, 0.0 }
 0x57a   : > { %v4142_v57 = vadd.f32 %v4141_v4, %v14403_v43  ;;  %v5993_v62 = vmax.f32 %v4138_v16, 0.0 }
 0x57b   : > { %v5997_v58 = vmax.f32 %v4140_v54, 0.0  ;;  %4404 = vmatmul.mubr.bf16.gmra.mrb[108].mxu1 %v14519_v48 }
 0x57c   : > { %v5998_v31 = vmax.f32 %v4142_v57, 0.0  ;;  %4413 = vmatprep.mubr.bf16.mxu1 %v16740_v63 }
 0x57d   : > { %v6472_v27 = vpack.c.bf16 %v5997_v58, %v5992_v25 }
 0x57e   : > { %v4145_v56 = vpop.f32.mrb[4].mxu1  ;;  %v6473_v35 = vpack.c.bf16 %v5998_v31, %v5993_v62 }
 0x57f   : > { %v4146_v39 = vadd.f32 %v4145_v56, %v14399_v40  ;;  %v4147_v24 = vpop.f32.mrb[5].mxu1 }
 0x580   : > { %v4148_v9 = vadd.f32 %v4147_v24, %v14403_v43  ;;  %v4149_v22 = vpop.f32.mrb[6].mxu1  ;;  %7476 = vmatprep.mubr.bf16.mxu0 %v6473_v35 }
 0x581   : > { %v4150_v53 = vadd.f32 %v4149_v22, %v14399_v40  ;;  %v4151_v16 = vpop.f32.mrb[7].mxu1  ;;  %7477 = vmatmul.mubr.bf16.gmra.mrb[128].mxu0 %v6472_v27  ;;  %v6002_v54 = vmax.f32 %v4146_v39, 0.0 }
 0x582   : > { %v4152_v10 = vadd.f32 %v4151_v16, %v14403_v43  ;;  %v6003_v57 = vmax.f32 %v4148_v9, 0.0 }
 0x583   : > { %v6007_v4 = vmax.f32 %v4150_v53, 0.0  ;;  %4414 = vmatmul.mubr.bf16.gmra.mrb[112].mxu1 %v14536_v44 }
 0x584   : > { %v6008_v25 = vmax.f32 %v4152_v10, 0.0  ;;  %4423 = vmatprep.mubr.bf16.mxu1 %v16740_v63 }
 0x585   : > { %v6477_v58 = vpack.c.bf16 %v6007_v4, %v6002_v54  ;;  %v12810_v54 = vld [vmem:[#allocation14 + $0x190] ss:$8 sps:$4 sm:$0xff]   ;;  %v12812_v4 = vld [vmem:[#allocation14 + $0x194] ss:$8 sps:$4 sm:$0xff]  }
 0x586   : > { %v4155_v62 = vpop.f32.mrb[8].mxu1  ;;  %v6478_v31 = vpack.c.bf16 %v6008_v25, %v6003_v57  ;;  %7815 = vmatprep.subr.bf16.mxu0 %v12812_v4 }
 0x587   : > { %v4156_v23 = vadd.f32 %v4155_v62, %v14399_v40  ;;  %v4157_v52 = vpop.f32.mrb[9].mxu1  ;;  %7816 = vmatpush1.bf16.msra.mxu0 %v12810_v54 }
 0x588   : > { %v4158_v56 = vadd.f32 %v4157_v52, %v14403_v43  ;;  %v4159_v35 = vpop.f32.mrb[10].mxu1  ;;  %7486 = vmatprep.mubr.bf16.mxu0 %v6478_v31 }
 0x589   : > { %v4160_v27 = vadd.f32 %v4159_v35, %v14399_v40  ;;  %v4161_v39 = vpop.f32.mrb[11].mxu1  ;;  %7487 = vmatmul.mubr.bf16.gmra.mrb[132].mxu0 %v6477_v58  ;;  %v6012_v9 = vmax.f32 %v4156_v23, 0.0 }
 0x58a   : > { %v4162_v24 = vadd.f32 %v4161_v39, %v14403_v43  ;;  %v6013_v53 = vmax.f32 %v4158_v56, 0.0 }
 0x58b   : > { %v6017_v22 = vmax.f32 %v4160_v27, 0.0  ;;  %4424 = vmatmul.mubr.bf16.gmra.mrb[116].mxu1 %v14533_v37 }
 0x58c   : > { %v6018_v16 = vmax.f32 %v4162_v24, 0.0  ;;  %4433 = vmatprep.mubr.bf16.mxu1 %v16740_v63 }
 0x58d   : > { %v14699_v10 = vpack.c.bf16 %v6017_v22, %v6012_v9 }
 0x58e   : > { %v4165_v57 = vpop.f32.mrb[12].mxu1  ;;  %v14701_v25 = vpack.c.bf16 %v6018_v16, %v6013_v53 }
 0x58f   : > { %16741 = vst [vmem:[#allocation48_spill] sm:$0xff] %v14699_v10  ;;  %v4166_v62 = vadd.f32 %v4165_v57, %v14399_v40  ;;  %v4167_v58 = vpop.f32.mrb[13].mxu1  ;;  %v16781_v10 = vld [vmem:[#allocation27_spill] sm:$0xff] }
 0x590   : > { %16742 = vst [vmem:[#allocation49_spill] sm:$0xff] %v14701_v25  ;;  %v4168_v31 = vadd.f32 %v4167_v58, %v14403_v43  ;;  %v4169_v23 = vpop.f32.mrb[14].mxu1 }
 0x591   : > { %v4170_v52 = vadd.f32 %v4169_v23, %v14399_v40  ;;  %v4171_v56 = vpop.f32.mrb[15].mxu1  ;;  %v6022_v27 = vmax.f32 %v4166_v62, 0.0 }
 0x592   : > { %v4172_v35 = vadd.f32 %v4171_v56, %v14403_v43  ;;  %v6023_v24 = vmax.f32 %v4168_v31, 0.0 }
 0x593   : > { %v6027_v39 = vmax.f32 %v4170_v52, 0.0  ;;  %4434 = vmatmul.mubr.bf16.gmra.mrb[120].mxu1 %v14550_v47 }
 0x594   : > { %v6028_v9 = vmax.f32 %v4172_v35, 0.0  ;;  %4443 = vmatprep.mubr.bf16.mxu1 %v16740_v63 }
 0x595   : > { %v14709_v22 = vpack.c.bf16 %v6027_v39, %v6022_v27 }
 0x596   : > { %v4175_v53 = vpop.f32.mrb[16].mxu1  ;;  %v14711_v16 = vpack.c.bf16 %v6028_v9, %v6023_v24  ;;  %v12813_v24 = vld [vmem:[#allocation14 + $0x1a0] ss:$8 sps:$4 sm:$0xff]   ;;  %v12815_v9 = vld [vmem:[#allocation14 + $0x1a4] ss:$8 sps:$4 sm:$0xff]  }
 0x597   : > { %16743 = vst [vmem:[#allocation50_spill] sm:$0xff] %v14709_v22  ;;  %v4176_v54 = vadd.f32 %v4175_v53, %v14399_v40  ;;  %v4177_v4 = vpop.f32.mrb[17].mxu1  ;;  %7817 = vmatprep.subr.bf16.mxu0 %v12815_v9 }
 0x598   : > { %16744 = vst [vmem:[#allocation51_spill] sm:$0xff] %v14711_v16  ;;  %v4178_v57 = vadd.f32 %v4177_v4, %v14403_v43  ;;  %v4179_v58 = vpop.f32.mrb[18].mxu1  ;;  %7818 = vmatpush1.bf16.msra.mxu0 %v12813_v24 }
 0x599   : > { %v4180_v62 = vadd.f32 %v4179_v58, %v14399_v40  ;;  %v4181_v23 = vpop.f32.mrb[19].mxu1  ;;  %v6032_v31 = vmax.f32 %v4176_v54, 0.0 }
 0x59a   : > { %v4182_v52 = vadd.f32 %v4181_v23, %v14403_v43  ;;  %v6033_v35 = vmax.f32 %v4178_v57, 0.0 }
 0x59b   : > { %v6037_v56 = vmax.f32 %v4180_v62, 0.0  ;;  %4444 = vmatmul.mubr.bf16.gmra.mrb[124].mxu1 %v14547_v15 }
 0x59c   : > { %v6038_v27 = vmax.f32 %v4182_v52, 0.0  ;;  %4486 = vmatprep.mubr.bf16.mxu1 %v16740_v63  ;;  %v12803_v52 = vld [vmem:[#allocation11 + $0x38] ss:$20 sps:$4 sm:$0xff]  }
 0x59d   : > { %v14719_v39 = vpack.c.bf16 %v6037_v56, %v6032_v31 }
 0x59e   : > { %v4185_v53 = vpop.f32.mrb[20].mxu1  ;;  %v14721_v4 = vpack.c.bf16 %v6038_v27, %v6033_v35 }
 0x59f   : > { %16745 = vst [vmem:[#allocation52_spill] sm:$0xff] %v14719_v39  ;;  %v4186_v58 = vadd.f32 %v4185_v53, %v14399_v40  ;;  %v4187_v22 = vpop.f32.mrb[21].mxu1 }
 0x5a0   : > { %16746 = vst [vmem:[#allocation53_spill] sm:$0xff] %v14721_v4  ;;  %v4188_v54 = vadd.f32 %v4187_v22, %v14403_v43  ;;  %v4189_v62 = vpop.f32.mrb[22].mxu1  ;;  %v12816_v22 = vld [vmem:[#allocation11 + $0x60] ss:$20 sps:$4 sm:$0xff]  }
 0x5a1   : > { %v4190_v57 = vadd.f32 %v4189_v62, %v14399_v40  ;;  %v4191_v23 = vpop.f32.mrb[23].mxu1  ;;  %v6042_v56 = vmax.f32 %v4186_v58, 0.0 }
 0x5a2   : > { %v4192_v31 = vadd.f32 %v4191_v23, %v14403_v43  ;;  %v6043_v35 = vmax.f32 %v4188_v54, 0.0 }
 0x5a3   : > { %v6047_v39 = vmax.f32 %v4190_v57, 0.0  ;;  %4487 = vmatmul.mubr.bf16.vlgmr.msra.gmra.mrb[128].mxu1 %v14130_v7 }
 0x5a4   : > { %v6048_v27 = vmax.f32 %v4192_v31, 0.0  ;;  %11588 = vmatpush3.bf16.msra.mxu1 %v14618_v12  ;;  %4496 = vmatprep.mubr.bf16.mxu1 %v16740_v63 }
 0x5a5   : > { %v14730_v9 = vpack.c.bf16 %v6047_v39, %v6042_v56  ;;  %11589 = vmatprep.subr.bf16.mxu1 %v12803_v52 }
 0x5a6   : > { %v4195_v24 = vpop.f32.mrb[24].mxu1  ;;  %v14732_v53 = vpack.c.bf16 %v6048_v27, %v6043_v35 }
 0x5a7   : > { %16747 = vst [vmem:[#allocation54_spill] sm:$0xff] %v14730_v9  ;;  %v4196_v62 = vadd.f32 %v4195_v24, %v14399_v40  ;;  %v4197_v23 = vpop.f32.mrb[25].mxu1  ;;  %v12817_v24 = vld [vmem:[#allocation14 + $0x1b0] ss:$8 sps:$4 sm:$0xff]  }
 0x5a8   : > { %16748 = vst [vmem:[#allocation55_spill] sm:$0xff] %v14732_v53  ;;  %v4198_v58 = vadd.f32 %v4197_v23, %v14403_v43  ;;  %v4199_v57 = vpop.f32.mrb[26].mxu1  ;;  %11590 = vmatpush3.bf16.msra.mxu1 %v12803_v52  ;;  %v12819_v23 = vld [vmem:[#allocation14 + $0x1b4] ss:$8 sps:$4 sm:$0xff]  }
 0x5a9   : > { %v4200_v54 = vadd.f32 %v4199_v57, %v14399_v40  ;;  %v4201_v31 = vpop.f32.mrb[27].mxu1  ;;  %11591 = vmatprep.subr.bf16.mxu1 %v12816_v22  ;;  %v6052_v39 = vmax.f32 %v4196_v62, 0.0  ;;  %7819 = vmatprep.subr.bf16.mxu0 %v12819_v23 }
 0x5aa   : > { %v4202_v12 = vadd.f32 %v4201_v31, %v14403_v43  ;;  %v6053_v9 = vmax.f32 %v4198_v58, 0.0  ;;  %7820 = vmatpush1.bf16.msra.mxu0 %v12817_v24 }
 0x5ab   : > { %v6057_v56 = vmax.f32 %v4200_v54, 0.0  ;;  %4497 = vmatmul.mubr.bf16.gmra.mrb[132].mxu1 %v14128_v6 }
 0x5ac   : > { %v6058_v35 = vmax.f32 %v4202_v12, 0.0  ;;  %4506 = vmatprep.mubr.bf16.mxu1 %v16740_v63  ;;  %11592 = vmatpush3.bf16.msra.mxu1 %v12816_v22 }
 0x5ad   : > { %v14740_v27 = vpack.c.bf16 %v6057_v56, %v6052_v39 }
 0x5ae   : > { %v4205_v52 = vpop.f32.mrb[28].mxu1  ;;  %v14742_v53 = vpack.c.bf16 %v6058_v35, %v6053_v9 }
 0x5af   : > { %16749 = vst [vmem:[#allocation56_spill] sm:$0xff] %v14740_v27  ;;  %v4206_v57 = vadd.f32 %v4205_v52, %v14399_v40  ;;  %v4207_v4 = vpop.f32.mrb[29].mxu1 }
 0x5b0   : > { %16750 = vst [vmem:[#allocation57_spill] sm:$0xff] %v14742_v53  ;;  %v4208_v62 = vadd.f32 %v4207_v4, %v14403_v43  ;;  %v4209_v54 = vpop.f32.mrb[30].mxu1  ;;  %v12828_v53 = vld [vmem:[#allocation14 + $0x1e4] ss:$8 sps:$4 sm:$0xff]  }
 0x5b1   : > { %v4210_v58 = vadd.f32 %v4209_v54, %v14399_v40  ;;  %v4211_v31 = vpop.f32.mrb[31].mxu1  ;;  %v6062_v12 = vmax.f32 %v4206_v57, 0.0 }
 0x5b2   : > { %v4212_v22 = vadd.f32 %v4211_v31, %v14403_v43  ;;  %v6063_v56 = vmax.f32 %v4208_v62, 0.0 }
 0x5b3   : > { %v6067_v39 = vmax.f32 %v4210_v58, 0.0  ;;  %4507 = vmatmul.mubr.bf16.gmra.mrb[136].mxu1 %v14144_v38 }
 0x5b4   : > { %v6068_v9 = vmax.f32 %v4212_v22, 0.0  ;;  %4516 = vmatprep.mubr.bf16.mxu1 %v16740_v63 }
 0x5b5   : > { %v14750_v35 = vpack.c.bf16 %v6067_v39, %v6062_v12 }
 0x5b6   : > { %v4215_v23 = vpop.f32.mrb[32].mxu1  ;;  %v14752_v52 = vpack.c.bf16 %v6068_v9, %v6063_v56  ;;  %v12820_v9 = vld [vmem:[#allocation14 + $0x1c0] ss:$8 sps:$4 sm:$0xff]  }
 0x5b7   : > { %16751 = vst [vmem:[#allocation58_spill] sm:$0xff] %v14750_v35  ;;  %v4216_v4 = vadd.f32 %v4215_v23, %v14399_v40  ;;  %v4217_v24 = vpop.f32.mrb[33].mxu1  ;;  %v12822_v23 = vld [vmem:[#allocation14 + $0x1c4] ss:$8 sps:$4 sm:$0xff]  }
 0x5b8   : > { %16752 = vst [vmem:[#allocation59_spill] sm:$0xff] %v14752_v52  ;;  %v4218_v54 = vadd.f32 %v4217_v24, %v14403_v43  ;;  %v4219_v27 = vpop.f32.mrb[34].mxu1  ;;  %7821 = vmatprep.subr.bf16.mxu0 %v12822_v23 }
 0x5b9   : > { %v4220_v57 = vadd.f32 %v4219_v27, %v14399_v40  ;;  %v4221_v58 = vpop.f32.mrb[35].mxu1  ;;  %v6072_v62 = vmax.f32 %v4216_v4, 0.0  ;;  %7822 = vmatpush1.bf16.msra.mxu0 %v12820_v9 }
 0x5ba   : > { %v4222_v31 = vadd.f32 %v4221_v58, %v14403_v43  ;;  %v6073_v12 = vmax.f32 %v4218_v54, 0.0 }
 0x5bb   : > { %v6077_v22 = vmax.f32 %v4220_v57, 0.0  ;;  %4517 = vmatmul.mubr.bf16.gmra.mrb[140].mxu1 %v14142_v33 }
 0x5bc   : > { %v6078_v39 = vmax.f32 %v4222_v31, 0.0  ;;  %4526 = vmatprep.mubr.bf16.mxu1 %v16740_v63 }
 0x5bd   : > { %v14760_v56 = vpack.c.bf16 %v6077_v22, %v6072_v62 }
 0x5be   : > { %v4225_v35 = vpop.f32.mrb[36].mxu1  ;;  %v14762_v24 = vpack.c.bf16 %v6078_v39, %v6073_v12 }
 0x5bf   : > { %16753 = vst [vmem:[#allocation60_spill] sm:$0xff] %v14760_v56  ;;  %v4226_v27 = vadd.f32 %v4225_v35, %v14399_v40  ;;  %v4227_v52 = vpop.f32.mrb[37].mxu1 }
 0x5c0   : > { %16754 = vst [vmem:[#allocation61_spill] sm:$0xff] %v14762_v24  ;;  %v4228_v4 = vadd.f32 %v4227_v52, %v14403_v43  ;;  %v4229_v57 = vpop.f32.mrb[38].mxu1 }
 0x5c1   : > { %v4230_v54 = vadd.f32 %v4229_v57, %v14399_v40  ;;  %v4231_v58 = vpop.f32.mrb[39].mxu1  ;;  %v6082_v62 = vmax.f32 %v4226_v27, 0.0 }
 0x5c2   : > { %v4232_v31 = vadd.f32 %v4231_v58, %v14403_v43  ;;  %v6083_v56 = vmax.f32 %v4228_v4, 0.0 }
 0x5c3   : > { %v6087_v22 = vmax.f32 %v4230_v54, 0.0  ;;  %4527 = vmatmul.mubr.bf16.gmra.mrb[144].mxu1 %v14160_v3 }
 0x5c4   : > { %v6088_v12 = vmax.f32 %v4232_v31, 0.0  ;;  %4536 = vmatprep.mubr.bf16.mxu1 %v16740_v63 }
 0x5c5   : > { %v14770_v35 = vpack.c.bf16 %v6087_v22, %v6082_v62 }
 0x5c6   : > { %v4235_v39 = vpop.f32.mrb[40].mxu1  ;;  %v14772_v23 = vpack.c.bf16 %v6088_v12, %v6083_v56  ;;  %v12823_v12 = vld [vmem:[#allocation14 + $0x1d0] ss:$8 sps:$4 sm:$0xff]  }
 0x5c7   : > { %16755 = vst [vmem:[#allocation62_spill] sm:$0xff] %v14770_v35  ;;  %v4236_v52 = vadd.f32 %v4235_v39, %v14399_v40  ;;  %v4237_v9 = vpop.f32.mrb[41].mxu1  ;;  %v12825_v39 = vld [vmem:[#allocation14 + $0x1d4] ss:$8 sps:$4 sm:$0xff]  }
 0x5c8   : > { %16756 = vst [vmem:[#allocation63_spill] sm:$0xff] %v14772_v23  ;;  %v4238_v57 = vadd.f32 %v4237_v9, %v14403_v43  ;;  %v4239_v24 = vpop.f32.mrb[42].mxu1  ;;  %7823 = vmatprep.subr.bf16.mxu0 %v12825_v39 }
 0x5c9   : > { %v4240_v27 = vadd.f32 %v4239_v24, %v14399_v40  ;;  %v4241_v54 = vpop.f32.mrb[43].mxu1  ;;  %v6092_v4 = vmax.f32 %v4236_v52, 0.0  ;;  %7824 = vmatpush1.bf16.msra.mxu0 %v12823_v12 }
 0x5ca   : > { %v4242_v58 = vadd.f32 %v4241_v54, %v14403_v43  ;;  %v6093_v62 = vmax.f32 %v4238_v57, 0.0  ;;  %7825 = vmatprep.subr.bf16.mxu0 %v12828_v53 }
 0x5cb   : > { %v6097_v31 = vmax.f32 %v4240_v27, 0.0  ;;  %4537 = vmatmul.mubr.bf16.gmra.mrb[148].mxu1 %v14158_v0 }
 0x5cc   : > { %v6098_v22 = vmax.f32 %v4242_v58, 0.0  ;;  %4546 = vmatprep.mubr.bf16.mxu1 %v16740_v63 }
 0x5cd   : > { %v14780_v56 = vpack.c.bf16 %v6097_v31, %v6092_v4 }
 0x5ce   : > { %v4245_v35 = vpop.f32.mrb[44].mxu1  ;;  %v14782_v9 = vpack.c.bf16 %v6098_v22, %v6093_v62 }
 0x5cf   : > { %16757 = vst [vmem:[#allocation64_spill] sm:$0xff] %v14780_v56  ;;  %v4246_v24 = vadd.f32 %v4245_v35, %v14399_v40  ;;  %v4247_v23 = vpop.f32.mrb[45].mxu1 }
 0x5d0   : > { %16758 = vst [vmem:[#allocation65_spill] sm:$0xff] %v14782_v9  ;;  %v4248_v52 = vadd.f32 %v4247_v23, %v14403_v43  ;;  %v4249_v27 = vpop.f32.mrb[46].mxu1 }
 0x5d1   : > { %v4250_v57 = vadd.f32 %v4249_v27, %v14399_v40  ;;  %v4251_v54 = vpop.f32.mrb[47].mxu1  ;;  %v6102_v4 = vmax.f32 %v4246_v24, 0.0 }
 0x5d2   : > { %v4252_v58 = vadd.f32 %v4251_v54, %v14403_v43  ;;  %v6103_v56 = vmax.f32 %v4248_v52, 0.0 }
 0x5d3   : > { %v6107_v31 = vmax.f32 %v4250_v57, 0.0  ;;  %4547 = vmatmul.mubr.bf16.gmra.mrb[152].mxu1 %v14174_v34 }
 0x5d4   : > { %v6108_v62 = vmax.f32 %v4252_v58, 0.0  ;;  %4556 = vmatprep.mubr.bf16.mxu1 %v16740_v63 }
 0x5d5   : > { %v14790_v35 = vpack.c.bf16 %v6107_v31, %v6102_v4 }
 0x5d6   : > { %v4255_v22 = vpop.f32.mrb[48].mxu1  ;;  %v14792_v39 = vpack.c.bf16 %v6108_v62, %v6103_v56 }
 0x5d7   : > { %16759 = vst [vmem:[#allocation66_spill] sm:$0xff] %v14790_v35  ;;  %v4256_v23 = vadd.f32 %v4255_v22, %v14399_v40  ;;  %v4257_v12 = vpop.f32.mrb[49].mxu1 }
 0x5d8   : > { %16760 = vst [vmem:[#allocation67_spill] sm:$0xff] %v14792_v39  ;;  %v4258_v27 = vadd.f32 %v4257_v12, %v14403_v43  ;;  %v4259_v9 = vpop.f32.mrb[50].mxu1 }
 0x5d9   : > { %v4260_v24 = vadd.f32 %v4259_v9, %v14399_v40  ;;  %v4261_v57 = vpop.f32.mrb[51].mxu1  ;;  %v6112_v52 = vmax.f32 %v4256_v23, 0.0 }
 0x5da   : > { %v4262_v54 = vadd.f32 %v4261_v57, %v14403_v43  ;;  %v6113_v4 = vmax.f32 %v4258_v27, 0.0  ;;  %v12826_v57 = vld [vmem:[#allocation14 + $0x1e0] ss:$8 sps:$4 sm:$0xff]  }
 0x5db   : > { %v6117_v58 = vmax.f32 %v4260_v24, 0.0  ;;  %4557 = vmatmul.mubr.bf16.gmra.mrb[156].mxu1 %v14172_v30  ;;  %7826 = vmatpush1.bf16.msra.mxu0 %v12826_v57 }
 0x5dc   : > { %v6118_v31 = vmax.f32 %v4262_v54, 0.0  ;;  %4566 = vmatprep.mubr.bf16.mxu1 %v16740_v63 }
 0x5dd   : > { %v14800_v56 = vpack.c.bf16 %v6117_v58, %v6112_v52 }
 0x5de   : > { %v4265_v62 = vpop.f32.mrb[52].mxu1  ;;  %v14802_v22 = vpack.c.bf16 %v6118_v31, %v6113_v4 }
 0x5df   : > { %16761 = vst [vmem:[#allocation68_spill] sm:$0xff] %v14800_v56  ;;  %v4266_v12 = vadd.f32 %v4265_v62, %v14399_v40  ;;  %v4267_v35 = vpop.f32.mrb[53].mxu1 }
 0x5e0   : > { %16762 = vst [vmem:[#allocation69_spill] sm:$0xff] %v14802_v22  ;;  %v4268_v9 = vadd.f32 %v4267_v35, %v14403_v43  ;;  %v4269_v39 = vpop.f32.mrb[54].mxu1  ;;  %v12829_v35 = vld [vmem:[#allocation11 + $0x88] ss:$20 sps:$4 sm:$0xff]  }
 0x5e1   : > { %v4270_v23 = vadd.f32 %v4269_v39, %v14399_v40  ;;  %v4271_v24 = vpop.f32.mrb[55].mxu1  ;;  %v6122_v54 = vmax.f32 %v4266_v12, 0.0  ;;  %11593 = vmatprep.subr.bf16.mxu1 %v12829_v35 }
 0x5e2   : > { %v4272_v27 = vadd.f32 %v4271_v24, %v14403_v43  ;;  %v6123_v52 = vmax.f32 %v4268_v9, 0.0  ;;  %11594 = vmatpush3.bf16.msra.mxu1 %v12829_v35 }
 0x5e3   : > { %v6127_v16 = vmax.f32 %v4270_v23, 0.0  ;;  %4567 = vmatmul.mubr.bf16.gmra.mrb[160].mxu1 %v14188_v8 }
 0x5e4   : > { %v6128_v58 = vmax.f32 %v4272_v27, 0.0  ;;  %4576 = vmatprep.mubr.bf16.mxu1 %v16740_v63 }
 0x5e5   : > { %v14810_v4 = vpack.c.bf16 %v6127_v16, %v6122_v54 }
 0x5e6   : > { %v4275_v31 = vpop.f32.mrb[56].mxu1  ;;  %v14812_v39 = vpack.c.bf16 %v6128_v58, %v6123_v52 }
 0x5e7   : > { %16763 = vst [vmem:[#allocation70_spill] sm:$0xff] %v14810_v4  ;;  %v4276_v62 = vadd.f32 %v4275_v31, %v14399_v40  ;;  %v4277_v56 = vpop.f32.mrb[57].mxu1 }
 0x5e8   : > { %16764 = vst [vmem:[#allocation71_spill] sm:$0xff] %v14812_v39  ;;  %v4278_v12 = vadd.f32 %v4277_v56, %v14403_v43  ;;  %v4279_v23 = vpop.f32.mrb[58].mxu1 }
 0x5e9   : > { %v4280_v53 = vadd.f32 %v4279_v23, %v14399_v40  ;;  %v4281_v9 = vpop.f32.mrb[59].mxu1  ;;  %v6132_v57 = vmax.f32 %v4276_v62, 0.0 }
 0x5ea   : > { %v4282_v24 = vadd.f32 %v4281_v9, %v14403_v43  ;;  %v6133_v27 = vmax.f32 %v4278_v12, 0.0  ;;  %v12830_v12 = vld [vmem:[#allocation14 + $0x1f0] ss:$8 sps:$4 sm:$0xff]  }
 0x5eb   : > { %v6137_v16 = vmax.f32 %v4280_v53, 0.0  ;;  %4577 = vmatmul.mubr.bf16.gmra.mrb[164].mxu1 %v14186_v2 }
 0x5ec   : > { %v6138_v54 = vmax.f32 %v4282_v24, 0.0  ;;  %4586 = vmatprep.mubr.bf16.mxu1 %v16740_v63  ;;  %v12832_v24 = vld [vmem:[#allocation14 + $0x1f4] ss:$8 sps:$4 sm:$0xff]  }
 0x5ed   : > { %v14820_v52 = vpack.c.bf16 %v6137_v16, %v6132_v57  ;;  %7827 = vmatprep.subr.bf16.mxu0 %v12832_v24 }
 0x5ee   : > { %v4285_v58 = vpop.f32.mrb[60].mxu1  ;;  %v14822_v31 = vpack.c.bf16 %v6138_v54, %v6133_v27  ;;  %7828 = vmatpush1.bf16.msra.mxu0 %v12830_v12 }
 0x5ef   : > { %16765 = vst [vmem:[#allocation72_spill] sm:$0xff] %v14820_v52  ;;  %v4286_v56 = vadd.f32 %v4285_v58, %v14399_v40  ;;  %v4287_v35 = vpop.f32.mrb[61].mxu1 }
 0x5f0   : > { %16766 = vst [vmem:[#allocation73_spill] sm:$0xff] %v14822_v31  ;;  %v4288_v23 = vadd.f32 %v4287_v35, %v14403_v43  ;;  %v4289_v4 = vpop.f32.mrb[62].mxu1 }
 0x5f1   : > { %v4290_v62 = vadd.f32 %v4289_v4, %v14399_v40  ;;  %v4291_v53 = vpop.f32.mrb[63].mxu1  ;;  %v6142_v39 = vmax.f32 %v4286_v56, 0.0 }
 0x5f2   : > { %v4292_v9 = vadd.f32 %v4291_v53, %v14403_v43  ;;  %v6143_v57 = vmax.f32 %v4288_v23, 0.0 }
 0x5f3   : > { %v6147_v22 = vmax.f32 %v4290_v62, 0.0  ;;  %4587 = vmatmul.mubr.bf16.gmra.mrb[168].mxu1 %v14202_v46 }
 0x5f4   : > { %v6148_v16 = vmax.f32 %v4292_v9, 0.0  ;;  %4596 = vmatprep.mubr.bf16.mxu1 %v16740_v63 }
 0x5f5   : > { %v14830_v27 = vpack.c.bf16 %v6147_v22, %v6142_v39 }
 0x5f6   : > { %v4295_v54 = vpop.f32.mrb[64].mxu1  ;;  %v14832_v58 = vpack.c.bf16 %v6148_v16, %v6143_v57 }
 0x5f7   : > { %16767 = vst [vmem:[#allocation74_spill] sm:$0xff] %v14830_v27  ;;  %v4296_v4 = vadd.f32 %v4295_v54, %v14399_v40  ;;  %v4297_v35 = vpop.f32.mrb[65].mxu1 }
 0x5f8   : > { %16768 = vst [vmem:[#allocation75_spill] sm:$0xff] %v14832_v58  ;;  %v4298_v53 = vadd.f32 %v4297_v35, %v14403_v43  ;;  %v4299_v56 = vpop.f32.mrb[66].mxu1  ;;  %v16778_v58 = vld [vmem:[#allocation24_spill] sm:$0xff] }
 0x5f9   : > { %v4300_v62 = vadd.f32 %v4299_v56, %v14399_v40  ;;  %v4301_v52 = vpop.f32.mrb[67].mxu1  ;;  %v6152_v9 = vmax.f32 %v4296_v4, 0.0 }
 0x5fa   : > { %v4302_v23 = vadd.f32 %v4301_v52, %v14403_v43  ;;  %v6153_v22 = vmax.f32 %v4298_v53, 0.0 }
 0x5fb   : > { %v6157_v31 = vmax.f32 %v4300_v62, 0.0  ;;  %4597 = vmatmul.mubr.bf16.gmra.mrb[172].mxu1 %v14200_v42 }
 0x5fc   : > { %v6158_v39 = vmax.f32 %v4302_v23, 0.0  ;;  %4606 = vmatprep.mubr.bf16.mxu1 %v16740_v63 }
 0x5fd   : > { %v14840_v12 = vpack.c.bf16 %v6157_v31, %v6152_v9 }
 0x5fe   : > { %v4305_v24 = vpop.f32.mrb[68].mxu1  ;;  %v14842_v57 = vpack.c.bf16 %v6158_v39, %v6153_v22  ;;  %v12835_v39 = vld [vmem:[#allocation14 + $0x204] ss:$8 sps:$4 sm:$0xff]  }
 0x5ff   : > { %16769 = vst [vmem:[#allocation76_spill] sm:$0xff] %v14840_v12  ;;  %v4306_v16 = vadd.f32 %v4305_v24, %v14399_v40  ;;  %v4307_v54 = vpop.f32.mrb[69].mxu1  ;;  %8470 = vmatprep.subr.bf16.mxu0 %v12835_v39 }
 0x600   : > { %16770 = vst [vmem:[#allocation77_spill] sm:$0xff] %v14842_v57  ;;  %v4308_v35 = vadd.f32 %v4307_v54, %v14403_v43  ;;  %v4309_v56 = vpop.f32.mrb[70].mxu1 }
 0x601   : > { %v4310_v52 = vadd.f32 %v4309_v56, %v14399_v40  ;;  %v4311_v4 = vpop.f32.mrb[71].mxu1  ;;  %v6162_v53 = vmax.f32 %v4306_v16, 0.0 }
 0x602   : > { %v4312_v62 = vadd.f32 %v4311_v4, %v14403_v43  ;;  %v6163_v31 = vmax.f32 %v4308_v35, 0.0 }
 0x603   : > { %v6167_v23 = vmax.f32 %v4310_v52, 0.0  ;;  %4607 = vmatmul.mubr.bf16.gmra.mrb[176].mxu1 %v14216_v21 }
 0x604   : > { %v6168_v9 = vmax.f32 %v4312_v62, 0.0  ;;  %4616 = vmatprep.mubr.bf16.mxu1 %v16740_v63 }
 0x605   : > { %v14850_v22 = vpack.c.bf16 %v6167_v23, %v6162_v53 }
 0x606   : > { %v4315_v24 = vpop.f32.mrb[72].mxu1  ;;  %v14852_v12 = vpack.c.bf16 %v6168_v9, %v6163_v31 }
 0x607   : > { %16771 = vst [vmem:[#allocation78_spill] sm:$0xff] %v14850_v22  ;;  %v4316_v54 = vadd.f32 %v4315_v24, %v14399_v40  ;;  %v4317_v56 = vpop.f32.mrb[73].mxu1 }
 0x608   : > { %16772 = vst [vmem:[#allocation79_spill] sm:$0xff] %v14852_v12  ;;  %v4318_v4 = vadd.f32 %v4317_v56, %v14403_v43  ;;  %v4319_v16 = vpop.f32.mrb[74].mxu1  ;;  %v16775_v12 = vld [vmem:[#allocation25_spill] sm:$0xff] }
 0x609   : > { %v4320_v52 = vadd.f32 %v4319_v16, %v14399_v40  ;;  %v4321_v57 = vpop.f32.mrb[75].mxu1  ;;  %v6172_v62 = vmax.f32 %v4316_v54, 0.0 }
 0x60a   : > { %v4322_v35 = vadd.f32 %v4321_v57, %v14403_v43  ;;  %v6173_v53 = vmax.f32 %v4318_v4, 0.0 }
 0x60b   : > { %v6177_v27 = vmax.f32 %v4320_v52, 0.0  ;;  %4617 = vmatmul.mubr.bf16.gmra.mrb[180].mxu1 %v14214_v18 }
 0x60c   : > { %v6178_v23 = vmax.f32 %v4322_v35, 0.0  ;;  %4626 = vmatprep.mubr.bf16.mxu1 %v16740_v63 }
 0x60d   : > { %v14860_v31 = vpack.c.bf16 %v6177_v27, %v6172_v62 }
 0x60e   : > { %v4325_v9 = vpop.f32.mrb[76].mxu1  ;;  %v14862_v39 = vpack.c.bf16 %v6178_v23, %v6173_v53 }
 0x60f   : > { %16773 = vst [vmem:[#allocation80_spill] sm:$0xff] %v14860_v31  ;;  %v4326_v24 = vadd.f32 %v4325_v9, %v14399_v40  ;;  %v4327_v56 = vpop.f32.mrb[77].mxu1 }
 0x610   : > { %16774 = vst [vmem:[#allocation81_spill] sm:$0xff] %v14862_v39  ;;  %v4328_v16 = vadd.f32 %v4327_v56, %v14403_v43  ;;  %v4329_v22 = vpop.f32.mrb[78].mxu1 }
 0x611   : > { %v4330_v57 = vadd.f32 %v4329_v22, %v14399_v40  ;;  %v4331_v54 = vpop.f32.mrb[79].mxu1  ;;  %v6182_v4 = vmax.f32 %v4326_v24, 0.0 }
 0x612   : > { %v4332_v52 = vadd.f32 %v4331_v54, %v14403_v43  ;;  %v6183_v27 = vmax.f32 %v4328_v16, 0.0 }
 0x613   : > { %v6187_v35 = vmax.f32 %v4330_v57, 0.0  ;;  %4627 = vmatmul.mubr.bf16.gmra.mrb[184].mxu1 %v16775_v12 }
 0x614   : > { %v6188_v62 = vmax.f32 %v4332_v52, 0.0  ;;  %4636 = vmatprep.mubr.bf16.mxu1 %v16740_v63 }
 0x615   : > { %v14870_v53 = vpack.c.bf16 %v6187_v35, %v6182_v4 }
 0x616   : > { %v4335_v23 = vpop.f32.mrb[80].mxu1  ;;  %v14872_v9 = vpack.c.bf16 %v6188_v62, %v6183_v27 }
 0x617   : > { %16776 = vst [vmem:[#allocation25_spill] sm:$0xff] %v14870_v53  ;;  %v4336_v56 = vadd.f32 %v4335_v23, %v14399_v40  ;;  %v4337_v31 = vpop.f32.mrb[81].mxu1 }
 0x618   : > { %16777 = vst [vmem:[#allocation82_spill] sm:$0xff] %v14872_v9  ;;  %v4338_v22 = vadd.f32 %v4337_v31, %v14403_v43  ;;  %v4339_v39 = vpop.f32.mrb[82].mxu1 }
 0x619   : > { %v4340_v24 = vadd.f32 %v4339_v39, %v14399_v40  ;;  %v4341_v57 = vpop.f32.mrb[83].mxu1  ;;  %v6192_v16 = vmax.f32 %v4336_v56, 0.0 }
 0x61a   : > { %v4342_v54 = vadd.f32 %v4341_v57, %v14403_v43  ;;  %v6193_v4 = vmax.f32 %v4338_v22, 0.0 }
 0x61b   : > { %v6197_v52 = vmax.f32 %v4340_v24, 0.0  ;;  %4637 = vmatmul.mubr.bf16.gmra.mrb[188].mxu1 %v16778_v58 }
 0x61c   : > { %v6198_v35 = vmax.f32 %v4342_v54, 0.0  ;;  %4646 = vmatprep.mubr.bf16.mxu1 %v16740_v63 }
 0x61d   : > { %v14880_v27 = vpack.c.bf16 %v6197_v52, %v6192_v16 }
 0x61e   : > { %v4345_v62 = vpop.f32.mrb[84].mxu1  ;;  %v14882_v23 = vpack.c.bf16 %v6198_v35, %v6193_v4  ;;  %v12836_v35 = vld [vmem:[#allocation11 + $0xb0] ss:$20 sps:$4 sm:$0xff]  }
 0x61f   : > { %16779 = vst [vmem:[#allocation83_spill] sm:$0xff] %v14880_v27  ;;  %v4346_v31 = vadd.f32 %v4345_v62, %v14399_v40  ;;  %v4347_v53 = vpop.f32.mrb[85].mxu1  ;;  %11595 = vmatprep.subr.bf16.mxu1 %v12836_v35 }
 0x620   : > { %16780 = vst [vmem:[#allocation84_spill] sm:$0xff] %v14882_v23  ;;  %v4348_v39 = vadd.f32 %v4347_v53, %v14403_v43  ;;  %v4349_v9 = vpop.f32.mrb[86].mxu1  ;;  %11596 = vmatpush3.bf16.msra.mxu1 %v12836_v35 }
 0x621   : > { %v4350_v56 = vadd.f32 %v4349_v9, %v14399_v40  ;;  %v4351_v24 = vpop.f32.mrb[87].mxu1  ;;  %v6202_v22 = vmax.f32 %v4346_v31, 0.0 }
 0x622   : > { %v4352_v57 = vadd.f32 %v4351_v24, %v14403_v43  ;;  %v6203_v16 = vmax.f32 %v4348_v39, 0.0 }
 0x623   : > { %v6207_v54 = vmax.f32 %v4350_v56, 0.0  ;;  %4647 = vmatmul.mubr.bf16.gmra.mrb[192].mxu1 %v16781_v10 }
 0x624   : > { %v6208_v52 = vmax.f32 %v4352_v57, 0.0  ;;  %4656 = vmatprep.mubr.bf16.mxu1 %v16740_v63 }
 0x625   : > { %v14890_v4 = vpack.c.bf16 %v6207_v54, %v6202_v22  ;;  %v16784_v54 = vld [vmem:[#allocation26_spill] sm:$0xff] }
 0x626   : > { %v4355_v62 = vpop.f32.mrb[88].mxu1  ;;  %v14892_v27 = vpack.c.bf16 %v6208_v52, %v6203_v16 }
 0x627   : > { %16782 = vst [vmem:[#allocation85_spill] sm:$0xff] %v14890_v4  ;;  %v4356_v53 = vadd.f32 %v4355_v62, %v14399_v40  ;;  %v4357_v9 = vpop.f32.mrb[89].mxu1 }
 0x628   : > { %16783 = vst [vmem:[#allocation86_spill] sm:$0xff] %v14892_v27  ;;  %v4358_v24 = vadd.f32 %v4357_v9, %v14403_v43  ;;  %v4359_v31 = vpop.f32.mrb[90].mxu1 }
 0x629   : > { %v4360_v56 = vadd.f32 %v4359_v31, %v14399_v40  ;;  %v4361_v39 = vpop.f32.mrb[91].mxu1  ;;  %v6212_v23 = vmax.f32 %v4356_v53, 0.0 }
 0x62a   : > { %v4362_v57 = vadd.f32 %v4361_v39, %v14403_v43  ;;  %v6213_v4 = vmax.f32 %v4358_v24, 0.0 }
 0x62b   : > { %v6217_v22 = vmax.f32 %v4360_v56, 0.0  ;;  %4657 = vmatmul.mubr.bf16.gmra.mrb[196].mxu1 %v16784_v54  ;;  %v16787_v54 = vld [vmem:[#allocation29_spill] sm:$0xff] }
 0x62c   : > { %v6218_v16 = vmax.f32 %v4362_v57, 0.0  ;;  %4666 = vmatprep.mubr.bf16.mxu1 %v16740_v63 }
 0x62d   : > { %v14900_v52 = vpack.c.bf16 %v6217_v22, %v6212_v23 }
 0x62e   : > { %v4365_v62 = vpop.f32.mrb[92].mxu1  ;;  %v14902_v27 = vpack.c.bf16 %v6218_v16, %v6213_v4 }
 0x62f   : > { %16785 = vst [vmem:[#allocation87_spill] sm:$0xff] %v14900_v52  ;;  %v4366_v35 = vadd.f32 %v4365_v62, %v14399_v40  ;;  %v4367_v9 = vpop.f32.mrb[93].mxu1 }
 0x630   : > { %16786 = vst [vmem:[#allocation88_spill] sm:$0xff] %v14902_v27  ;;  %v4368_v31 = vadd.f32 %v4367_v9, %v14403_v43  ;;  %v4369_v25 = vpop.f32.mrb[94].mxu1 }
 0x631   : > { %v4370_v53 = vadd.f32 %v4369_v25, %v14399_v40  ;;  %v4371_v56 = vpop.f32.mrb[95].mxu1  ;;  %v6222_v24 = vmax.f32 %v4366_v35, 0.0 }
 0x632   : > { %v4372_v39 = vadd.f32 %v4371_v56, %v14403_v43  ;;  %v6223_v23 = vmax.f32 %v4368_v31, 0.0 }
 0x633   : > { %v6227_v57 = vmax.f32 %v4370_v53, 0.0  ;;  %4667 = vmatmul.mubr.bf16.gmra.mrb[200].mxu1 %v16787_v54  ;;  %v16790_v54 = vld [vmem:[#allocation28_spill] sm:$0xff] }
 0x634   : > { %v6228_v22 = vmax.f32 %v4372_v39, 0.0  ;;  %4676 = vmatprep.mubr.bf16.mxu1 %v16740_v63 }
 0x635   : > { %v14910_v4 = vpack.c.bf16 %v6227_v57, %v6222_v24 }
 0x636   : > { %v4375_v16 = vpop.f32.mrb[96].mxu1  ;;  %v14912_v62 = vpack.c.bf16 %v6228_v22, %v6223_v23 }
 0x637   : > { %16788 = vst [vmem:[#allocation89_spill] sm:$0xff] %v14910_v4  ;;  %v4376_v9 = vadd.f32 %v4375_v16, %v14399_v40  ;;  %v4377_v52 = vpop.f32.mrb[97].mxu1 }
 0x638   : > { %16789 = vst [vmem:[#allocation90_spill] sm:$0xff] %v14912_v62  ;;  %v4378_v25 = vadd.f32 %v4377_v52, %v14403_v43  ;;  %v4379_v27 = vpop.f32.mrb[98].mxu1 }
 0x639   : > { %v4380_v35 = vadd.f32 %v4379_v27, %v14399_v40  ;;  %v4381_v53 = vpop.f32.mrb[99].mxu1  ;;  %v6232_v31 = vmax.f32 %v4376_v9, 0.0 }
 0x63a   : > { %v4382_v56 = vadd.f32 %v4381_v53, %v14403_v43  ;;  %v6233_v24 = vmax.f32 %v4378_v25, 0.0 }
 0x63b   : > { %v6237_v39 = vmax.f32 %v4380_v35, 0.0  ;;  %4677 = vmatmul.mubr.bf16.gmra.mrb[204].mxu1 %v16790_v54  ;;  %v16793_v54 = vld [vmem:[#allocation31_spill] sm:$0xff] }
 0x63c   : > { %v6238_v57 = vmax.f32 %v4382_v56, 0.0  ;;  %4686 = vmatprep.mubr.bf16.mxu1 %v16740_v63 }
 0x63d   : > { %v14920_v23 = vpack.c.bf16 %v6237_v39, %v6232_v31 }
 0x63e   : > { %v4385_v22 = vpop.f32.mrb[100].mxu1  ;;  %v14922_v16 = vpack.c.bf16 %v6238_v57, %v6233_v24 }
 0x63f   : > { %16791 = vst [vmem:[#allocation91_spill] sm:$0xff] %v14920_v23  ;;  %v4386_v52 = vadd.f32 %v4385_v22, %v14399_v40  ;;  %v4387_v4 = vpop.f32.mrb[101].mxu1 }
 0x640   : > { %16792 = vst [vmem:[#allocation92_spill] sm:$0xff] %v14922_v16  ;;  %v4388_v27 = vadd.f32 %v4387_v4, %v14403_v43  ;;  %v4389_v62 = vpop.f32.mrb[102].mxu1 }
 0x641   : > { %v4390_v9 = vadd.f32 %v4389_v62, %v14399_v40  ;;  %v4391_v35 = vpop.f32.mrb[103].mxu1  ;;  %v6242_v25 = vmax.f32 %v4386_v52, 0.0 }
 0x642   : > { %v4392_v53 = vadd.f32 %v4391_v35, %v14403_v43  ;;  %v6243_v31 = vmax.f32 %v4388_v27, 0.0 }
 0x643   : > { %v6247_v56 = vmax.f32 %v4390_v9, 0.0  ;;  %4687 = vmatmul.mubr.bf16.gmra.mrb[208].mxu1 %v16793_v54  ;;  %v16796_v54 = vld [vmem:[#allocation30_spill] sm:$0xff] }
 0x644   : > { %v6248_v39 = vmax.f32 %v4392_v53, 0.0  ;;  %4696 = vmatprep.mubr.bf16.mxu1 %v16740_v63 }
 0x645   : > { %v14930_v24 = vpack.c.bf16 %v6247_v56, %v6242_v25 }
 0x646   : > { %v4395_v57 = vpop.f32.mrb[104].mxu1  ;;  %v14932_v22 = vpack.c.bf16 %v6248_v39, %v6243_v31 }
 0x647   : > { %16794 = vst [vmem:[#allocation93_spill] sm:$0xff] %v14930_v24  ;;  %v4396_v4 = vadd.f32 %v4395_v57, %v14399_v40  ;;  %v4397_v23 = vpop.f32.mrb[105].mxu1 }
 0x648   : > { %16795 = vst [vmem:[#allocation94_spill] sm:$0xff] %v14932_v22  ;;  %v4398_v62 = vadd.f32 %v4397_v23, %v14403_v43  ;;  %v4399_v16 = vpop.f32.mrb[106].mxu1 }
 0x649   : > { %v4400_v52 = vadd.f32 %v4399_v16, %v14399_v40  ;;  %v4401_v9 = vpop.f32.mrb[107].mxu1  ;;  %v6252_v27 = vmax.f32 %v4396_v4, 0.0 }
 0x64a   : > { %v4402_v35 = vadd.f32 %v4401_v9, %v14403_v43  ;;  %v6253_v25 = vmax.f32 %v4398_v62, 0.0 }
 0x64b   : > { %v6257_v53 = vmax.f32 %v4400_v52, 0.0  ;;  %4697 = vmatmul.mubr.bf16.gmra.mrb[212].mxu1 %v16796_v54  ;;  %v16799_v54 = vld [vmem:[#allocation33_spill] sm:$0xff] }
 0x64c   : > { %v6258_v56 = vmax.f32 %v4402_v35, 0.0  ;;  %4706 = vmatprep.mubr.bf16.mxu1 %v16740_v63 }
 0x64d   : > { %v14940_v31 = vpack.c.bf16 %v6257_v53, %v6252_v27 }
 0x64e   : > { %v4405_v39 = vpop.f32.mrb[108].mxu1  ;;  %v14942_v57 = vpack.c.bf16 %v6258_v56, %v6253_v25 }
 0x64f   : > { %16797 = vst [vmem:[#allocation95_spill] sm:$0xff] %v14940_v31  ;;  %v4406_v23 = vadd.f32 %v4405_v39, %v14399_v40  ;;  %v4407_v24 = vpop.f32.mrb[109].mxu1 }
 0x650   : > { %16798 = vst [vmem:[#allocation96_spill] sm:$0xff] %v14942_v57  ;;  %v4408_v16 = vadd.f32 %v4407_v24, %v14403_v43  ;;  %v4409_v22 = vpop.f32.mrb[110].mxu1 }
 0x651   : > { %v4410_v4 = vadd.f32 %v4409_v22, %v14399_v40  ;;  %v4411_v52 = vpop.f32.mrb[111].mxu1  ;;  %v6262_v62 = vmax.f32 %v4406_v23, 0.0 }
 0x652   : > { %v4412_v9 = vadd.f32 %v4411_v52, %v14403_v43  ;;  %v6263_v27 = vmax.f32 %v4408_v16, 0.0 }
 0x653   : > { %v6267_v35 = vmax.f32 %v4410_v4, 0.0  ;;  %4707 = vmatmul.mubr.bf16.gmra.mrb[216].mxu1 %v16799_v54  ;;  %v16802_v54 = vld [vmem:[#allocation32_spill] sm:$0xff] }
 0x654   : > { %v6268_v53 = vmax.f32 %v4412_v9, 0.0  ;;  %4716 = vmatprep.mubr.bf16.mxu1 %v16740_v63 }
 0x655   : > { %v14950_v25 = vpack.c.bf16 %v6267_v35, %v6262_v62 }
 0x656   : > { %v4415_v56 = vpop.f32.mrb[112].mxu1  ;;  %v14952_v39 = vpack.c.bf16 %v6268_v53, %v6263_v27 }
 0x657   : > { %16800 = vst [vmem:[#allocation97_spill] sm:$0xff] %v14950_v25  ;;  %v4416_v24 = vadd.f32 %v4415_v56, %v14399_v40  ;;  %v4417_v31 = vpop.f32.mrb[113].mxu1 }
 0x658   : > { %16801 = vst [vmem:[#allocation98_spill] sm:$0xff] %v14952_v39  ;;  %v4418_v22 = vadd.f32 %v4417_v31, %v14403_v43  ;;  %v4419_v57 = vpop.f32.mrb[114].mxu1 }
 0x659   : > { %v4420_v23 = vadd.f32 %v4419_v57, %v14399_v40  ;;  %v4421_v4 = vpop.f32.mrb[115].mxu1  ;;  %v6272_v16 = vmax.f32 %v4416_v24, 0.0 }
 0x65a   : > { %v4422_v52 = vadd.f32 %v4421_v4, %v14403_v43  ;;  %v6273_v62 = vmax.f32 %v4418_v22, 0.0 }
 0x65b   : > { %v6277_v9 = vmax.f32 %v4420_v23, 0.0  ;;  %4717 = vmatmul.mubr.bf16.gmra.mrb[220].mxu1 %v16802_v54  ;;  %v16805_v54 = vld [vmem:[#allocation35_spill] sm:$0xff] }
 0x65c   : > { %v6278_v35 = vmax.f32 %v4422_v52, 0.0  ;;  %4726 = vmatprep.mubr.bf16.mxu1 %v16740_v63 }
 0x65d   : > { %v14960_v27 = vpack.c.bf16 %v6277_v9, %v6272_v16 }
 0x65e   : > { %v4425_v53 = vpop.f32.mrb[116].mxu1  ;;  %v14962_v56 = vpack.c.bf16 %v6278_v35, %v6273_v62  ;;  %v12840_v35 = vld [vmem:[#allocation11 + $0xd8] ss:$20 sps:$4 sm:$0xff]  }
 0x65f   : > { %16803 = vst [vmem:[#allocation99_spill] sm:$0xff] %v14960_v27  ;;  %v4426_v31 = vadd.f32 %v4425_v53, %v14399_v40  ;;  %v4427_v25 = vpop.f32.mrb[117].mxu1  ;;  %11597 = vmatprep.subr.bf16.mxu1 %v12840_v35 }
 0x660   : > { %16804 = vst [vmem:[#allocation100_spill] sm:$0xff] %v14962_v56  ;;  %v4428_v57 = vadd.f32 %v4427_v25, %v14403_v43  ;;  %v4429_v39 = vpop.f32.mrb[118].mxu1  ;;  %11598 = vmatpush3.bf16.msra.mxu1 %v12840_v35 }
 0x661   : > { %v4430_v24 = vadd.f32 %v4429_v39, %v14399_v40  ;;  %v4431_v23 = vpop.f32.mrb[119].mxu1  ;;  %v6282_v22 = vmax.f32 %v4426_v31, 0.0 }
 0x662   : > { %v4432_v4 = vadd.f32 %v4431_v23, %v14403_v43  ;;  %v6283_v16 = vmax.f32 %v4428_v57, 0.0 }
 0x663   : > { %v6287_v52 = vmax.f32 %v4430_v24, 0.0  ;;  %4727 = vmatmul.mubr.bf16.gmra.mrb[224].mxu1 %v16805_v54 }
 0x664   : > { %v6288_v9 = vmax.f32 %v4432_v4, 0.0  ;;  %4736 = vmatprep.mubr.bf16.mxu1 %v16740_v63 }
 0x665   : > { %v14970_v62 = vpack.c.bf16 %v6287_v52, %v6282_v22  ;;  %v16808_v52 = vld [vmem:[#allocation34_spill] sm:$0xff] }
 0x666   : > { %v4435_v53 = vpop.f32.mrb[120].mxu1  ;;  %v14972_v27 = vpack.c.bf16 %v6288_v9, %v6283_v16 }
 0x667   : > { %16806 = vst [vmem:[#allocation101_spill] sm:$0xff] %v14970_v62  ;;  %v4436_v25 = vadd.f32 %v4435_v53, %v14399_v40  ;;  %v4437_v39 = vpop.f32.mrb[121].mxu1 }
 0x668   : > { %16807 = vst [vmem:[#allocation102_spill] sm:$0xff] %v14972_v27  ;;  %v4438_v23 = vadd.f32 %v4437_v39, %v14403_v43  ;;  %v4439_v31 = vpop.f32.mrb[122].mxu1  ;;  %v16811_v39 = vld [vmem:[#allocation47_spill] sm:$0xff] }
 0x669   : > { %v4440_v24 = vadd.f32 %v4439_v31, %v14399_v40  ;;  %v4441_v57 = vpop.f32.mrb[123].mxu1  ;;  %v6292_v56 = vmax.f32 %v4436_v25, 0.0  ;;  %v3558_v35 = vsub.s32 2, %v16811_v39 }
 0x66a   : > { %v4442_v4 = vadd.f32 %v4441_v57, %v14403_v43  ;;  %v6293_v62 = vmax.f32 %v4438_v23, 0.0 }
 0x66b   : > { %v6297_v22 = vmax.f32 %v4440_v24, 0.0  ;;  %4737 = vmatmul.mubr.bf16.gmra.mrb[228].mxu1 %v16808_v52  ;;  %v3562_v24 = vsub.s32 3, %v16811_v39 }
 0x66c   : > { %v6298_v16 = vmax.f32 %v4442_v4, 0.0  ;;  %4746 = vmatprep.mubr.bf16.mxu1 %v16740_v63 }
 0x66d   : > { %v14980_v9 = vpack.c.bf16 %v6297_v22, %v6292_v56 }
 0x66e   : > { %v4445_v53 = vpop.f32.mrb[124].mxu1  ;;  %v14982_v27 = vpack.c.bf16 %v6298_v16, %v6293_v62  ;;  %v12864_v62 = vld [vmem:[#allocation13] sm:$0x1f] }
 0x66f   : > { %16809 = vst [vmem:[#allocation103_spill] sm:$0xff] %v14980_v9  ;;  %v4446_v31 = vadd.f32 %v4445_v53, %v14399_v40  ;;  %v4447_v54 = vpop.f32.mrb[125].mxu1  ;;  %v16812_v9 = vld [vmem:[#allocation37_spill] sm:$0xff]  ;;  %v14991_v16 = vrot.slane %v12864_v62, %v3558_v35  ;;  %v14993_v10 = vrot.slane %v12864_v62, %v3562_v24  ;;  %v16815_v62 = vld [vmem:[#allocation36_spill] sm:$0xff] }
 0x670   : > { %16810 = vst [vmem:[#allocation104_spill] sm:$0xff] %v14982_v27  ;;  %v4448_v57 = vadd.f32 %v4447_v54, %v14403_v43  ;;  %v4449_v25 = vpop.f32.mrb[126].mxu1 }
 0x671   : > { %v4450_v23 = vadd.f32 %v4449_v25, %v14399_v40  ;;  %v4451_v4 = vpop.f32.mrb[127].mxu1  ;;  %v6302_v56 = vmax.f32 %v4446_v31, 0.0 }
 0x672   : > { %v4452_v52 = vadd.f32 %v4451_v4, %v14403_v43  ;;  %v6303_v27 = vmax.f32 %v4448_v57, 0.0 }
 0x673   : > { %v6307_v22 = vmax.f32 %v4450_v23, 0.0  ;;  %4747 = vmatmul.mubr.bf16.gmra.mrb[232].mxu1 %v16812_v9  ;;  %v12839_v9 = vld [vmem:[#allocation14 + $0x214] ss:$8 sps:$4 sm:$0xff]  }
 0x674   : > { %v6308_v53 = vmax.f32 %v4452_v52, 0.0  ;;  %4756 = vmatprep.mubr.bf16.mxu1 %v16740_v63 }
 0x675   : > { %v14996_v54 = vpack.c.bf16 %v6307_v22, %v6302_v56 }
 0x676   : > { %v4488_v39 = vpop.f32.mrb[128].mxu1  ;;  %v14998_v40 = vpack.c.bf16 %v6308_v53, %v6303_v27 }
 0x677   : > { %16813 = vst [vmem:[#allocation105_spill] sm:$0xff] %v14996_v54  ;;  %v4489_v43 = vadd.f32 %v4488_v39, %v14991_v16  ;;  %v4490_v31 = vpop.f32.mrb[129].mxu1  ;;  %v12833_v54 = vld [vmem:[#allocation14 + $0x200] ss:$8 sps:$4 sm:$0xff]  }
 0x678   : > { %16814 = vst [vmem:[#allocation106_spill] sm:$0xff] %v14998_v40  ;;  %v4491_v25 = vadd.f32 %v4490_v31, %v14993_v10  ;;  %v4492_v23 = vpop.f32.mrb[130].mxu1 }
 0x679   : > { %v4493_v35 = vadd.f32 %v4492_v23, %v14991_v16  ;;  %v4494_v4 = vpop.f32.mrb[131].mxu1  ;;  %v5674_v57 = vmax.f32 %v4489_v43, 0.0 }
 0x67a   : > { %v4495_v52 = vadd.f32 %v4494_v4, %v14993_v10  ;;  %v5675_v56 = vmax.f32 %v4491_v25, 0.0  ;;  %v12837_v4 = vld [vmem:[#allocation14 + $0x210] ss:$8 sps:$4 sm:$0xff]  }
 0x67b   : > { %v5679_v24 = vmax.f32 %v4493_v35, 0.0  ;;  %4757 = vmatmul.mubr.bf16.gmra.mrb[236].mxu1 %v16815_v62 }
 0x67c   : > { %v5680_v22 = vmax.f32 %v4495_v52, 0.0  ;;  %4766 = vmatprep.mubr.bf16.mxu1 %v16740_v63 }
 0x67d   : > { %v6314_v27 = vpack.c.bf16 %v5679_v24, %v5674_v57  ;;  %v16816_v24 = vld [vmem:[#allocation39_spill] sm:$0xff] }
 0x67e   : > { %v4498_v53 = vpop.f32.mrb[132].mxu1  ;;  %v6315_v39 = vpack.c.bf16 %v5680_v22, %v5675_v56 }
 0x67f   : > { %v4499_v31 = vadd.f32 %v4498_v53, %v14991_v16  ;;  %v4500_v40 = vpop.f32.mrb[133].mxu1  ;;  %v12843_v53 = vld [vmem:[#allocation14 + $0x224] ss:$8 sps:$4 sm:$0xff]  }
 0x680   : > { %v4501_v23 = vadd.f32 %v4500_v40, %v14993_v10  ;;  %v4502_v58 = vpop.f32.mrb[134].mxu1  ;;  %7829 = vmatprep.mubr.bf16.mxu0 %v6315_v39 }
 0x681   : > { %v4503_v43 = vadd.f32 %v4502_v58, %v14991_v16  ;;  %v4504_v35 = vpop.f32.mrb[135].mxu1  ;;  %7830 = vmatmul.mubr.bf16.vlgmr.msra.gmra.mrb[0].mxu0 %v6314_v27  ;;  %v5684_v52 = vmax.f32 %v4499_v31, 0.0  ;;  %v12841_v58 = vld [vmem:[#allocation14 + $0x220] ss:$8 sps:$4 sm:$0xff]  }
 0x682   : > { %v4505_v25 = vadd.f32 %v4504_v35, %v14993_v10  ;;  %8471 = vmatpush1.bf16.msra.mxu0 %v12833_v54  ;;  %v5685_v56 = vmax.f32 %v4501_v23, 0.0 }
 0x683   : > { %v5689_v57 = vmax.f32 %v4503_v43, 0.0  ;;  %4767 = vmatmul.mubr.bf16.gmra.mrb[240].mxu1 %v16816_v24  ;;  %8472 = vmatprep.subr.bf16.mxu0 %v12839_v9 }
 0x684   : > { %v5690_v22 = vmax.f32 %v4505_v25, 0.0  ;;  %4776 = vmatprep.mubr.bf16.mxu1 %v16740_v63 }
 0x685   : > { %v6319_v40 = vpack.c.bf16 %v5689_v57, %v5684_v52  ;;  %v16817_v57 = vld [vmem:[#allocation38_spill] sm:$0xff] }
 0x686   : > { %v4508_v39 = vpop.f32.mrb[136].mxu1  ;;  %v6320_v62 = vpack.c.bf16 %v5690_v22, %v5685_v56  ;;  %8473 = vmatpush1.bf16.msra.mxu0 %v12837_v4 }
 0x687   : > { %v4509_v27 = vadd.f32 %v4508_v39, %v14991_v16  ;;  %v4510_v35 = vpop.f32.mrb[137].mxu1  ;;  %8474 = vmatprep.subr.bf16.mxu0 %v12843_v53 }
 0x688   : > { %v4511_v54 = vadd.f32 %v4510_v35, %v14993_v10  ;;  %v4512_v31 = vpop.f32.mrb[138].mxu1  ;;  %7839 = vmatprep.mubr.bf16.mxu0 %v6320_v62 }
 0x689   : > { %v4513_v9 = vadd.f32 %v4512_v31, %v14991_v16  ;;  %v4514_v23 = vpop.f32.mrb[139].mxu1  ;;  %7840 = vmatmul.mubr.bf16.gmra.mrb[4].mxu0 %v6319_v40  ;;  %v5694_v25 = vmax.f32 %v4509_v27, 0.0 }
 0x68a   : > { %v4515_v43 = vadd.f32 %v4514_v23, %v14993_v10  ;;  %8475 = vmatpush1.bf16.msra.mxu0 %v12841_v58  ;;  %v5695_v4 = vmax.f32 %v4511_v54, 0.0 }
 0x68b   : > { %v5699_v52 = vmax.f32 %v4513_v9, 0.0  ;;  %4777 = vmatmul.mubr.bf16.gmra.mrb[244].mxu1 %v16817_v57 }
 0x68c   : > { %v5700_v56 = vmax.f32 %v4515_v43, 0.0  ;;  %4786 = vmatprep.mubr.bf16.mxu1 %v16740_v63  ;;  %v16818_v43 = vld [vmem:[#allocation41_spill] sm:$0xff] }
 0x68d   : > { %v6324_v22 = vpack.c.bf16 %v5699_v52, %v5694_v25 }
 0x68e   : > { %v4518_v53 = vpop.f32.mrb[140].mxu1  ;;  %v6325_v39 = vpack.c.bf16 %v5700_v56, %v5695_v4 }
 0x68f   : > { %v4519_v62 = vadd.f32 %v4518_v53, %v14991_v16  ;;  %v4520_v35 = vpop.f32.mrb[141].mxu1 }
 0x690   : > { %v4521_v31 = vadd.f32 %v4520_v35, %v14993_v10  ;;  %v4522_v40 = vpop.f32.mrb[142].mxu1  ;;  %7849 = vmatprep.mubr.bf16.mxu0 %v6325_v39 }
 0x691   : > { %v4523_v58 = vadd.f32 %v4522_v40, %v14991_v16  ;;  %v4524_v27 = vpop.f32.mrb[143].mxu1  ;;  %7850 = vmatmul.mubr.bf16.gmra.mrb[8].mxu0 %v6324_v22  ;;  %v5704_v54 = vmax.f32 %v4519_v62, 0.0 }
 0x692   : > { %v4525_v9 = vadd.f32 %v4524_v27, %v14993_v10  ;;  %v5705_v25 = vmax.f32 %v4521_v31, 0.0 }
 0x693   : > { %v5709_v23 = vmax.f32 %v4523_v58, 0.0  ;;  %4787 = vmatmul.mubr.bf16.gmra.mrb[248].mxu1 %v16818_v43 }
 0x694   : > { %v5710_v52 = vmax.f32 %v4525_v9, 0.0  ;;  %4796 = vmatprep.mubr.bf16.mxu1 %v16740_v63  ;;  %v16819_v9 = vld [vmem:[#allocation40_spill] sm:$0xff] }
 0x695   : > { %v6329_v4 = vpack.c.bf16 %v5709_v23, %v5704_v54 }
 0x696   : > { %v4528_v56 = vpop.f32.mrb[144].mxu1  ;;  %v6330_v53 = vpack.c.bf16 %v5710_v52, %v5705_v25 }
 0x697   : > { %v4529_v35 = vadd.f32 %v4528_v56, %v14991_v16  ;;  %v4530_v39 = vpop.f32.mrb[145].mxu1 }
 0x698   : > { %v4531_v40 = vadd.f32 %v4530_v39, %v14993_v10  ;;  %v4532_v57 = vpop.f32.mrb[146].mxu1  ;;  %7859 = vmatprep.mubr.bf16.mxu0 %v6330_v53 }
 0x699   : > { %v4533_v22 = vadd.f32 %v4532_v57, %v14991_v16  ;;  %v4534_v62 = vpop.f32.mrb[147].mxu1  ;;  %7860 = vmatmul.mubr.bf16.gmra.mrb[12].mxu0 %v6329_v4  ;;  %v5714_v31 = vmax.f32 %v4529_v35, 0.0 }
 0x69a   : > { %v4535_v58 = vadd.f32 %v4534_v62, %v14993_v10  ;;  %v5715_v54 = vmax.f32 %v4531_v40, 0.0 }
 0x69b   : > { %v5719_v27 = vmax.f32 %v4533_v22, 0.0  ;;  %4797 = vmatmul.mubr.bf16.gmra.mrb[252].mxu1 %v16819_v9 }
 0x69c   : > { %v5720_v23 = vmax.f32 %v4535_v58, 0.0  ;;  %4806 = vmatprep.mubr.bf16.mxu1 %v16740_v63  ;;  %v16820_v58 = vld [vmem:[#allocation43_spill] sm:$0xff] }
 0x69d   : > { %v6334_v25 = vpack.c.bf16 %v5719_v27, %v5714_v31 }
 0x69e   : > { %v4538_v52 = vpop.f32.mrb[148].mxu1  ;;  %v6335_v56 = vpack.c.bf16 %v5720_v23, %v5715_v54  ;;  %v12844_v23 = vld [vmem:[#allocation11 + $0x100] ss:$20 sps:$4 sm:$0xff]  }
 0x69f   : > { %v4539_v39 = vadd.f32 %v4538_v52, %v14991_v16  ;;  %v4540_v53 = vpop.f32.mrb[149].mxu1  ;;  %11599 = vmatprep.subr.bf16.mxu1 %v12844_v23 }
 0x6a0   : > { %v4541_v57 = vadd.f32 %v4540_v53, %v14993_v10  ;;  %v4542_v43 = vpop.f32.mrb[150].mxu1  ;;  %7869 = vmatprep.mubr.bf16.mxu0 %v6335_v56  ;;  %11600 = vmatpush3.bf16.msra.mxu1 %v12844_v23 }
 0x6a1   : > { %v4543_v4 = vadd.f32 %v4542_v43, %v14991_v16  ;;  %v4544_v35 = vpop.f32.mrb[151].mxu1  ;;  %7870 = vmatmul.mubr.bf16.gmra.mrb[16].mxu0 %v6334_v25  ;;  %v5724_v40 = vmax.f32 %v4539_v39, 0.0 }
 0x6a2   : > { %v4545_v22 = vadd.f32 %v4544_v35, %v14993_v10  ;;  %v5725_v31 = vmax.f32 %v4541_v57, 0.0 }
 0x6a3   : > { %v5729_v62 = vmax.f32 %v4543_v4, 0.0  ;;  %4807 = vmatmul.mubr.bf16.gmra.mrb[0].mxu1 %v16820_v58 }
 0x6a4   : > { %v5730_v27 = vmax.f32 %v4545_v22, 0.0  ;;  %4816 = vmatprep.mubr.bf16.mxu1 %v16740_v63 }
 0x6a5   : > { %v6339_v54 = vpack.c.bf16 %v5729_v62, %v5724_v40  ;;  %v16821_v40 = vld [vmem:[#allocation42_spill] sm:$0xff] }
 0x6a6   : > { %v4548_v52 = vpop.f32.mrb[152].mxu1  ;;  %v6340_v53 = vpack.c.bf16 %v5730_v27, %v5725_v31 }
 0x6a7   : > { %v4549_v56 = vadd.f32 %v4548_v52, %v14991_v16  ;;  %v4550_v9 = vpop.f32.mrb[153].mxu1 }
 0x6a8   : > { %v4551_v43 = vadd.f32 %v4550_v9, %v14993_v10  ;;  %v4552_v25 = vpop.f32.mrb[154].mxu1  ;;  %7879 = vmatprep.mubr.bf16.mxu0 %v6340_v53 }
 0x6a9   : > { %v4553_v39 = vadd.f32 %v4552_v25, %v14991_v16  ;;  %v4554_v4 = vpop.f32.mrb[155].mxu1  ;;  %7880 = vmatmul.mubr.bf16.gmra.mrb[20].mxu0 %v6339_v54  ;;  %v5734_v35 = vmax.f32 %v4549_v56, 0.0 }
 0x6aa   : > { %v4555_v57 = vadd.f32 %v4554_v4, %v14993_v10  ;;  %v5735_v62 = vmax.f32 %v4551_v43, 0.0 }
 0x6ab   : > { %v5739_v22 = vmax.f32 %v4553_v39, 0.0  ;;  %4817 = vmatmul.mubr.bf16.gmra.mrb[4].mxu1 %v16821_v40 }
 0x6ac   : > { %v5740_v31 = vmax.f32 %v4555_v57, 0.0  ;;  %4826 = vmatprep.mubr.bf16.mxu1 %v16740_v63  ;;  %v16822_v57 = vld [vmem:[#allocation45_spill] sm:$0xff] }
 0x6ad   : > { %v6344_v27 = vpack.c.bf16 %v5739_v22, %v5734_v35 }
 0x6ae   : > { %v4558_v52 = vpop.f32.mrb[156].mxu1  ;;  %v6345_v9 = vpack.c.bf16 %v5740_v31, %v5735_v62 }
 0x6af   : > { %v4559_v53 = vadd.f32 %v4558_v52, %v14991_v16  ;;  %v4560_v23 = vpop.f32.mrb[157].mxu1 }
 0x6b0   : > { %v4561_v25 = vadd.f32 %v4560_v23, %v14993_v10  ;;  %v4562_v58 = vpop.f32.mrb[158].mxu1  ;;  %7889 = vmatprep.mubr.bf16.mxu0 %v6345_v9 }
 0x6b1   : > { %v4563_v54 = vadd.f32 %v4562_v58, %v14991_v16  ;;  %v4564_v56 = vpop.f32.mrb[159].mxu1  ;;  %7890 = vmatmul.mubr.bf16.gmra.mrb[24].mxu0 %v6344_v27  ;;  %v5744_v43 = vmax.f32 %v4559_v53, 0.0 }
 0x6b2   : > { %v4565_v39 = vadd.f32 %v4564_v56, %v14993_v10  ;;  %v5745_v35 = vmax.f32 %v4561_v25, 0.0 }
 0x6b3   : > { %v5749_v4 = vmax.f32 %v4563_v54, 0.0  ;;  %4827 = vmatmul.mubr.bf16.gmra.mrb[8].mxu1 %v16822_v57 }
 0x6b4   : > { %v5750_v22 = vmax.f32 %v4565_v39, 0.0  ;;  %4836 = vmatprep.mubr.bf16.mxu1 %v16740_v63  ;;  %v16823_v39 = vld [vmem:[#allocation44_spill] sm:$0xff] }
 0x6b5   : > { %v6349_v62 = vpack.c.bf16 %v5749_v4, %v5744_v43 }
 0x6b6   : > { %v4568_v31 = vpop.f32.mrb[160].mxu1  ;;  %v6350_v52 = vpack.c.bf16 %v5750_v22, %v5745_v35 }
 0x6b7   : > { %v4569_v23 = vadd.f32 %v4568_v31, %v14991_v16  ;;  %v4570_v9 = vpop.f32.mrb[161].mxu1 }
 0x6b8   : > { %v4571_v58 = vadd.f32 %v4570_v9, %v14993_v10  ;;  %v4572_v40 = vpop.f32.mrb[162].mxu1  ;;  %7899 = vmatprep.mubr.bf16.mxu0 %v6350_v52 }
 0x6b9   : > { %v4573_v27 = vadd.f32 %v4572_v40, %v14991_v16  ;;  %v4574_v53 = vpop.f32.mrb[163].mxu1  ;;  %7900 = vmatmul.mubr.bf16.gmra.mrb[28].mxu0 %v6349_v62  ;;  %v5754_v25 = vmax.f32 %v4569_v23, 0.0 }
 0x6ba   : > { %v4575_v54 = vadd.f32 %v4574_v53, %v14993_v10  ;;  %v5755_v43 = vmax.f32 %v4571_v58, 0.0 }
 0x6bb   : > { %v5759_v56 = vmax.f32 %v4573_v27, 0.0  ;;  %4837 = vmatmul.mubr.bf16.gmra.mrb[12].mxu1 %v16823_v39 }
 0x6bc   : > { %v5760_v4 = vmax.f32 %v4575_v54, 0.0  ;;  %4846 = vmatprep.mubr.bf16.mxu1 %v16740_v63  ;;  %v16824_v54 = vld [vmem:[#allocation46_spill] sm:$0xff] }
 0x6bd   : > { %v6354_v35 = vpack.c.bf16 %v5759_v56, %v5754_v25 }
 0x6be   : > { %v4578_v22 = vpop.f32.mrb[164].mxu1  ;;  %v6355_v31 = vpack.c.bf16 %v5760_v4, %v5755_v43  ;;  %v12845_v4 = vld [vmem:[#allocation14 + $0x230] ss:$8 sps:$4 sm:$0xff]  }
 0x6bf   : > { %v4579_v9 = vadd.f32 %v4578_v22, %v14991_v16  ;;  %v4580_v52 = vpop.f32.mrb[165].mxu1  ;;  %v12847_v22 = vld [vmem:[#allocation14 + $0x234] ss:$8 sps:$4 sm:$0xff]  }
 0x6c0   : > { %v4581_v40 = vadd.f32 %v4580_v52, %v14993_v10  ;;  %v4582_v57 = vpop.f32.mrb[166].mxu1  ;;  %7909 = vmatprep.mubr.bf16.mxu0 %v6355_v31  ;;  %8476 = vmatprep.subr.bf16.mxu0 %v12847_v22 }
 0x6c1   : > { %v4583_v62 = vadd.f32 %v4582_v57, %v14991_v16  ;;  %v4584_v23 = vpop.f32.mrb[167].mxu1  ;;  %7910 = vmatmul.mubr.bf16.gmra.mrb[32].mxu0 %v6354_v35  ;;  %v5764_v58 = vmax.f32 %v4579_v9, 0.0 }
 0x6c2   : > { %v4585_v27 = vadd.f32 %v4584_v23, %v14993_v10  ;;  %v5765_v25 = vmax.f32 %v4581_v40, 0.0  ;;  %8477 = vmatpush1.bf16.msra.mxu0 %v12845_v4 }
 0x6c3   : > { %v5769_v53 = vmax.f32 %v4583_v62, 0.0  ;;  %4847 = vmatmul.mubr.bf16.gmra.mrb[16].mxu1 %v16824_v54 }
 0x6c4   : > { %v5770_v56 = vmax.f32 %v4585_v27, 0.0  ;;  %4856 = vmatprep.mubr.bf16.mxu1 %v16740_v63 }
 0x6c5   : > { %v6359_v43 = vpack.c.bf16 %v5769_v53, %v5764_v58 }
 0x6c6   : > { %v4588_v52 = vpop.f32.mrb[168].mxu1  ;;  %v6360_v39 = vpack.c.bf16 %v5770_v56, %v5765_v25 }
 0x6c7   : > { %v4589_v31 = vadd.f32 %v4588_v52, %v14991_v16  ;;  %v4590_v57 = vpop.f32.mrb[169].mxu1 }
 0x6c8   : > { %v4591_v35 = vadd.f32 %v4590_v57, %v14993_v10  ;;  %v4592_v23 = vpop.f32.mrb[170].mxu1  ;;  %7919 = vmatprep.mubr.bf16.mxu0 %v6360_v39 }
 0x6c9   : > { %v4593_v9 = vadd.f32 %v4592_v23, %v14991_v16  ;;  %v4594_v40 = vpop.f32.mrb[171].mxu1  ;;  %7920 = vmatmul.mubr.bf16.gmra.mrb[36].mxu0 %v6359_v43  ;;  %v5774_v27 = vmax.f32 %v4589_v31, 0.0 }
 0x6ca   : > { %v4595_v62 = vadd.f32 %v4594_v40, %v14993_v10  ;;  %v5775_v53 = vmax.f32 %v4591_v35, 0.0 }
 0x6cb   : > { %v5779_v58 = vmax.f32 %v4593_v9, 0.0  ;;  %4857 = vmatmul.mubr.bf16.gmra.mrb[20].mxu1 %v14350_v20 }
 0x6cc   : > { %v5780_v25 = vmax.f32 %v4595_v62, 0.0  ;;  %4866 = vmatprep.mubr.bf16.mxu1 %v16740_v63 }
 0x6cd   : > { %v6364_v56 = vpack.c.bf16 %v5779_v58, %v5774_v27 }
 0x6ce   : > { %v4598_v22 = vpop.f32.mrb[172].mxu1  ;;  %v6365_v52 = vpack.c.bf16 %v5780_v25, %v5775_v53 }
 0x6cf   : > { %v4599_v39 = vadd.f32 %v4598_v22, %v14991_v16  ;;  %v4600_v4 = vpop.f32.mrb[173].mxu1 }
 0x6d0   : > { %v4601_v57 = vadd.f32 %v4600_v4, %v14993_v10  ;;  %v4602_v23 = vpop.f32.mrb[174].mxu1  ;;  %7929 = vmatprep.mubr.bf16.mxu0 %v6365_v52 }
 0x6d1   : > { %v4603_v43 = vadd.f32 %v4602_v23, %v14991_v16  ;;  %v4604_v31 = vpop.f32.mrb[175].mxu1  ;;  %7930 = vmatmul.mubr.bf16.gmra.mrb[40].mxu0 %v6364_v56  ;;  %v5784_v35 = vmax.f32 %v4599_v39, 0.0 }
 0x6d2   : > { %v4605_v9 = vadd.f32 %v4604_v31, %v14993_v10  ;;  %v5785_v62 = vmax.f32 %v4601_v57, 0.0 }
 0x6d3   : > { %v5789_v40 = vmax.f32 %v4603_v43, 0.0  ;;  %4867 = vmatmul.mubr.bf16.gmra.mrb[24].mxu1 %v14364_v49 }
 0x6d4   : > { %v5790_v27 = vmax.f32 %v4605_v9, 0.0  ;;  %4876 = vmatprep.mubr.bf16.mxu1 %v16740_v63 }
 0x6d5   : > { %v6369_v58 = vpack.c.bf16 %v5789_v40, %v5784_v35 }
 0x6d6   : > { %v4608_v53 = vpop.f32.mrb[176].mxu1  ;;  %v6370_v25 = vpack.c.bf16 %v5790_v27, %v5785_v62 }
 0x6d7   : > { %v4609_v22 = vadd.f32 %v4608_v53, %v14991_v16  ;;  %v4610_v52 = vpop.f32.mrb[177].mxu1 }
 0x6d8   : > { %v4611_v4 = vadd.f32 %v4610_v52, %v14993_v10  ;;  %v4612_v23 = vpop.f32.mrb[178].mxu1  ;;  %7939 = vmatprep.mubr.bf16.mxu0 %v6370_v25 }
 0x6d9   : > { %v4613_v56 = vadd.f32 %v4612_v23, %v14991_v16  ;;  %v4614_v39 = vpop.f32.mrb[179].mxu1  ;;  %7940 = vmatmul.mubr.bf16.gmra.mrb[44].mxu0 %v6369_v58  ;;  %v5794_v57 = vmax.f32 %v4609_v22, 0.0 }
 0x6da   : > { %v4615_v43 = vadd.f32 %v4614_v39, %v14993_v10  ;;  %v5795_v9 = vmax.f32 %v4611_v4, 0.0 }
 0x6db   : > { %v5799_v31 = vmax.f32 %v4613_v56, 0.0  ;;  %4877 = vmatmul.mubr.bf16.gmra.mrb[28].mxu1 %v14362_v59 }
 0x6dc   : > { %v5800_v35 = vmax.f32 %v4615_v43, 0.0  ;;  %4886 = vmatprep.mubr.bf16.mxu1 %v16740_v63 }
 0x6dd   : > { %v6374_v40 = vpack.c.bf16 %v5799_v31, %v5794_v57 }
 0x6de   : > { %v4618_v62 = vpop.f32.mrb[180].mxu1  ;;  %v6375_v27 = vpack.c.bf16 %v5800_v35, %v5795_v9  ;;  %v12848_v9 = vld [vmem:[#allocation11 + $0x128] ss:$20 sps:$4 sm:$0xff]  }
 0x6df   : > { %v4619_v53 = vadd.f32 %v4618_v62, %v14991_v16  ;;  %v4620_v25 = vpop.f32.mrb[181].mxu1  ;;  %11601 = vmatprep.subr.bf16.mxu1 %v12848_v9 }
 0x6e0   : > { %v4621_v52 = vadd.f32 %v4620_v25, %v14993_v10  ;;  %v4622_v23 = vpop.f32.mrb[182].mxu1  ;;  %7949 = vmatprep.mubr.bf16.mxu0 %v6375_v27  ;;  %11602 = vmatpush3.bf16.msra.mxu1 %v12848_v9 }
 0x6e1   : > { %v4623_v58 = vadd.f32 %v4622_v23, %v14991_v16  ;;  %v4624_v22 = vpop.f32.mrb[183].mxu1  ;;  %7950 = vmatmul.mubr.bf16.gmra.mrb[48].mxu0 %v6374_v40  ;;  %v5804_v4 = vmax.f32 %v4619_v53, 0.0 }
 0x6e2   : > { %v4625_v56 = vadd.f32 %v4624_v22, %v14993_v10  ;;  %v5805_v43 = vmax.f32 %v4621_v52, 0.0  ;;  %v12865_v52 = vld [vmem:[#allocation14 + $0x4] ss:$8 sps:$4 sm:$0xff]  }
 0x6e3   : > { %v5809_v39 = vmax.f32 %v4623_v58, 0.0  ;;  %4887 = vmatmul.mubr.bf16.gmra.mrb[32].mxu1 %v14376_v32  ;;  %11731 = vmatprep.subr.bf16.mxu1 %v12865_v52 }
 0x6e4   : > { %v5810_v57 = vmax.f32 %v4625_v56, 0.0  ;;  %4896 = vmatprep.mubr.bf16.mxu1 %v16740_v63 }
 0x6e5   : > { %v6379_v31 = vpack.c.bf16 %v5809_v39, %v5804_v4 }
 0x6e6   : > { %v4628_v35 = vpop.f32.mrb[184].mxu1  ;;  %v6380_v62 = vpack.c.bf16 %v5810_v57, %v5805_v43 }
 0x6e7   : > { %v4629_v27 = vadd.f32 %v4628_v35, %v14991_v16  ;;  %v4630_v25 = vpop.f32.mrb[185].mxu1 }
 0x6e8   : > { %v4631_v40 = vadd.f32 %v4630_v25, %v14993_v10  ;;  %v4632_v23 = vpop.f32.mrb[186].mxu1  ;;  %7959 = vmatprep.mubr.bf16.mxu0 %v6380_v62 }
 0x6e9   : > { %v4633_v53 = vadd.f32 %v4632_v23, %v14991_v16  ;;  %v4634_v58 = vpop.f32.mrb[187].mxu1  ;;  %7960 = vmatmul.mubr.bf16.gmra.mrb[52].mxu0 %v6379_v31  ;;  %v5814_v56 = vmax.f32 %v4629_v27, 0.0 }
 0x6ea   : > { %v4635_v22 = vadd.f32 %v4634_v58, %v14993_v10  ;;  %v5815_v39 = vmax.f32 %v4631_v40, 0.0 }
 0x6eb   : > { %v5819_v4 = vmax.f32 %v4633_v53, 0.0  ;;  %4897 = vmatmul.mubr.bf16.gmra.mrb[36].mxu1 %v14374_v29 }
 0x6ec   : > { %v5820_v43 = vmax.f32 %v4635_v22, 0.0  ;;  %4906 = vmatprep.mubr.bf16.mxu1 %v16740_v63 }
 0x6ed   : > { %v6384_v57 = vpack.c.bf16 %v5819_v4, %v5814_v56 }
 0x6ee   : > { %v4638_v35 = vpop.f32.mrb[188].mxu1  ;;  %v6385_v62 = vpack.c.bf16 %v5820_v43, %v5815_v39 }
 0x6ef   : > { %v4639_v9 = vadd.f32 %v4638_v35, %v14991_v16  ;;  %v4640_v25 = vpop.f32.mrb[189].mxu1 }
 0x6f0   : > { %v4641_v31 = vadd.f32 %v4640_v25, %v14993_v10  ;;  %v4642_v23 = vpop.f32.mrb[190].mxu1  ;;  %7969 = vmatprep.mubr.bf16.mxu0 %v6385_v62 }
 0x6f1   : > { %v4643_v58 = vadd.f32 %v4642_v23, %v14991_v16  ;;  %v4644_v27 = vpop.f32.mrb[191].mxu1  ;;  %7970 = vmatmul.mubr.bf16.gmra.mrb[56].mxu0 %v6384_v57  ;;  %v5824_v40 = vmax.f32 %v4639_v9, 0.0 }
 0x6f2   : > { %v4645_v53 = vadd.f32 %v4644_v27, %v14993_v10  ;;  %v5825_v22 = vmax.f32 %v4641_v31, 0.0 }
 0x6f3   : > { %v5829_v52 = vmax.f32 %v4643_v58, 0.0  ;;  %4907 = vmatmul.mubr.bf16.gmra.mrb[40].mxu1 %v14388_v14 }
 0x6f4   : > { %v5830_v56 = vmax.f32 %v4645_v53, 0.0  ;;  %4916 = vmatprep.mubr.bf16.mxu1 %v16740_v63 }
 0x6f5   : > { %v6389_v4 = vpack.c.bf16 %v5829_v52, %v5824_v40 }
 0x6f6   : > { %v4648_v39 = vpop.f32.mrb[192].mxu1  ;;  %v6390_v43 = vpack.c.bf16 %v5830_v56, %v5825_v22 }
 0x6f7   : > { %v4649_v35 = vadd.f32 %v4648_v39, %v14991_v16  ;;  %v4650_v62 = vpop.f32.mrb[193].mxu1 }
 0x6f8   : > { %v4651_v25 = vadd.f32 %v4650_v62, %v14993_v10  ;;  %v4652_v23 = vpop.f32.mrb[194].mxu1  ;;  %7979 = vmatprep.mubr.bf16.mxu0 %v6390_v43 }
 0x6f9   : > { %v4653_v57 = vadd.f32 %v4652_v23, %v14991_v16  ;;  %v4654_v9 = vpop.f32.mrb[195].mxu1  ;;  %7980 = vmatmul.mubr.bf16.gmra.mrb[60].mxu0 %v6389_v4  ;;  %v5834_v31 = vmax.f32 %v4649_v35, 0.0 }
 0x6fa   : > { %v4655_v58 = vadd.f32 %v4654_v9, %v14993_v10  ;;  %v5835_v53 = vmax.f32 %v4651_v25, 0.0 }
 0x6fb   : > { %v5839_v27 = vmax.f32 %v4653_v57, 0.0  ;;  %4917 = vmatmul.mubr.bf16.gmra.mrb[44].mxu1 %v14386_v13 }
 0x6fc   : > { %v5840_v40 = vmax.f32 %v4655_v58, 0.0  ;;  %4926 = vmatprep.mubr.bf16.mxu1 %v16740_v63 }
 0x6fd   : > { %v6394_v52 = vpack.c.bf16 %v5839_v27, %v5834_v31 }
 0x6fe   : > { %v4658_v22 = vpop.f32.mrb[196].mxu1  ;;  %v6395_v56 = vpack.c.bf16 %v5840_v40, %v5835_v53  ;;  %v12849_v53 = vld [vmem:[#allocation14 + $0x240] ss:$8 sps:$4 sm:$0xff]   ;;  %v12851_v40 = vld [vmem:[#allocation14 + $0x244] ss:$8 sps:$4 sm:$0xff]  }
 0x6ff   : > { %v4659_v39 = vadd.f32 %v4658_v22, %v14991_v16  ;;  %v4660_v43 = vpop.f32.mrb[197].mxu1  ;;  %8478 = vmatprep.subr.bf16.mxu0 %v12851_v40 }
 0x700   : > { %v4661_v62 = vadd.f32 %v4660_v43, %v14993_v10  ;;  %v4662_v23 = vpop.f32.mrb[198].mxu1  ;;  %7989 = vmatprep.mubr.bf16.mxu0 %v6395_v56  ;;  %8479 = vmatpush1.bf16.msra.mxu0 %v12849_v53 }
 0x701   : > { %v4663_v4 = vadd.f32 %v4662_v23, %v14991_v16  ;;  %v4664_v35 = vpop.f32.mrb[199].mxu1  ;;  %7990 = vmatmul.mubr.bf16.gmra.mrb[64].mxu0 %v6394_v52  ;;  %v5844_v25 = vmax.f32 %v4659_v39, 0.0 }
 0x702   : > { %v4665_v57 = vadd.f32 %v4664_v35, %v14993_v10  ;;  %v5845_v58 = vmax.f32 %v4661_v62, 0.0 }
 0x703   : > { %v5849_v9 = vmax.f32 %v4663_v4, 0.0  ;;  %4927 = vmatmul.mubr.bf16.gmra.mrb[48].mxu1 %v14416_v41 }
 0x704   : > { %v5850_v31 = vmax.f32 %v4665_v57, 0.0  ;;  %4936 = vmatprep.mubr.bf16.mxu1 %v16740_v63 }
 0x705   : > { %v6399_v27 = vpack.c.bf16 %v5849_v9, %v5844_v25 }
 0x706   : > { %v4668_v22 = vpop.f32.mrb[200].mxu1  ;;  %v6400_v43 = vpack.c.bf16 %v5850_v31, %v5845_v58 }
 0x707   : > { %v4669_v56 = vadd.f32 %v4668_v22, %v14991_v16  ;;  %v4670_v23 = vpop.f32.mrb[201].mxu1 }
 0x708   : > { %v4671_v52 = vadd.f32 %v4670_v23, %v14993_v10  ;;  %v4672_v35 = vpop.f32.mrb[202].mxu1  ;;  %7999 = vmatprep.mubr.bf16.mxu0 %v6400_v43 }
 0x709   : > { %v4673_v39 = vadd.f32 %v4672_v35, %v14991_v16  ;;  %v4674_v62 = vpop.f32.mrb[203].mxu1  ;;  %8000 = vmatmul.mubr.bf16.gmra.mrb[68].mxu0 %v6399_v27  ;;  %v5854_v57 = vmax.f32 %v4669_v56, 0.0 }
 0x70a   : > { %v4675_v4 = vadd.f32 %v4674_v62, %v14993_v10  ;;  %v5855_v9 = vmax.f32 %v4671_v52, 0.0 }
 0x70b   : > { %v5859_v25 = vmax.f32 %v4673_v39, 0.0  ;;  %4937 = vmatmul.mubr.bf16.gmra.mrb[52].mxu1 %v14413_v45 }
 0x70c   : > { %v5860_v58 = vmax.f32 %v4675_v4, 0.0  ;;  %4946 = vmatprep.mubr.bf16.mxu1 %v16740_v63 }
 0x70d   : > { %v6404_v31 = vpack.c.bf16 %v5859_v25, %v5854_v57 }
 0x70e   : > { %v4678_v40 = vpop.f32.mrb[204].mxu1  ;;  %v6405_v22 = vpack.c.bf16 %v5860_v58, %v5855_v9 }
 0x70f   : > { %v4679_v43 = vadd.f32 %v4678_v40, %v14991_v16  ;;  %v4680_v53 = vpop.f32.mrb[205].mxu1 }
 0x710   : > { %v4681_v23 = vadd.f32 %v4680_v53, %v14993_v10  ;;  %v4682_v35 = vpop.f32.mrb[206].mxu1  ;;  %8009 = vmatprep.mubr.bf16.mxu0 %v6405_v22 }
 0x711   : > { %v4683_v27 = vadd.f32 %v4682_v35, %v14991_v16  ;;  %v4684_v56 = vpop.f32.mrb[207].mxu1  ;;  %8010 = vmatmul.mubr.bf16.gmra.mrb[72].mxu0 %v6404_v31  ;;  %v5864_v52 = vmax.f32 %v4679_v43, 0.0 }
 0x712   : > { %v4685_v39 = vadd.f32 %v4684_v56, %v14993_v10  ;;  %v5865_v4 = vmax.f32 %v4681_v23, 0.0 }
 0x713   : > { %v5869_v62 = vmax.f32 %v4683_v27, 0.0  ;;  %4947 = vmatmul.mubr.bf16.gmra.mrb[56].mxu1 %v14436_v61 }
 0x714   : > { %v5870_v57 = vmax.f32 %v4685_v39, 0.0  ;;  %4956 = vmatprep.mubr.bf16.mxu1 %v16740_v63 }
 0x715   : > { %v6409_v25 = vpack.c.bf16 %v5869_v62, %v5864_v52 }
 0x716   : > { %v4688_v9 = vpop.f32.mrb[208].mxu1  ;;  %v6410_v58 = vpack.c.bf16 %v5870_v57, %v5865_v4 }
 0x717   : > { %v4689_v40 = vadd.f32 %v4688_v9, %v14991_v16  ;;  %v4690_v22 = vpop.f32.mrb[209].mxu1 }
 0x718   : > { %v4691_v53 = vadd.f32 %v4690_v22, %v14993_v10  ;;  %v4692_v35 = vpop.f32.mrb[210].mxu1  ;;  %8019 = vmatprep.mubr.bf16.mxu0 %v6410_v58 }
 0x719   : > { %v4693_v31 = vadd.f32 %v4692_v35, %v14991_v16  ;;  %v4694_v43 = vpop.f32.mrb[211].mxu1  ;;  %8020 = vmatmul.mubr.bf16.gmra.mrb[76].mxu0 %v6409_v25  ;;  %v5874_v23 = vmax.f32 %v4689_v40, 0.0 }
 0x71a   : > { %v4695_v27 = vadd.f32 %v4694_v43, %v14993_v10  ;;  %v5875_v39 = vmax.f32 %v4691_v53, 0.0 }
 0x71b   : > { %v5879_v56 = vmax.f32 %v4693_v31, 0.0  ;;  %4957 = vmatmul.mubr.bf16.gmra.mrb[60].mxu1 %v14433_v50 }
 0x71c   : > { %v5880_v52 = vmax.f32 %v4695_v27, 0.0  ;;  %4966 = vmatprep.mubr.bf16.mxu1 %v16740_v63 }
 0x71d   : > { %v6414_v62 = vpack.c.bf16 %v5879_v56, %v5874_v23 }
 0x71e   : > { %v4698_v4 = vpop.f32.mrb[212].mxu1  ;;  %v6415_v57 = vpack.c.bf16 %v5880_v52, %v5875_v39 }
 0x71f   : > { %v4699_v9 = vadd.f32 %v4698_v4, %v14991_v16  ;;  %v4700_v58 = vpop.f32.mrb[213].mxu1 }
 0x720   : > { %v4701_v22 = vadd.f32 %v4700_v58, %v14993_v10  ;;  %v4702_v35 = vpop.f32.mrb[214].mxu1  ;;  %8029 = vmatprep.mubr.bf16.mxu0 %v6415_v57 }
 0x721   : > { %v4703_v25 = vadd.f32 %v4702_v35, %v14991_v16  ;;  %v4704_v40 = vpop.f32.mrb[215].mxu1  ;;  %8030 = vmatmul.mubr.bf16.gmra.mrb[80].mxu0 %v6414_v62  ;;  %v5884_v53 = vmax.f32 %v4699_v9, 0.0 }
 0x722   : > { %v4705_v31 = vadd.f32 %v4704_v40, %v14993_v10  ;;  %v5885_v27 = vmax.f32 %v4701_v22, 0.0 }
 0x723   : > { %v5889_v43 = vmax.f32 %v4703_v25, 0.0  ;;  %4967 = vmatmul.mubr.bf16.gmra.mrb[64].mxu1 %v14452_v5 }
 0x724   : > { %v5890_v23 = vmax.f32 %v4705_v31, 0.0  ;;  %4976 = vmatprep.mubr.bf16.mxu1 %v16740_v63 }
 0x725   : > { %v6419_v56 = vpack.c.bf16 %v5889_v43, %v5884_v53 }
 0x726   : > { %v4708_v39 = vpop.f32.mrb[216].mxu1  ;;  %v6420_v52 = vpack.c.bf16 %v5890_v23, %v5885_v27 }
 0x727   : > { %v4709_v4 = vadd.f32 %v4708_v39, %v14991_v16  ;;  %v4710_v57 = vpop.f32.mrb[217].mxu1 }
 0x728   : > { %v4711_v58 = vadd.f32 %v4710_v57, %v14993_v10  ;;  %v4712_v35 = vpop.f32.mrb[218].mxu1  ;;  %8039 = vmatprep.mubr.bf16.mxu0 %v6420_v52 }
 0x729   : > { %v4713_v62 = vadd.f32 %v4712_v35, %v14991_v16  ;;  %v4714_v9 = vpop.f32.mrb[219].mxu1  ;;  %8040 = vmatmul.mubr.bf16.gmra.mrb[84].mxu0 %v6419_v56  ;;  %v5894_v22 = vmax.f32 %v4709_v4, 0.0 }
 0x72a   : > { %v4715_v25 = vadd.f32 %v4714_v9, %v14993_v10  ;;  %v5895_v31 = vmax.f32 %v4711_v58, 0.0 }
 0x72b   : > { %v5899_v40 = vmax.f32 %v4713_v62, 0.0  ;;  %4977 = vmatmul.mubr.bf16.gmra.mrb[68].mxu1 %v14449_v36 }
 0x72c   : > { %v5900_v53 = vmax.f32 %v4715_v25, 0.0  ;;  %4986 = vmatprep.mubr.bf16.mxu1 %v16740_v63 }
 0x72d   : > { %v6424_v43 = vpack.c.bf16 %v5899_v40, %v5894_v22 }
 0x72e   : > { %v4718_v27 = vpop.f32.mrb[220].mxu1  ;;  %v6425_v23 = vpack.c.bf16 %v5900_v53, %v5895_v31 }
 0x72f   : > { %v4719_v39 = vadd.f32 %v4718_v27, %v14991_v16  ;;  %v4720_v52 = vpop.f32.mrb[221].mxu1 }
 0x730   : > { %v4721_v57 = vadd.f32 %v4720_v52, %v14993_v10  ;;  %v4722_v35 = vpop.f32.mrb[222].mxu1  ;;  %8049 = vmatprep.mubr.bf16.mxu0 %v6425_v23 }
 0x731   : > { %v4723_v56 = vadd.f32 %v4722_v35, %v14991_v16  ;;  %v4724_v4 = vpop.f32.mrb[223].mxu1  ;;  %8050 = vmatmul.mubr.bf16.gmra.mrb[88].mxu0 %v6424_v43  ;;  %v5904_v58 = vmax.f32 %v4719_v39, 0.0 }
 0x732   : > { %v4725_v62 = vadd.f32 %v4724_v4, %v14993_v10  ;;  %v5905_v25 = vmax.f32 %v4721_v57, 0.0 }
 0x733   : > { %v5909_v9 = vmax.f32 %v4723_v56, 0.0  ;;  %4987 = vmatmul.mubr.bf16.gmra.mrb[72].mxu1 %v14466_v11 }
 0x734   : > { %v5910_v22 = vmax.f32 %v4725_v62, 0.0  ;;  %4996 = vmatprep.mubr.bf16.mxu1 %v16740_v63 }
 0x735   : > { %v6429_v40 = vpack.c.bf16 %v5909_v9, %v5904_v58 }
 0x736   : > { %v4728_v31 = vpop.f32.mrb[224].mxu1  ;;  %v6430_v53 = vpack.c.bf16 %v5910_v22, %v5905_v25 }
 0x737   : > { %v4729_v27 = vadd.f32 %v4728_v31, %v14991_v16  ;;  %v4730_v23 = vpop.f32.mrb[225].mxu1 }
 0x738   : > { %v4731_v52 = vadd.f32 %v4730_v23, %v14993_v10  ;;  %v4732_v35 = vpop.f32.mrb[226].mxu1  ;;  %8059 = vmatprep.mubr.bf16.mxu0 %v6430_v53 }
 0x739   : > { %v4733_v43 = vadd.f32 %v4732_v35, %v14991_v16  ;;  %v4734_v39 = vpop.f32.mrb[227].mxu1  ;;  %8060 = vmatmul.mubr.bf16.gmra.mrb[92].mxu0 %v6429_v40  ;;  %v5914_v57 = vmax.f32 %v4729_v27, 0.0 }
 0x73a   : > { %v4735_v56 = vadd.f32 %v4734_v39, %v14993_v10  ;;  %v5915_v62 = vmax.f32 %v4731_v52, 0.0 }
 0x73b   : > { %v5919_v4 = vmax.f32 %v4733_v43, 0.0  ;;  %4997 = vmatmul.mubr.bf16.gmra.mrb[76].mxu1 %v14463_v51 }
 0x73c   : > { %v5920_v58 = vmax.f32 %v4735_v56, 0.0  ;;  %5006 = vmatprep.mubr.bf16.mxu1 %v16740_v63 }
 0x73d   : > { %v6434_v9 = vpack.c.bf16 %v5919_v4, %v5914_v57 }
 0x73e   : > { %v4738_v25 = vpop.f32.mrb[228].mxu1  ;;  %v6435_v22 = vpack.c.bf16 %v5920_v58, %v5915_v62  ;;  %v12852_v62 = vld [vmem:[#allocation14 + $0x250] ss:$8 sps:$4 sm:$0xff]   ;;  %v12854_v58 = vld [vmem:[#allocation14 + $0x254] ss:$8 sps:$4 sm:$0xff]  }
 0x73f   : > { %v4739_v31 = vadd.f32 %v4738_v25, %v14991_v16  ;;  %v4740_v53 = vpop.f32.mrb[229].mxu1  ;;  %8480 = vmatprep.subr.bf16.mxu0 %v12854_v58 }
 0x740   : > { %v4741_v23 = vadd.f32 %v4740_v53, %v14993_v10  ;;  %v4742_v35 = vpop.f32.mrb[230].mxu1  ;;  %8069 = vmatprep.mubr.bf16.mxu0 %v6435_v22  ;;  %8481 = vmatpush1.bf16.msra.mxu0 %v12852_v62 }
 0x741   : > { %v4743_v40 = vadd.f32 %v4742_v35, %v14991_v16  ;;  %v4744_v27 = vpop.f32.mrb[231].mxu1  ;;  %8070 = vmatmul.mubr.bf16.gmra.mrb[96].mxu0 %v6434_v9  ;;  %v5924_v52 = vmax.f32 %v4739_v31, 0.0 }
 0x742   : > { %v4745_v43 = vadd.f32 %v4744_v27, %v14993_v10  ;;  %v5925_v56 = vmax.f32 %v4741_v23, 0.0 }
 0x743   : > { %v5929_v39 = vmax.f32 %v4743_v40, 0.0  ;;  %5007 = vmatmul.mubr.bf16.gmra.mrb[80].mxu1 %v14480_v28 }
 0x744   : > { %v5930_v57 = vmax.f32 %v4745_v43, 0.0  ;;  %5016 = vmatprep.mubr.bf16.mxu1 %v16740_v63 }
 0x745   : > { %v6439_v4 = vpack.c.bf16 %v5929_v39, %v5924_v52 }
 0x746   : > { %v4748_v25 = vpop.f32.mrb[232].mxu1  ;;  %v6440_v53 = vpack.c.bf16 %v5930_v57, %v5925_v56 }
 0x747   : > { %v4749_v22 = vadd.f32 %v4748_v25, %v14991_v16  ;;  %v4750_v35 = vpop.f32.mrb[233].mxu1 }
 0x748   : > { %v4751_v9 = vadd.f32 %v4750_v35, %v14993_v10  ;;  %v4752_v27 = vpop.f32.mrb[234].mxu1  ;;  %8079 = vmatprep.mubr.bf16.mxu0 %v6440_v53 }
 0x749   : > { %v4753_v31 = vadd.f32 %v4752_v27, %v14991_v16  ;;  %v4754_v23 = vpop.f32.mrb[235].mxu1  ;;  %8080 = vmatmul.mubr.bf16.gmra.mrb[100].mxu0 %v6439_v4  ;;  %v5934_v43 = vmax.f32 %v4749_v22, 0.0 }
 0x74a   : > { %v4755_v40 = vadd.f32 %v4754_v23, %v14993_v10  ;;  %v5935_v39 = vmax.f32 %v4751_v9, 0.0 }
 0x74b   : > { %v5939_v52 = vmax.f32 %v4753_v31, 0.0  ;;  %5017 = vmatmul.mubr.bf16.gmra.mrb[84].mxu1 %v14477_v55 }
 0x74c   : > { %v5940_v56 = vmax.f32 %v4755_v40, 0.0  ;;  %5026 = vmatprep.mubr.bf16.mxu1 %v16740_v63 }
 0x74d   : > { %v6444_v57 = vpack.c.bf16 %v5939_v52, %v5934_v43 }
 0x74e   : > { %v4758_v58 = vpop.f32.mrb[236].mxu1  ;;  %v6445_v25 = vpack.c.bf16 %v5940_v56, %v5935_v39 }
 0x74f   : > { %v4759_v53 = vadd.f32 %v4758_v58, %v14991_v16  ;;  %v4760_v62 = vpop.f32.mrb[237].mxu1 }
 0x750   : > { %v4761_v35 = vadd.f32 %v4760_v62, %v14993_v10  ;;  %v4762_v27 = vpop.f32.mrb[238].mxu1  ;;  %8089 = vmatprep.mubr.bf16.mxu0 %v6445_v25 }
 0x751   : > { %v4763_v4 = vadd.f32 %v4762_v27, %v14991_v16  ;;  %v4764_v22 = vpop.f32.mrb[239].mxu1  ;;  %8090 = vmatmul.mubr.bf16.gmra.mrb[104].mxu0 %v6444_v57  ;;  %v5944_v9 = vmax.f32 %v4759_v53, 0.0 }
 0x752   : > { %v4765_v31 = vadd.f32 %v4764_v22, %v14993_v10  ;;  %v5945_v40 = vmax.f32 %v4761_v35, 0.0 }
 0x753   : > { %v5949_v23 = vmax.f32 %v4763_v4, 0.0  ;;  %5027 = vmatmul.mubr.bf16.gmra.mrb[88].mxu1 %v14494_v26 }
 0x754   : > { %v5950_v43 = vmax.f32 %v4765_v31, 0.0  ;;  %5036 = vmatprep.mubr.bf16.mxu1 %v16740_v63 }
 0x755   : > { %v6449_v52 = vpack.c.bf16 %v5949_v23, %v5944_v9 }
 0x756   : > { %v4768_v39 = vpop.f32.mrb[240].mxu1  ;;  %v6450_v56 = vpack.c.bf16 %v5950_v43, %v5945_v40 }
 0x757   : > { %v4769_v58 = vadd.f32 %v4768_v39, %v14991_v16  ;;  %v4770_v25 = vpop.f32.mrb[241].mxu1 }
 0x758   : > { %v4771_v62 = vadd.f32 %v4770_v25, %v14993_v10  ;;  %v4772_v27 = vpop.f32.mrb[242].mxu1  ;;  %8099 = vmatprep.mubr.bf16.mxu0 %v6450_v56 }
 0x759   : > { %v4773_v57 = vadd.f32 %v4772_v27, %v14991_v16  ;;  %v4774_v53 = vpop.f32.mrb[243].mxu1  ;;  %8100 = vmatmul.mubr.bf16.gmra.mrb[108].mxu0 %v6449_v52  ;;  %v5954_v35 = vmax.f32 %v4769_v58, 0.0 }
 0x75a   : > { %v4775_v4 = vadd.f32 %v4774_v53, %v14993_v10  ;;  %v5955_v31 = vmax.f32 %v4771_v62, 0.0 }
 0x75b   : > { %v5959_v22 = vmax.f32 %v4773_v57, 0.0  ;;  %5037 = vmatmul.mubr.bf16.gmra.mrb[92].mxu1 %v14491_v19 }
 0x75c   : > { %v5960_v9 = vmax.f32 %v4775_v4, 0.0  ;;  %5046 = vmatprep.mubr.bf16.mxu1 %v16740_v63 }
 0x75d   : > { %v6454_v23 = vpack.c.bf16 %v5959_v22, %v5954_v35 }
 0x75e   : > { %v4778_v40 = vpop.f32.mrb[244].mxu1  ;;  %v6455_v43 = vpack.c.bf16 %v5960_v9, %v5955_v31 }
 0x75f   : > { %v4779_v39 = vadd.f32 %v4778_v40, %v14991_v16  ;;  %v4780_v56 = vpop.f32.mrb[245].mxu1 }
 0x760   : > { %v4781_v25 = vadd.f32 %v4780_v56, %v14993_v10  ;;  %v4782_v27 = vpop.f32.mrb[246].mxu1  ;;  %8109 = vmatprep.mubr.bf16.mxu0 %v6455_v43 }
 0x761   : > { %v4783_v52 = vadd.f32 %v4782_v27, %v14991_v16  ;;  %v4784_v58 = vpop.f32.mrb[247].mxu1  ;;  %8110 = vmatmul.mubr.bf16.gmra.mrb[112].mxu0 %v6454_v23  ;;  %v5964_v62 = vmax.f32 %v4779_v39, 0.0 }
 0x762   : > { %v4785_v57 = vadd.f32 %v4784_v58, %v14993_v10  ;;  %v5965_v4 = vmax.f32 %v4781_v25, 0.0 }
 0x763   : > { %v5969_v53 = vmax.f32 %v4783_v52, 0.0  ;;  %5047 = vmatmul.mubr.bf16.gmra.mrb[96].mxu1 %v14508_v1 }
 0x764   : > { %v5970_v35 = vmax.f32 %v4785_v57, 0.0  ;;  %5056 = vmatprep.mubr.bf16.mxu1 %v16740_v63 }
 0x765   : > { %v6459_v22 = vpack.c.bf16 %v5969_v53, %v5964_v62 }
 0x766   : > { %v4788_v31 = vpop.f32.mrb[248].mxu1  ;;  %v6460_v9 = vpack.c.bf16 %v5970_v35, %v5965_v4 }
 0x767   : > { %v4789_v40 = vadd.f32 %v4788_v31, %v14991_v16  ;;  %v4790_v43 = vpop.f32.mrb[249].mxu1 }
 0x768   : > { %v4791_v56 = vadd.f32 %v4790_v43, %v14993_v10  ;;  %v4792_v27 = vpop.f32.mrb[250].mxu1  ;;  %8119 = vmatprep.mubr.bf16.mxu0 %v6460_v9 }
 0x769   : > { %v4793_v23 = vadd.f32 %v4792_v27, %v14991_v16  ;;  %v4794_v39 = vpop.f32.mrb[251].mxu1  ;;  %8120 = vmatmul.mubr.bf16.gmra.mrb[116].mxu0 %v6459_v22  ;;  %v5974_v25 = vmax.f32 %v4789_v40, 0.0 }
 0x76a   : > { %v4795_v52 = vadd.f32 %v4794_v39, %v14993_v10  ;;  %v5975_v57 = vmax.f32 %v4791_v56, 0.0 }
 0x76b   : > { %v5979_v58 = vmax.f32 %v4793_v23, 0.0  ;;  %5057 = vmatmul.mubr.bf16.gmra.mrb[100].mxu1 %v14505_v17 }
 0x76c   : > { %v5980_v62 = vmax.f32 %v4795_v52, 0.0  ;;  %5066 = vmatprep.mubr.bf16.mxu1 %v16740_v63 }
 0x76d   : > { %v6464_v53 = vpack.c.bf16 %v5979_v58, %v5974_v25 }
 0x76e   : > { %v4798_v4 = vpop.f32.mrb[252].mxu1  ;;  %v6465_v35 = vpack.c.bf16 %v5980_v62, %v5975_v57 }
 0x76f   : > { %v4799_v31 = vadd.f32 %v4798_v4, %v14991_v16  ;;  %v4800_v9 = vpop.f32.mrb[253].mxu1 }
 0x770   : > { %v4801_v43 = vadd.f32 %v4800_v9, %v14993_v10  ;;  %v4802_v27 = vpop.f32.mrb[254].mxu1  ;;  %8129 = vmatprep.mubr.bf16.mxu0 %v6465_v35 }
 0x771   : > { %v4803_v22 = vadd.f32 %v4802_v27, %v14991_v16  ;;  %v4804_v40 = vpop.f32.mrb[255].mxu1  ;;  %8130 = vmatmul.mubr.bf16.gmra.mrb[120].mxu0 %v6464_v53  ;;  %v5984_v56 = vmax.f32 %v4799_v31, 0.0 }
 0x772   : > { %v4805_v23 = vadd.f32 %v4804_v40, %v14993_v10  ;;  %v5985_v52 = vmax.f32 %v4801_v43, 0.0 }
 0x773   : > { %v5989_v39 = vmax.f32 %v4803_v22, 0.0  ;;  %5067 = vmatmul.mubr.bf16.gmra.mrb[104].mxu1 %v14522_v60 }
 0x774   : > { %v5990_v25 = vmax.f32 %v4805_v23, 0.0  ;;  %5076 = vmatprep.mubr.bf16.mxu1 %v16740_v63 }
 0x775   : > { %v6469_v58 = vpack.c.bf16 %v5989_v39, %v5984_v56 }
 0x776   : > { %v4808_v57 = vpop.f32.mrb[0].mxu1  ;;  %v6470_v62 = vpack.c.bf16 %v5990_v25, %v5985_v52 }
 0x777   : > { %v4809_v4 = vadd.f32 %v4808_v57, %v14991_v16  ;;  %v4810_v35 = vpop.f32.mrb[1].mxu1 }
 0x778   : > { %v4811_v9 = vadd.f32 %v4810_v35, %v14993_v10  ;;  %v4812_v27 = vpop.f32.mrb[2].mxu1  ;;  %8139 = vmatprep.mubr.bf16.mxu0 %v6470_v62 }
 0x779   : > { %v4813_v53 = vadd.f32 %v4812_v27, %v14991_v16  ;;  %v4814_v31 = vpop.f32.mrb[3].mxu1  ;;  %8140 = vmatmul.mubr.bf16.gmra.mrb[124].mxu0 %v6469_v58  ;;  %v5994_v43 = vmax.f32 %v4809_v4, 0.0 }
 0x77a   : > { %v4815_v22 = vadd.f32 %v4814_v31, %v14993_v10  ;;  %v5995_v23 = vmax.f32 %v4811_v9, 0.0 }
 0x77b   : > { %v5999_v40 = vmax.f32 %v4813_v53, 0.0  ;;  %5077 = vmatmul.mubr.bf16.gmra.mrb[108].mxu1 %v14519_v48 }
 0x77c   : > { %v6000_v56 = vmax.f32 %v4815_v22, 0.0  ;;  %5086 = vmatprep.mubr.bf16.mxu1 %v16740_v63 }
 0x77d   : > { %v6474_v39 = vpack.c.bf16 %v5999_v40, %v5994_v43 }
 0x77e   : > { %v4818_v52 = vpop.f32.mrb[4].mxu1  ;;  %v6475_v25 = vpack.c.bf16 %v6000_v56, %v5995_v23  ;;  %v12855_v23 = vld [vmem:[#allocation14 + $0x260] ss:$8 sps:$4 sm:$0xff]   ;;  %v12857_v56 = vld [vmem:[#allocation14 + $0x264] ss:$8 sps:$4 sm:$0xff]  }
 0x77f   : > { %v4819_v57 = vadd.f32 %v4818_v52, %v14991_v16  ;;  %v4820_v62 = vpop.f32.mrb[5].mxu1  ;;  %8482 = vmatprep.subr.bf16.mxu0 %v12857_v56 }
 0x780   : > { %v4821_v35 = vadd.f32 %v4820_v62, %v14993_v10  ;;  %v4822_v27 = vpop.f32.mrb[6].mxu1  ;;  %8149 = vmatprep.mubr.bf16.mxu0 %v6475_v25  ;;  %8483 = vmatpush1.bf16.msra.mxu0 %v12855_v23 }
 0x781   : > { %v4823_v58 = vadd.f32 %v4822_v27, %v14991_v16  ;;  %v4824_v4 = vpop.f32.mrb[7].mxu1  ;;  %8150 = vmatmul.mubr.bf16.gmra.mrb[128].mxu0 %v6474_v39  ;;  %v6004_v9 = vmax.f32 %v4819_v57, 0.0 }
 0x782   : > { %v4825_v53 = vadd.f32 %v4824_v4, %v14993_v10  ;;  %v6005_v22 = vmax.f32 %v4821_v35, 0.0 }
 0x783   : > { %v6009_v31 = vmax.f32 %v4823_v58, 0.0  ;;  %5087 = vmatmul.mubr.bf16.gmra.mrb[112].mxu1 %v14536_v44 }
 0x784   : > { %v6010_v43 = vmax.f32 %v4825_v53, 0.0  ;;  %5096 = vmatprep.mubr.bf16.mxu1 %v16740_v63 }
 0x785   : > { %v6479_v40 = vpack.c.bf16 %v6009_v31, %v6004_v9 }
 0x786   : > { %v4828_v52 = vpop.f32.mrb[8].mxu1  ;;  %v6480_v62 = vpack.c.bf16 %v6010_v43, %v6005_v22 }
 0x787   : > { %v4829_v25 = vadd.f32 %v4828_v52, %v14991_v16  ;;  %v4830_v27 = vpop.f32.mrb[9].mxu1 }
 0x788   : > { %v4831_v39 = vadd.f32 %v4830_v27, %v14993_v10  ;;  %v4832_v4 = vpop.f32.mrb[10].mxu1  ;;  %8159 = vmatprep.mubr.bf16.mxu0 %v6480_v62 }
 0x789   : > { %v4833_v57 = vadd.f32 %v4832_v4, %v14991_v16  ;;  %v4834_v35 = vpop.f32.mrb[11].mxu1  ;;  %8160 = vmatmul.mubr.bf16.gmra.mrb[132].mxu0 %v6479_v40  ;;  %v6014_v53 = vmax.f32 %v4829_v25, 0.0 }
 0x78a   : > { %v4835_v58 = vadd.f32 %v4834_v35, %v14993_v10  ;;  %v6015_v31 = vmax.f32 %v4831_v39, 0.0 }
 0x78b   : > { %v6019_v9 = vmax.f32 %v4833_v57, 0.0  ;;  %5097 = vmatmul.mubr.bf16.gmra.mrb[116].mxu1 %v14533_v37 }
 0x78c   : > { %v6020_v22 = vmax.f32 %v4835_v58, 0.0  ;;  %5106 = vmatprep.mubr.bf16.mxu1 %v16740_v63 }
 0x78d   : > { %v6484_v43 = vpack.c.bf16 %v6019_v9, %v6014_v53 }
 0x78e   : > { %v4838_v56 = vpop.f32.mrb[12].mxu1  ;;  %v6485_v52 = vpack.c.bf16 %v6020_v22, %v6015_v31 }
 0x78f   : > { %v4839_v62 = vadd.f32 %v4838_v56, %v14991_v16  ;;  %v4840_v23 = vpop.f32.mrb[13].mxu1 }
 0x790   : > { %v4841_v27 = vadd.f32 %v4840_v23, %v14993_v10  ;;  %v4842_v4 = vpop.f32.mrb[14].mxu1  ;;  %8169 = vmatprep.mubr.bf16.mxu0 %v6485_v52 }
 0x791   : > { %v4843_v40 = vadd.f32 %v4842_v4, %v14991_v16  ;;  %v4844_v25 = vpop.f32.mrb[15].mxu1  ;;  %8170 = vmatmul.mubr.bf16.gmra.mrb[136].mxu0 %v6484_v43  ;;  %v6024_v39 = vmax.f32 %v4839_v62, 0.0 }
 0x792   : > { %v4845_v57 = vadd.f32 %v4844_v25, %v14993_v10  ;;  %v6025_v58 = vmax.f32 %v4841_v27, 0.0 }
 0x793   : > { %v6029_v35 = vmax.f32 %v4843_v40, 0.0  ;;  %5107 = vmatmul.mubr.bf16.gmra.mrb[120].mxu1 %v14550_v47 }
 0x794   : > { %v6030_v53 = vmax.f32 %v4845_v57, 0.0  ;;  %5116 = vmatprep.mubr.bf16.mxu1 %v16740_v63 }
 0x795   : > { %v6489_v9 = vpack.c.bf16 %v6029_v35, %v6024_v39 }
 0x796   : > { %v4848_v31 = vpop.f32.mrb[16].mxu1  ;;  %v6490_v22 = vpack.c.bf16 %v6030_v53, %v6025_v58 }
 0x797   : > { %v4849_v56 = vadd.f32 %v4848_v31, %v14991_v16  ;;  %v4850_v52 = vpop.f32.mrb[17].mxu1 }
 0x798   : > { %v4851_v23 = vadd.f32 %v4850_v52, %v14993_v10  ;;  %v4852_v4 = vpop.f32.mrb[18].mxu1  ;;  %8179 = vmatprep.mubr.bf16.mxu0 %v6490_v22 }
 0x799   : > { %v4853_v43 = vadd.f32 %v4852_v4, %v14991_v16  ;;  %v4854_v62 = vpop.f32.mrb[19].mxu1  ;;  %8180 = vmatmul.mubr.bf16.gmra.mrb[140].mxu0 %v6489_v9  ;;  %v6034_v27 = vmax.f32 %v4849_v56, 0.0 }
 0x79a   : > { %v4855_v40 = vadd.f32 %v4854_v62, %v14993_v10  ;;  %v6035_v57 = vmax.f32 %v4851_v23, 0.0 }
 0x79b   : > { %v6039_v25 = vmax.f32 %v4853_v43, 0.0  ;;  %5117 = vmatmul.mubr.bf16.gmra.mrb[124].mxu1 %v14547_v15 }
 0x79c   : > { %v6040_v39 = vmax.f32 %v4855_v40, 0.0  ;;  %11603 = vmatprep.mubr.bf16.mxu1 %v14130_v7 }
 0x79d   : > { %v6494_v35 = vpack.c.bf16 %v6039_v25, %v6034_v27  ;;  %v12866_v27 = vld [vmem:[#allocation14] ss:$8 sps:$4 sm:$0xff]  }
 0x79e   : > { %v4858_v58 = vpop.f32.mrb[20].mxu1  ;;  %v6495_v53 = vpack.c.bf16 %v6040_v39, %v6035_v57  ;;  %v12867_v57 = vld [vmem:[#allocation14 + $0x14] ss:$8 sps:$4 sm:$0xff]  }
 0x79f   : > { %v4859_v31 = vadd.f32 %v4858_v58, %v14991_v16  ;;  %v4860_v22 = vpop.f32.mrb[21].mxu1 }
 0x7a0   : > { %v4861_v52 = vadd.f32 %v4860_v22, %v14993_v10  ;;  %v4862_v4 = vpop.f32.mrb[22].mxu1  ;;  %8189 = vmatprep.mubr.bf16.mxu0 %v6495_v53 }
 0x7a1   : > { %v4863_v9 = vadd.f32 %v4862_v4, %v14991_v16  ;;  %v4864_v56 = vpop.f32.mrb[23].mxu1  ;;  %8190 = vmatmul.mubr.bf16.gmra.mrb[144].mxu0 %v6494_v35  ;;  %v6044_v23 = vmax.f32 %v4859_v31, 0.0  ;;  %v12868_v4 = vld [vmem:[#allocation14 + $0x10] ss:$8 sps:$4 sm:$0xff]  }
 0x7a2   : > { %v4865_v43 = vadd.f32 %v4864_v56, %v14993_v10  ;;  %v6045_v7 = vmax.f32 %v4861_v52, 0.0 }
 0x7a3   : > { %v6049_v62 = vmax.f32 %v4863_v9, 0.0  ;;  %11604 = vmatmul.mubr.bf16.vlgmr.msra.gmra.mrb[128].mxu1 %v14128_v6 }
 0x7a4   : > { %v6050_v40 = vmax.f32 %v4865_v43, 0.0  ;;  %11607 = vmatprep.mubr.bf16.mxu1 %v14144_v38  ;;  %11747 = vmatpush1.bf16.msra.mxu1 %v12866_v27  ;;  %v12869_v38 = vld [vmem:[#allocation14 + $0x24] ss:$8 sps:$4 sm:$0xff]   ;;  %v12871_v27 = vld [vmem:[#allocation14 + $0x34] ss:$8 sps:$4 sm:$0xff]  }
 0x7a5   : > { %v6499_v25 = vpack.c.bf16 %v6049_v62, %v6044_v23  ;;  %11732 = vmatprep.subr.bf16.mxu1 %v12867_v57 }
 0x7a6   : > { %v4868_v39 = vpop.f32.mrb[24].mxu1  ;;  %v6500_v58 = vpack.c.bf16 %v6050_v40, %v6045_v7  ;;  %v12870_v7 = vld [vmem:[#allocation14 + $0x20] ss:$8 sps:$4 sm:$0xff]  }
 0x7a7   : > { %v4869_v53 = vadd.f32 %v4868_v39, %v14991_v16  ;;  %v4870_v35 = vpop.f32.mrb[25].mxu1 }
 0x7a8   : > { %v4871_v22 = vadd.f32 %v4870_v35, %v14993_v10  ;;  %v4872_v31 = vpop.f32.mrb[26].mxu1  ;;  %8199 = vmatprep.mubr.bf16.mxu0 %v6500_v58  ;;  %11748 = vmatpush1.bf16.msra.mxu1 %v12868_v4 }
 0x7a9   : > { %v4873_v6 = vadd.f32 %v4872_v31, %v14991_v16  ;;  %v4874_v52 = vpop.f32.mrb[27].mxu1  ;;  %8200 = vmatmul.mubr.bf16.gmra.mrb[148].mxu0 %v6499_v25  ;;  %11733 = vmatprep.subr.bf16.mxu1 %v12869_v38  ;;  %v6054_v56 = vmax.f32 %v4869_v53, 0.0  ;;  %v12872_v31 = vld [vmem:[#allocation14 + $0x30] ss:$8 sps:$4 sm:$0xff]  }
 0x7aa   : > { %v4875_v9 = vadd.f32 %v4874_v52, %v14993_v10  ;;  %v6055_v23 = vmax.f32 %v4871_v22, 0.0 }
 0x7ab   : > { %v6059_v43 = vmax.f32 %v4873_v6, 0.0  ;;  %11608 = vmatmul.mubr.bf16.gmra.mrb[132].mxu1 %v14142_v33 }
 0x7ac   : > { %v6060_v62 = vmax.f32 %v4875_v9, 0.0  ;;  %11611 = vmatprep.mubr.bf16.mxu1 %v14160_v3  ;;  %11749 = vmatpush1.bf16.msra.mxu1 %v12870_v7  ;;  %v12873_v3 = vld [vmem:[#allocation14 + $0x44] ss:$8 sps:$4 sm:$0xff]  }
 0x7ad   : > { %v6504_v40 = vpack.c.bf16 %v6059_v43, %v6054_v56  ;;  %11734 = vmatprep.subr.bf16.mxu1 %v12871_v27  ;;  %v12874_v56 = vld [vmem:[#allocation14 + $0x40] ss:$8 sps:$4 sm:$0xff]  }
 0x7ae   : > { %v4878_v57 = vpop.f32.mrb[28].mxu1  ;;  %v6505_v39 = vpack.c.bf16 %v6060_v62, %v6055_v23  ;;  %v12875_v23 = vld [vmem:[#allocation14 + $0x54] ss:$8 sps:$4 sm:$0xff]  }
 0x7af   : > { %v4879_v25 = vadd.f32 %v4878_v57, %v14991_v16  ;;  %v4880_v58 = vpop.f32.mrb[29].mxu1 }
 0x7b0   : > { %v4881_v35 = vadd.f32 %v4880_v58, %v14993_v10  ;;  %v4882_v53 = vpop.f32.mrb[30].mxu1  ;;  %8209 = vmatprep.mubr.bf16.mxu0 %v6505_v39  ;;  %11750 = vmatpush1.bf16.msra.mxu1 %v12872_v31 }
 0x7b1   : > { %v4883_v33 = vadd.f32 %v4882_v53, %v14991_v16  ;;  %v4884_v22 = vpop.f32.mrb[31].mxu1  ;;  %8210 = vmatmul.mubr.bf16.gmra.mrb[152].mxu0 %v6504_v40  ;;  %11735 = vmatprep.subr.bf16.mxu1 %v12873_v3  ;;  %v6064_v6 = vmax.f32 %v4879_v25, 0.0  ;;  %v12876_v25 = vld [vmem:[#allocation14 + $0x50] ss:$8 sps:$4 sm:$0xff]   ;;  %v12878_v3 = vld [vmem:[#allocation14 + $0x60] ss:$8 sps:$4 sm:$0xff]  }
 0x7b2   : > { %v4885_v4 = vadd.f32 %v4884_v22, %v14993_v10  ;;  %v6065_v38 = vmax.f32 %v4881_v35, 0.0 }
 0x7b3   : > { %v6069_v52 = vmax.f32 %v4883_v33, 0.0  ;;  %11612 = vmatmul.mubr.bf16.gmra.mrb[136].mxu1 %v14158_v0 }
 0x7b4   : > { %v6070_v9 = vmax.f32 %v4885_v4, 0.0  ;;  %11615 = vmatprep.mubr.bf16.mxu1 %v14174_v34  ;;  %11751 = vmatpush1.bf16.msra.mxu1 %v12874_v56  ;;  %v12877_v34 = vld [vmem:[#allocation14 + $0x64] ss:$8 sps:$4 sm:$0xff]  }
 0x7b5   : > { %v6509_v43 = vpack.c.bf16 %v6069_v52, %v6064_v6  ;;  %11736 = vmatprep.subr.bf16.mxu1 %v12875_v23  ;;  %v12879_v6 = vld [vmem:[#allocation14 + $0x74] ss:$8 sps:$4 sm:$0xff]  }
 0x7b6   : > { %v4888_v62 = vpop.f32.mrb[32].mxu1  ;;  %v6510_v7 = vpack.c.bf16 %v6070_v9, %v6065_v38 }
 0x7b7   : > { %v4889_v40 = vadd.f32 %v4888_v62, %v14991_v16  ;;  %v4890_v27 = vpop.f32.mrb[33].mxu1  ;;  %v12880_v62 = vld [vmem:[#allocation14 + $0x70] ss:$8 sps:$4 sm:$0xff]  }
 0x7b8   : > { %v4891_v57 = vadd.f32 %v4890_v27, %v14993_v10  ;;  %v4892_v39 = vpop.f32.mrb[34].mxu1  ;;  %8219 = vmatprep.mubr.bf16.mxu0 %v6510_v7  ;;  %11752 = vmatpush1.bf16.msra.mxu1 %v12876_v25 }
 0x7b9   : > { %v4893_v0 = vadd.f32 %v4892_v39, %v14991_v16  ;;  %v4894_v58 = vpop.f32.mrb[35].mxu1  ;;  %8220 = vmatmul.mubr.bf16.gmra.mrb[156].mxu0 %v6509_v43  ;;  %11737 = vmatprep.subr.bf16.mxu1 %v12877_v34  ;;  %v6074_v53 = vmax.f32 %v4889_v40, 0.0  ;;  %v12858_v34 = vld [vmem:[#allocation14 + $0x270] ss:$8 sps:$4 sm:$0xff]  }
 0x7ba   : > { %v4895_v35 = vadd.f32 %v4894_v58, %v14993_v10  ;;  %v6075_v33 = vmax.f32 %v4891_v57, 0.0 }
 0x7bb   : > { %v6079_v31 = vmax.f32 %v4893_v0, 0.0  ;;  %11616 = vmatmul.mubr.bf16.gmra.mrb[140].mxu1 %v14172_v30  ;;  %v12882_v0 = vld [vmem:[#allocation14 + $0x80] ss:$8 sps:$4 sm:$0xff]  }
 0x7bc   : > { %v6080_v22 = vmax.f32 %v4895_v35, 0.0  ;;  %11619 = vmatprep.mubr.bf16.mxu1 %v14188_v8  ;;  %11753 = vmatpush1.bf16.msra.mxu1 %v12878_v3  ;;  %v12881_v8 = vld [vmem:[#allocation14 + $0x84] ss:$8 sps:$4 sm:$0xff]   ;;  %v12860_v35 = vld [vmem:[#allocation14 + $0x274] ss:$8 sps:$4 sm:$0xff]  }
 0x7bd   : > { %v6514_v4 = vpack.c.bf16 %v6079_v31, %v6074_v53  ;;  %11738 = vmatprep.subr.bf16.mxu1 %v12879_v6  ;;  %v12883_v53 = vld [vmem:[#allocation14 + $0x94] ss:$8 sps:$4 sm:$0xff]   ;;  %8484 = vmatprep.subr.bf16.mxu0 %v12860_v35  ;;  %v12889_v35 = vld [vmem:[#allocation14 + $0xc4] ss:$8 sps:$4 sm:$0xff]  }
 0x7be   : > { %v4898_v52 = vpop.f32.mrb[36].mxu1  ;;  %v6515_v38 = vpack.c.bf16 %v6080_v22, %v6075_v33  ;;  %8485 = vmatpush1.bf16.msra.mxu0 %v12858_v34  ;;  %v12888_v34 = vld [vmem:[#allocation14 + $0xb0] ss:$8 sps:$4 sm:$0xff]  }
 0x7bf   : > { %v4899_v9 = vadd.f32 %v4898_v52, %v14991_v16  ;;  %v4900_v56 = vpop.f32.mrb[37].mxu1  ;;  %v12884_v52 = vld [vmem:[#allocation14 + $0x90] ss:$8 sps:$4 sm:$0xff]  }
 0x7c0   : > { %v4901_v43 = vadd.f32 %v4900_v56, %v14993_v10  ;;  %v4902_v23 = vpop.f32.mrb[38].mxu1  ;;  %8229 = vmatprep.mubr.bf16.mxu0 %v6515_v38  ;;  %11754 = vmatpush1.bf16.msra.mxu1 %v12880_v62 }
 0x7c1   : > { %v4903_v30 = vadd.f32 %v4902_v23, %v14991_v16  ;;  %v4904_v7 = vpop.f32.mrb[39].mxu1  ;;  %8230 = vmatmul.mubr.bf16.gmra.mrb[160].mxu0 %v6514_v4  ;;  %11739 = vmatprep.subr.bf16.mxu1 %v12881_v8  ;;  %v6084_v27 = vmax.f32 %v4899_v9, 0.0  ;;  %v12885_v9 = vld [vmem:[#allocation14 + $0xa4] ss:$8 sps:$4 sm:$0xff]  }
 0x7c2   : > { %v4905_v40 = vadd.f32 %v4904_v7, %v14993_v10  ;;  %v6085_v39 = vmax.f32 %v4901_v43, 0.0  ;;  %v12886_v7 = vld [vmem:[#allocation14 + $0xa0] ss:$8 sps:$4 sm:$0xff]  }
 0x7c3   : > { %v6089_v57 = vmax.f32 %v4903_v30, 0.0  ;;  %11620 = vmatmul.mubr.bf16.gmra.mrb[144].mxu1 %v14186_v2 }
 0x7c4   : > { %v6090_v25 = vmax.f32 %v4905_v40, 0.0  ;;  %11623 = vmatprep.mubr.bf16.mxu1 %v14202_v46  ;;  %11755 = vmatpush1.bf16.msra.mxu1 %v12882_v0 }
 0x7c5   : > { %v6519_v58 = vpack.c.bf16 %v6089_v57, %v6084_v27  ;;  %11740 = vmatprep.subr.bf16.mxu1 %v12883_v53  ;;  %v12887_v27 = vld [vmem:[#allocation14 + $0xb4] ss:$8 sps:$4 sm:$0xff]  }
 0x7c6   : > { %v4908_v31 = vpop.f32.mrb[40].mxu1  ;;  %v6520_v33 = vpack.c.bf16 %v6090_v25, %v6085_v39 }
 0x7c7   : > { %v4909_v22 = vadd.f32 %v4908_v31, %v14991_v16  ;;  %v4910_v3 = vpop.f32.mrb[41].mxu1 }
 0x7c8   : > { %v4911_v4 = vadd.f32 %v4910_v3, %v14993_v10  ;;  %v4912_v2 = vpop.f32.mrb[42].mxu1  ;;  %8239 = vmatprep.mubr.bf16.mxu0 %v6520_v33  ;;  %11756 = vmatpush1.bf16.msra.mxu1 %v12884_v52 }
 0x7c9   : > { %v4913_v46 = vadd.f32 %v4912_v2, %v14991_v16  ;;  %v4914_v6 = vpop.f32.mrb[43].mxu1  ;;  %8240 = vmatmul.mubr.bf16.gmra.mrb[164].mxu0 %v6519_v58  ;;  %11741 = vmatprep.subr.bf16.mxu1 %v12885_v9  ;;  %v6094_v56 = vmax.f32 %v4909_v22, 0.0 }
 0x7ca   : > { %v4915_v38 = vadd.f32 %v4914_v6, %v14993_v10  ;;  %v6095_v23 = vmax.f32 %v4911_v4, 0.0  ;;  %v12890_v4 = vld [vmem:[#allocation14 + $0xc0] ss:$8 sps:$4 sm:$0xff]   ;;  %v12891_v6 = vld [vmem:[#allocation14 + $0xd4] ss:$8 sps:$4 sm:$0xff]  }
 0x7cb   : > { %v6099_v43 = vmax.f32 %v4913_v46, 0.0  ;;  %11624 = vmatmul.mubr.bf16.gmra.mrb[148].mxu1 %v14200_v42 }
 0x7cc   : > { %v6100_v62 = vmax.f32 %v4915_v38, 0.0  ;;  %11627 = vmatprep.mubr.bf16.mxu1 %v14216_v21  ;;  %11757 = vmatpush1.bf16.msra.mxu1 %v12886_v7 }
 0x7cd   : > { %v6524_v30 = vpack.c.bf16 %v6099_v43, %v6094_v56  ;;  %11742 = vmatprep.subr.bf16.mxu1 %v12887_v27 }
 0x7ce   : > { %v4918_v8 = vpop.f32.mrb[44].mxu1  ;;  %v6525_v40 = vpack.c.bf16 %v6100_v62, %v6095_v23  ;;  %v12892_v23 = vld [vmem:[#allocation14 + $0xd0] ss:$8 sps:$4 sm:$0xff]   ;;  %v12893_v62 = vld [vmem:[#allocation14 + $0xe4] ss:$8 sps:$4 sm:$0xff]  }
 0x7cf   : > { %v4919_v57 = vadd.f32 %v4918_v8, %v14991_v16  ;;  %v4920_v39 = vpop.f32.mrb[45].mxu1  ;;  %v16825_v8 = vld [vmem:[#allocation24_spill] sm:$0xff] }
 0x7d0   : > { %v4921_v25 = vadd.f32 %v4920_v39, %v14993_v10  ;;  %v4922_v0 = vpop.f32.mrb[46].mxu1  ;;  %8249 = vmatprep.mubr.bf16.mxu0 %v6525_v40  ;;  %11758 = vmatpush1.bf16.msra.mxu1 %v12888_v34 }
 0x7d1   : > { %v4923_v42 = vadd.f32 %v4922_v0, %v14991_v16  ;;  %v4924_v58 = vpop.f32.mrb[47].mxu1  ;;  %8250 = vmatmul.mubr.bf16.gmra.mrb[168].mxu0 %v6524_v30  ;;  %11743 = vmatprep.subr.bf16.mxu1 %v12889_v35  ;;  %v6104_v53 = vmax.f32 %v4919_v57, 0.0  ;;  %v16826_v57 = vld [vmem:[#allocation27_spill] sm:$0xff] }
 0x7d2   : > { %v4925_v21 = vadd.f32 %v4924_v58, %v14993_v10  ;;  %v6105_v33 = vmax.f32 %v4921_v25, 0.0  ;;  %v12894_v25 = vld [vmem:[#allocation14 + $0xe0] ss:$8 sps:$4 sm:$0xff]   ;;  %v12895_v58 = vld [vmem:[#allocation14 + $0xf4] ss:$8 sps:$4 sm:$0xff]  }
 0x7d3   : > { %v6109_v31 = vmax.f32 %v4923_v42, 0.0  ;;  %11628 = vmatmul.mubr.bf16.gmra.mrb[152].mxu1 %v14214_v18 }
 0x7d4   : > { %v6110_v22 = vmax.f32 %v4925_v21, 0.0  ;;  %11631 = vmatprep.mubr.bf16.mxu1 %v16775_v12  ;;  %11759 = vmatpush1.bf16.msra.mxu1 %v12890_v4 }
 0x7d5   : > { %v6529_v3 = vpack.c.bf16 %v6109_v31, %v6104_v53  ;;  %11744 = vmatprep.subr.bf16.mxu1 %v12891_v6 }
 0x7d6   : > { %v4928_v2 = vpop.f32.mrb[48].mxu1  ;;  %v6530_v46 = vpack.c.bf16 %v6110_v22, %v6105_v33  ;;  %v12896_v22 = vld [vmem:[#allocation14 + $0xf0] ss:$8 sps:$4 sm:$0xff]  }
 0x7d7   : > { %v4929_v52 = vadd.f32 %v4928_v2, %v14991_v16  ;;  %v4930_v38 = vpop.f32.mrb[49].mxu1 }
 0x7d8   : > { %v4931_v9 = vadd.f32 %v4930_v38, %v14993_v10  ;;  %v4932_v56 = vpop.f32.mrb[50].mxu1  ;;  %8259 = vmatprep.mubr.bf16.mxu0 %v6530_v46  ;;  %11760 = vmatpush1.bf16.msra.mxu1 %v12892_v23  ;;  %v16827_v46 = vld [vmem:[#allocation26_spill] sm:$0xff]  ;;  %v16828_v38 = vld [vmem:[#allocation29_spill] sm:$0xff] }
 0x7d9   : > { %v4933_v18 = vadd.f32 %v4932_v56, %v14991_v16  ;;  %v4934_v43 = vpop.f32.mrb[51].mxu1  ;;  %8260 = vmatmul.mubr.bf16.gmra.mrb[172].mxu0 %v6529_v3  ;;  %11745 = vmatprep.subr.bf16.mxu1 %v12893_v62  ;;  %v6114_v30 = vmax.f32 %v4929_v52, 0.0 }
 0x7da   : > { %v4935_v12 = vadd.f32 %v4934_v43, %v14993_v10  ;;  %v6115_v40 = vmax.f32 %v4931_v9, 0.0 }
 0x7db   : > { %v6119_v7 = vmax.f32 %v4933_v18, 0.0  ;;  %11632 = vmatmul.mubr.bf16.gmra.mrb[156].mxu1 %v16825_v8 }
 0x7dc   : > { %v6120_v27 = vmax.f32 %v4935_v12, 0.0  ;;  %11635 = vmatprep.mubr.bf16.mxu1 %v16826_v57  ;;  %11761 = vmatpush1.bf16.msra.mxu1 %v12894_v25  ;;  %v16829_v57 = vld [vmem:[#allocation28_spill] sm:$0xff] }
 0x7dd   : > { %v6534_v39 = vpack.c.bf16 %v6119_v7, %v6114_v30  ;;  %11746 = vmatprep.subr.bf16.mxu1 %v12895_v58 }
 0x7de   : > { %v4938_v0 = vpop.f32.mrb[52].mxu1  ;;  %v6535_v42 = vpack.c.bf16 %v6120_v27, %v6115_v40 }
 0x7df   : > { %v4939_v34 = vadd.f32 %v4938_v0, %v14991_v16  ;;  %v4940_v21 = vpop.f32.mrb[53].mxu1  ;;  %v16830_v0 = vld [vmem:[#allocation31_spill] sm:$0xff] }
 0x7e0   : > { %v4941_v35 = vadd.f32 %v4940_v21, %v14993_v10  ;;  %v4942_v53 = vpop.f32.mrb[54].mxu1  ;;  %8269 = vmatprep.mubr.bf16.mxu0 %v6535_v42  ;;  %11762 = vmatpush1.bf16.msra.mxu1 %v12896_v22 }
 0x7e1   : > { %v4943_v31 = vadd.f32 %v4942_v53, %v14991_v16  ;;  %v4944_v33 = vpop.f32.mrb[55].mxu1  ;;  %8270 = vmatmul.mubr.bf16.gmra.mrb[176].mxu0 %v6534_v39  ;;  %v6124_v4 = vmax.f32 %v4939_v34, 0.0 }
 0x7e2   : > { %v4945_v3 = vadd.f32 %v4944_v33, %v14993_v10  ;;  %v6125_v6 = vmax.f32 %v4941_v35, 0.0 }
 0x7e3   : > { %v6129_v2 = vmax.f32 %v4943_v31, 0.0  ;;  %11636 = vmatmul.mubr.bf16.gmra.mrb[160].mxu1 %v16827_v46  ;;  %v16831_v46 = vld [vmem:[#allocation30_spill] sm:$0xff] }
 0x7e4   : > { %v6130_v52 = vmax.f32 %v4945_v3, 0.0  ;;  %11639 = vmatprep.mubr.bf16.mxu1 %v16828_v38  ;;  %v16832_v38 = vld [vmem:[#allocation33_spill] sm:$0xff] }
 0x7e5   : > { %v6539_v9 = vpack.c.bf16 %v6129_v2, %v6124_v4 }
 0x7e6   : > { %v4948_v56 = vpop.f32.mrb[56].mxu1  ;;  %v6540_v18 = vpack.c.bf16 %v6130_v52, %v6125_v6 }
 0x7e7   : > { %v4949_v43 = vadd.f32 %v4948_v56, %v14991_v16  ;;  %v4950_v23 = vpop.f32.mrb[57].mxu1 }
 0x7e8   : > { %v4951_v12 = vadd.f32 %v4950_v23, %v14993_v10  ;;  %v4952_v62 = vpop.f32.mrb[58].mxu1  ;;  %8279 = vmatprep.mubr.bf16.mxu0 %v6540_v18 }
 0x7e9   : > { %v4953_v30 = vadd.f32 %v4952_v62, %v14991_v16  ;;  %v4954_v7 = vpop.f32.mrb[59].mxu1  ;;  %8280 = vmatmul.mubr.bf16.gmra.mrb[180].mxu0 %v6539_v9  ;;  %v6134_v40 = vmax.f32 %v4949_v43, 0.0 }
 0x7ea   : > { %v4955_v8 = vadd.f32 %v4954_v7, %v14993_v10  ;;  %v6135_v39 = vmax.f32 %v4951_v12, 0.0 }
 0x7eb   : > { %v6139_v27 = vmax.f32 %v4953_v30, 0.0  ;;  %11640 = vmatmul.mubr.bf16.gmra.mrb[164].mxu1 %v16829_v57  ;;  %v16833_v57 = vld [vmem:[#allocation32_spill] sm:$0xff] }
 0x7ec   : > { %v6140_v25 = vmax.f32 %v4955_v8, 0.0  ;;  %11643 = vmatprep.mubr.bf16.mxu1 %v16830_v0  ;;  %v16834_v0 = vld [vmem:[#allocation35_spill] sm:$0xff] }
 0x7ed   : > { %v6544_v42 = vpack.c.bf16 %v6139_v27, %v6134_v40 }
 0x7ee   : > { %v4958_v58 = vpop.f32.mrb[60].mxu1  ;;  %v6545_v34 = vpack.c.bf16 %v6140_v25, %v6135_v39 }
 0x7ef   : > { %v4959_v21 = vadd.f32 %v4958_v58, %v14991_v16  ;;  %v4960_v35 = vpop.f32.mrb[61].mxu1 }
 0x7f0   : > { %v4961_v53 = vadd.f32 %v4960_v35, %v14993_v10  ;;  %v4962_v31 = vpop.f32.mrb[62].mxu1  ;;  %8289 = vmatprep.mubr.bf16.mxu0 %v6545_v34 }
 0x7f1   : > { %v4963_v33 = vadd.f32 %v4962_v31, %v14991_v16  ;;  %v4964_v22 = vpop.f32.mrb[63].mxu1  ;;  %8290 = vmatmul.mubr.bf16.gmra.mrb[184].mxu0 %v6544_v42  ;;  %v6144_v4 = vmax.f32 %v4959_v21, 0.0 }
 0x7f2   : > { %v4965_v3 = vadd.f32 %v4964_v22, %v14993_v10  ;;  %v6145_v6 = vmax.f32 %v4961_v53, 0.0 }
 0x7f3   : > { %v6149_v2 = vmax.f32 %v4963_v33, 0.0  ;;  %11644 = vmatmul.mubr.bf16.gmra.mrb[168].mxu1 %v16831_v46  ;;  %v16835_v46 = vld [vmem:[#allocation34_spill] sm:$0xff] }
 0x7f4   : > { %v6150_v52 = vmax.f32 %v4965_v3, 0.0  ;;  %11647 = vmatprep.mubr.bf16.mxu1 %v16832_v38  ;;  %v16836_v38 = vld [vmem:[#allocation37_spill] sm:$0xff] }
 0x7f5   : > { %v6549_v9 = vpack.c.bf16 %v6149_v2, %v6144_v4 }
 0x7f6   : > { %v4968_v56 = vpop.f32.mrb[64].mxu1  ;;  %v6550_v18 = vpack.c.bf16 %v6150_v52, %v6145_v6 }
 0x7f7   : > { %v4969_v43 = vadd.f32 %v4968_v56, %v14991_v16  ;;  %v4970_v23 = vpop.f32.mrb[65].mxu1 }
 0x7f8   : > { %v4971_v12 = vadd.f32 %v4970_v23, %v14993_v10  ;;  %v4972_v62 = vpop.f32.mrb[66].mxu1  ;;  %8299 = vmatprep.mubr.bf16.mxu0 %v6550_v18 }
 0x7f9   : > { %v4973_v30 = vadd.f32 %v4972_v62, %v14991_v16  ;;  %v4974_v7 = vpop.f32.mrb[67].mxu1  ;;  %8300 = vmatmul.mubr.bf16.gmra.mrb[188].mxu0 %v6549_v9  ;;  %v6154_v40 = vmax.f32 %v4969_v43, 0.0 }
 0x7fa   : > { %v4975_v8 = vadd.f32 %v4974_v7, %v14993_v10  ;;  %v6155_v39 = vmax.f32 %v4971_v12, 0.0 }
 0x7fb   : > { %v6159_v27 = vmax.f32 %v4973_v30, 0.0  ;;  %11648 = vmatmul.mubr.bf16.gmra.mrb[172].mxu1 %v16833_v57  ;;  %v16837_v57 = vld [vmem:[#allocation36_spill] sm:$0xff] }
 0x7fc   : > { %v6160_v25 = vmax.f32 %v4975_v8, 0.0  ;;  %11651 = vmatprep.mubr.bf16.mxu1 %v16834_v0 }
 0x7fd   : > { %v6554_v42 = vpack.c.bf16 %v6159_v27, %v6154_v40 }
 0x7fe   : > { %v4978_v58 = vpop.f32.mrb[68].mxu1  ;;  %v6555_v34 = vpack.c.bf16 %v6160_v25, %v6155_v39 }
 0x7ff   : > { %v4979_v21 = vadd.f32 %v4978_v58, %v14991_v16  ;;  %v4980_v35 = vpop.f32.mrb[69].mxu1 }
 0x800   : > { %v4981_v53 = vadd.f32 %v4980_v35, %v14993_v10  ;;  %v4982_v31 = vpop.f32.mrb[70].mxu1  ;;  %8309 = vmatprep.mubr.bf16.mxu0 %v6555_v34 }
 0x801   : > { %v4983_v33 = vadd.f32 %v4982_v31, %v14991_v16  ;;  %v4984_v22 = vpop.f32.mrb[71].mxu1  ;;  %8310 = vmatmul.mubr.bf16.gmra.mrb[192].mxu0 %v6554_v42  ;;  %v6164_v4 = vmax.f32 %v4979_v21, 0.0 }
 0x802   : > { %v4985_v3 = vadd.f32 %v4984_v22, %v14993_v10  ;;  %v6165_v6 = vmax.f32 %v4981_v53, 0.0 }
 0x803   : > { %v6169_v2 = vmax.f32 %v4983_v33, 0.0  ;;  %11652 = vmatmul.mubr.bf16.gmra.mrb[176].mxu1 %v16835_v46 }
 0x804   : > { %v6170_v52 = vmax.f32 %v4985_v3, 0.0  ;;  %11655 = vmatprep.mubr.bf16.mxu1 %v16836_v38 }
 0x805   : > { %v6559_v9 = vpack.c.bf16 %v6169_v2, %v6164_v4  ;;  %v16838_v2 = vld [vmem:[#allocation38_spill] sm:$0xff] }
 0x806   : > { %v4988_v56 = vpop.f32.mrb[72].mxu1  ;;  %v6560_v18 = vpack.c.bf16 %v6170_v52, %v6165_v6  ;;  %v16839_v6 = vld [vmem:[#allocation41_spill] sm:$0xff] }
 0x807   : > { %v4989_v43 = vadd.f32 %v4988_v56, %v14991_v16  ;;  %v4990_v23 = vpop.f32.mrb[73].mxu1 }
 0x808   : > { %v4991_v12 = vadd.f32 %v4990_v23, %v14993_v10  ;;  %v4992_v62 = vpop.f32.mrb[74].mxu1  ;;  %8319 = vmatprep.mubr.bf16.mxu0 %v6560_v18 }
 0x809   : > { %v4993_v30 = vadd.f32 %v4992_v62, %v14991_v16  ;;  %v4994_v7 = vpop.f32.mrb[75].mxu1  ;;  %8320 = vmatmul.mubr.bf16.gmra.mrb[196].mxu0 %v6559_v9  ;;  %v6174_v40 = vmax.f32 %v4989_v43, 0.0 }
 0x80a   : > { %v4995_v8 = vadd.f32 %v4994_v7, %v14993_v10  ;;  %v6175_v39 = vmax.f32 %v4991_v12, 0.0 }
 0x80b   : > { %v6179_v27 = vmax.f32 %v4993_v30, 0.0  ;;  %11656 = vmatmul.mubr.bf16.gmra.mrb[180].mxu1 %v16837_v57 }
 0x80c   : > { %v6180_v25 = vmax.f32 %v4995_v8, 0.0  ;;  %11659 = vmatprep.mubr.bf16.mxu1 %v16816_v24 }
 0x80d   : > { %v6564_v0 = vpack.c.bf16 %v6179_v27, %v6174_v40  ;;  %v16840_v40 = vld [vmem:[#allocation40_spill] sm:$0xff] }
 0x80e   : > { %v4998_v42 = vpop.f32.mrb[76].mxu1  ;;  %v6565_v58 = vpack.c.bf16 %v6180_v25, %v6175_v39  ;;  %v16841_v39 = vld [vmem:[#allocation43_spill] sm:$0xff] }
 0x80f   : > { %v4999_v34 = vadd.f32 %v4998_v42, %v14991_v16  ;;  %v5000_v21 = vpop.f32.mrb[77].mxu1 }
 0x810   : > { %v5001_v35 = vadd.f32 %v5000_v21, %v14993_v10  ;;  %v5002_v53 = vpop.f32.mrb[78].mxu1  ;;  %8329 = vmatprep.mubr.bf16.mxu0 %v6565_v58 }
 0x811   : > { %v5003_v31 = vadd.f32 %v5002_v53, %v14991_v16  ;;  %v5004_v33 = vpop.f32.mrb[79].mxu1  ;;  %8330 = vmatmul.mubr.bf16.gmra.mrb[200].mxu0 %v6564_v0  ;;  %v6184_v3 = vmax.f32 %v4999_v34, 0.0 }
 0x812   : > { %v5005_v22 = vadd.f32 %v5004_v33, %v14993_v10  ;;  %v6185_v24 = vmax.f32 %v5001_v35, 0.0 }
 0x813   : > { %v6189_v4 = vmax.f32 %v5003_v31, 0.0  ;;  %11660 = vmatmul.mubr.bf16.gmra.mrb[184].mxu1 %v16838_v2 }
 0x814   : > { %v6190_v46 = vmax.f32 %v5005_v22, 0.0  ;;  %11663 = vmatprep.mubr.bf16.mxu1 %v16839_v6 }
 0x815   : > { %v6569_v52 = vpack.c.bf16 %v6189_v4, %v6184_v3  ;;  %v16842_v4 = vld [vmem:[#allocation42_spill] sm:$0xff] }
 0x816   : > { %v5008_v38 = vpop.f32.mrb[80].mxu1  ;;  %v6570_v9 = vpack.c.bf16 %v6190_v46, %v6185_v24  ;;  %v16843_v46 = vld [vmem:[#allocation45_spill] sm:$0xff] }
 0x817   : > { %v5009_v56 = vadd.f32 %v5008_v38, %v14991_v16  ;;  %v5010_v18 = vpop.f32.mrb[81].mxu1 }
 0x818   : > { %v5011_v43 = vadd.f32 %v5010_v18, %v14993_v10  ;;  %v5012_v23 = vpop.f32.mrb[82].mxu1  ;;  %8339 = vmatprep.mubr.bf16.mxu0 %v6570_v9 }
 0x819   : > { %v5013_v12 = vadd.f32 %v5012_v23, %v14991_v16  ;;  %v5014_v62 = vpop.f32.mrb[83].mxu1  ;;  %8340 = vmatmul.mubr.bf16.gmra.mrb[204].mxu0 %v6569_v52  ;;  %v6194_v7 = vmax.f32 %v5009_v56, 0.0 }
 0x81a   : > { %v5015_v30 = vadd.f32 %v5014_v62, %v14993_v10  ;;  %v6195_v27 = vmax.f32 %v5011_v43, 0.0 }
 0x81b   : > { %v6199_v8 = vmax.f32 %v5013_v12, 0.0  ;;  %11664 = vmatmul.mubr.bf16.gmra.mrb[188].mxu1 %v16840_v40 }
 0x81c   : > { %v6200_v57 = vmax.f32 %v5015_v30, 0.0  ;;  %11667 = vmatprep.mubr.bf16.mxu1 %v16841_v39 }
 0x81d   : > { %v6574_v25 = vpack.c.bf16 %v6199_v8, %v6194_v7  ;;  %v16844_v8 = vld [vmem:[#allocation44_spill] sm:$0xff] }
 0x81e   : > { %v5018_v0 = vpop.f32.mrb[84].mxu1  ;;  %v6575_v42 = vpack.c.bf16 %v6200_v57, %v6195_v27 }
 0x81f   : > { %v5019_v58 = vadd.f32 %v5018_v0, %v14991_v16  ;;  %v5020_v34 = vpop.f32.mrb[85].mxu1 }
 0x820   : > { %v5021_v21 = vadd.f32 %v5020_v34, %v14993_v10  ;;  %v5022_v35 = vpop.f32.mrb[86].mxu1  ;;  %8349 = vmatprep.mubr.bf16.mxu0 %v6575_v42 }
 0x821   : > { %v5023_v53 = vadd.f32 %v5022_v35, %v14991_v16  ;;  %v5024_v31 = vpop.f32.mrb[87].mxu1  ;;  %8350 = vmatmul.mubr.bf16.gmra.mrb[208].mxu0 %v6574_v25  ;;  %v6204_v22 = vmax.f32 %v5019_v58, 0.0 }
 0x822   : > { %v5025_v33 = vadd.f32 %v5024_v31, %v14993_v10  ;;  %v6205_v2 = vmax.f32 %v5021_v21, 0.0 }
 0x823   : > { %v6209_v3 = vmax.f32 %v5023_v53, 0.0  ;;  %11668 = vmatmul.mubr.bf16.gmra.mrb[192].mxu1 %v16842_v4 }
 0x824   : > { %v6210_v24 = vmax.f32 %v5025_v33, 0.0  ;;  %11671 = vmatprep.mubr.bf16.mxu1 %v16843_v46 }
 0x825   : > { %v6579_v6 = vpack.c.bf16 %v6209_v3, %v6204_v22 }
 0x826   : > { %v5028_v52 = vpop.f32.mrb[88].mxu1  ;;  %v6580_v38 = vpack.c.bf16 %v6210_v24, %v6205_v2 }
 0x827   : > { %v5029_v9 = vadd.f32 %v5028_v52, %v14991_v16  ;;  %v5030_v56 = vpop.f32.mrb[89].mxu1 }
 0x828   : > { %v5031_v18 = vadd.f32 %v5030_v56, %v14993_v10  ;;  %v5032_v43 = vpop.f32.mrb[90].mxu1  ;;  %8359 = vmatprep.mubr.bf16.mxu0 %v6580_v38 }
 0x829   : > { %v5033_v23 = vadd.f32 %v5032_v43, %v14991_v16  ;;  %v5034_v12 = vpop.f32.mrb[91].mxu1  ;;  %8360 = vmatmul.mubr.bf16.gmra.mrb[212].mxu0 %v6579_v6  ;;  %v6214_v30 = vmax.f32 %v5029_v9, 0.0 }
 0x82a   : > { %v5035_v62 = vadd.f32 %v5034_v12, %v14993_v10  ;;  %v6215_v40 = vmax.f32 %v5031_v18, 0.0 }
 0x82b   : > { %v6219_v7 = vmax.f32 %v5033_v23, 0.0  ;;  %11672 = vmatmul.mubr.bf16.gmra.mrb[196].mxu1 %v16844_v8 }
 0x82c   : > { %v6220_v27 = vmax.f32 %v5035_v62, 0.0  ;;  %11675 = vmatprep.mubr.bf16.mxu1 %v16824_v54 }
 0x82d   : > { %v6584_v57 = vpack.c.bf16 %v6219_v7, %v6214_v30 }
 0x82e   : > { %v5038_v39 = vpop.f32.mrb[92].mxu1  ;;  %v6585_v25 = vpack.c.bf16 %v6220_v27, %v6215_v40 }
 0x82f   : > { %v5039_v0 = vadd.f32 %v5038_v39, %v14991_v16  ;;  %v5040_v42 = vpop.f32.mrb[93].mxu1 }
 0x830   : > { %v5041_v58 = vadd.f32 %v5040_v42, %v14993_v10  ;;  %v5042_v34 = vpop.f32.mrb[94].mxu1  ;;  %8369 = vmatprep.mubr.bf16.mxu0 %v6585_v25 }
 0x831   : > { %v5043_v21 = vadd.f32 %v5042_v34, %v14991_v16  ;;  %v5044_v35 = vpop.f32.mrb[95].mxu1  ;;  %8370 = vmatmul.mubr.bf16.gmra.mrb[216].mxu0 %v6584_v57  ;;  %v6224_v31 = vmax.f32 %v5039_v0, 0.0 }
 0x832   : > { %v5045_v53 = vadd.f32 %v5044_v35, %v14993_v10  ;;  %v6225_v54 = vmax.f32 %v5041_v58, 0.0 }
 0x833   : > { %v6229_v33 = vmax.f32 %v5043_v21, 0.0  ;;  %11676 = vmatmul.mubr.bf16.gmra.mrb[200].mxu1 %v14350_v20 }
 0x834   : > { %v6230_v22 = vmax.f32 %v5045_v53, 0.0  ;;  %11679 = vmatprep.mubr.bf16.mxu1 %v14364_v49 }
 0x835   : > { %v6589_v3 = vpack.c.bf16 %v6229_v33, %v6224_v31 }
 0x836   : > { %v5048_v4 = vpop.f32.mrb[96].mxu1  ;;  %v6590_v2 = vpack.c.bf16 %v6230_v22, %v6225_v54 }
 0x837   : > { %v5049_v24 = vadd.f32 %v5048_v4, %v14991_v16  ;;  %v5050_v46 = vpop.f32.mrb[97].mxu1 }
 0x838   : > { %v5051_v6 = vadd.f32 %v5050_v46, %v14993_v10  ;;  %v5052_v52 = vpop.f32.mrb[98].mxu1  ;;  %8379 = vmatprep.mubr.bf16.mxu0 %v6590_v2 }
 0x839   : > { %v5053_v38 = vadd.f32 %v5052_v52, %v14991_v16  ;;  %v5054_v9 = vpop.f32.mrb[99].mxu1  ;;  %8380 = vmatmul.mubr.bf16.gmra.mrb[220].mxu0 %v6589_v3  ;;  %v6234_v56 = vmax.f32 %v5049_v24, 0.0 }
 0x83a   : > { %v5055_v20 = vadd.f32 %v5054_v9, %v14993_v10  ;;  %v6235_v49 = vmax.f32 %v5051_v6, 0.0 }
 0x83b   : > { %v6239_v18 = vmax.f32 %v5053_v38, 0.0  ;;  %11680 = vmatmul.mubr.bf16.gmra.mrb[204].mxu1 %v14362_v59 }
 0x83c   : > { %v6240_v43 = vmax.f32 %v5055_v20, 0.0  ;;  %11683 = vmatprep.mubr.bf16.mxu1 %v14376_v32 }
 0x83d   : > { %v6594_v23 = vpack.c.bf16 %v6239_v18, %v6234_v56 }
 0x83e   : > { %v5058_v12 = vpop.f32.mrb[100].mxu1  ;;  %v6595_v62 = vpack.c.bf16 %v6240_v43, %v6235_v49 }
 0x83f   : > { %v5059_v30 = vadd.f32 %v5058_v12, %v14991_v16  ;;  %v5060_v7 = vpop.f32.mrb[101].mxu1 }
 0x840   : > { %v5061_v8 = vadd.f32 %v5060_v7, %v14993_v10  ;;  %v5062_v40 = vpop.f32.mrb[102].mxu1  ;;  %8389 = vmatprep.mubr.bf16.mxu0 %v6595_v62 }
 0x841   : > { %v5063_v27 = vadd.f32 %v5062_v40, %v14991_v16  ;;  %v5064_v57 = vpop.f32.mrb[103].mxu1  ;;  %8390 = vmatmul.mubr.bf16.gmra.mrb[224].mxu0 %v6594_v23  ;;  %v6244_v39 = vmax.f32 %v5059_v30, 0.0 }
 0x842   : > { %v5065_v59 = vadd.f32 %v5064_v57, %v14993_v10  ;;  %v6245_v32 = vmax.f32 %v5061_v8, 0.0 }
 0x843   : > { %v6249_v25 = vmax.f32 %v5063_v27, 0.0  ;;  %11684 = vmatmul.mubr.bf16.gmra.mrb[208].mxu1 %v14374_v29 }
 0x844   : > { %v6250_v0 = vmax.f32 %v5065_v59, 0.0  ;;  %11687 = vmatprep.mubr.bf16.mxu1 %v14388_v14 }
 0x845   : > { %v6599_v42 = vpack.c.bf16 %v6249_v25, %v6244_v39 }
 0x846   : > { %v5068_v58 = vpop.f32.mrb[104].mxu1  ;;  %v6600_v34 = vpack.c.bf16 %v6250_v0, %v6245_v32 }
 0x847   : > { %v5069_v21 = vadd.f32 %v5068_v58, %v14991_v16  ;;  %v5070_v35 = vpop.f32.mrb[105].mxu1 }
 0x848   : > { %v5071_v53 = vadd.f32 %v5070_v35, %v14993_v10  ;;  %v5072_v31 = vpop.f32.mrb[106].mxu1  ;;  %8399 = vmatprep.mubr.bf16.mxu0 %v6600_v34 }
 0x849   : > { %v5073_v33 = vadd.f32 %v5072_v31, %v14991_v16  ;;  %v5074_v54 = vpop.f32.mrb[107].mxu1  ;;  %8400 = vmatmul.mubr.bf16.gmra.mrb[228].mxu0 %v6599_v42  ;;  %v6254_v22 = vmax.f32 %v5069_v21, 0.0 }
 0x84a   : > { %v5075_v29 = vadd.f32 %v5074_v54, %v14993_v10  ;;  %v6255_v14 = vmax.f32 %v5071_v53, 0.0 }
 0x84b   : > { %v6259_v3 = vmax.f32 %v5073_v33, 0.0  ;;  %11688 = vmatmul.mubr.bf16.gmra.mrb[212].mxu1 %v14386_v13 }
 0x84c   : > { %v6260_v4 = vmax.f32 %v5075_v29, 0.0  ;;  %11691 = vmatprep.mubr.bf16.mxu1 %v14416_v41 }
 0x84d   : > { %v6604_v2 = vpack.c.bf16 %v6259_v3, %v6254_v22 }
 0x84e   : > { %v5078_v24 = vpop.f32.mrb[108].mxu1  ;;  %v6605_v46 = vpack.c.bf16 %v6260_v4, %v6255_v14 }
 0x84f   : > { %v5079_v6 = vadd.f32 %v5078_v24, %v14991_v16  ;;  %v5080_v52 = vpop.f32.mrb[109].mxu1 }
 0x850   : > { %v5081_v38 = vadd.f32 %v5080_v52, %v14993_v10  ;;  %v5082_v9 = vpop.f32.mrb[110].mxu1  ;;  %8409 = vmatprep.mubr.bf16.mxu0 %v6605_v46 }
 0x851   : > { %v5083_v20 = vadd.f32 %v5082_v9, %v14991_v16  ;;  %v5084_v56 = vpop.f32.mrb[111].mxu1  ;;  %8410 = vmatmul.mubr.bf16.gmra.mrb[232].mxu0 %v6604_v2  ;;  %v6264_v18 = vmax.f32 %v5079_v6, 0.0 }
 0x852   : > { %v5085_v13 = vadd.f32 %v5084_v56, %v14993_v10  ;;  %v6265_v41 = vmax.f32 %v5081_v38, 0.0 }
 0x853   : > { %v6269_v49 = vmax.f32 %v5083_v20, 0.0  ;;  %11692 = vmatmul.mubr.bf16.gmra.mrb[216].mxu1 %v14413_v45 }
 0x854   : > { %v6270_v43 = vmax.f32 %v5085_v13, 0.0  ;;  %11695 = vmatprep.mubr.bf16.mxu1 %v14436_v61 }
 0x855   : > { %v6609_v23 = vpack.c.bf16 %v6269_v49, %v6264_v18  ;;  %v16845_v49 = vld [vmem:[#allocation47_spill] sm:$0xff] }
 0x856   : > { %v5088_v12 = vpop.f32.mrb[112].mxu1  ;;  %v6610_v62 = vpack.c.bf16 %v6270_v43, %v6265_v41  ;;  %v3566_v41 = vsub.s32 4, %v16845_v49 }
 0x857   : > { %v5089_v30 = vadd.f32 %v5088_v12, %v14991_v16  ;;  %v5090_v7 = vpop.f32.mrb[113].mxu1 }
 0x858   : > { %v5091_v8 = vadd.f32 %v5090_v7, %v14993_v10  ;;  %v5092_v40 = vpop.f32.mrb[114].mxu1  ;;  %8419 = vmatprep.mubr.bf16.mxu0 %v6610_v62 }
 0x859   : > { %v5093_v27 = vadd.f32 %v5092_v40, %v14991_v16  ;;  %v5094_v57 = vpop.f32.mrb[115].mxu1  ;;  %8420 = vmatmul.mubr.bf16.gmra.mrb[236].mxu0 %v6609_v23  ;;  %v6274_v59 = vmax.f32 %v5089_v30, 0.0  ;;  %v12897_v40 = vld [vmem:[#allocation13] sm:$0x1f] }
 0x85a   : > { %v5095_v45 = vadd.f32 %v5094_v57, %v14993_v10  ;;  %v6275_v61 = vmax.f32 %v5091_v8, 0.0 }
 0x85b   : > { %v6279_v39 = vmax.f32 %v5093_v27, 0.0  ;;  %11696 = vmatmul.mubr.bf16.gmra.mrb[220].mxu1 %v14433_v50  ;;  %v15384_v27 = vrot.slane %v12897_v40, %v3566_v41 }
 0x85c   : > { %v6280_v25 = vmax.f32 %v5095_v45, 0.0  ;;  %11699 = vmatprep.mubr.bf16.mxu1 %v14452_v5 }
 0x85d   : > { %v6614_v32 = vpack.c.bf16 %v6279_v39, %v6274_v59 }
 0x85e   : > { %v5098_v0 = vpop.f32.mrb[116].mxu1  ;;  %v6615_v42 = vpack.c.bf16 %v6280_v25, %v6275_v61 }
 0x85f   : > { %v5099_v58 = vadd.f32 %v5098_v0, %v14991_v16  ;;  %v5100_v34 = vpop.f32.mrb[117].mxu1 }
 0x860   : > { %v5101_v21 = vadd.f32 %v5100_v34, %v14993_v10  ;;  %v5102_v35 = vpop.f32.mrb[118].mxu1  ;;  %8429 = vmatprep.mubr.bf16.mxu0 %v6615_v42 }
 0x861   : > { %v5103_v53 = vadd.f32 %v5102_v35, %v14991_v16  ;;  %v5104_v31 = vpop.f32.mrb[119].mxu1  ;;  %8430 = vmatmul.mubr.bf16.gmra.mrb[240].mxu0 %v6614_v32  ;;  %v6284_v33 = vmax.f32 %v5099_v58, 0.0 }
 0x862   : > { %v5105_v50 = vadd.f32 %v5104_v31, %v14993_v10  ;;  %v6285_v5 = vmax.f32 %v5101_v21, 0.0 }
 0x863   : > { %v6289_v54 = vmax.f32 %v5103_v53, 0.0  ;;  %11700 = vmatmul.mubr.bf16.gmra.mrb[224].mxu1 %v14449_v36 }
 0x864   : > { %v6290_v29 = vmax.f32 %v5105_v50, 0.0  ;;  %11703 = vmatprep.mubr.bf16.mxu1 %v14466_v11 }
 0x865   : > { %v6619_v22 = vpack.c.bf16 %v6289_v54, %v6284_v33 }
 0x866   : > { %v5108_v3 = vpop.f32.mrb[120].mxu1  ;;  %v6620_v14 = vpack.c.bf16 %v6290_v29, %v6285_v5 }
 0x867   : > { %v5109_v4 = vadd.f32 %v5108_v3, %v14991_v16  ;;  %v5110_v2 = vpop.f32.mrb[121].mxu1 }
 0x868   : > { %v5111_v24 = vadd.f32 %v5110_v2, %v14993_v10  ;;  %v5112_v46 = vpop.f32.mrb[122].mxu1  ;;  %8439 = vmatprep.mubr.bf16.mxu0 %v6620_v14 }
 0x869   : > { %v5113_v6 = vadd.f32 %v5112_v46, %v14991_v16  ;;  %v5114_v52 = vpop.f32.mrb[123].mxu1  ;;  %8440 = vmatmul.mubr.bf16.gmra.mrb[244].mxu0 %v6619_v22  ;;  %v6294_v38 = vmax.f32 %v5109_v4, 0.0 }
 0x86a   : > { %v5115_v36 = vadd.f32 %v5114_v52, %v14993_v10  ;;  %v6295_v11 = vmax.f32 %v5111_v24, 0.0 }
 0x86b   : > { %v6299_v9 = vmax.f32 %v5113_v6, 0.0  ;;  %11704 = vmatmul.mubr.bf16.gmra.mrb[228].mxu1 %v14463_v51 }
 0x86c   : > { %v6300_v20 = vmax.f32 %v5115_v36, 0.0  ;;  %11707 = vmatprep.mubr.bf16.mxu1 %v14480_v28 }
 0x86d   : > { %v6624_v56 = vpack.c.bf16 %v6299_v9, %v6294_v38 }
 0x86e   : > { %v6625_v13 = vpack.c.bf16 %v6300_v20, %v6295_v11  ;;  %v5118_v18 = vpop.f32.mrb[124].mxu1 }
 0x86f   : > { %v5119_v43 = vadd.f32 %v5118_v18, %v14991_v16  ;;  %v5120_v23 = vpop.f32.mrb[125].mxu1 }
 0x870   : > { %v5121_v12 = vadd.f32 %v5120_v23, %v14993_v10  ;;  %v5122_v62 = vpop.f32.mrb[126].mxu1  ;;  %8449 = vmatprep.mubr.bf16.mxu0 %v6625_v13 }
 0x871   : > { %v5123_v30 = vadd.f32 %v5122_v62, %v14991_v16  ;;  %v5124_v7 = vpop.f32.mrb[127].mxu1  ;;  %8450 = vmatmul.mubr.bf16.gmra.mrb[248].mxu0 %v6624_v56  ;;  %v6304_v8 = vmax.f32 %v5119_v43, 0.0 }
 0x872   : > { %v5125_v51 = vadd.f32 %v5124_v7, %v14993_v10  ;;  %v6305_v57 = vmax.f32 %v5121_v12, 0.0 }
 0x873   : > { %v6309_v28 = vmax.f32 %v5123_v30, 0.0  ;;  %11708 = vmatmul.mubr.bf16.gmra.mrb[232].mxu1 %v14477_v55 }
 0x874   : > { %v6310_v45 = vmax.f32 %v5125_v51, 0.0  ;;  %11711 = vmatprep.mubr.bf16.mxu1 %v14494_v26 }
 0x875   : > { %v6629_v59 = vpack.c.bf16 %v6309_v28, %v6304_v8 }
 0x876   : > { %v6630_v39 = vpack.c.bf16 %v6310_v45, %v6305_v57  ;;  %v11605_v61 = vpop.f32.mrb[128].mxu1 }
 0x877   : > { %v5170_v16 = vadd.f32 %v11605_v61, %v15384_v27  ;;  %v5161_v25 = vpop.f32.mrb[129].mxu1 }
 0x878   : > { %v5162_v32 = vadd.f32 %v5161_v25, %v15384_v27  ;;  %v11606_v10 = vpop.f32.mrb[130].mxu1  ;;  %8459 = vmatprep.mubr.bf16.mxu0 %v6630_v39 }
 0x879   : > { %v5173_v0 = vadd.f32 %v11606_v10, %v15384_v27  ;;  %v5164_v55 = vpop.f32.mrb[131].mxu1  ;;  %8460 = vmatmul.mubr.bf16.gmra.mrb[252].mxu0 %v6629_v59  ;;  %v5686_v58 = vmax.f32 %v5170_v16, 0.0 }
 0x87a   : > { %v5165_v42 = vadd.f32 %v5164_v55, %v15384_v27  ;;  %8502 = vmatprep.mubr.bf16.mxu0 %v16740_v63  ;;  %v5676_v34 = vmax.f32 %v5162_v32, 0.0 }
 0x87b   : > { %v5691_v26 = vmax.f32 %v5173_v0, 0.0  ;;  %11712 = vmatmul.mubr.bf16.gmra.mrb[236].mxu1 %v14491_v19 }
 0x87c   : > { %v5681_v21 = vmax.f32 %v5165_v42, 0.0  ;;  %11715 = vmatprep.mubr.bf16.mxu1 %v14508_v1 }
 0x87d   : > { %v6321_v35 = vpack.c.bf16 %v5691_v26, %v5686_v58  ;;  %v16846_v58 = vld [vmem:[#allocation49_spill] sm:$0xff] }
 0x87e   : > { %v6316_v53 = vpack.c.bf16 %v5681_v21, %v5676_v34  ;;  %v11609_v31 = vpop.f32.mrb[132].mxu1 }
 0x87f   : > { %v5186_v50 = vadd.f32 %v11609_v31, %v15384_v27  ;;  %v5177_v33 = vpop.f32.mrb[133].mxu1 }
 0x880   : > { %v5178_v54 = vadd.f32 %v5177_v33, %v15384_v27  ;;  %v11610_v5 = vpop.f32.mrb[134].mxu1 }
 0x881   : > { %v5189_v29 = vadd.f32 %v11610_v5, %v15384_v27  ;;  %v5180_v22 = vpop.f32.mrb[135].mxu1  ;;  %8503 = vmatmul.mubr.bf16.vlgmr.msra.gmra.mrb[0].mxu0 %v6316_v53  ;;  %v5706_v19 = vmax.f32 %v5186_v50, 0.0 }
 0x882   : > { %v5181_v3 = vadd.f32 %v5180_v22, %v15384_v27  ;;  %8512 = vmatprep.mubr.bf16.mxu0 %v16740_v63  ;;  %v5696_v1 = vmax.f32 %v5178_v54, 0.0  ;;  %v16847_v22 = vld [vmem:[#allocation48_spill] sm:$0xff] }
 0x883   : > { %v5711_v14 = vmax.f32 %v5189_v29, 0.0  ;;  %11716 = vmatmul.mubr.bf16.gmra.mrb[240].mxu1 %v14505_v17 }
 0x884   : > { %v5701_v4 = vmax.f32 %v5181_v3, 0.0  ;;  %11719 = vmatprep.mubr.bf16.mxu1 %v14522_v60 }
 0x885   : > { %v6331_v2 = vpack.c.bf16 %v5711_v14, %v5706_v19  ;;  %v16848_v14 = vld [vmem:[#allocation51_spill] sm:$0xff] }
 0x886   : > { %v6326_v24 = vpack.c.bf16 %v5701_v4, %v5696_v1  ;;  %v11613_v46 = vpop.f32.mrb[136].mxu1 }
 0x887   : > { %v5202_v6 = vadd.f32 %v11613_v46, %v15384_v27  ;;  %v5193_v52 = vpop.f32.mrb[137].mxu1 }
 0x888   : > { %v5194_v36 = vadd.f32 %v5193_v52, %v15384_v27  ;;  %v11614_v38 = vpop.f32.mrb[138].mxu1 }
 0x889   : > { %v5205_v9 = vadd.f32 %v11614_v38, %v15384_v27  ;;  %v5196_v11 = vpop.f32.mrb[139].mxu1  ;;  %8513 = vmatmul.mubr.bf16.gmra.mrb[4].mxu0 %v6321_v35  ;;  %v5726_v17 = vmax.f32 %v5202_v6, 0.0 }
 0x88a   : > { %v5197_v20 = vadd.f32 %v5196_v11, %v15384_v27  ;;  %8522 = vmatprep.mubr.bf16.mxu0 %v16740_v63  ;;  %v5716_v60 = vmax.f32 %v5194_v36, 0.0 }
 0x88b   : > { %v5731_v56 = vmax.f32 %v5205_v9, 0.0  ;;  %11720 = vmatmul.mubr.bf16.gmra.mrb[244].mxu1 %v14519_v48 }
 0x88c   : > { %v5721_v13 = vmax.f32 %v5197_v20, 0.0  ;;  %11723 = vmatprep.mubr.bf16.mxu1 %v14536_v44 }
 0x88d   : > { %v6341_v18 = vpack.c.bf16 %v5731_v56, %v5726_v17  ;;  %v16849_v17 = vld [vmem:[#allocation50_spill] sm:$0xff] }
 0x88e   : > { %v6336_v41 = vpack.c.bf16 %v5721_v13, %v5716_v60  ;;  %v11617_v43 = vpop.f32.mrb[140].mxu1  ;;  %v16850_v13 = vld [vmem:[#allocation53_spill] sm:$0xff] }
 0x88f   : > { %v5218_v23 = vadd.f32 %v11617_v43, %v15384_v27  ;;  %v5209_v12 = vpop.f32.mrb[141].mxu1 }
 0x890   : > { %v5210_v62 = vadd.f32 %v5209_v12, %v15384_v27  ;;  %v11618_v30 = vpop.f32.mrb[142].mxu1 }
 0x891   : > { %v5221_v7 = vadd.f32 %v11618_v30, %v15384_v27  ;;  %v5212_v51 = vpop.f32.mrb[143].mxu1  ;;  %8523 = vmatmul.mubr.bf16.gmra.mrb[8].mxu0 %v6326_v24  ;;  %v5746_v48 = vmax.f32 %v5218_v23, 0.0 }
 0x892   : > { %v5213_v8 = vadd.f32 %v5212_v51, %v15384_v27  ;;  %8532 = vmatprep.mubr.bf16.mxu0 %v16740_v63  ;;  %v5736_v44 = vmax.f32 %v5210_v62, 0.0 }
 0x893   : > { %v5751_v28 = vmax.f32 %v5221_v7, 0.0  ;;  %11724 = vmatmul.mubr.bf16.gmra.mrb[248].mxu1 %v14533_v37 }
 0x894   : > { %v5741_v40 = vmax.f32 %v5213_v8, 0.0  ;;  %11727 = vmatprep.mubr.bf16.mxu1 %v14550_v47 }
 0x895   : > { %v15415_v57 = vpack.c.bf16 %v5751_v28, %v5746_v48 }
 0x896   : > { %v6346_v45 = vpack.c.bf16 %v5741_v40, %v5736_v44  ;;  %v11621_v59 = vpop.f32.mrb[144].mxu1  ;;  %v16851_v44 = vld [vmem:[#allocation52_spill] sm:$0xff] }
 0x897   : > { %v5234_v39 = vadd.f32 %v11621_v59, %v15384_v27  ;;  %v5225_v61 = vpop.f32.mrb[145].mxu1 }
 0x898   : > { %v5226_v16 = vadd.f32 %v5225_v61, %v15384_v27  ;;  %v11622_v25 = vpop.f32.mrb[146].mxu1 }
 0x899   : > { %v5237_v32 = vadd.f32 %v11622_v25, %v15384_v27  ;;  %v5228_v10 = vpop.f32.mrb[147].mxu1  ;;  %8533 = vmatmul.mubr.bf16.gmra.mrb[12].mxu0 %v6331_v2  ;;  %v5766_v0 = vmax.f32 %v5234_v39, 0.0  ;;  %v16852_v39 = vld [vmem:[#allocation55_spill] sm:$0xff] }
 0x89a   : > { %v5229_v37 = vadd.f32 %v5228_v10, %v15384_v27  ;;  %8542 = vmatprep.mubr.bf16.mxu0 %v16740_v63  ;;  %v5756_v55 = vmax.f32 %v5226_v16, 0.0 }
 0x89b   : > { %v5771_v47 = vmax.f32 %v5237_v32, 0.0  ;;  %11728 = vmatmul.mubr.bf16.gmra.mrb[252].mxu1 %v14547_v15 }
 0x89c   : > { %v5761_v42 = vmax.f32 %v5229_v37, 0.0  ;;  %7496 = vmatprep.mubr.bf16.mxu1 %v16846_v58 }
 0x89d   : > { %v15424_v26 = vpack.c.bf16 %v5771_v47, %v5766_v0 }
 0x89e   : > { %v15426_v34 = vpack.c.bf16 %v5761_v42, %v5756_v55  ;;  %v11625_v21 = vpop.f32.mrb[148].mxu1 }
 0x89f   : > { %v5250_v35 = vadd.f32 %v11625_v21, %v15384_v27  ;;  %v5241_v53 = vpop.f32.mrb[149].mxu1  ;;  %v16853_v21 = vld [vmem:[#allocation54_spill] sm:$0xff] }
 0x8a0   : > { %v5242_v31 = vadd.f32 %v5241_v53, %v15384_v27  ;;  %v11626_v50 = vpop.f32.mrb[150].mxu1 }
 0x8a1   : > { %v5253_v33 = vadd.f32 %v11626_v50, %v15384_v27  ;;  %v5244_v54 = vpop.f32.mrb[151].mxu1  ;;  %8543 = vmatmul.mubr.bf16.gmra.mrb[16].mxu0 %v6336_v41  ;;  %v5786_v5 = vmax.f32 %v5250_v35, 0.0 }
 0x8a2   : > { %v5245_v15 = vadd.f32 %v5244_v54, %v15384_v27  ;;  %8552 = vmatprep.mubr.bf16.mxu0 %v16740_v63  ;;  %v5776_v3 = vmax.f32 %v5242_v31, 0.0  ;;  %v16854_v31 = vld [vmem:[#allocation57_spill] sm:$0xff] }
 0x8a3   : > { %v5791_v29 = vmax.f32 %v5253_v33, 0.0  ;;  %7497 = vmatmul.mubr.bf16.vlgmr.msra.gmra.mrb[0].mxu1 %v16847_v22 }
 0x8a4   : > { %v5781_v19 = vmax.f32 %v5245_v15, 0.0  ;;  %7506 = vmatprep.mubr.bf16.mxu1 %v16848_v14 }
 0x8a5   : > { %v15435_v1 = vpack.c.bf16 %v5791_v29, %v5786_v5 }
 0x8a6   : > { %v15437_v4 = vpack.c.bf16 %v5781_v19, %v5776_v3  ;;  %v11629_v2 = vpop.f32.mrb[152].mxu1 }
 0x8a7   : > { %v5266_v24 = vadd.f32 %v11629_v2, %v15384_v27  ;;  %v5257_v46 = vpop.f32.mrb[153].mxu1 }
 0x8a8   : > { %v5258_v6 = vadd.f32 %v5257_v46, %v15384_v27  ;;  %v11630_v52 = vpop.f32.mrb[154].mxu1 }
 0x8a9   : > { %v5269_v36 = vadd.f32 %v11630_v52, %v15384_v27  ;;  %v5260_v38 = vpop.f32.mrb[155].mxu1  ;;  %8553 = vmatmul.mubr.bf16.gmra.mrb[20].mxu0 %v6341_v18  ;;  %v5806_v11 = vmax.f32 %v5266_v24, 0.0  ;;  %v16855_v24 = vld [vmem:[#allocation56_spill] sm:$0xff]  ;;  %v16856_v52 = vld [vmem:[#allocation59_spill] sm:$0xff] }
 0x8aa   : > { %v5261_v9 = vadd.f32 %v5260_v38, %v15384_v27  ;;  %8562 = vmatprep.mubr.bf16.mxu0 %v16740_v63  ;;  %v5796_v56 = vmax.f32 %v5258_v6, 0.0 }
 0x8ab   : > { %v5811_v20 = vmax.f32 %v5269_v36, 0.0  ;;  %7507 = vmatmul.mubr.bf16.gmra.mrb[4].mxu1 %v16849_v17 }
 0x8ac   : > { %v5801_v60 = vmax.f32 %v5261_v9, 0.0  ;;  %7516 = vmatprep.mubr.bf16.mxu1 %v16850_v13 }
 0x8ad   : > { %v15446_v41 = vpack.c.bf16 %v5811_v20, %v5806_v11 }
 0x8ae   : > { %v15448_v43 = vpack.c.bf16 %v5801_v60, %v5796_v56  ;;  %v11633_v23 = vpop.f32.mrb[156].mxu1 }
 0x8af   : > { %v5282_v12 = vadd.f32 %v11633_v23, %v15384_v27  ;;  %v5273_v18 = vpop.f32.mrb[157].mxu1 }
 0x8b0   : > { %v5274_v62 = vadd.f32 %v5273_v18, %v15384_v27  ;;  %v11634_v30 = vpop.f32.mrb[158].mxu1  ;;  %v16857_v18 = vld [vmem:[#allocation58_spill] sm:$0xff] }
 0x8b1   : > { %v5285_v7 = vadd.f32 %v11634_v30, %v15384_v27  ;;  %v5276_v51 = vpop.f32.mrb[159].mxu1  ;;  %8563 = vmatmul.mubr.bf16.gmra.mrb[24].mxu0 %v6346_v45  ;;  %v5826_v48 = vmax.f32 %v5282_v12, 0.0 }
 0x8b2   : > { %v5277_v8 = vadd.f32 %v5276_v51, %v15384_v27  ;;  %8572 = vmatprep.mubr.bf16.mxu0 %v16740_v63  ;;  %v5816_v40 = vmax.f32 %v5274_v62, 0.0 }
 0x8b3   : > { %v5831_v28 = vmax.f32 %v5285_v7, 0.0  ;;  %7517 = vmatmul.mubr.bf16.gmra.mrb[8].mxu1 %v16851_v44  ;;  %v16858_v7 = vld [vmem:[#allocation61_spill] sm:$0xff] }
 0x8b4   : > { %v5821_v59 = vmax.f32 %v5277_v8, 0.0  ;;  %7526 = vmatprep.mubr.bf16.mxu1 %v16852_v39 }
 0x8b5   : > { %v15457_v61 = vpack.c.bf16 %v5831_v28, %v5826_v48 }
 0x8b6   : > { %v15459_v16 = vpack.c.bf16 %v5821_v59, %v5816_v40  ;;  %v11637_v25 = vpop.f32.mrb[160].mxu1 }
 0x8b7   : > { %v5298_v32 = vadd.f32 %v11637_v25, %v15384_v27  ;;  %v5289_v45 = vpop.f32.mrb[161].mxu1 }
 0x8b8   : > { %v5290_v10 = vadd.f32 %v5289_v45, %v15384_v27  ;;  %v11638_v37 = vpop.f32.mrb[162].mxu1 }
 0x8b9   : > { %v5301_v0 = vadd.f32 %v11638_v37, %v15384_v27  ;;  %v5292_v47 = vpop.f32.mrb[163].mxu1  ;;  %8573 = vmatmul.mubr.bf16.gmra.mrb[28].mxu0 %v15415_v57  ;;  %v5846_v42 = vmax.f32 %v5298_v32, 0.0 }
 0x8ba   : > { %v5293_v55 = vadd.f32 %v5292_v47, %v15384_v27  ;;  %8582 = vmatprep.mubr.bf16.mxu0 %v16740_v63  ;;  %v5836_v35 = vmax.f32 %v5290_v10, 0.0  ;;  %v16859_v10 = vld [vmem:[#allocation60_spill] sm:$0xff]  ;;  %v16860_v47 = vld [vmem:[#allocation63_spill] sm:$0xff] }
 0x8bb   : > { %v5851_v58 = vmax.f32 %v5301_v0, 0.0  ;;  %7527 = vmatmul.mubr.bf16.gmra.mrb[12].mxu1 %v16853_v21 }
 0x8bc   : > { %v5841_v53 = vmax.f32 %v5293_v55, 0.0  ;;  %7536 = vmatprep.mubr.bf16.mxu1 %v16854_v31 }
 0x8bd   : > { %v15469_v50 = vpack.c.bf16 %v5851_v58, %v5846_v42 }
 0x8be   : > { %v15471_v33 = vpack.c.bf16 %v5841_v53, %v5836_v35  ;;  %v11641_v54 = vpop.f32.mrb[164].mxu1 }
 0x8bf   : > { %v5314_v15 = vadd.f32 %v11641_v54, %v15384_v27  ;;  %v5305_v57 = vpop.f32.mrb[165].mxu1 }
 0x8c0   : > { %v5306_v5 = vadd.f32 %v5305_v57, %v15384_v27  ;;  %v11642_v29 = vpop.f32.mrb[166].mxu1 }
 0x8c1   : > { %v5317_v22 = vadd.f32 %v11642_v29, %v15384_v27  ;;  %v5308_v3 = vpop.f32.mrb[167].mxu1  ;;  %8583 = vmatmul.mubr.bf16.gmra.mrb[32].mxu0 %v15426_v34  ;;  %v5866_v14 = vmax.f32 %v5314_v15, 0.0  ;;  %v16861_v29 = vld [vmem:[#allocation62_spill] sm:$0xff] }
 0x8c2   : > { %v5309_v19 = vadd.f32 %v5308_v3, %v15384_v27  ;;  %8592 = vmatprep.mubr.bf16.mxu0 %v16740_v63  ;;  %v5856_v46 = vmax.f32 %v5306_v5, 0.0 }
 0x8c3   : > { %v5871_v2 = vmax.f32 %v5317_v22, 0.0  ;;  %7537 = vmatmul.mubr.bf16.gmra.mrb[16].mxu1 %v16855_v24 }
 0x8c4   : > { %v5861_v6 = vmax.f32 %v5309_v19, 0.0  ;;  %7546 = vmatprep.mubr.bf16.mxu1 %v16856_v52  ;;  %v16862_v19 = vld [vmem:[#allocation65_spill] sm:$0xff] }
 0x8c5   : > { %v15481_v36 = vpack.c.bf16 %v5871_v2, %v5866_v14 }
 0x8c6   : > { %v15483_v38 = vpack.c.bf16 %v5861_v6, %v5856_v46  ;;  %v11645_v9 = vpop.f32.mrb[168].mxu1 }
 0x8c7   : > { %v5330_v11 = vadd.f32 %v11645_v9, %v15384_v27  ;;  %v5321_v34 = vpop.f32.mrb[169].mxu1 }
 0x8c8   : > { %v5322_v20 = vadd.f32 %v5321_v34, %v15384_v27  ;;  %v11646_v17 = vpop.f32.mrb[170].mxu1 }
 0x8c9   : > { %v5333_v56 = vadd.f32 %v11646_v17, %v15384_v27  ;;  %v5324_v60 = vpop.f32.mrb[171].mxu1  ;;  %8593 = vmatmul.mubr.bf16.gmra.mrb[36].mxu0 %v15424_v26  ;;  %v5886_v23 = vmax.f32 %v5330_v11, 0.0 }
 0x8ca   : > { %v5325_v13 = vadd.f32 %v5324_v60, %v15384_v27  ;;  %8602 = vmatprep.mubr.bf16.mxu0 %v16740_v63  ;;  %v5876_v62 = vmax.f32 %v5322_v20, 0.0 }
 0x8cb   : > { %v5891_v12 = vmax.f32 %v5333_v56, 0.0  ;;  %7547 = vmatmul.mubr.bf16.gmra.mrb[20].mxu1 %v16857_v18  ;;  %v16863_v56 = vld [vmem:[#allocation64_spill] sm:$0xff] }
 0x8cc   : > { %v5881_v30 = vmax.f32 %v5325_v13, 0.0  ;;  %7556 = vmatprep.mubr.bf16.mxu1 %v16858_v7 }
 0x8cd   : > { %v15493_v51 = vpack.c.bf16 %v5891_v12, %v5886_v23  ;;  %v16864_v23 = vld [vmem:[#allocation67_spill] sm:$0xff] }
 0x8ce   : > { %v15495_v8 = vpack.c.bf16 %v5881_v30, %v5876_v62  ;;  %v11649_v48 = vpop.f32.mrb[172].mxu1 }
 0x8cf   : > { %v5346_v28 = vadd.f32 %v11649_v48, %v15384_v27  ;;  %v5337_v26 = vpop.f32.mrb[173].mxu1 }
 0x8d0   : > { %v5338_v44 = vadd.f32 %v5337_v26, %v15384_v27  ;;  %v11650_v40 = vpop.f32.mrb[174].mxu1 }
 0x8d1   : > { %v5349_v59 = vadd.f32 %v11650_v40, %v15384_v27  ;;  %v5340_v39 = vpop.f32.mrb[175].mxu1  ;;  %8603 = vmatmul.mubr.bf16.gmra.mrb[40].mxu0 %v15437_v4  ;;  %v5906_v32 = vmax.f32 %v5346_v28, 0.0 }
 0x8d2   : > { %v5341_v25 = vadd.f32 %v5340_v39, %v15384_v27  ;;  %8612 = vmatprep.mubr.bf16.mxu0 %v16740_v63  ;;  %v5896_v37 = vmax.f32 %v5338_v44, 0.0  ;;  %v16865_v39 = vld [vmem:[#allocation66_spill] sm:$0xff] }
 0x8d3   : > { %v5911_v45 = vmax.f32 %v5349_v59, 0.0  ;;  %7557 = vmatmul.mubr.bf16.gmra.mrb[24].mxu1 %v16859_v10 }
 0x8d4   : > { %v5901_v0 = vmax.f32 %v5341_v25, 0.0  ;;  %7566 = vmatprep.mubr.bf16.mxu1 %v16860_v47 }
 0x8d5   : > { %v15505_v55 = vpack.c.bf16 %v5911_v45, %v5906_v32  ;;  %v16866_v45 = vld [vmem:[#allocation69_spill] sm:$0xff] }
 0x8d6   : > { %v15507_v42 = vpack.c.bf16 %v5901_v0, %v5896_v37  ;;  %v11653_v58 = vpop.f32.mrb[176].mxu1 }
 0x8d7   : > { %v5362_v21 = vadd.f32 %v11653_v58, %v15384_v27  ;;  %v5353_v4 = vpop.f32.mrb[177].mxu1 }
 0x8d8   : > { %v5354_v35 = vadd.f32 %v5353_v4, %v15384_v27  ;;  %v11654_v53 = vpop.f32.mrb[178].mxu1 }
 0x8d9   : > { %v5365_v31 = vadd.f32 %v11654_v53, %v15384_v27  ;;  %v5356_v54 = vpop.f32.mrb[179].mxu1  ;;  %8613 = vmatmul.mubr.bf16.gmra.mrb[44].mxu0 %v15435_v1  ;;  %v5926_v57 = vmax.f32 %v5362_v21, 0.0 }
 0x8da   : > { %v5357_v15 = vadd.f32 %v5356_v54, %v15384_v27  ;;  %8622 = vmatprep.mubr.bf16.mxu0 %v16740_v63  ;;  %v5916_v22 = vmax.f32 %v5354_v35, 0.0 }
 0x8db   : > { %v5931_v5 = vmax.f32 %v5365_v31, 0.0  ;;  %7567 = vmatmul.mubr.bf16.gmra.mrb[28].mxu1 %v16861_v29  ;;  %v16868_v29 = vld [vmem:[#allocation71_spill] sm:$0xff] }
 0x8dc   : > { %v5921_v3 = vmax.f32 %v5357_v15, 0.0  ;;  %7576 = vmatprep.mubr.bf16.mxu1 %v16862_v19  ;;  %v16867_v15 = vld [vmem:[#allocation68_spill] sm:$0xff] }
 0x8dd   : > { %v15517_v14 = vpack.c.bf16 %v5931_v5, %v5926_v57 }
 0x8de   : > { %v15519_v2 = vpack.c.bf16 %v5921_v3, %v5916_v22  ;;  %v11657_v24 = vpop.f32.mrb[180].mxu1 }
 0x8df   : > { %v5378_v46 = vadd.f32 %v11657_v24, %v15384_v27  ;;  %v5369_v1 = vpop.f32.mrb[181].mxu1 }
 0x8e0   : > { %v5370_v6 = vadd.f32 %v5369_v1, %v15384_v27  ;;  %v11658_v52 = vpop.f32.mrb[182].mxu1 }
 0x8e1   : > { %v5381_v9 = vadd.f32 %v11658_v52, %v15384_v27  ;;  %v5372_v11 = vpop.f32.mrb[183].mxu1  ;;  %8623 = vmatmul.mubr.bf16.gmra.mrb[48].mxu0 %v15448_v43  ;;  %v5946_v20 = vmax.f32 %v5378_v46, 0.0 }
 0x8e2   : > { %v5373_v34 = vadd.f32 %v5372_v11, %v15384_v27  ;;  %8632 = vmatprep.mubr.bf16.mxu0 %v16740_v63  ;;  %v5936_v60 = vmax.f32 %v5370_v6, 0.0 }
 0x8e3   : > { %v5951_v17 = vmax.f32 %v5381_v9, 0.0  ;;  %7577 = vmatmul.mubr.bf16.gmra.mrb[32].mxu1 %v16863_v56 }
 0x8e4   : > { %v5941_v13 = vmax.f32 %v5373_v34, 0.0  ;;  %7586 = vmatprep.mubr.bf16.mxu1 %v16864_v23 }
 0x8e5   : > { %v15529_v12 = vpack.c.bf16 %v5951_v17, %v5946_v20  ;;  %v16869_v20 = vld [vmem:[#allocation70_spill] sm:$0xff] }
 0x8e6   : > { %v15531_v18 = vpack.c.bf16 %v5941_v13, %v5936_v60  ;;  %v11661_v62 = vpop.f32.mrb[184].mxu1  ;;  %v16870_v60 = vld [vmem:[#allocation73_spill] sm:$0xff] }
 0x8e7   : > { %v5394_v30 = vadd.f32 %v11661_v62, %v15384_v27  ;;  %v5385_v43 = vpop.f32.mrb[185].mxu1 }
 0x8e8   : > { %v5386_v7 = vadd.f32 %v5385_v43, %v15384_v27  ;;  %v11662_v48 = vpop.f32.mrb[186].mxu1 }
 0x8e9   : > { %v5397_v28 = vadd.f32 %v11662_v48, %v15384_v27  ;;  %v5388_v26 = vpop.f32.mrb[187].mxu1  ;;  %8633 = vmatmul.mubr.bf16.gmra.mrb[52].mxu0 %v15446_v41  ;;  %v5966_v40 = vmax.f32 %v5394_v30, 0.0 }
 0x8ea   : > { %v5389_v44 = vadd.f32 %v5388_v26, %v15384_v27  ;;  %8642 = vmatprep.mubr.bf16.mxu0 %v16740_v63  ;;  %v5956_v25 = vmax.f32 %v5386_v7, 0.0 }
 0x8eb   : > { %v5971_v59 = vmax.f32 %v5397_v28, 0.0  ;;  %7587 = vmatmul.mubr.bf16.gmra.mrb[36].mxu1 %v16865_v39 }
 0x8ec   : > { %v5961_v32 = vmax.f32 %v5389_v44, 0.0  ;;  %7596 = vmatprep.mubr.bf16.mxu1 %v16866_v45 }
 0x8ed   : > { %v15541_v10 = vpack.c.bf16 %v5971_v59, %v5966_v40  ;;  %v16871_v59 = vld [vmem:[#allocation72_spill] sm:$0xff] }
 0x8ee   : > { %v15543_v37 = vpack.c.bf16 %v5961_v32, %v5956_v25  ;;  %v11665_v0 = vpop.f32.mrb[188].mxu1  ;;  %v16872_v32 = vld [vmem:[#allocation75_spill] sm:$0xff] }
 0x8ef   : > { %v5410_v47 = vadd.f32 %v11665_v0, %v15384_v27  ;;  %v5401_v41 = vpop.f32.mrb[189].mxu1 }
 0x8f0   : > { %v5402_v58 = vadd.f32 %v5401_v41, %v15384_v27  ;;  %v11666_v21 = vpop.f32.mrb[190].mxu1 }
 0x8f1   : > { %v5413_v4 = vadd.f32 %v11666_v21, %v15384_v27  ;;  %v5404_v35 = vpop.f32.mrb[191].mxu1  ;;  %8643 = vmatmul.mubr.bf16.gmra.mrb[56].mxu0 %v15459_v16  ;;  %v5986_v31 = vmax.f32 %v5410_v47, 0.0 }
 0x8f2   : > { %v5405_v53 = vadd.f32 %v5404_v35, %v15384_v27  ;;  %8652 = vmatprep.mubr.bf16.mxu0 %v16740_v63  ;;  %v5976_v57 = vmax.f32 %v5402_v58, 0.0 }
 0x8f3   : > { %v5991_v54 = vmax.f32 %v5413_v4, 0.0  ;;  %7597 = vmatmul.mubr.bf16.gmra.mrb[40].mxu1 %v16867_v15  ;;  %v16873_v15 = vld [vmem:[#allocation74_spill] sm:$0xff] }
 0x8f4   : > { %v5981_v5 = vmax.f32 %v5405_v53, 0.0  ;;  %7606 = vmatprep.mubr.bf16.mxu1 %v16868_v29  ;;  %v16874_v29 = vld [vmem:[#allocation77_spill] sm:$0xff] }
 0x8f5   : > { %v15553_v22 = vpack.c.bf16 %v5991_v54, %v5986_v31 }
 0x8f6   : > { %v15555_v3 = vpack.c.bf16 %v5981_v5, %v5976_v57  ;;  %v11669_v19 = vpop.f32.mrb[192].mxu1 }
 0x8f7   : > { %v5426_v24 = vadd.f32 %v11669_v19, %v15384_v27  ;;  %v5417_v16 = vpop.f32.mrb[193].mxu1 }
 0x8f8   : > { %v5418_v46 = vadd.f32 %v5417_v16, %v15384_v27  ;;  %v11670_v1 = vpop.f32.mrb[194].mxu1 }
 0x8f9   : > { %v5429_v6 = vadd.f32 %v11670_v1, %v15384_v27  ;;  %v5420_v52 = vpop.f32.mrb[195].mxu1  ;;  %8653 = vmatmul.mubr.bf16.gmra.mrb[60].mxu0 %v15457_v61  ;;  %v6006_v11 = vmax.f32 %v5426_v24, 0.0 }
 0x8fa   : > { %v5421_v9 = vadd.f32 %v5420_v52, %v15384_v27  ;;  %8662 = vmatprep.mubr.bf16.mxu0 %v16740_v63  ;;  %v5996_v17 = vmax.f32 %v5418_v46, 0.0 }
 0x8fb   : > { %v6011_v34 = vmax.f32 %v5429_v6, 0.0  ;;  %7607 = vmatmul.mubr.bf16.gmra.mrb[44].mxu1 %v16869_v20 }
 0x8fc   : > { %v6001_v56 = vmax.f32 %v5421_v9, 0.0  ;;  %7616 = vmatprep.mubr.bf16.mxu1 %v16870_v60 }
 0x8fd   : > { %v15565_v13 = vpack.c.bf16 %v6011_v34, %v6006_v11 }
 0x8fe   : > { %v15567_v23 = vpack.c.bf16 %v6001_v56, %v5996_v17  ;;  %v11673_v62 = vpop.f32.mrb[196].mxu1  ;;  %v16875_v17 = vld [vmem:[#allocation76_spill] sm:$0xff] }
 0x8ff   : > { %v5442_v30 = vadd.f32 %v11673_v62, %v15384_v27  ;;  %v5433_v61 = vpop.f32.mrb[197].mxu1  ;;  %v16876_v62 = vld [vmem:[#allocation79_spill] sm:$0xff] }
 0x900   : > { %v5434_v43 = vadd.f32 %v5433_v61, %v15384_v27  ;;  %v11674_v7 = vpop.f32.mrb[198].mxu1 }
 0x901   : > { %v5445_v48 = vadd.f32 %v11674_v7, %v15384_v27  ;;  %v5436_v28 = vpop.f32.mrb[199].mxu1  ;;  %8663 = vmatmul.mubr.bf16.gmra.mrb[64].mxu0 %v15471_v33  ;;  %v6026_v44 = vmax.f32 %v5442_v30, 0.0 }
 0x902   : > { %v5437_v26 = vadd.f32 %v5436_v28, %v15384_v27  ;;  %8672 = vmatprep.mubr.bf16.mxu0 %v16740_v63  ;;  %v6016_v39 = vmax.f32 %v5434_v43, 0.0 }
 0x903   : > { %v6031_v40 = vmax.f32 %v5445_v48, 0.0  ;;  %7617 = vmatmul.mubr.bf16.gmra.mrb[48].mxu1 %v16871_v59 }
 0x904   : > { %v6021_v25 = vmax.f32 %v5437_v26, 0.0  ;;  %7626 = vmatprep.mubr.bf16.mxu1 %v16872_v32 }
 0x905   : > { %v15577_v45 = vpack.c.bf16 %v6031_v40, %v6026_v44 }
 0x906   : > { %v15579_v0 = vpack.c.bf16 %v6021_v25, %v6016_v39  ;;  %v11677_v47 = vpop.f32.mrb[200].mxu1  ;;  %v16877_v25 = vld [vmem:[#allocation78_spill] sm:$0xff] }
 0x907   : > { %v5458_v41 = vadd.f32 %v11677_v47, %v15384_v27  ;;  %v5449_v33 = vpop.f32.mrb[201].mxu1 }
 0x908   : > { %v5450_v58 = vadd.f32 %v5449_v33, %v15384_v27  ;;  %v11678_v21 = vpop.f32.mrb[202].mxu1 }
 0x909   : > { %v5461_v4 = vadd.f32 %v11678_v21, %v15384_v27  ;;  %v5452_v35 = vpop.f32.mrb[203].mxu1  ;;  %8673 = vmatmul.mubr.bf16.gmra.mrb[68].mxu0 %v15469_v50  ;;  %v6046_v31 = vmax.f32 %v5458_v41, 0.0  ;;  %v16878_v41 = vld [vmem:[#allocation81_spill] sm:$0xff] }
 0x90a   : > { %v5453_v53 = vadd.f32 %v5452_v35, %v15384_v27  ;;  %8682 = vmatprep.mubr.bf16.mxu0 %v16740_v63  ;;  %v6036_v57 = vmax.f32 %v5450_v58, 0.0 }
 0x90b   : > { %v6051_v54 = vmax.f32 %v5461_v4, 0.0  ;;  %7627 = vmatmul.mubr.bf16.gmra.mrb[52].mxu1 %v16873_v15 }
 0x90c   : > { %v6041_v5 = vmax.f32 %v5453_v53, 0.0  ;;  %7636 = vmatprep.mubr.bf16.mxu1 %v16874_v29  ;;  %v16879_v29 = vld [vmem:[#allocation80_spill] sm:$0xff] }
 0x90d   : > { %v15589_v19 = vpack.c.bf16 %v6051_v54, %v6046_v31 }
 0x90e   : > { %v15591_v24 = vpack.c.bf16 %v6041_v5, %v6036_v57  ;;  %v11681_v16 = vpop.f32.mrb[204].mxu1 }
 0x90f   : > { %v5474_v46 = vadd.f32 %v11681_v16, %v15384_v27  ;;  %v5465_v50 = vpop.f32.mrb[205].mxu1 }
 0x910   : > { %v5466_v1 = vadd.f32 %v5465_v50, %v15384_v27  ;;  %v11682_v6 = vpop.f32.mrb[206].mxu1  ;;  %v16880_v50 = vld [vmem:[#allocation82_spill] sm:$0xff] }
 0x911   : > { %v5477_v52 = vadd.f32 %v11682_v6, %v15384_v27  ;;  %v5468_v9 = vpop.f32.mrb[207].mxu1  ;;  %8683 = vmatmul.mubr.bf16.gmra.mrb[72].mxu0 %v15483_v38  ;;  %v6066_v34 = vmax.f32 %v5474_v46, 0.0 }
 0x912   : > { %v5469_v11 = vadd.f32 %v5468_v9, %v15384_v27  ;;  %8692 = vmatprep.mubr.bf16.mxu0 %v16740_v63  ;;  %v6056_v56 = vmax.f32 %v5466_v1, 0.0 }
 0x913   : > { %v6071_v20 = vmax.f32 %v5477_v52, 0.0  ;;  %7637 = vmatmul.mubr.bf16.gmra.mrb[56].mxu1 %v16875_v17 }
 0x914   : > { %v6061_v60 = vmax.f32 %v5469_v11, 0.0  ;;  %7646 = vmatprep.mubr.bf16.mxu1 %v16876_v62 }
 0x915   : > { %v15601_v30 = vpack.c.bf16 %v6071_v20, %v6066_v34 }
 0x916   : > { %v15603_v61 = vpack.c.bf16 %v6061_v60, %v6056_v56  ;;  %v11685_v43 = vpop.f32.mrb[208].mxu1 }
 0x917   : > { %v5490_v7 = vadd.f32 %v11685_v43, %v15384_v27  ;;  %v5481_v38 = vpop.f32.mrb[209].mxu1  ;;  %v16881_v43 = vld [vmem:[#allocation25_spill] sm:$0xff] }
 0x918   : > { %v5482_v48 = vadd.f32 %v5481_v38, %v15384_v27  ;;  %v11686_v28 = vpop.f32.mrb[210].mxu1 }
 0x919   : > { %v5493_v26 = vadd.f32 %v11686_v28, %v15384_v27  ;;  %v5484_v44 = vpop.f32.mrb[211].mxu1  ;;  %8693 = vmatmul.mubr.bf16.gmra.mrb[76].mxu0 %v15481_v36  ;;  %v6086_v59 = vmax.f32 %v5490_v7, 0.0 }
 0x91a   : > { %v5485_v40 = vadd.f32 %v5484_v44, %v15384_v27  ;;  %8702 = vmatprep.mubr.bf16.mxu0 %v16740_v63  ;;  %v6076_v32 = vmax.f32 %v5482_v48, 0.0  ;;  %v16882_v48 = vld [vmem:[#allocation84_spill] sm:$0xff] }
 0x91b   : > { %v6091_v39 = vmax.f32 %v5493_v26, 0.0  ;;  %7647 = vmatmul.mubr.bf16.gmra.mrb[60].mxu1 %v16877_v25 }
 0x91c   : > { %v6081_v47 = vmax.f32 %v5485_v40, 0.0  ;;  %7656 = vmatprep.mubr.bf16.mxu1 %v16878_v41 }
 0x91d   : > { %v15613_v33 = vpack.c.bf16 %v6091_v39, %v6086_v59 }
 0x91e   : > { %v15615_v58 = vpack.c.bf16 %v6081_v47, %v6076_v32  ;;  %v11689_v21 = vpop.f32.mrb[212].mxu1 }
 0x91f   : > { %v5506_v4 = vadd.f32 %v11689_v21, %v15384_v27  ;;  %v5497_v36 = vpop.f32.mrb[213].mxu1 }
 0x920   : > { %v5498_v35 = vadd.f32 %v5497_v36, %v15384_v27  ;;  %v11690_v53 = vpop.f32.mrb[214].mxu1 }
 0x921   : > { %v5509_v31 = vadd.f32 %v11690_v53, %v15384_v27  ;;  %v5500_v54 = vpop.f32.mrb[215].mxu1  ;;  %8703 = vmatmul.mubr.bf16.gmra.mrb[80].mxu0 %v15495_v8  ;;  %v6106_v57 = vmax.f32 %v5506_v4, 0.0  ;;  %v16883_v4 = vld [vmem:[#allocation83_spill] sm:$0xff]  ;;  %v16884_v53 = vld [vmem:[#allocation86_spill] sm:$0xff] }
 0x922   : > { %v5501_v15 = vadd.f32 %v5500_v54, %v15384_v27  ;;  %8712 = vmatprep.mubr.bf16.mxu0 %v16740_v63  ;;  %v6096_v16 = vmax.f32 %v5498_v35, 0.0 }
 0x923   : > { %v6111_v5 = vmax.f32 %v5509_v31, 0.0  ;;  %7657 = vmatmul.mubr.bf16.gmra.mrb[64].mxu1 %v16879_v29 }
 0x924   : > { %v6101_v46 = vmax.f32 %v5501_v15, 0.0  ;;  %7666 = vmatprep.mubr.bf16.mxu1 %v16880_v50 }
 0x925   : > { %v15625_v1 = vpack.c.bf16 %v6111_v5, %v6106_v57 }
 0x926   : > { %v15627_v6 = vpack.c.bf16 %v6101_v46, %v6096_v16  ;;  %v11693_v52 = vpop.f32.mrb[216].mxu1 }
 0x927   : > { %v5522_v9 = vadd.f32 %v11693_v52, %v15384_v27  ;;  %v5513_v8 = vpop.f32.mrb[217].mxu1 }
 0x928   : > { %v5514_v11 = vadd.f32 %v5513_v8, %v15384_v27  ;;  %v11694_v34 = vpop.f32.mrb[218].mxu1  ;;  %v16885_v8 = vld [vmem:[#allocation85_spill] sm:$0xff] }
 0x929   : > { %v5525_v20 = vadd.f32 %v11694_v34, %v15384_v27  ;;  %v5516_v17 = vpop.f32.mrb[219].mxu1  ;;  %8713 = vmatmul.mubr.bf16.gmra.mrb[84].mxu0 %v15493_v51  ;;  %v6126_v60 = vmax.f32 %v5522_v9, 0.0 }
 0x92a   : > { %v5517_v56 = vadd.f32 %v5516_v17, %v15384_v27  ;;  %8722 = vmatprep.mubr.bf16.mxu0 %v16740_v63  ;;  %v6116_v7 = vmax.f32 %v5514_v11, 0.0 }
 0x92b   : > { %v6131_v62 = vmax.f32 %v5525_v20, 0.0  ;;  %7667 = vmatmul.mubr.bf16.gmra.mrb[68].mxu1 %v16881_v43  ;;  %v16886_v20 = vld [vmem:[#allocation88_spill] sm:$0xff] }
 0x92c   : > { %v6121_v38 = vmax.f32 %v5517_v56, 0.0  ;;  %7676 = vmatprep.mubr.bf16.mxu1 %v16882_v48 }
 0x92d   : > { %v15637_v28 = vpack.c.bf16 %v6131_v62, %v6126_v60 }
 0x92e   : > { %v15639_v26 = vpack.c.bf16 %v6121_v38, %v6116_v7  ;;  %v11697_v44 = vpop.f32.mrb[220].mxu1 }
 0x92f   : > { %v5538_v40 = vadd.f32 %v11697_v44, %v15384_v27  ;;  %v5529_v51 = vpop.f32.mrb[221].mxu1 }
 0x930   : > { %v5530_v59 = vadd.f32 %v5529_v51, %v15384_v27  ;;  %v11698_v39 = vpop.f32.mrb[222].mxu1 }
 0x931   : > { %v5541_v25 = vadd.f32 %v11698_v39, %v15384_v27  ;;  %v5532_v32 = vpop.f32.mrb[223].mxu1  ;;  %8723 = vmatmul.mubr.bf16.gmra.mrb[88].mxu0 %v15507_v42  ;;  %v6146_v41 = vmax.f32 %v5538_v40, 0.0 }
 0x932   : > { %v5533_v47 = vadd.f32 %v5532_v32, %v15384_v27  ;;  %8732 = vmatprep.mubr.bf16.mxu0 %v16740_v63  ;;  %v6136_v36 = vmax.f32 %v5530_v59, 0.0  ;;  %v16887_v59 = vld [vmem:[#allocation87_spill] sm:$0xff]  ;;  %v16888_v32 = vld [vmem:[#allocation90_spill] sm:$0xff] }
 0x933   : > { %v6151_v21 = vmax.f32 %v5541_v25, 0.0  ;;  %7677 = vmatmul.mubr.bf16.gmra.mrb[72].mxu1 %v16883_v4 }
 0x934   : > { %v6141_v35 = vmax.f32 %v5533_v47, 0.0  ;;  %7686 = vmatprep.mubr.bf16.mxu1 %v16884_v53 }
 0x935   : > { %v15649_v31 = vpack.c.bf16 %v6151_v21, %v6146_v41 }
 0x936   : > { %v15651_v54 = vpack.c.bf16 %v6141_v35, %v6136_v36  ;;  %v11701_v15 = vpop.f32.mrb[224].mxu1 }
 0x937   : > { %v5554_v57 = vadd.f32 %v11701_v15, %v15384_v27  ;;  %v5545_v42 = vpop.f32.mrb[225].mxu1 }
 0x938   : > { %v5546_v5 = vadd.f32 %v5545_v42, %v15384_v27  ;;  %v11702_v29 = vpop.f32.mrb[226].mxu1 }
 0x939   : > { %v5557_v16 = vadd.f32 %v11702_v29, %v15384_v27  ;;  %v5548_v46 = vpop.f32.mrb[227].mxu1  ;;  %8733 = vmatmul.mubr.bf16.gmra.mrb[92].mxu0 %v15505_v55  ;;  %v6166_v52 = vmax.f32 %v5554_v57, 0.0  ;;  %v16889_v29 = vld [vmem:[#allocation89_spill] sm:$0xff] }
 0x93a   : > { %v5549_v50 = vadd.f32 %v5548_v46, %v15384_v27  ;;  %8742 = vmatprep.mubr.bf16.mxu0 %v16740_v63  ;;  %v6156_v11 = vmax.f32 %v5546_v5, 0.0 }
 0x93b   : > { %v6171_v9 = vmax.f32 %v5557_v16, 0.0  ;;  %7687 = vmatmul.mubr.bf16.gmra.mrb[76].mxu1 %v16885_v8 }
 0x93c   : > { %v6161_v34 = vmax.f32 %v5549_v50, 0.0  ;;  %7696 = vmatprep.mubr.bf16.mxu1 %v16886_v20  ;;  %v16890_v50 = vld [vmem:[#allocation92_spill] sm:$0xff] }
 0x93d   : > { %v15661_v17 = vpack.c.bf16 %v6171_v9, %v6166_v52 }
 0x93e   : > { %v15663_v56 = vpack.c.bf16 %v6161_v34, %v6156_v11  ;;  %v11705_v60 = vpop.f32.mrb[228].mxu1  ;;  %v6712_v11 = vld [vmem:[#allocation16] sm:$0x3] }
 0x93f   : > { %v5570_v62 = vadd.f32 %v11705_v60, %v15384_v27  ;;  %v5561_v55 = vpop.f32.mrb[229].mxu1 }
 0x940   : > { %v5562_v43 = vadd.f32 %v5561_v55, %v15384_v27  ;;  %v11706_v7 = vpop.f32.mrb[230].mxu1 }
 0x941   : > { %v5573_v38 = vadd.f32 %v11706_v7, %v15384_v27  ;;  %v5564_v48 = vpop.f32.mrb[231].mxu1  ;;  %8743 = vmatmul.mubr.bf16.gmra.mrb[96].mxu0 %v15519_v2  ;;  %v6186_v40 = vmax.f32 %v5570_v62, 0.0 }
 0x942   : > { %v5565_v44 = vadd.f32 %v5564_v48, %v15384_v27  ;;  %8752 = vmatprep.mubr.bf16.mxu0 %v16740_v63  ;;  %v6176_v39 = vmax.f32 %v5562_v43, 0.0  ;;  %v16891_v43 = vsub.s32 0, %v16845_v49  ;;  %v16892_v48 = vsub.s32 1, %v16845_v49 }
 0x943   : > { %v6191_v51 = vmax.f32 %v5573_v38, 0.0  ;;  %7697 = vmatmul.mubr.bf16.gmra.mrb[80].mxu1 %v16887_v59  ;;  %v16893_v59 = vld [vmem:[#allocation91_spill] sm:$0xff] }
 0x944   : > { %v6181_v25 = vmax.f32 %v5565_v44, 0.0  ;;  %7706 = vmatprep.mubr.bf16.mxu1 %v16888_v32  ;;  %v15695_v7 = vrot.slane %v6712_v11, %v16891_v43  ;;  %v15700_v44 = vrot.slane %v6712_v11, %v16892_v48  ;;  %v16894_v32 = vld [vmem:[#allocation94_spill] sm:$0xff] }
 0x945   : > { %v15673_v47 = vpack.c.bf16 %v6191_v51, %v6186_v40 }
 0x946   : > { %v15675_v41 = vpack.c.bf16 %v6181_v25, %v6176_v39  ;;  %v11709_v21 = vpop.f32.mrb[232].mxu1 }
 0x947   : > { %v5586_v4 = vadd.f32 %v11709_v21, %v15384_v27  ;;  %v5577_v2 = vpop.f32.mrb[233].mxu1 }
 0x948   : > { %v5578_v36 = vadd.f32 %v5577_v2, %v15384_v27  ;;  %v11710_v35 = vpop.f32.mrb[234].mxu1 }
 0x949   : > { %v5589_v53 = vadd.f32 %v11710_v35, %v15384_v27  ;;  %v5580_v15 = vpop.f32.mrb[235].mxu1  ;;  %8753 = vmatmul.mubr.bf16.gmra.mrb[100].mxu0 %v15517_v14  ;;  %v6206_v42 = vmax.f32 %v5586_v4, 0.0 }
 0x94a   : > { %v5581_v57 = vadd.f32 %v5580_v15, %v15384_v27  ;;  %8762 = vmatprep.mubr.bf16.mxu0 %v16740_v63  ;;  %v6196_v16 = vmax.f32 %v5578_v36, 0.0 }
 0x94b   : > { %v6211_v5 = vmax.f32 %v5589_v53, 0.0  ;;  %7707 = vmatmul.mubr.bf16.gmra.mrb[84].mxu1 %v16889_v29 }
 0x94c   : > { %v6201_v46 = vmax.f32 %v5581_v57, 0.0  ;;  %7716 = vmatprep.mubr.bf16.mxu1 %v16890_v50 }
 0x94d   : > { %v15685_v52 = vpack.c.bf16 %v6211_v5, %v6206_v42 }
 0x94e   : > { %v15687_v9 = vpack.c.bf16 %v6201_v46, %v6196_v16  ;;  %v11713_v8 = vpop.f32.mrb[236].mxu1 }
 0x94f   : > { %v5602_v14 = vadd.f32 %v11713_v8, %v15384_v27  ;;  %v5593_v34 = vpop.f32.mrb[237].mxu1 }
 0x950   : > { %v5594_v20 = vadd.f32 %v5593_v34, %v15384_v27  ;;  %v11714_v60 = vpop.f32.mrb[238].mxu1 }
 0x951   : > { %v5605_v62 = vadd.f32 %v11714_v60, %v15384_v27  ;;  %v5596_v55 = vpop.f32.mrb[239].mxu1  ;;  %8763 = vmatmul.mubr.bf16.gmra.mrb[104].mxu0 %v15531_v18  ;;  %v6226_v40 = vmax.f32 %v5602_v14, 0.0 }
 0x952   : > { %v5597_v38 = vadd.f32 %v5596_v55, %v15384_v27  ;;  %8772 = vmatprep.mubr.bf16.mxu0 %v16740_v63  ;;  %v6216_v39 = vmax.f32 %v5594_v20, 0.0 }
 0x953   : > { %v6231_v51 = vmax.f32 %v5605_v62, 0.0  ;;  %7717 = vmatmul.mubr.bf16.gmra.mrb[88].mxu1 %v16893_v59  ;;  %v16895_v62 = vld [vmem:[#allocation93_spill] sm:$0xff] }
 0x954   : > { %v6221_v25 = vmax.f32 %v5597_v38, 0.0  ;;  %7726 = vmatprep.mubr.bf16.mxu1 %v16894_v32  ;;  %v8504_v18 = vpop.f32.mrb[0].mxu0  ;;  %v16896_v38 = vld [vmem:[#allocation96_spill] sm:$0xff] }
 0x955   : > { %v15705_v21 = vpack.c.bf16 %v6231_v51, %v6226_v40  ;;  %v11763_v4 = vadd.f32 %v8504_v18, %v15695_v7  ;;  %v8506_v2 = vpop.f32.mrb[1].mxu0 }
 0x956   : > { %v15708_v49 = vpack.c.bf16 %v6221_v25, %v6216_v39  ;;  %v11764_v36 = vadd.f32 %v8506_v2, %v15700_v44  ;;  %v11717_v35 = vpop.f32.mrb[240].mxu1  ;;  %v8508_v53 = vpop.f32.mrb[2].mxu0 }
 0x957   : > { %v5618_v15 = vadd.f32 %v11717_v35, %v15384_v27  ;;  %v11765_v57 = vadd.f32 %v8508_v53, %v15695_v7  ;;  %v5609_v42 = vpop.f32.mrb[241].mxu1  ;;  %v8510_v5 = vpop.f32.mrb[3].mxu0 }
 0x958   : > { %v10630_v29 = vpack.c.bf16 %v11764_v36, %v11763_v4  ;;  %v5610_v16 = vadd.f32 %v5609_v42, %v15384_v27  ;;  %v11766_v46 = vadd.f32 %v8510_v5, %v15700_v44  ;;  %v11718_v50 = vpop.f32.mrb[242].mxu1 }
 0x959   : > { %v5621_v8 = vadd.f32 %v11718_v50, %v15384_v27  ;;  %v5612_v11 = vpop.f32.mrb[243].mxu1  ;;  %8773 = vmatmul.mubr.bf16.gmra.mrb[108].mxu0 %v15529_v12  ;;  %v6246_v20 = vmax.f32 %v5618_v15, 0.0 }
 0x95a   : > { %9911 = vst [vmem:[%s15719_s16] sm:$0xff] %v10630_v29  ;;  %v10631_v14 = vpack.c.bf16 %v11766_v46, %v11765_v57  ;;  %v5613_v34 = vadd.f32 %v5612_v11, %v15384_v27  ;;  %8782 = vmatprep.mubr.bf16.mxu0 %v16740_v63  ;;  %v6236_v55 = vmax.f32 %v5610_v16, 0.0 }
 0x95b   : > { %v6251_v60 = vmax.f32 %v5621_v8, 0.0  ;;  %7727 = vmatmul.mubr.bf16.gmra.mrb[92].mxu1 %v16895_v62  ;;  %v16897_v8 = vld [vmem:[#allocation95_spill] sm:$0xff] }
 0x95c   : > { %9912 = vst [vmem:[%s15719_s16 + $0x8] sm:$0xff] %v10631_v14  ;;  %v6241_v43 = vmax.f32 %v5613_v34, 0.0  ;;  %7736 = vmatprep.mubr.bf16.mxu1 %v16896_v38  ;;  %v8514_v12 = vpop.f32.mrb[4].mxu0  ;;  %v16898_v34 = vld [vmem:[#allocation98_spill] sm:$0xff] }
 0x95d   : > { %v15727_v48 = vpack.c.bf16 %v6251_v60, %v6246_v20  ;;  %v11767_v40 = vadd.f32 %v8514_v12, %v15695_v7  ;;  %v8516_v51 = vpop.f32.mrb[5].mxu0 }
 0x95e   : > { %v15730_v59 = vpack.c.bf16 %v6241_v43, %v6236_v55  ;;  %v11768_v39 = vadd.f32 %v8516_v51, %v15700_v44  ;;  %v11721_v25 = vpop.f32.mrb[244].mxu1  ;;  %v8518_v32 = vpop.f32.mrb[6].mxu0 }
 0x95f   : > { %v5634_v18 = vadd.f32 %v11721_v25, %v15384_v27  ;;  %v11769_v4 = vadd.f32 %v8518_v32, %v15695_v7  ;;  %v5625_v2 = vpop.f32.mrb[245].mxu1  ;;  %v8520_v36 = vpop.f32.mrb[7].mxu0 }
 0x960   : > { %v10632_v35 = vpack.c.bf16 %v11768_v39, %v11767_v40  ;;  %v5626_v53 = vadd.f32 %v5625_v2, %v15384_v27  ;;  %v11770_v15 = vadd.f32 %v8520_v36, %v15700_v44  ;;  %v11722_v57 = vpop.f32.mrb[246].mxu1 }
 0x961   : > { %v5637_v42 = vadd.f32 %v11722_v57, %v15384_v27  ;;  %v5628_v5 = vpop.f32.mrb[247].mxu1  ;;  %8783 = vmatmul.mubr.bf16.gmra.mrb[112].mxu0 %v15543_v37  ;;  %v6266_v46 = vmax.f32 %v5634_v18, 0.0 }
 0x962   : > { %9913 = vst [vmem:[%s15719_s16 + $0x10] sm:$0xff] %v10632_v35  ;;  %v10633_v29 = vpack.c.bf16 %v11770_v15, %v11769_v4  ;;  %v5629_v16 = vadd.f32 %v5628_v5, %v15384_v27  ;;  %8792 = vmatprep.mubr.bf16.mxu0 %v16740_v63  ;;  %v6256_v11 = vmax.f32 %v5626_v53, 0.0  ;;  %v16899_v5 = vld [vmem:[#allocation97_spill] sm:$0xff] }
 0x963   : > { %v6271_v50 = vmax.f32 %v5637_v42, 0.0  ;;  %7737 = vmatmul.mubr.bf16.gmra.mrb[96].mxu1 %v16897_v8 }
 0x964   : > { %9914 = vst [vmem:[%s15719_s16 + $0x18] sm:$0xff] %v10633_v29  ;;  %v6261_v14 = vmax.f32 %v5629_v16, 0.0  ;;  %7746 = vmatprep.mubr.bf16.mxu1 %v16898_v34  ;;  %v8524_v20 = vpop.f32.mrb[8].mxu0 }
 0x965   : > { %v15745_v60 = vpack.c.bf16 %v6271_v50, %v6266_v46  ;;  %v11771_v37 = vadd.f32 %v8524_v20, %v15695_v7  ;;  %v8526_v62 = vpop.f32.mrb[9].mxu0  ;;  %v16900_v46 = vld [vmem:[#allocation100_spill] sm:$0xff] }
 0x966   : > { %v15748_v55 = vpack.c.bf16 %v6261_v14, %v6256_v11  ;;  %v11772_v43 = vadd.f32 %v8526_v62, %v15700_v44  ;;  %v11725_v38 = vpop.f32.mrb[248].mxu1  ;;  %v8528_v12 = vpop.f32.mrb[10].mxu0 }
 0x967   : > { %v5650_v40 = vadd.f32 %v11725_v38, %v15384_v27  ;;  %v11773_v51 = vadd.f32 %v8528_v12, %v15695_v7  ;;  %v5641_v39 = vpop.f32.mrb[249].mxu1  ;;  %v8530_v25 = vpop.f32.mrb[11].mxu0 }
 0x968   : > { %v10634_v32 = vpack.c.bf16 %v11772_v43, %v11771_v37  ;;  %v5642_v18 = vadd.f32 %v5641_v39, %v15384_v27  ;;  %v11774_v4 = vadd.f32 %v8530_v25, %v15700_v44  ;;  %v11726_v2 = vpop.f32.mrb[250].mxu1 }
 0x969   : > { %v5653_v36 = vadd.f32 %v11726_v2, %v15384_v27  ;;  %v5644_v35 = vpop.f32.mrb[251].mxu1  ;;  %8793 = vmatmul.mubr.bf16.gmra.mrb[116].mxu0 %v15541_v10  ;;  %v6286_v57 = vmax.f32 %v5650_v40, 0.0 }
 0x96a   : > { %9915 = vst [vmem:[%s15719_s16 + $0x20] sm:$0xff] %v10634_v32  ;;  %v10635_v53 = vpack.c.bf16 %v11774_v4, %v11773_v51  ;;  %v5645_v15 = vadd.f32 %v5644_v35, %v15384_v27  ;;  %8802 = vmatprep.mubr.bf16.mxu0 %v16740_v63  ;;  %v6276_v29 = vmax.f32 %v5642_v18, 0.0 }
 0x96b   : > { %v6291_v42 = vmax.f32 %v5653_v36, 0.0  ;;  %7747 = vmatmul.mubr.bf16.gmra.mrb[100].mxu1 %v16899_v5 }
 0x96c   : > { %9916 = vst [vmem:[%s15719_s16 + $0x28] sm:$0xff] %v10635_v53  ;;  %v6281_v16 = vmax.f32 %v5645_v15, 0.0  ;;  %7756 = vmatprep.mubr.bf16.mxu1 %v16900_v46  ;;  %v8534_v50 = vpop.f32.mrb[12].mxu0  ;;  %v16901_v53 = vld [vmem:[#allocation99_spill] sm:$0xff] }
 0x96d   : > { %v15763_v8 = vpack.c.bf16 %v6291_v42, %v6286_v57  ;;  %v11775_v10 = vadd.f32 %v8534_v50, %v15695_v7  ;;  %v8536_v11 = vpop.f32.mrb[13].mxu0  ;;  %v16902_v42 = vld [vmem:[#allocation102_spill] sm:$0xff] }
 0x96e   : > { %v15766_v14 = vpack.c.bf16 %v6281_v16, %v6276_v29  ;;  %v11776_v34 = vadd.f32 %v8536_v11, %v15700_v44  ;;  %v11729_v20 = vpop.f32.mrb[252].mxu1  ;;  %v8538_v37 = vpop.f32.mrb[14].mxu0 }
 0x96f   : > { %v5666_v62 = vadd.f32 %v11729_v20, %v15384_v27  ;;  %v11777_v43 = vadd.f32 %v8538_v37, %v15695_v7  ;;  %v5657_v38 = vpop.f32.mrb[253].mxu1  ;;  %v8540_v12 = vpop.f32.mrb[15].mxu0 }
 0x970   : > { %v10636_v40 = vpack.c.bf16 %v11776_v34, %v11775_v10  ;;  %v5658_v51 = vadd.f32 %v5657_v38, %v15384_v27  ;;  %v11778_v39 = vadd.f32 %v8540_v12, %v15700_v44  ;;  %v11730_v25 = vpop.f32.mrb[254].mxu1 }
 0x971   : > { %v5669_v32 = vadd.f32 %v11730_v25, %v15384_v27  ;;  %v5660_v18 = vpop.f32.mrb[255].mxu1  ;;  %8803 = vmatmul.mubr.bf16.gmra.mrb[120].mxu0 %v15555_v3  ;;  %v6306_v36 = vmax.f32 %v5666_v62, 0.0 }
 0x972   : > { %9917 = vst [vmem:[%s15719_s16 + $0x30] sm:$0xff] %v10636_v40  ;;  %v10637_v4 = vpack.c.bf16 %v11778_v39, %v11777_v43  ;;  %v5661_v2 = vadd.f32 %v5660_v18, %v15384_v27  ;;  %8812 = vmatprep.mubr.bf16.mxu0 %v16740_v63  ;;  %v6296_v15 = vmax.f32 %v5658_v51, 0.0  ;;  %v16903_v40 = vld [vmem:[#allocation101_spill] sm:$0xff]  ;;  %v16904_v51 = vld [vmem:[#allocation104_spill] sm:$0xff] }
 0x973   : > { %v6311_v35 = vmax.f32 %v5669_v32, 0.0  ;;  %7757 = vmatmul.mubr.bf16.gmra.mrb[104].mxu1 %v16901_v53 }
 0x974   : > { %9918 = vst [vmem:[%s15719_s16 + $0x38] sm:$0xff] %v10637_v4  ;;  %v6301_v57 = vmax.f32 %v5661_v2, 0.0  ;;  %7766 = vmatprep.mubr.bf16.mxu1 %v16902_v42  ;;  %v8544_v5 = vpop.f32.mrb[16].mxu0 }
 0x975   : > { %v15781_v29 = vpack.c.bf16 %v6311_v35, %v6306_v36  ;;  %v11779_v3 = vadd.f32 %v8544_v5, %v15695_v7  ;;  %v8546_v16 = vpop.f32.mrb[17].mxu0 }
 0x976   : > { %v15784_v46 = vpack.c.bf16 %v6301_v57, %v6296_v15  ;;  %v11780_v27 = vadd.f32 %v8546_v16, %v15700_v44  ;;  %v15787_v50 = vpop.f32.mrb[0].mxu1  ;;  %v8548_v10 = vpop.f32.mrb[18].mxu0  ;;  %v16906_v16 = vld [vmem:[#allocation106_spill] sm:$0xff] }
 0x977   : > { %v11781_v11 = vadd.f32 %v8548_v10, %v15695_v7  ;;  %v15790_v34 = vpop.f32.mrb[1].mxu1  ;;  %v8550_v20 = vpop.f32.mrb[19].mxu0 }
 0x978   : > { %v10638_v37 = vpack.c.bf16 %v11780_v27, %v11779_v3  ;;  %v11782_v62 = vadd.f32 %v8550_v20, %v15700_v44  ;;  %v15793_v43 = vpop.f32.mrb[2].mxu1  ;;  %v16905_v3 = vld [vmem:[#allocation103_spill] sm:$0xff] }
 0x979   : > { %v15795_v38 = vpop.f32.mrb[3].mxu1  ;;  %8813 = vmatmul.mubr.bf16.gmra.mrb[124].mxu0 %v15553_v22 }
 0x97a   : > { %9919 = vst [vmem:[%s15719_s16 + $0x40] sm:$0xff] %v10638_v37  ;;  %v10639_v12 = vpack.c.bf16 %v11782_v62, %v11781_v11  ;;  %8822 = vmatprep.mubr.bf16.mxu0 %v16740_v63 }
 0x97b   : > { %7767 = vmatmul.mubr.bf16.gmra.mrb[108].mxu1 %v16903_v40 }
 0x97c   : > { %9920 = vst [vmem:[%s15719_s16 + $0x48] sm:$0xff] %v10639_v12  ;;  %7776 = vmatprep.mubr.bf16.mxu1 %v16904_v51  ;;  %v8554_v39 = vpop.f32.mrb[20].mxu0 }
 0x97d   : > { %v11783_v25 = vadd.f32 %v8554_v39, %v15695_v7  ;;  %v8556_v32 = vpop.f32.mrb[21].mxu0 }
 0x97e   : > { %v11784_v18 = vadd.f32 %v8556_v32, %v15700_v44  ;;  %v15805_v4 = vpop.f32.mrb[4].mxu1  ;;  %v8558_v22 = vpop.f32.mrb[22].mxu0 }
 0x97f   : > { %v11785_v2 = vadd.f32 %v8558_v22, %v15695_v7  ;;  %v15808_v36 = vpop.f32.mrb[5].mxu1  ;;  %v8560_v35 = vpop.f32.mrb[23].mxu0  ;;  %v16907_v22 = vld [vmem:[#allocation105_spill] sm:$0xff] }
 0x980   : > { %v10640_v53 = vpack.c.bf16 %v11784_v18, %v11783_v25  ;;  %v11786_v15 = vadd.f32 %v8560_v35, %v15700_v44  ;;  %v15811_v57 = vpop.f32.mrb[6].mxu1 }
 0x981   : > { %v15813_v42 = vpop.f32.mrb[7].mxu1  ;;  %8823 = vmatmul.mubr.bf16.gmra.mrb[128].mxu0 %v15567_v23 }
 0x982   : > { %9921 = vst [vmem:[%s15719_s16 + $0x50] sm:$0xff] %v10640_v53  ;;  %v10641_v5 = vpack.c.bf16 %v11786_v15, %v11785_v2  ;;  %8832 = vmatprep.mubr.bf16.mxu0 %v16740_v63 }
 0x983   : > { %7777 = vmatmul.mubr.bf16.gmra.mrb[112].mxu1 %v16905_v3 }
 0x984   : > { %9922 = vst [vmem:[%s15719_s16 + $0x58] sm:$0xff] %v10641_v5  ;;  %7786 = vmatprep.mubr.bf16.mxu1 %v16906_v16  ;;  %v8564_v27 = vpop.f32.mrb[24].mxu0 }
 0x985   : > { %v11787_v10 = vadd.f32 %v8564_v27, %v15695_v7  ;;  %v8566_v11 = vpop.f32.mrb[25].mxu0 }
 0x986   : > { %v11788_v20 = vadd.f32 %v8566_v11, %v15700_v44  ;;  %v15823_v37 = vpop.f32.mrb[8].mxu1  ;;  %v8568_v23 = vpop.f32.mrb[26].mxu0 }
 0x987   : > { %v11789_v62 = vadd.f32 %v8568_v23, %v15695_v7  ;;  %v15826_v12 = vpop.f32.mrb[9].mxu1  ;;  %v8570_v40 = vpop.f32.mrb[27].mxu0 }
 0x988   : > { %v10642_v51 = vpack.c.bf16 %v11788_v20, %v11787_v10  ;;  %v11790_v39 = vadd.f32 %v8570_v40, %v15700_v44  ;;  %v15829_v25 = vpop.f32.mrb[10].mxu1 }
 0x989   : > { %v15831_v32 = vpop.f32.mrb[11].mxu1  ;;  %8833 = vmatmul.mubr.bf16.gmra.mrb[132].mxu0 %v15565_v13 }
 0x98a   : > { %9923 = vst [vmem:[%s15719_s16 + $0x60] sm:$0xff] %v10642_v51  ;;  %v10643_v18 = vpack.c.bf16 %v11790_v39, %v11789_v62  ;;  %8842 = vmatprep.mubr.bf16.mxu0 %v16740_v63 }
 0x98b   : > { %7787 = vmatmul.mubr.bf16.gmra.mrb[116].mxu1 %v16907_v22 }
 0x98c   : > { %9924 = vst [vmem:[%s15719_s16 + $0x68] sm:$0xff] %v10643_v18  ;;  %v8574_v2 = vpop.f32.mrb[28].mxu0 }
 0x98d   : > { %v11791_v35 = vadd.f32 %v8574_v2, %v15695_v7  ;;  %v8576_v53 = vpop.f32.mrb[29].mxu0 }
 0x98e   : > { %v11792_v15 = vadd.f32 %v8576_v53, %v15700_v44  ;;  %v15840_v5 = vpop.f32.mrb[12].mxu1  ;;  %v8578_v3 = vpop.f32.mrb[30].mxu0 }
 0x98f   : > { %v11793_v13 = vadd.f32 %v8578_v3, %v15695_v7  ;;  %v15843_v16 = vpop.f32.mrb[13].mxu1  ;;  %v8580_v27 = vpop.f32.mrb[31].mxu0 }
 0x990   : > { %v10644_v10 = vpack.c.bf16 %v11792_v15, %v11791_v35  ;;  %v11794_v11 = vadd.f32 %v8580_v27, %v15700_v44  ;;  %v15846_v20 = vpop.f32.mrb[14].mxu1 }
 0x991   : > { %v15848_v23 = vpop.f32.mrb[15].mxu1  ;;  %8843 = vmatmul.mubr.bf16.gmra.mrb[136].mxu0 %v15579_v0 }
 0x992   : > { %9925 = vst [vmem:[%s15719_s16 + $0x70] sm:$0xff] %v10644_v10  ;;  %v10645_v62 = vpack.c.bf16 %v11794_v11, %v11793_v13  ;;  %8852 = vmatprep.mubr.bf16.mxu0 %v16740_v63 }
 0x994   : > { %9926 = vst [vmem:[%s15719_s16 + $0x78] sm:$0xff] %v10645_v62  ;;  %v8584_v40 = vpop.f32.mrb[32].mxu0 }
 0x995   : > { %v11795_v51 = vadd.f32 %v8584_v40, %v15695_v7  ;;  %v8586_v39 = vpop.f32.mrb[33].mxu0 }
 0x996   : > { %v11796_v18 = vadd.f32 %v8586_v39, %v15700_v44  ;;  %v15856_v22 = vpop.f32.mrb[16].mxu1  ;;  %v8588_v2 = vpop.f32.mrb[34].mxu0 }
 0x997   : > { %v11797_v35 = vadd.f32 %v8588_v2, %v15695_v7  ;;  %v15859_v53 = vpop.f32.mrb[17].mxu1  ;;  %v8590_v0 = vpop.f32.mrb[35].mxu0 }
 0x998   : > { %v10646_v15 = vpack.c.bf16 %v11796_v18, %v11795_v51  ;;  %v11798_v3 = vadd.f32 %v8590_v0, %v15700_v44  ;;  %v15862_v13 = vpop.f32.mrb[18].mxu1 }
 0x999   : > { %v15864_v27 = vpop.f32.mrb[19].mxu1  ;;  %8853 = vmatmul.mubr.bf16.gmra.mrb[140].mxu0 %v15577_v45 }
 0x99a   : > { %9927 = vst [vmem:[%s15719_s16 + $0x80] sm:$0xff] %v10646_v15  ;;  %v10647_v10 = vpack.c.bf16 %v11798_v3, %v11797_v35  ;;  %8862 = vmatprep.mubr.bf16.mxu0 %v16740_v63 }
 0x99c   : > { %9928 = vst [vmem:[%s15719_s16 + $0x88] sm:$0xff] %v10647_v10  ;;  %v8594_v11 = vpop.f32.mrb[36].mxu0 }
 0x99d   : > { %v11799_v62 = vadd.f32 %v8594_v11, %v15695_v7  ;;  %v8596_v40 = vpop.f32.mrb[37].mxu0 }
 0x99e   : > { %v11800_v51 = vadd.f32 %v8596_v40, %v15700_v44  ;;  %v15872_v39 = vpop.f32.mrb[20].mxu1  ;;  %v8598_v18 = vpop.f32.mrb[38].mxu0 }
 0x99f   : > { %v11801_v2 = vadd.f32 %v8598_v18, %v15695_v7  ;;  %v15875_v0 = vpop.f32.mrb[21].mxu1  ;;  %v8600_v45 = vpop.f32.mrb[39].mxu0 }
 0x9a0   : > { %16908 = vst [vmem:[#allocation39_spill] sm:$0xff] %v15875_v0  ;;  %v10648_v35 = vpack.c.bf16 %v11800_v51, %v11799_v62  ;;  %v11802_v15 = vadd.f32 %v8600_v45, %v15700_v44  ;;  %v15878_v3 = vpop.f32.mrb[22].mxu1 }
 0x9a1   : > { %16909 = vst [vmem:[#allocation46_spill] sm:$0xff] %v15878_v3  ;;  %v15880_v10 = vpop.f32.mrb[23].mxu1  ;;  %8863 = vmatmul.mubr.bf16.gmra.mrb[144].mxu0 %v15591_v24 }
 0x9a2   : > { %16910 = vst [vmem:[#allocation24_spill] sm:$0xff] %v15880_v10  ;;  %9929 = vst [vmem:[%s15719_s16 + $0x90] sm:$0xff] %v10648_v35  ;;  %v10649_v11 = vpack.c.bf16 %v11802_v15, %v11801_v2  ;;  %8872 = vmatprep.mubr.bf16.mxu0 %v16740_v63 }
 0x9a4   : > { %9930 = vst [vmem:[%s15719_s16 + $0x98] sm:$0xff] %v10649_v11  ;;  %v8604_v40 = vpop.f32.mrb[40].mxu0 }
 0x9a5   : > { %v11803_v18 = vadd.f32 %v8604_v40, %v15695_v7  ;;  %v8606_v0 = vpop.f32.mrb[41].mxu0 }
 0x9a6   : > { %v11804_v62 = vadd.f32 %v8606_v0, %v15700_v44  ;;  %v15888_v51 = vpop.f32.mrb[24].mxu1  ;;  %v8608_v45 = vpop.f32.mrb[42].mxu0 }
 0x9a7   : > { %v11805_v10 = vadd.f32 %v8608_v45, %v15695_v7  ;;  %v15891_v3 = vpop.f32.mrb[25].mxu1  ;;  %v8610_v24 = vpop.f32.mrb[43].mxu0 }
 0x9a8   : > { %16911 = vst [vmem:[#allocation27_spill] sm:$0xff] %v15891_v3  ;;  %v10650_v2 = vpack.c.bf16 %v11804_v62, %v11803_v18  ;;  %v11806_v35 = vadd.f32 %v8610_v24, %v15700_v44  ;;  %v15894_v15 = vpop.f32.mrb[26].mxu1 }
 0x9a9   : > { %16912 = vst [vmem:[#allocation26_spill] sm:$0xff] %v15894_v15  ;;  %v15896_v11 = vpop.f32.mrb[27].mxu1  ;;  %8873 = vmatmul.mubr.bf16.gmra.mrb[148].mxu0 %v15589_v19 }
 0x9aa   : > { %16913 = vst [vmem:[#allocation29_spill] sm:$0xff] %v15896_v11  ;;  %9931 = vst [vmem:[%s15719_s16 + $0xa0] sm:$0xff] %v10650_v2  ;;  %v10651_v40 = vpack.c.bf16 %v11806_v35, %v11805_v10  ;;  %8882 = vmatprep.mubr.bf16.mxu0 %v16740_v63 }
 0x9ac   : > { %9932 = vst [vmem:[%s15719_s16 + $0xa8] sm:$0xff] %v10651_v40  ;;  %v8614_v0 = vpop.f32.mrb[44].mxu0 }
 0x9ad   : > { %v11807_v45 = vadd.f32 %v8614_v0, %v15695_v7  ;;  %v8616_v3 = vpop.f32.mrb[45].mxu0 }
 0x9ae   : > { %v11808_v18 = vadd.f32 %v8616_v3, %v15700_v44  ;;  %v15904_v62 = vpop.f32.mrb[28].mxu1  ;;  %v8618_v24 = vpop.f32.mrb[46].mxu0 }
 0x9af   : > { %v11809_v11 = vadd.f32 %v8618_v24, %v15695_v7  ;;  %v15907_v15 = vpop.f32.mrb[29].mxu1  ;;  %v8620_v19 = vpop.f32.mrb[47].mxu0 }
 0x9b0   : > { %16914 = vst [vmem:[#allocation28_spill] sm:$0xff] %v15907_v15  ;;  %v10652_v10 = vpack.c.bf16 %v11808_v18, %v11807_v45  ;;  %v11810_v2 = vadd.f32 %v8620_v19, %v15700_v44  ;;  %v15910_v35 = vpop.f32.mrb[30].mxu1 }
 0x9b1   : > { %16915 = vst [vmem:[#allocation31_spill] sm:$0xff] %v15910_v35  ;;  %v15912_v40 = vpop.f32.mrb[31].mxu1  ;;  %8883 = vmatmul.mubr.bf16.gmra.mrb[152].mxu0 %v15603_v61 }
 0x9b2   : > { %16916 = vst [vmem:[#allocation30_spill] sm:$0xff] %v15912_v40  ;;  %9933 = vst [vmem:[%s15719_s16 + $0xb0] sm:$0xff] %v10652_v10  ;;  %v10653_v0 = vpack.c.bf16 %v11810_v2, %v11809_v11  ;;  %8892 = vmatprep.mubr.bf16.mxu0 %v16740_v63 }
 0x9b4   : > { %9934 = vst [vmem:[%s15719_s16 + $0xb8] sm:$0xff] %v10653_v0  ;;  %v8624_v3 = vpop.f32.mrb[48].mxu0 }
 0x9b5   : > { %v11811_v24 = vadd.f32 %v8624_v3, %v15695_v7  ;;  %v8626_v15 = vpop.f32.mrb[49].mxu0 }
 0x9b6   : > { %v11812_v45 = vadd.f32 %v8626_v15, %v15700_v44  ;;  %v15920_v18 = vpop.f32.mrb[32].mxu1  ;;  %v8628_v19 = vpop.f32.mrb[50].mxu0 }
 0x9b7   : > { %v11813_v40 = vadd.f32 %v8628_v19, %v15695_v7  ;;  %v15923_v35 = vpop.f32.mrb[33].mxu1  ;;  %v8630_v61 = vpop.f32.mrb[51].mxu0 }
 0x9b8   : > { %16917 = vst [vmem:[#allocation33_spill] sm:$0xff] %v15923_v35  ;;  %v10654_v11 = vpack.c.bf16 %v11812_v45, %v11811_v24  ;;  %v11814_v10 = vadd.f32 %v8630_v61, %v15700_v44  ;;  %v15926_v2 = vpop.f32.mrb[34].mxu1 }
 0x9b9   : > { %16918 = vst [vmem:[#allocation32_spill] sm:$0xff] %v15926_v2  ;;  %v15928_v0 = vpop.f32.mrb[35].mxu1  ;;  %8893 = vmatmul.mubr.bf16.gmra.mrb[156].mxu0 %v15601_v30 }
 0x9ba   : > { %16919 = vst [vmem:[#allocation35_spill] sm:$0xff] %v15928_v0  ;;  %9935 = vst [vmem:[%s15719_s16 + $0xc0] sm:$0xff] %v10654_v11  ;;  %v10655_v3 = vpack.c.bf16 %v11814_v10, %v11813_v40  ;;  %8902 = vmatprep.mubr.bf16.mxu0 %v16740_v63 }
 0x9bc   : > { %9936 = vst [vmem:[%s15719_s16 + $0xc8] sm:$0xff] %v10655_v3  ;;  %v8634_v15 = vpop.f32.mrb[52].mxu0 }
 0x9bd   : > { %v11815_v19 = vadd.f32 %v8634_v15, %v15695_v7  ;;  %v8636_v35 = vpop.f32.mrb[53].mxu0 }
 0x9be   : > { %v11816_v24 = vadd.f32 %v8636_v35, %v15700_v44  ;;  %v15936_v45 = vpop.f32.mrb[36].mxu1  ;;  %v8638_v61 = vpop.f32.mrb[54].mxu0 }
 0x9bf   : > { %v11817_v0 = vadd.f32 %v8638_v61, %v15695_v7  ;;  %v15939_v2 = vpop.f32.mrb[37].mxu1  ;;  %v8640_v30 = vpop.f32.mrb[55].mxu0 }
 0x9c0   : > { %16920 = vst [vmem:[#allocation34_spill] sm:$0xff] %v15939_v2  ;;  %v10656_v40 = vpack.c.bf16 %v11816_v24, %v11815_v19  ;;  %v11818_v11 = vadd.f32 %v8640_v30, %v15700_v44  ;;  %v15942_v10 = vpop.f32.mrb[38].mxu1 }
 0x9c1   : > { %16921 = vst [vmem:[#allocation37_spill] sm:$0xff] %v15942_v10  ;;  %v15944_v3 = vpop.f32.mrb[39].mxu1  ;;  %8903 = vmatmul.mubr.bf16.gmra.mrb[160].mxu0 %v15615_v58 }
 0x9c2   : > { %16922 = vst [vmem:[#allocation36_spill] sm:$0xff] %v15944_v3  ;;  %9937 = vst [vmem:[%s15719_s16 + $0xd0] sm:$0xff] %v10656_v40  ;;  %v10657_v15 = vpack.c.bf16 %v11818_v11, %v11817_v0  ;;  %8912 = vmatprep.mubr.bf16.mxu0 %v16740_v63 }
 0x9c4   : > { %9938 = vst [vmem:[%s15719_s16 + $0xd8] sm:$0xff] %v10657_v15  ;;  %v8644_v35 = vpop.f32.mrb[56].mxu0 }
 0x9c5   : > { %v11819_v61 = vadd.f32 %v8644_v35, %v15695_v7  ;;  %v8646_v2 = vpop.f32.mrb[57].mxu0 }
 0x9c6   : > { %v11820_v19 = vadd.f32 %v8646_v2, %v15700_v44  ;;  %v15952_v24 = vpop.f32.mrb[40].mxu1  ;;  %v8648_v30 = vpop.f32.mrb[58].mxu0 }
 0x9c7   : > { %v11821_v3 = vadd.f32 %v8648_v30, %v15695_v7  ;;  %v15955_v10 = vpop.f32.mrb[41].mxu1  ;;  %v8650_v58 = vpop.f32.mrb[59].mxu0 }
 0x9c8   : > { %16923 = vst [vmem:[#allocation38_spill] sm:$0xff] %v15955_v10  ;;  %v10658_v0 = vpack.c.bf16 %v11820_v19, %v11819_v61  ;;  %v11822_v40 = vadd.f32 %v8650_v58, %v15700_v44  ;;  %v15958_v11 = vpop.f32.mrb[42].mxu1 }
 0x9c9   : > { %16924 = vst [vmem:[#allocation41_spill] sm:$0xff] %v15958_v11  ;;  %v15960_v15 = vpop.f32.mrb[43].mxu1  ;;  %8913 = vmatmul.mubr.bf16.gmra.mrb[164].mxu0 %v15613_v33 }
 0x9ca   : > { %16925 = vst [vmem:[#allocation40_spill] sm:$0xff] %v15960_v15  ;;  %9939 = vst [vmem:[%s15719_s16 + $0xe0] sm:$0xff] %v10658_v0  ;;  %v10659_v35 = vpack.c.bf16 %v11822_v40, %v11821_v3  ;;  %8922 = vmatprep.mubr.bf16.mxu0 %v16740_v63 }
 0x9cc   : > { %9940 = vst [vmem:[%s15719_s16 + $0xe8] sm:$0xff] %v10659_v35  ;;  %v8654_v2 = vpop.f32.mrb[60].mxu0 }
 0x9cd   : > { %v11823_v30 = vadd.f32 %v8654_v2, %v15695_v7  ;;  %v8656_v10 = vpop.f32.mrb[61].mxu0 }
 0x9ce   : > { %v11824_v61 = vadd.f32 %v8656_v10, %v15700_v44  ;;  %v15968_v19 = vpop.f32.mrb[44].mxu1  ;;  %v8658_v58 = vpop.f32.mrb[62].mxu0 }
 0x9cf   : > { %v11825_v15 = vadd.f32 %v8658_v58, %v15695_v7  ;;  %v15971_v11 = vpop.f32.mrb[45].mxu1  ;;  %v8660_v33 = vpop.f32.mrb[63].mxu0 }
 0x9d0   : > { %16926 = vst [vmem:[#allocation43_spill] sm:$0xff] %v15971_v11  ;;  %v10660_v3 = vpack.c.bf16 %v11824_v61, %v11823_v30  ;;  %v11826_v0 = vadd.f32 %v8660_v33, %v15700_v44  ;;  %v15974_v40 = vpop.f32.mrb[46].mxu1 }
 0x9d1   : > { %16927 = vst [vmem:[#allocation42_spill] sm:$0xff] %v15974_v40  ;;  %v15976_v35 = vpop.f32.mrb[47].mxu1  ;;  %8923 = vmatmul.mubr.bf16.gmra.mrb[168].mxu0 %v15627_v6 }
 0x9d2   : > { %16928 = vst [vmem:[#allocation45_spill] sm:$0xff] %v15976_v35  ;;  %9941 = vst [vmem:[%s15719_s16 + $0xf0] sm:$0xff] %v10660_v3  ;;  %v10661_v2 = vpack.c.bf16 %v11826_v0, %v11825_v15  ;;  %8932 = vmatprep.mubr.bf16.mxu0 %v16740_v63 }
 0x9d4   : > { %9942 = vst [vmem:[%s15719_s16 + $0xf8] sm:$0xff] %v10661_v2  ;;  %v8664_v10 = vpop.f32.mrb[64].mxu0 }
 0x9d5   : > { %v11827_v58 = vadd.f32 %v8664_v10, %v15695_v7  ;;  %v8666_v11 = vpop.f32.mrb[65].mxu0 }
 0x9d6   : > { %v11828_v30 = vadd.f32 %v8666_v11, %v15700_v44  ;;  %v15984_v61 = vpop.f32.mrb[48].mxu1  ;;  %v8668_v33 = vpop.f32.mrb[66].mxu0 }
 0x9d7   : > { %v11829_v35 = vadd.f32 %v8668_v33, %v15695_v7  ;;  %v15987_v40 = vpop.f32.mrb[49].mxu1  ;;  %v8670_v6 = vpop.f32.mrb[67].mxu0 }
 0x9d8   : > { %16929 = vst [vmem:[#allocation44_spill] sm:$0xff] %v15987_v40  ;;  %v10662_v15 = vpack.c.bf16 %v11828_v30, %v11827_v58  ;;  %v11830_v3 = vadd.f32 %v8670_v6, %v15700_v44  ;;  %v15990_v0 = vpop.f32.mrb[50].mxu1 }
 0x9d9   : > { %16930 = vst [vmem:[#allocation47_spill] sm:$0xff] %v15990_v0  ;;  %v15992_v2 = vpop.f32.mrb[51].mxu1  ;;  %8933 = vmatmul.mubr.bf16.gmra.mrb[172].mxu0 %v15625_v1 }
 0x9da   : > { %16931 = vst [vmem:[#allocation49_spill] sm:$0xff] %v15992_v2  ;;  %9943 = vst [vmem:[%s15719_s16 + $0x100] sm:$0xff] %v10662_v15  ;;  %v10663_v10 = vpack.c.bf16 %v11830_v3, %v11829_v35  ;;  %8942 = vmatprep.mubr.bf16.mxu0 %v16740_v63 }
 0x9dc   : > { %9944 = vst [vmem:[%s15719_s16 + $0x108] sm:$0xff] %v10663_v10  ;;  %v8674_v11 = vpop.f32.mrb[68].mxu0 }
 0x9dd   : > { %v11831_v33 = vadd.f32 %v8674_v11, %v15695_v7  ;;  %v8676_v40 = vpop.f32.mrb[69].mxu0 }
 0x9de   : > { %v11832_v58 = vadd.f32 %v8676_v40, %v15700_v44  ;;  %v16000_v30 = vpop.f32.mrb[52].mxu1  ;;  %v8678_v6 = vpop.f32.mrb[70].mxu0 }
 0x9df   : > { %v11833_v2 = vadd.f32 %v8678_v6, %v15695_v7  ;;  %v16003_v0 = vpop.f32.mrb[53].mxu1  ;;  %v8680_v1 = vpop.f32.mrb[71].mxu0 }
 0x9e0   : > { %16932 = vst [vmem:[#allocation48_spill] sm:$0xff] %v16003_v0  ;;  %v10664_v35 = vpack.c.bf16 %v11832_v58, %v11831_v33  ;;  %v11834_v15 = vadd.f32 %v8680_v1, %v15700_v44  ;;  %v16006_v3 = vpop.f32.mrb[54].mxu1 }
 0x9e1   : > { %16933 = vst [vmem:[#allocation51_spill] sm:$0xff] %v16006_v3  ;;  %v16008_v10 = vpop.f32.mrb[55].mxu1  ;;  %8943 = vmatmul.mubr.bf16.gmra.mrb[176].mxu0 %v15639_v26 }
 0x9e2   : > { %16934 = vst [vmem:[#allocation50_spill] sm:$0xff] %v16008_v10  ;;  %9945 = vst [vmem:[%s15719_s16 + $0x110] sm:$0xff] %v10664_v35  ;;  %v10665_v11 = vpack.c.bf16 %v11834_v15, %v11833_v2  ;;  %8952 = vmatprep.mubr.bf16.mxu0 %v16740_v63 }
 0x9e4   : > { %9946 = vst [vmem:[%s15719_s16 + $0x118] sm:$0xff] %v10665_v11  ;;  %v8684_v40 = vpop.f32.mrb[72].mxu0 }
 0x9e5   : > { %v11835_v6 = vadd.f32 %v8684_v40, %v15695_v7  ;;  %v8686_v0 = vpop.f32.mrb[73].mxu0 }
 0x9e6   : > { %v11836_v33 = vadd.f32 %v8686_v0, %v15700_v44  ;;  %v16016_v58 = vpop.f32.mrb[56].mxu1  ;;  %v8688_v1 = vpop.f32.mrb[74].mxu0 }
 0x9e7   : > { %v11837_v10 = vadd.f32 %v8688_v1, %v15695_v7  ;;  %v16019_v3 = vpop.f32.mrb[57].mxu1  ;;  %v8690_v26 = vpop.f32.mrb[75].mxu0 }
 0x9e8   : > { %16935 = vst [vmem:[#allocation53_spill] sm:$0xff] %v16019_v3  ;;  %v10666_v2 = vpack.c.bf16 %v11836_v33, %v11835_v6  ;;  %v11838_v35 = vadd.f32 %v8690_v26, %v15700_v44  ;;  %v16022_v15 = vpop.f32.mrb[58].mxu1 }
 0x9e9   : > { %16936 = vst [vmem:[#allocation52_spill] sm:$0xff] %v16022_v15  ;;  %v16024_v11 = vpop.f32.mrb[59].mxu1  ;;  %8953 = vmatmul.mubr.bf16.gmra.mrb[180].mxu0 %v15637_v28 }
 0x9ea   : > { %16937 = vst [vmem:[#allocation55_spill] sm:$0xff] %v16024_v11  ;;  %9947 = vst [vmem:[%s15719_s16 + $0x120] sm:$0xff] %v10666_v2  ;;  %v10667_v40 = vpack.c.bf16 %v11838_v35, %v11837_v10  ;;  %8962 = vmatprep.mubr.bf16.mxu0 %v16740_v63 }
 0x9ec   : > { %9948 = vst [vmem:[%s15719_s16 + $0x128] sm:$0xff] %v10667_v40  ;;  %v8694_v0 = vpop.f32.mrb[76].mxu0 }
 0x9ed   : > { %v11839_v1 = vadd.f32 %v8694_v0, %v15695_v7  ;;  %v8696_v3 = vpop.f32.mrb[77].mxu0 }
 0x9ee   : > { %v11840_v6 = vadd.f32 %v8696_v3, %v15700_v44  ;;  %v16032_v33 = vpop.f32.mrb[60].mxu1  ;;  %v8698_v26 = vpop.f32.mrb[78].mxu0 }
 0x9ef   : > { %v11841_v11 = vadd.f32 %v8698_v26, %v15695_v7  ;;  %v16035_v15 = vpop.f32.mrb[61].mxu1  ;;  %v8700_v28 = vpop.f32.mrb[79].mxu0 }
 0x9f0   : > { %16938 = vst [vmem:[#allocation54_spill] sm:$0xff] %v16035_v15  ;;  %v10668_v10 = vpack.c.bf16 %v11840_v6, %v11839_v1  ;;  %v11842_v2 = vadd.f32 %v8700_v28, %v15700_v44  ;;  %v16038_v35 = vpop.f32.mrb[62].mxu1 }
 0x9f1   : > { %16939 = vst [vmem:[#allocation57_spill] sm:$0xff] %v16038_v35  ;;  %v16040_v40 = vpop.f32.mrb[63].mxu1  ;;  %8963 = vmatmul.mubr.bf16.gmra.mrb[184].mxu0 %v15651_v54 }
 0x9f2   : > { %16940 = vst [vmem:[#allocation56_spill] sm:$0xff] %v16040_v40  ;;  %9949 = vst [vmem:[%s15719_s16 + $0x130] sm:$0xff] %v10668_v10  ;;  %v10669_v0 = vpack.c.bf16 %v11842_v2, %v11841_v11  ;;  %8972 = vmatprep.mubr.bf16.mxu0 %v16740_v63 }
 0x9f4   : > { %9950 = vst [vmem:[%s15719_s16 + $0x138] sm:$0xff] %v10669_v0  ;;  %v8704_v3 = vpop.f32.mrb[80].mxu0 }
 0x9f5   : > { %v11843_v26 = vadd.f32 %v8704_v3, %v15695_v7  ;;  %v8706_v15 = vpop.f32.mrb[81].mxu0 }
 0x9f6   : > { %v11844_v1 = vadd.f32 %v8706_v15, %v15700_v44  ;;  %v16048_v6 = vpop.f32.mrb[64].mxu1  ;;  %v8708_v28 = vpop.f32.mrb[82].mxu0 }
 0x9f7   : > { %v11845_v40 = vadd.f32 %v8708_v28, %v15695_v7  ;;  %v16051_v35 = vpop.f32.mrb[65].mxu1  ;;  %v8710_v54 = vpop.f32.mrb[83].mxu0 }
 0x9f8   : > { %16941 = vst [vmem:[#allocation59_spill] sm:$0xff] %v16051_v35  ;;  %v10670_v11 = vpack.c.bf16 %v11844_v1, %v11843_v26  ;;  %v11846_v10 = vadd.f32 %v8710_v54, %v15700_v44  ;;  %v16054_v2 = vpop.f32.mrb[66].mxu1 }
 0x9f9   : > { %16942 = vst [vmem:[#allocation58_spill] sm:$0xff] %v16054_v2  ;;  %v16056_v0 = vpop.f32.mrb[67].mxu1  ;;  %8973 = vmatmul.mubr.bf16.gmra.mrb[188].mxu0 %v15649_v31 }
 0x9fa   : > { %16943 = vst [vmem:[#allocation61_spill] sm:$0xff] %v16056_v0  ;;  %9951 = vst [vmem:[%s15719_s16 + $0x140] sm:$0xff] %v10670_v11  ;;  %v10671_v3 = vpack.c.bf16 %v11846_v10, %v11845_v40  ;;  %8982 = vmatprep.mubr.bf16.mxu0 %v16740_v63 }
 0x9fc   : > { %9952 = vst [vmem:[%s15719_s16 + $0x148] sm:$0xff] %v10671_v3  ;;  %v8714_v15 = vpop.f32.mrb[84].mxu0 }
 0x9fd   : > { %v11847_v28 = vadd.f32 %v8714_v15, %v15695_v7  ;;  %v8716_v35 = vpop.f32.mrb[85].mxu0 }
 0x9fe   : > { %v11848_v26 = vadd.f32 %v8716_v35, %v15700_v44  ;;  %v16064_v1 = vpop.f32.mrb[68].mxu1  ;;  %v8718_v54 = vpop.f32.mrb[86].mxu0 }
 0x9ff   : > { %v11849_v0 = vadd.f32 %v8718_v54, %v15695_v7  ;;  %v16067_v2 = vpop.f32.mrb[69].mxu1  ;;  %v8720_v31 = vpop.f32.mrb[87].mxu0 }
 0xa00   : > { %16944 = vst [vmem:[#allocation60_spill] sm:$0xff] %v16067_v2  ;;  %v10672_v40 = vpack.c.bf16 %v11848_v26, %v11847_v28  ;;  %v11850_v11 = vadd.f32 %v8720_v31, %v15700_v44  ;;  %v16070_v10 = vpop.f32.mrb[70].mxu1 }
 0xa01   : > { %16945 = vst [vmem:[#allocation63_spill] sm:$0xff] %v16070_v10  ;;  %v16072_v3 = vpop.f32.mrb[71].mxu1  ;;  %8983 = vmatmul.mubr.bf16.gmra.mrb[192].mxu0 %v15663_v56 }
 0xa02   : > { %16946 = vst [vmem:[#allocation62_spill] sm:$0xff] %v16072_v3  ;;  %9953 = vst [vmem:[%s15719_s16 + $0x150] sm:$0xff] %v10672_v40  ;;  %v10673_v15 = vpack.c.bf16 %v11850_v11, %v11849_v0  ;;  %8992 = vmatprep.mubr.bf16.mxu0 %v16740_v63 }
 0xa04   : > { %9954 = vst [vmem:[%s15719_s16 + $0x158] sm:$0xff] %v10673_v15  ;;  %v8724_v35 = vpop.f32.mrb[88].mxu0 }
 0xa05   : > { %v11851_v54 = vadd.f32 %v8724_v35, %v15695_v7  ;;  %v8726_v2 = vpop.f32.mrb[89].mxu0 }
 0xa06   : > { %v11852_v28 = vadd.f32 %v8726_v2, %v15700_v44  ;;  %v16080_v26 = vpop.f32.mrb[72].mxu1  ;;  %v8728_v31 = vpop.f32.mrb[90].mxu0 }
 0xa07   : > { %v11853_v3 = vadd.f32 %v8728_v31, %v15695_v7  ;;  %v16083_v10 = vpop.f32.mrb[73].mxu1  ;;  %v8730_v56 = vpop.f32.mrb[91].mxu0 }
 0xa08   : > { %16947 = vst [vmem:[#allocation65_spill] sm:$0xff] %v16083_v10  ;;  %v10674_v0 = vpack.c.bf16 %v11852_v28, %v11851_v54  ;;  %v11854_v40 = vadd.f32 %v8730_v56, %v15700_v44  ;;  %v16086_v11 = vpop.f32.mrb[74].mxu1 }
 0xa09   : > { %16948 = vst [vmem:[#allocation64_spill] sm:$0xff] %v16086_v11  ;;  %v16088_v15 = vpop.f32.mrb[75].mxu1  ;;  %8993 = vmatmul.mubr.bf16.gmra.mrb[196].mxu0 %v15661_v17 }
 0xa0a   : > { %16949 = vst [vmem:[#allocation67_spill] sm:$0xff] %v16088_v15  ;;  %9955 = vst [vmem:[%s15719_s16 + $0x160] sm:$0xff] %v10674_v0  ;;  %v10675_v35 = vpack.c.bf16 %v11854_v40, %v11853_v3  ;;  %9002 = vmatprep.mubr.bf16.mxu0 %v16740_v63 }
 0xa0c   : > { %9956 = vst [vmem:[%s15719_s16 + $0x168] sm:$0xff] %v10675_v35  ;;  %v8734_v2 = vpop.f32.mrb[92].mxu0 }
 0xa0d   : > { %v11855_v31 = vadd.f32 %v8734_v2, %v15695_v7  ;;  %v8736_v10 = vpop.f32.mrb[93].mxu0 }
 0xa0e   : > { %v11856_v54 = vadd.f32 %v8736_v10, %v15700_v44  ;;  %v16096_v28 = vpop.f32.mrb[76].mxu1  ;;  %v8738_v56 = vpop.f32.mrb[94].mxu0 }
 0xa0f   : > { %v11857_v15 = vadd.f32 %v8738_v56, %v15695_v7  ;;  %v16099_v11 = vpop.f32.mrb[77].mxu1  ;;  %v8740_v17 = vpop.f32.mrb[95].mxu0 }
 0xa10   : > { %16950 = vst [vmem:[#allocation66_spill] sm:$0xff] %v16099_v11  ;;  %v10676_v3 = vpack.c.bf16 %v11856_v54, %v11855_v31  ;;  %v11858_v0 = vadd.f32 %v8740_v17, %v15700_v44  ;;  %v16102_v40 = vpop.f32.mrb[78].mxu1 }
 0xa11   : > { %16951 = vst [vmem:[#allocation69_spill] sm:$0xff] %v16102_v40  ;;  %v16104_v35 = vpop.f32.mrb[79].mxu1  ;;  %9003 = vmatmul.mubr.bf16.gmra.mrb[200].mxu0 %v15675_v41 }
 0xa12   : > { %16952 = vst [vmem:[#allocation68_spill] sm:$0xff] %v16104_v35  ;;  %9957 = vst [vmem:[%s15719_s16 + $0x170] sm:$0xff] %v10676_v3  ;;  %v10677_v2 = vpack.c.bf16 %v11858_v0, %v11857_v15  ;;  %9012 = vmatprep.mubr.bf16.mxu0 %v16740_v63 }
 0xa14   : > { %9958 = vst [vmem:[%s15719_s16 + $0x178] sm:$0xff] %v10677_v2  ;;  %v8744_v10 = vpop.f32.mrb[96].mxu0 }
 0xa15   : > { %v11859_v56 = vadd.f32 %v8744_v10, %v15695_v7  ;;  %v8746_v11 = vpop.f32.mrb[97].mxu0 }
 0xa16   : > { %v11860_v31 = vadd.f32 %v8746_v11, %v15700_v44  ;;  %v16112_v54 = vpop.f32.mrb[80].mxu1  ;;  %v8748_v17 = vpop.f32.mrb[98].mxu0 }
 0xa17   : > { %v11861_v35 = vadd.f32 %v8748_v17, %v15695_v7  ;;  %v16115_v40 = vpop.f32.mrb[81].mxu1  ;;  %v8750_v41 = vpop.f32.mrb[99].mxu0 }
 0xa18   : > { %16953 = vst [vmem:[#allocation71_spill] sm:$0xff] %v16115_v40  ;;  %v10678_v15 = vpack.c.bf16 %v11860_v31, %v11859_v56  ;;  %v11862_v3 = vadd.f32 %v8750_v41, %v15700_v44  ;;  %v16118_v0 = vpop.f32.mrb[82].mxu1 }
 0xa19   : > { %16954 = vst [vmem:[#allocation70_spill] sm:$0xff] %v16118_v0  ;;  %v16120_v2 = vpop.f32.mrb[83].mxu1  ;;  %9013 = vmatmul.mubr.bf16.gmra.mrb[204].mxu0 %v15673_v47 }
 0xa1a   : > { %16955 = vst [vmem:[#allocation73_spill] sm:$0xff] %v16120_v2  ;;  %9959 = vst [vmem:[%s15719_s16 + $0x180] sm:$0xff] %v10678_v15  ;;  %v10679_v10 = vpack.c.bf16 %v11862_v3, %v11861_v35  ;;  %9022 = vmatprep.mubr.bf16.mxu0 %v16740_v63 }
 0xa1c   : > { %9960 = vst [vmem:[%s15719_s16 + $0x188] sm:$0xff] %v10679_v10  ;;  %v8754_v11 = vpop.f32.mrb[100].mxu0 }
 0xa1d   : > { %v11863_v17 = vadd.f32 %v8754_v11, %v15695_v7  ;;  %v8756_v40 = vpop.f32.mrb[101].mxu0 }
 0xa1e   : > { %v11864_v56 = vadd.f32 %v8756_v40, %v15700_v44  ;;  %v16128_v31 = vpop.f32.mrb[84].mxu1  ;;  %v8758_v41 = vpop.f32.mrb[102].mxu0 }
 0xa1f   : > { %v11865_v2 = vadd.f32 %v8758_v41, %v15695_v7  ;;  %v16131_v0 = vpop.f32.mrb[85].mxu1  ;;  %v8760_v47 = vpop.f32.mrb[103].mxu0 }
 0xa20   : > { %16956 = vst [vmem:[#allocation72_spill] sm:$0xff] %v16131_v0  ;;  %v10680_v35 = vpack.c.bf16 %v11864_v56, %v11863_v17  ;;  %v11866_v15 = vadd.f32 %v8760_v47, %v15700_v44  ;;  %v16134_v3 = vpop.f32.mrb[86].mxu1 }
 0xa21   : > { %16957 = vst [vmem:[#allocation75_spill] sm:$0xff] %v16134_v3  ;;  %v16136_v10 = vpop.f32.mrb[87].mxu1  ;;  %9023 = vmatmul.mubr.bf16.gmra.mrb[208].mxu0 %v15687_v9 }
 0xa22   : > { %16958 = vst [vmem:[#allocation74_spill] sm:$0xff] %v16136_v10  ;;  %9961 = vst [vmem:[%s15719_s16 + $0x190] sm:$0xff] %v10680_v35  ;;  %v10681_v11 = vpack.c.bf16 %v11866_v15, %v11865_v2  ;;  %9032 = vmatprep.mubr.bf16.mxu0 %v16740_v63 }
 0xa24   : > { %9962 = vst [vmem:[%s15719_s16 + $0x198] sm:$0xff] %v10681_v11  ;;  %v8764_v40 = vpop.f32.mrb[104].mxu0 }
 0xa25   : > { %v11867_v41 = vadd.f32 %v8764_v40, %v15695_v7  ;;  %v8766_v0 = vpop.f32.mrb[105].mxu0 }
 0xa26   : > { %v11868_v17 = vadd.f32 %v8766_v0, %v15700_v44  ;;  %v16144_v56 = vpop.f32.mrb[88].mxu1  ;;  %v8768_v47 = vpop.f32.mrb[106].mxu0 }
 0xa27   : > { %v11869_v10 = vadd.f32 %v8768_v47, %v15695_v7  ;;  %v16147_v3 = vpop.f32.mrb[89].mxu1  ;;  %v8770_v9 = vpop.f32.mrb[107].mxu0 }
 0xa28   : > { %16959 = vst [vmem:[#allocation77_spill] sm:$0xff] %v16147_v3  ;;  %v10682_v2 = vpack.c.bf16 %v11868_v17, %v11867_v41  ;;  %v11870_v35 = vadd.f32 %v8770_v9, %v15700_v44  ;;  %v16150_v15 = vpop.f32.mrb[90].mxu1 }
 0xa29   : > { %16960 = vst [vmem:[#allocation76_spill] sm:$0xff] %v16150_v15  ;;  %v16152_v11 = vpop.f32.mrb[91].mxu1  ;;  %9033 = vmatmul.mubr.bf16.gmra.mrb[212].mxu0 %v15685_v52 }
 0xa2a   : > { %16961 = vst [vmem:[#allocation79_spill] sm:$0xff] %v16152_v11  ;;  %9963 = vst [vmem:[%s15719_s16 + $0x1a0] sm:$0xff] %v10682_v2  ;;  %v10683_v40 = vpack.c.bf16 %v11870_v35, %v11869_v10  ;;  %9042 = vmatprep.mubr.bf16.mxu0 %v16740_v63 }
 0xa2c   : > { %9964 = vst [vmem:[%s15719_s16 + $0x1a8] sm:$0xff] %v10683_v40  ;;  %v8774_v0 = vpop.f32.mrb[108].mxu0 }
 0xa2d   : > { %v11871_v47 = vadd.f32 %v8774_v0, %v15695_v7  ;;  %v8776_v3 = vpop.f32.mrb[109].mxu0 }
 0xa2e   : > { %v11872_v41 = vadd.f32 %v8776_v3, %v15700_v44  ;;  %v16160_v17 = vpop.f32.mrb[92].mxu1  ;;  %v8778_v9 = vpop.f32.mrb[110].mxu0 }
 0xa2f   : > { %v11873_v11 = vadd.f32 %v8778_v9, %v15695_v7  ;;  %v16163_v15 = vpop.f32.mrb[93].mxu1  ;;  %v8780_v52 = vpop.f32.mrb[111].mxu0 }
 0xa30   : > { %16962 = vst [vmem:[#allocation78_spill] sm:$0xff] %v16163_v15  ;;  %v10684_v10 = vpack.c.bf16 %v11872_v41, %v11871_v47  ;;  %v11874_v2 = vadd.f32 %v8780_v52, %v15700_v44  ;;  %v16166_v35 = vpop.f32.mrb[94].mxu1 }
 0xa31   : > { %16963 = vst [vmem:[#allocation81_spill] sm:$0xff] %v16166_v35  ;;  %v16168_v40 = vpop.f32.mrb[95].mxu1  ;;  %9043 = vmatmul.mubr.bf16.gmra.mrb[216].mxu0 %v15708_v49 }
 0xa32   : > { %16964 = vst [vmem:[#allocation80_spill] sm:$0xff] %v16168_v40  ;;  %9965 = vst [vmem:[%s15719_s16 + $0x1b0] sm:$0xff] %v10684_v10  ;;  %v10685_v0 = vpack.c.bf16 %v11874_v2, %v11873_v11  ;;  %9052 = vmatprep.mubr.bf16.mxu0 %v16740_v63 }
 0xa34   : > { %9966 = vst [vmem:[%s15719_s16 + $0x1b8] sm:$0xff] %v10685_v0  ;;  %v8784_v3 = vpop.f32.mrb[112].mxu0 }
 0xa35   : > { %v11875_v9 = vadd.f32 %v8784_v3, %v15695_v7  ;;  %v8786_v15 = vpop.f32.mrb[113].mxu0 }
 0xa36   : > { %v11876_v47 = vadd.f32 %v8786_v15, %v15700_v44  ;;  %v16176_v41 = vpop.f32.mrb[96].mxu1  ;;  %v8788_v52 = vpop.f32.mrb[114].mxu0 }
 0xa37   : > { %v11877_v40 = vadd.f32 %v8788_v52, %v15695_v7  ;;  %v16179_v35 = vpop.f32.mrb[97].mxu1  ;;  %v8790_v49 = vpop.f32.mrb[115].mxu0 }
 0xa38   : > { %16965 = vst [vmem:[#allocation82_spill] sm:$0xff] %v16179_v35  ;;  %v10686_v11 = vpack.c.bf16 %v11876_v47, %v11875_v9  ;;  %v11878_v10 = vadd.f32 %v8790_v49, %v15700_v44  ;;  %v16182_v2 = vpop.f32.mrb[98].mxu1 }
 0xa39   : > { %16966 = vst [vmem:[#allocation25_spill] sm:$0xff] %v16182_v2  ;;  %v16184_v0 = vpop.f32.mrb[99].mxu1  ;;  %9053 = vmatmul.mubr.bf16.gmra.mrb[220].mxu0 %v15705_v21 }
 0xa3a   : > { %16967 = vst [vmem:[#allocation84_spill] sm:$0xff] %v16184_v0  ;;  %9967 = vst [vmem:[%s15719_s16 + $0x1c0] sm:$0xff] %v10686_v11  ;;  %v10687_v3 = vpack.c.bf16 %v11878_v10, %v11877_v40  ;;  %9062 = vmatprep.mubr.bf16.mxu0 %v16740_v63 }
 0xa3c   : > { %9968 = vst [vmem:[%s15719_s16 + $0x1c8] sm:$0xff] %v10687_v3  ;;  %v8794_v15 = vpop.f32.mrb[116].mxu0 }
 0xa3d   : > { %v11879_v52 = vadd.f32 %v8794_v15, %v15695_v7  ;;  %v8796_v35 = vpop.f32.mrb[117].mxu0 }
 0xa3e   : > { %v11880_v9 = vadd.f32 %v8796_v35, %v15700_v44  ;;  %v16192_v47 = vpop.f32.mrb[100].mxu1  ;;  %v8798_v49 = vpop.f32.mrb[118].mxu0 }
 0xa3f   : > { %v11881_v0 = vadd.f32 %v8798_v49, %v15695_v7  ;;  %v16195_v2 = vpop.f32.mrb[101].mxu1  ;;  %v8800_v21 = vpop.f32.mrb[119].mxu0 }
 0xa40   : > { %16968 = vst [vmem:[#allocation83_spill] sm:$0xff] %v16195_v2  ;;  %v10688_v40 = vpack.c.bf16 %v11880_v9, %v11879_v52  ;;  %v11882_v11 = vadd.f32 %v8800_v21, %v15700_v44  ;;  %v16198_v10 = vpop.f32.mrb[102].mxu1 }
 0xa41   : > { %16969 = vst [vmem:[#allocation86_spill] sm:$0xff] %v16198_v10  ;;  %v16200_v3 = vpop.f32.mrb[103].mxu1  ;;  %9063 = vmatmul.mubr.bf16.gmra.mrb[224].mxu0 %v15730_v59 }
 0xa42   : > { %16970 = vst [vmem:[#allocation85_spill] sm:$0xff] %v16200_v3  ;;  %9969 = vst [vmem:[%s15719_s16 + $0x1d0] sm:$0xff] %v10688_v40  ;;  %v10689_v15 = vpack.c.bf16 %v11882_v11, %v11881_v0  ;;  %9072 = vmatprep.mubr.bf16.mxu0 %v16740_v63 }
 0xa44   : > { %9970 = vst [vmem:[%s15719_s16 + $0x1d8] sm:$0xff] %v10689_v15  ;;  %v8804_v35 = vpop.f32.mrb[120].mxu0 }
 0xa45   : > { %v11883_v49 = vadd.f32 %v8804_v35, %v15695_v7  ;;  %v8806_v2 = vpop.f32.mrb[121].mxu0 }
 0xa46   : > { %v11884_v52 = vadd.f32 %v8806_v2, %v15700_v44  ;;  %v16208_v9 = vpop.f32.mrb[104].mxu1  ;;  %v8808_v21 = vpop.f32.mrb[122].mxu0 }
 0xa47   : > { %v11885_v3 = vadd.f32 %v8808_v21, %v15695_v7  ;;  %v16211_v10 = vpop.f32.mrb[105].mxu1  ;;  %v8810_v59 = vpop.f32.mrb[123].mxu0 }
 0xa48   : > { %16971 = vst [vmem:[#allocation88_spill] sm:$0xff] %v16211_v10  ;;  %v10690_v0 = vpack.c.bf16 %v11884_v52, %v11883_v49  ;;  %v11886_v40 = vadd.f32 %v8810_v59, %v15700_v44  ;;  %v16214_v11 = vpop.f32.mrb[106].mxu1 }
 0xa49   : > { %16972 = vst [vmem:[#allocation87_spill] sm:$0xff] %v16214_v11  ;;  %v16216_v15 = vpop.f32.mrb[107].mxu1  ;;  %9073 = vmatmul.mubr.bf16.gmra.mrb[228].mxu0 %v15727_v48 }
 0xa4a   : > { %16973 = vst [vmem:[#allocation90_spill] sm:$0xff] %v16216_v15  ;;  %9971 = vst [vmem:[%s15719_s16 + $0x1e0] sm:$0xff] %v10690_v0  ;;  %v10691_v35 = vpack.c.bf16 %v11886_v40, %v11885_v3  ;;  %9082 = vmatprep.mubr.bf16.mxu0 %v16740_v63 }
 0xa4c   : > { %9972 = vst [vmem:[%s15719_s16 + $0x1e8] sm:$0xff] %v10691_v35  ;;  %v8814_v2 = vpop.f32.mrb[124].mxu0 }
 0xa4d   : > { %v11887_v21 = vadd.f32 %v8814_v2, %v15695_v7  ;;  %v8816_v10 = vpop.f32.mrb[125].mxu0 }
 0xa4e   : > { %v11888_v49 = vadd.f32 %v8816_v10, %v15700_v44  ;;  %v16224_v52 = vpop.f32.mrb[108].mxu1  ;;  %v8818_v59 = vpop.f32.mrb[126].mxu0 }
 0xa4f   : > { %v11889_v15 = vadd.f32 %v8818_v59, %v15695_v7  ;;  %v16227_v11 = vpop.f32.mrb[109].mxu1  ;;  %v8820_v48 = vpop.f32.mrb[127].mxu0 }
 0xa50   : > { %16974 = vst [vmem:[#allocation89_spill] sm:$0xff] %v16227_v11  ;;  %v10692_v3 = vpack.c.bf16 %v11888_v49, %v11887_v21  ;;  %v11890_v0 = vadd.f32 %v8820_v48, %v15700_v44  ;;  %v16230_v40 = vpop.f32.mrb[110].mxu1 }
 0xa51   : > { %16975 = vst [vmem:[#allocation92_spill] sm:$0xff] %v16230_v40  ;;  %v16232_v35 = vpop.f32.mrb[111].mxu1  ;;  %9083 = vmatmul.mubr.bf16.gmra.mrb[232].mxu0 %v15748_v55 }
 0xa52   : > { %16976 = vst [vmem:[#allocation91_spill] sm:$0xff] %v16232_v35  ;;  %9973 = vst [vmem:[%s15719_s16 + $0x1f0] sm:$0xff] %v10692_v3  ;;  %v10693_v2 = vpack.c.bf16 %v11890_v0, %v11889_v15  ;;  %9092 = vmatprep.mubr.bf16.mxu0 %v16740_v63 }
 0xa54   : > { %9974 = vst [vmem:[%s15719_s16 + $0x1f8] sm:$0xff] %v10693_v2  ;;  %v8824_v10 = vpop.f32.mrb[128].mxu0 }
 0xa55   : > { %v11891_v59 = vadd.f32 %v8824_v10, %v15695_v7  ;;  %v8826_v11 = vpop.f32.mrb[129].mxu0 }
 0xa56   : > { %v11892_v21 = vadd.f32 %v8826_v11, %v15700_v44  ;;  %v16240_v49 = vpop.f32.mrb[112].mxu1  ;;  %v8828_v48 = vpop.f32.mrb[130].mxu0 }
 0xa57   : > { %v11893_v35 = vadd.f32 %v8828_v48, %v15695_v7  ;;  %v16243_v40 = vpop.f32.mrb[113].mxu1  ;;  %v8830_v55 = vpop.f32.mrb[131].mxu0 }
 0xa58   : > { %16977 = vst [vmem:[#allocation94_spill] sm:$0xff] %v16243_v40  ;;  %v10694_v15 = vpack.c.bf16 %v11892_v21, %v11891_v59  ;;  %v11894_v3 = vadd.f32 %v8830_v55, %v15700_v44  ;;  %v16246_v0 = vpop.f32.mrb[114].mxu1 }
 0xa59   : > { %16978 = vst [vmem:[#allocation93_spill] sm:$0xff] %v16246_v0  ;;  %v16248_v2 = vpop.f32.mrb[115].mxu1  ;;  %9093 = vmatmul.mubr.bf16.gmra.mrb[236].mxu0 %v15745_v60 }
 0xa5a   : > { %16979 = vst [vmem:[#allocation96_spill] sm:$0xff] %v16248_v2  ;;  %9975 = vst [vmem:[%s15719_s16 + $0x200] sm:$0xff] %v10694_v15  ;;  %v10695_v10 = vpack.c.bf16 %v11894_v3, %v11893_v35  ;;  %9102 = vmatprep.mubr.bf16.mxu0 %v16740_v63 }
 0xa5c   : > { %9976 = vst [vmem:[%s15719_s16 + $0x208] sm:$0xff] %v10695_v10  ;;  %v8834_v11 = vpop.f32.mrb[132].mxu0 }
 0xa5d   : > { %v11895_v48 = vadd.f32 %v8834_v11, %v15695_v7  ;;  %v8836_v40 = vpop.f32.mrb[133].mxu0  ;;  %v7499_v11 = vadd.f32 %v15787_v50, %v15695_v7 }
 0xa5e   : > { %v11896_v59 = vadd.f32 %v8836_v40, %v15700_v44  ;;  %v16256_v21 = vpop.f32.mrb[116].mxu1  ;;  %v8838_v55 = vpop.f32.mrb[134].mxu0 }
 0xa5f   : > { %v11897_v2 = vadd.f32 %v8838_v55, %v15695_v7  ;;  %v16259_v0 = vpop.f32.mrb[117].mxu1  ;;  %v8840_v60 = vpop.f32.mrb[135].mxu0  ;;  %v7501_v55 = vadd.f32 %v15790_v34, %v15700_v44 }
 0xa60   : > { %16980 = vst [vmem:[#allocation95_spill] sm:$0xff] %v16259_v0  ;;  %v10696_v35 = vpack.c.bf16 %v11896_v59, %v11895_v48  ;;  %v11898_v15 = vadd.f32 %v8840_v60, %v15700_v44  ;;  %v16262_v3 = vpop.f32.mrb[118].mxu1  ;;  %v7503_v59 = vadd.f32 %v15793_v43, %v15695_v7  ;;  %v7509_v43 = vadd.f32 %v15805_v4, %v15695_v7 }
 0xa61   : > { %16981 = vst [vmem:[#allocation98_spill] sm:$0xff] %v16262_v3  ;;  %v16264_v10 = vpop.f32.mrb[119].mxu1  ;;  %9103 = vmatmul.mubr.bf16.gmra.mrb[240].mxu0 %v15766_v14  ;;  %v7505_v14 = vadd.f32 %v15795_v38, %v15700_v44 }
 0xa62   : > { %16982 = vst [vmem:[#allocation97_spill] sm:$0xff] %v16264_v10  ;;  %9977 = vst [vmem:[%s15719_s16 + $0x210] sm:$0xff] %v10696_v35  ;;  %v10697_v40 = vpack.c.bf16 %v11898_v15, %v11897_v2  ;;  %9112 = vmatprep.mubr.bf16.mxu0 %v16740_v63 }
 0xa64   : > { %9978 = vst [vmem:[%s15719_s16 + $0x218] sm:$0xff] %v10697_v40  ;;  %v8844_v48 = vpop.f32.mrb[136].mxu0  ;;  %v7511_v40 = vadd.f32 %v15808_v36, %v15700_v44 }
 0xa65   : > { %v11900_v60 = vadd.f32 %v8844_v48, %v7499_v11  ;;  %v8846_v10 = vpop.f32.mrb[137].mxu0 }
 0xa66   : > { %v11902_v2 = vadd.f32 %v8846_v10, %v7501_v55  ;;  %v8848_v35 = vpop.f32.mrb[138].mxu0  ;;  %v7513_v10 = vadd.f32 %v15811_v57, %v15695_v7  ;;  %v7519_v57 = vadd.f32 %v15823_v37, %v15695_v7 }
 0xa67   : > { %v11904_v15 = vadd.f32 %v8848_v35, %v7503_v59  ;;  %v8850_v3 = vpop.f32.mrb[139].mxu0 }
 0xa68   : > { %v10698_v0 = vpack.c.bf16 %v11902_v2, %v11900_v60  ;;  %v11906_v50 = vadd.f32 %v8850_v3, %v7505_v14  ;;  %v7521_v14 = vadd.f32 %v15826_v12, %v15700_v44  ;;  %v7523_v2 = vadd.f32 %v15829_v25, %v15695_v7 }
 0xa69   : > { %9113 = vmatmul.mubr.bf16.gmra.mrb[244].mxu0 %v15763_v8  ;;  %v7515_v8 = vadd.f32 %v15813_v42, %v15700_v44  ;;  %v7531_v25 = vadd.f32 %v15843_v16, %v15700_v44 }
 0xa6a   : > { %9979 = vst [vmem:[%s15719_s16 + $0x220] sm:$0xff] %v10698_v0  ;;  %v10699_v34 = vpack.c.bf16 %v11906_v50, %v11904_v15  ;;  %9122 = vmatprep.mubr.bf16.mxu0 %v16740_v63 }
 0xa6c   : > { %9980 = vst [vmem:[%s15719_s16 + $0x228] sm:$0xff] %v10699_v34  ;;  %v8854_v38 = vpop.f32.mrb[140].mxu0 }
 0xa6d   : > { %v11908_v3 = vadd.f32 %v8854_v38, %v7509_v43  ;;  %v8856_v11 = vpop.f32.mrb[141].mxu0  ;;  %v7529_v38 = vadd.f32 %v15840_v5, %v15695_v7 }
 0xa6e   : > { %v11910_v0 = vadd.f32 %v8856_v11, %v7511_v40  ;;  %v8858_v55 = vpop.f32.mrb[142].mxu0 }
 0xa6f   : > { %v11912_v48 = vadd.f32 %v8858_v55, %v7513_v10  ;;  %v8860_v59 = vpop.f32.mrb[143].mxu0  ;;  %v7533_v10 = vadd.f32 %v15846_v20, %v15695_v7  ;;  %v7541_v20 = vadd.f32 %v15859_v53, %v15700_v44 }
 0xa70   : > { %v10700_v60 = vpack.c.bf16 %v11910_v0, %v11908_v3  ;;  %v11914_v4 = vadd.f32 %v8860_v59, %v7515_v8 }
 0xa71   : > { %9123 = vmatmul.mubr.bf16.gmra.mrb[248].mxu0 %v15784_v46  ;;  %v7525_v46 = vadd.f32 %v15831_v32, %v15700_v44 }
 0xa72   : > { %9981 = vst [vmem:[%s15719_s16 + $0x230] sm:$0xff] %v10700_v60  ;;  %v10701_v36 = vpack.c.bf16 %v11914_v4, %v11912_v48  ;;  %9132 = vmatprep.mubr.bf16.mxu0 %v16740_v63  ;;  %v7539_v60 = vadd.f32 %v15856_v22, %v15695_v7 }
 0xa74   : > { %9982 = vst [vmem:[%s15719_s16 + $0x238] sm:$0xff] %v10701_v36  ;;  %v8864_v42 = vpop.f32.mrb[144].mxu0 }
 0xa75   : > { %v11916_v35 = vadd.f32 %v8864_v42, %v7519_v57  ;;  %v8866_v15 = vpop.f32.mrb[145].mxu0 }
 0xa76   : > { %v11918_v50 = vadd.f32 %v8866_v15, %v7521_v14  ;;  %v8868_v63 = vpop.f32.mrb[146].mxu0  ;;  %v7545_v14 = vadd.f32 %v15864_v27, %v15700_v44  ;;  %v16984_v27 = vld [vmem:[#allocation46_spill] sm:$0xff] }
 0xa77   : > { %v11920_v34 = vadd.f32 %v8868_v63, %v7523_v2  ;;  %v8870_v43 = vpop.f32.mrb[147].mxu0  ;;  %v16983_v63 = vld [vmem:[#allocation39_spill] sm:$0xff] }
 0xa78   : > { %v10702_v40 = vpack.c.bf16 %v11918_v50, %v11916_v35  ;;  %v11922_v37 = vadd.f32 %v8870_v43, %v7525_v46  ;;  %v7549_v50 = vadd.f32 %v15872_v39, %v15695_v7  ;;  %v7553_v43 = vadd.f32 %v16984_v27, %v15695_v7 }
 0xa79   : > { %9133 = vmatmul.mubr.bf16.gmra.mrb[252].mxu0 %v15781_v29  ;;  %v7535_v29 = vadd.f32 %v15848_v23, %v15700_v44  ;;  %v7543_v23 = vadd.f32 %v15862_v13, %v15695_v7  ;;  %v7551_v13 = vadd.f32 %v16983_v63, %v15700_v44 }
 0xa7a   : > { %9983 = vst [vmem:[%s15719_s16 + $0x240] sm:$0xff] %v10702_v40  ;;  %v10703_v12 = vpack.c.bf16 %v11922_v37, %v11920_v34 }
 0xa7c   : > { %9984 = vst [vmem:[%s15719_s16 + $0x248] sm:$0xff] %v10703_v12  ;;  %v8874_v32 = vpop.f32.mrb[148].mxu0  ;;  %v16985_v12 = vld [vmem:[#allocation24_spill] sm:$0xff] }
 0xa7d   : > { %v11924_v3 = vadd.f32 %v8874_v32, %v7529_v38  ;;  %v8876_v11 = vpop.f32.mrb[149].mxu0  ;;  %v7555_v38 = vadd.f32 %v16985_v12, %v15700_v44 }
 0xa7e   : > { %v11926_v8 = vadd.f32 %v8876_v11, %v7531_v25  ;;  %v8878_v0 = vpop.f32.mrb[150].mxu0 }
 0xa7f   : > { %v11928_v55 = vadd.f32 %v8878_v0, %v7533_v10  ;;  %v8880_v48 = vpop.f32.mrb[151].mxu0  ;;  %v16986_v0 = vld [vmem:[#allocation27_spill] sm:$0xff] }
 0xa80   : > { %v10704_v59 = vpack.c.bf16 %v11926_v8, %v11924_v3  ;;  %v11930_v5 = vadd.f32 %v8880_v48, %v7535_v29  ;;  %v7559_v8 = vadd.f32 %v15888_v51, %v15695_v7 }
 0xa82   : > { %9985 = vst [vmem:[%s15719_s16 + $0x250] sm:$0xff] %v10704_v59  ;;  %v10705_v16 = vpack.c.bf16 %v11930_v5, %v11928_v55  ;;  %v7561_v55 = vadd.f32 %v16986_v0, %v15700_v44  ;;  %v16987_v59 = vld [vmem:[#allocation26_spill] sm:$0xff] }
 0xa83   : > { %v7563_v5 = vadd.f32 %v16987_v59, %v15695_v7 }
 0xa84   : > { %9986 = vst [vmem:[%s15719_s16 + $0x258] sm:$0xff] %v10705_v16  ;;  %v8884_v4 = vpop.f32.mrb[152].mxu0 }
 0xa85   : > { %v11932_v36 = vadd.f32 %v8884_v4, %v7539_v60  ;;  %v8886_v57 = vpop.f32.mrb[153].mxu0 }
 0xa86   : > { %v11934_v42 = vadd.f32 %v8886_v57, %v7541_v20  ;;  %v8888_v2 = vpop.f32.mrb[154].mxu0  ;;  %v16988_v20 = vld [vmem:[#allocation29_spill] sm:$0xff] }
 0xa87   : > { %v11936_v35 = vadd.f32 %v8888_v2, %v7543_v23  ;;  %v8890_v15 = vpop.f32.mrb[155].mxu0  ;;  %v7565_v4 = vadd.f32 %v16988_v20, %v15700_v44 }
 0xa88   : > { %v10706_v46 = vpack.c.bf16 %v11934_v42, %v11932_v36  ;;  %v11938_v22 = vadd.f32 %v8890_v15, %v7545_v14  ;;  %v16989_v15 = vld [vmem:[#allocation28_spill] sm:$0xff] }
 0xa8a   : > { %9987 = vst [vmem:[%s15719_s16 + $0x260] sm:$0xff] %v10706_v46  ;;  %v10707_v53 = vpack.c.bf16 %v11938_v22, %v11936_v35  ;;  %v7569_v35 = vadd.f32 %v15904_v62, %v15695_v7  ;;  %v7571_v46 = vadd.f32 %v16989_v15, %v15700_v44  ;;  %v16997_v15 = vld [vmem:[#allocation36_spill] sm:$0xff] }
 0xa8c   : > { %9988 = vst [vmem:[%s15719_s16 + $0x268] sm:$0xff] %v10707_v53  ;;  %v8894_v34 = vpop.f32.mrb[156].mxu0  ;;  %v16990_v53 = vld [vmem:[#allocation31_spill] sm:$0xff] }
 0xa8d   : > { %v11940_v40 = vadd.f32 %v8894_v34, %v7549_v50  ;;  %v8896_v37 = vpop.f32.mrb[157].mxu0  ;;  %v7573_v50 = vadd.f32 %v16990_v53, %v15695_v7  ;;  %v16991_v34 = vld [vmem:[#allocation30_spill] sm:$0xff] }
 0xa8e   : > { %v11942_v25 = vadd.f32 %v8896_v37, %v7551_v13  ;;  %v8898_v32 = vpop.f32.mrb[158].mxu0  ;;  %v7575_v27 = vadd.f32 %v16991_v34, %v15700_v44 }
 0xa8f   : > { %v11944_v10 = vadd.f32 %v8898_v32, %v7553_v43  ;;  %v8900_v3 = vpop.f32.mrb[159].mxu0  ;;  %v7579_v32 = vadd.f32 %v15920_v18, %v15695_v7 }
 0xa90   : > { %v10708_v11 = vpack.c.bf16 %v11942_v25, %v11940_v40  ;;  %v11946_v39 = vadd.f32 %v8900_v3, %v7555_v38 }
 0xa92   : > { %9989 = vst [vmem:[%s15719_s16 + $0x270] sm:$0xff] %v10708_v11  ;;  %v10709_v29 = vpack.c.bf16 %v11946_v39, %v11944_v10  ;;  %v16992_v10 = vld [vmem:[#allocation33_spill] sm:$0xff]  ;;  %v16993_v39 = vld [vmem:[#allocation32_spill] sm:$0xff] }
 0xa93   : > { %v7581_v3 = vadd.f32 %v16992_v10, %v15700_v44 }
 0xa94   : > { %9990 = vst [vmem:[%s15719_s16 + $0x278] sm:$0xff] %v10709_v29  ;;  %v8904_v48 = vpop.f32.mrb[160].mxu0  ;;  %v7583_v29 = vadd.f32 %v16993_v39, %v15695_v7 }
 0xa95   : > { %v11948_v16 = vadd.f32 %v8904_v48, %v7559_v8  ;;  %v8906_v60 = vpop.f32.mrb[161].mxu0 }
 0xa96   : > { %v11950_v23 = vadd.f32 %v8906_v60, %v7561_v55  ;;  %v8908_v36 = vpop.f32.mrb[162].mxu0  ;;  %v16994_v55 = vld [vmem:[#allocation35_spill] sm:$0xff] }
 0xa97   : > { %v11952_v57 = vadd.f32 %v8908_v36, %v7563_v5  ;;  %v8910_v14 = vpop.f32.mrb[163].mxu0  ;;  %v7585_v48 = vadd.f32 %v16994_v55, %v15700_v44  ;;  %v16995_v36 = vld [vmem:[#allocation34_spill] sm:$0xff]  ;;  %v7609_v55 = vadd.f32 %v15968_v19, %v15695_v7 }
 0xa98   : > { %v10710_v42 = vpack.c.bf16 %v11950_v23, %v11948_v16  ;;  %v11954_v51 = vadd.f32 %v8910_v14, %v7565_v4  ;;  %v7589_v23 = vadd.f32 %v15936_v45, %v15695_v7 }
 0xa9a   : > { %9991 = vst [vmem:[%s15719_s16 + $0x280] sm:$0xff] %v10710_v42  ;;  %v10711_v2 = vpack.c.bf16 %v11954_v51, %v11952_v57  ;;  %v7591_v57 = vadd.f32 %v16995_v36, %v15700_v44  ;;  %v16996_v42 = vld [vmem:[#allocation37_spill] sm:$0xff] }
 0xa9b   : > { %v7593_v51 = vadd.f32 %v16996_v42, %v15695_v7 }
 0xa9c   : > { %9992 = vst [vmem:[%s15719_s16 + $0x288] sm:$0xff] %v10711_v2  ;;  %v8914_v22 = vpop.f32.mrb[164].mxu0 }
 0xa9d   : > { %v11956_v63 = vadd.f32 %v8914_v22, %v7569_v35  ;;  %v8916_v13 = vpop.f32.mrb[165].mxu0 }
 0xa9e   : > { %v11958_v43 = vadd.f32 %v8916_v13, %v7571_v46  ;;  %v8918_v40 = vpop.f32.mrb[166].mxu0  ;;  %v7595_v46 = vadd.f32 %v16997_v15, %v15700_v44  ;;  %v17004_v15 = vld [vmem:[#allocation44_spill] sm:$0xff] }
 0xa9f   : > { %v11960_v37 = vadd.f32 %v8918_v40, %v7573_v50  ;;  %v8920_v12 = vpop.f32.mrb[167].mxu0 }
 0xaa0   : > { %v10712_v38 = vpack.c.bf16 %v11958_v43, %v11956_v63  ;;  %v11962_v62 = vadd.f32 %v8920_v12, %v7575_v27  ;;  %v7599_v27 = vadd.f32 %v15952_v24, %v15695_v7  ;;  %v16998_v43 = vld [vmem:[#allocation38_spill] sm:$0xff]  ;;  %v16999_v12 = vld [vmem:[#allocation41_spill] sm:$0xff] }
 0xaa1   : > { %v7601_v40 = vadd.f32 %v16998_v43, %v15700_v44 }
 0xaa2   : > { %9993 = vst [vmem:[%s15719_s16 + $0x290] sm:$0xff] %v10712_v38  ;;  %v10713_v25 = vpack.c.bf16 %v11962_v62, %v11960_v37  ;;  %v7603_v38 = vadd.f32 %v16999_v12, %v15695_v7 }
 0xaa4   : > { %9994 = vst [vmem:[%s15719_s16 + $0x298] sm:$0xff] %v10713_v25  ;;  %v8924_v11 = vpop.f32.mrb[168].mxu0 }
 0xaa5   : > { %v11964_v8 = vadd.f32 %v8924_v11, %v7579_v32  ;;  %v8926_v0 = vpop.f32.mrb[169].mxu0  ;;  %v17000_v32 = vld [vmem:[#allocation40_spill] sm:$0xff] }
 0xaa6   : > { %v11966_v59 = vadd.f32 %v8926_v0, %v7581_v3  ;;  %v8928_v5 = vpop.f32.mrb[170].mxu0  ;;  %v7605_v10 = vadd.f32 %v17000_v32, %v15700_v44 }
 0xaa7   : > { %v11968_v16 = vadd.f32 %v8928_v5, %v7583_v29  ;;  %v8930_v60 = vpop.f32.mrb[171].mxu0 }
 0xaa8   : > { %v10714_v20 = vpack.c.bf16 %v11966_v59, %v11964_v8  ;;  %v11970_v18 = vadd.f32 %v8930_v60, %v7585_v48  ;;  %v17001_v48 = vld [vmem:[#allocation43_spill] sm:$0xff] }
 0xaa9   : > { %v7611_v59 = vadd.f32 %v17001_v48, %v15700_v44 }
 0xaaa   : > { %9995 = vst [vmem:[%s15719_s16 + $0x2a0] sm:$0xff] %v10714_v20  ;;  %v10715_v4 = vpack.c.bf16 %v11970_v18, %v11968_v16  ;;  %v17002_v16 = vld [vmem:[#allocation42_spill] sm:$0xff] }
 0xaab   : > { %v7613_v60 = vadd.f32 %v17002_v16, %v15695_v7 }
 0xaac   : > { %9996 = vst [vmem:[%s15719_s16 + $0x2a8] sm:$0xff] %v10715_v4  ;;  %v8934_v14 = vpop.f32.mrb[172].mxu0  ;;  %v17003_v4 = vld [vmem:[#allocation45_spill] sm:$0xff] }
 0xaad   : > { %v11972_v2 = vadd.f32 %v8934_v14, %v7589_v23  ;;  %v8936_v35 = vpop.f32.mrb[173].mxu0  ;;  %v7615_v23 = vadd.f32 %v17003_v4, %v15700_v44 }
 0xaae   : > { %v11974_v22 = vadd.f32 %v8936_v35, %v7591_v57  ;;  %v8938_v53 = vpop.f32.mrb[174].mxu0  ;;  %v7619_v35 = vadd.f32 %v15984_v61, %v15695_v7 }
 0xaaf   : > { %v11976_v50 = vadd.f32 %v8938_v53, %v7593_v51  ;;  %v8940_v63 = vpop.f32.mrb[175].mxu0  ;;  %v17005_v53 = vld [vmem:[#allocation47_spill] sm:$0xff] }
 0xab0   : > { %v10716_v13 = vpack.c.bf16 %v11974_v22, %v11972_v2  ;;  %v11978_v45 = vadd.f32 %v8940_v63, %v7595_v46  ;;  %v7621_v46 = vadd.f32 %v17004_v15, %v15700_v44 }
 0xab2   : > { %9997 = vst [vmem:[%s15719_s16 + $0x2b0] sm:$0xff] %v10716_v13  ;;  %v10717_v34 = vpack.c.bf16 %v11978_v45, %v11976_v50  ;;  %v7623_v50 = vadd.f32 %v17005_v53, %v15695_v7  ;;  %v17006_v45 = vld [vmem:[#allocation49_spill] sm:$0xff]  ;;  %v7649_v53 = vadd.f32 %v16032_v33, %v15695_v7 }
 0xab4   : > { %9998 = vst [vmem:[%s15719_s16 + $0x2b8] sm:$0xff] %v10717_v34  ;;  %v8944_v37 = vpop.f32.mrb[176].mxu0  ;;  %v7625_v34 = vadd.f32 %v17006_v45, %v15700_v44  ;;  %v17014_v45 = vld [vmem:[#allocation57_spill] sm:$0xff] }
 0xab5   : > { %v11980_v62 = vadd.f32 %v8944_v37, %v7599_v27  ;;  %v8946_v25 = vpop.f32.mrb[177].mxu0 }
 0xab6   : > { %v11982_v3 = vadd.f32 %v8946_v25, %v7601_v40  ;;  %v8948_v11 = vpop.f32.mrb[178].mxu0  ;;  %v17007_v25 = vld [vmem:[#allocation48_spill] sm:$0xff] }
 0xab7   : > { %v11984_v39 = vadd.f32 %v8948_v11, %v7603_v38  ;;  %v8950_v29 = vpop.f32.mrb[179].mxu0  ;;  %v7631_v32 = vadd.f32 %v17007_v25, %v15700_v44 }
 0xab8   : > { %v10718_v8 = vpack.c.bf16 %v11982_v3, %v11980_v62  ;;  %v11986_v24 = vadd.f32 %v8950_v29, %v7605_v10  ;;  %v7629_v62 = vadd.f32 %v16000_v30, %v15695_v7  ;;  %v17008_v3 = vld [vmem:[#allocation51_spill] sm:$0xff] }
 0xab9   : > { %v7633_v11 = vadd.f32 %v17008_v3, %v15695_v7  ;;  %v17016_v3 = vld [vmem:[#allocation59_spill] sm:$0xff] }
 0xaba   : > { %9999 = vst [vmem:[%s15719_s16 + $0x2c0] sm:$0xff] %v10718_v8  ;;  %v10719_v0 = vpack.c.bf16 %v11986_v24, %v11984_v39  ;;  %v17009_v8 = vld [vmem:[#allocation50_spill] sm:$0xff] }
 0xabb   : > { %v7635_v24 = vadd.f32 %v17009_v8, %v15700_v44 }
 0xabc   : > { %10000 = vst [vmem:[%s15719_s16 + $0x2c8] sm:$0xff] %v10719_v0  ;;  %v8954_v5 = vpop.f32.mrb[180].mxu0 }
 0xabd   : > { %v11988_v20 = vadd.f32 %v8954_v5, %v7609_v55  ;;  %v8956_v18 = vpop.f32.mrb[181].mxu0 }
 0xabe   : > { %v11990_v36 = vadd.f32 %v8956_v18, %v7611_v59  ;;  %v8958_v57 = vpop.f32.mrb[182].mxu0 }
 0xabf   : > { %v11992_v14 = vadd.f32 %v8958_v57, %v7613_v60  ;;  %v8960_v42 = vpop.f32.mrb[183].mxu0  ;;  %v7639_v60 = vadd.f32 %v16016_v58, %v15695_v7 }
 0xac0   : > { %v10720_v51 = vpack.c.bf16 %v11990_v36, %v11988_v20  ;;  %v11994_v19 = vadd.f32 %v8960_v42, %v7615_v23  ;;  %v17010_v20 = vld [vmem:[#allocation53_spill] sm:$0xff]  ;;  %v17011_v23 = vld [vmem:[#allocation52_spill] sm:$0xff]  ;;  %v17012_v42 = vld [vmem:[#allocation55_spill] sm:$0xff] }
 0xac1   : > { %v7641_v18 = vadd.f32 %v17010_v20, %v15700_v44  ;;  %v7643_v36 = vadd.f32 %v17011_v23, %v15695_v7 }
 0xac2   : > { %10001 = vst [vmem:[%s15719_s16 + $0x2d0] sm:$0xff] %v10720_v51  ;;  %v10721_v2 = vpack.c.bf16 %v11994_v19, %v11992_v14  ;;  %v7645_v51 = vadd.f32 %v17012_v42, %v15700_v44 }
 0xac4   : > { %10002 = vst [vmem:[%s15719_s16 + $0x2d8] sm:$0xff] %v10721_v2  ;;  %v8964_v22 = vpop.f32.mrb[184].mxu0 }
 0xac5   : > { %v11996_v63 = vadd.f32 %v8964_v22, %v7619_v35  ;;  %v8966_v13 = vpop.f32.mrb[185].mxu0 }
 0xac6   : > { %v11998_v27 = vadd.f32 %v8966_v13, %v7621_v46  ;;  %v8968_v43 = vpop.f32.mrb[186].mxu0 }
 0xac7   : > { %v12000_v40 = vadd.f32 %v8968_v43, %v7623_v50  ;;  %v8970_v37 = vpop.f32.mrb[187].mxu0  ;;  %v17013_v50 = vld [vmem:[#allocation54_spill] sm:$0xff] }
 0xac8   : > { %v10722_v12 = vpack.c.bf16 %v11998_v27, %v11996_v63  ;;  %v12002_v61 = vadd.f32 %v8970_v37, %v7625_v34  ;;  %v7651_v63 = vadd.f32 %v17013_v50, %v15700_v44  ;;  %v7653_v34 = vadd.f32 %v17014_v45, %v15695_v7 }
 0xac9   : > { %v7679_v50 = vadd.f32 %v16080_v26, %v15695_v7 }
 0xaca   : > { %10003 = vst [vmem:[%s15719_s16 + $0x2e0] sm:$0xff] %v10722_v12  ;;  %v10723_v38 = vpack.c.bf16 %v12002_v61, %v12000_v40  ;;  %v17015_v40 = vld [vmem:[#allocation56_spill] sm:$0xff] }
 0xacb   : > { %v7655_v37 = vadd.f32 %v17015_v40, %v15700_v44 }
 0xacc   : > { %10004 = vst [vmem:[%s15719_s16 + $0x2e8] sm:$0xff] %v10723_v38  ;;  %v8974_v10 = vpop.f32.mrb[188].mxu0 }
 0xacd   : > { %v12004_v39 = vadd.f32 %v8974_v10, %v7629_v62  ;;  %v8976_v29 = vpop.f32.mrb[189].mxu0  ;;  %v7659_v10 = vadd.f32 %v16048_v6, %v15695_v7 }
 0xace   : > { %v12006_v0 = vadd.f32 %v8976_v29, %v7631_v32  ;;  %v8978_v55 = vpop.f32.mrb[190].mxu0  ;;  %v17017_v29 = vld [vmem:[#allocation58_spill] sm:$0xff] }
 0xacf   : > { %v12008_v48 = vadd.f32 %v8978_v55, %v7633_v11  ;;  %v8980_v59 = vpop.f32.mrb[191].mxu0  ;;  %v7661_v11 = vadd.f32 %v17016_v3, %v15700_v44  ;;  %v7663_v8 = vadd.f32 %v17017_v29, %v15695_v7  ;;  %v17018_v55 = vld [vmem:[#allocation61_spill] sm:$0xff]  ;;  %v17025_v3 = vld [vmem:[#allocation66_spill] sm:$0xff] }
 0xad0   : > { %v10724_v5 = vpack.c.bf16 %v12006_v0, %v12004_v39  ;;  %v12010_v30 = vadd.f32 %v8980_v59, %v7635_v24  ;;  %v17026_v29 = vld [vmem:[#allocation69_spill] sm:$0xff] }
 0xad2   : > { %10005 = vst [vmem:[%s15719_s16 + $0x2f0] sm:$0xff] %v10724_v5  ;;  %v10725_v16 = vpack.c.bf16 %v12010_v30, %v12008_v48  ;;  %v7665_v48 = vadd.f32 %v17018_v55, %v15700_v44  ;;  %v17027_v55 = vld [vmem:[#allocation68_spill] sm:$0xff] }
 0xad4   : > { %10006 = vst [vmem:[%s15719_s16 + $0x2f8] sm:$0xff] %v10725_v16  ;;  %v8984_v4 = vpop.f32.mrb[192].mxu0 }
 0xad5   : > { %v12012_v57 = vadd.f32 %v8984_v4, %v7639_v60  ;;  %v8986_v14 = vpop.f32.mrb[193].mxu0  ;;  %v17019_v4 = vld [vmem:[#allocation60_spill] sm:$0xff] }
 0xad6   : > { %v12014_v19 = vadd.f32 %v8986_v14, %v7641_v18  ;;  %v8988_v2 = vpop.f32.mrb[194].mxu0  ;;  %v7669_v18 = vadd.f32 %v16064_v1, %v15695_v7  ;;  %v7671_v23 = vadd.f32 %v17019_v4, %v15700_v44 }
 0xad7   : > { %v12016_v35 = vadd.f32 %v8988_v2, %v7643_v36  ;;  %v8990_v15 = vpop.f32.mrb[195].mxu0 }
 0xad8   : > { %v10726_v46 = vpack.c.bf16 %v12014_v19, %v12012_v57  ;;  %v12018_v58 = vadd.f32 %v8990_v15, %v7645_v51  ;;  %v17020_v57 = vld [vmem:[#allocation63_spill] sm:$0xff]  ;;  %v17021_v19 = vld [vmem:[#allocation62_spill] sm:$0xff] }
 0xad9   : > { %v7673_v14 = vadd.f32 %v17020_v57, %v15695_v7  ;;  %v7675_v2 = vadd.f32 %v17021_v19, %v15700_v44 }
 0xada   : > { %10007 = vst [vmem:[%s15719_s16 + $0x300] sm:$0xff] %v10726_v46  ;;  %v10727_v22 = vpack.c.bf16 %v12018_v58, %v12016_v35 }
 0xadc   : > { %10008 = vst [vmem:[%s15719_s16 + $0x308] sm:$0xff] %v10727_v22  ;;  %v8994_v13 = vpop.f32.mrb[196].mxu0 }
 0xadd   : > { %v12020_v27 = vadd.f32 %v8994_v13, %v7649_v53  ;;  %v8996_v43 = vpop.f32.mrb[197].mxu0 }
 0xade   : > { %v12022_v12 = vadd.f32 %v8996_v43, %v7651_v63  ;;  %v8998_v61 = vpop.f32.mrb[198].mxu0  ;;  %v17022_v63 = vld [vmem:[#allocation65_spill] sm:$0xff] }
 0xadf   : > { %v12024_v38 = vadd.f32 %v8998_v61, %v7653_v34  ;;  %v9000_v62 = vpop.f32.mrb[199].mxu0  ;;  %v7681_v13 = vadd.f32 %v17022_v63, %v15700_v44  ;;  %v17023_v34 = vld [vmem:[#allocation64_spill] sm:$0xff] }
 0xae0   : > { %v10728_v25 = vpack.c.bf16 %v12022_v12, %v12020_v27  ;;  %v12026_v33 = vadd.f32 %v9000_v62, %v7655_v37  ;;  %v7683_v27 = vadd.f32 %v17023_v34, %v15695_v7  ;;  %v17024_v37 = vld [vmem:[#allocation67_spill] sm:$0xff] }
 0xae1   : > { %v7685_v12 = vadd.f32 %v17024_v37, %v15700_v44 }
 0xae2   : > { %10009 = vst [vmem:[%s15719_s16 + $0x310] sm:$0xff] %v10728_v25  ;;  %v10729_v32 = vpack.c.bf16 %v12026_v33, %v12024_v38 }
 0xae4   : > { %10010 = vst [vmem:[%s15719_s16 + $0x318] sm:$0xff] %v10729_v32  ;;  %v9004_v39 = vpop.f32.mrb[200].mxu0 }
 0xae5   : > { %v12028_v24 = vadd.f32 %v9004_v39, %v7659_v10  ;;  %v9006_v0 = vpop.f32.mrb[201].mxu0  ;;  %v7689_v10 = vadd.f32 %v16096_v28, %v15695_v7 }
 0xae6   : > { %v12030_v59 = vadd.f32 %v9006_v0, %v7661_v11  ;;  %v9008_v5 = vpop.f32.mrb[202].mxu0  ;;  %v7691_v11 = vadd.f32 %v17025_v3, %v15700_v44  ;;  %v17035_v3 = vld [vmem:[#allocation76_spill] sm:$0xff] }
 0xae7   : > { %v12032_v30 = vadd.f32 %v9008_v5, %v7663_v8  ;;  %v9010_v16 = vpop.f32.mrb[203].mxu0  ;;  %v7693_v8 = vadd.f32 %v17026_v29, %v15695_v7 }
 0xae8   : > { %v10730_v60 = vpack.c.bf16 %v12030_v59, %v12028_v24  ;;  %v12034_v6 = vadd.f32 %v9010_v16, %v7665_v48  ;;  %v7695_v48 = vadd.f32 %v17027_v55, %v15700_v44 }
 0xaea   : > { %10011 = vst [vmem:[%s15719_s16 + $0x320] sm:$0xff] %v10730_v60  ;;  %v10731_v20 = vpack.c.bf16 %v12034_v6, %v12032_v30 }
 0xaec   : > { %10012 = vst [vmem:[%s15719_s16 + $0x328] sm:$0xff] %v10731_v20  ;;  %v9014_v36 = vpop.f32.mrb[204].mxu0  ;;  %v7699_v20 = vadd.f32 %v16112_v54, %v15695_v7 }
 0xaed   : > { %v12036_v42 = vadd.f32 %v9014_v36, %v7669_v18  ;;  %v9016_v51 = vpop.f32.mrb[205].mxu0  ;;  %v17028_v18 = vld [vmem:[#allocation71_spill] sm:$0xff]  ;;  %v17029_v36 = vld [vmem:[#allocation70_spill] sm:$0xff] }
 0xaee   : > { %v12038_v35 = vadd.f32 %v9016_v51, %v7671_v23  ;;  %v9018_v15 = vpop.f32.mrb[206].mxu0  ;;  %v7701_v4 = vadd.f32 %v17028_v18, %v15700_v44  ;;  %v7703_v57 = vadd.f32 %v17029_v36, %v15695_v7  ;;  %v17030_v51 = vld [vmem:[#allocation73_spill] sm:$0xff]  ;;  %v17039_v36 = vld [vmem:[#allocation80_spill] sm:$0xff] }
 0xaef   : > { %v12040_v46 = vadd.f32 %v9018_v15, %v7673_v14  ;;  %v9020_v58 = vpop.f32.mrb[207].mxu0  ;;  %v7705_v19 = vadd.f32 %v17030_v51, %v15700_v44 }
 0xaf0   : > { %v10732_v22 = vpack.c.bf16 %v12038_v35, %v12036_v42  ;;  %v12042_v1 = vadd.f32 %v9020_v58, %v7675_v2 }
 0xaf2   : > { %10013 = vst [vmem:[%s15719_s16 + $0x330] sm:$0xff] %v10732_v22  ;;  %v10733_v53 = vpack.c.bf16 %v12042_v1, %v12040_v46  ;;  %v7709_v1 = vadd.f32 %v16128_v31, %v15695_v7 }
 0xaf4   : > { %10014 = vst [vmem:[%s15719_s16 + $0x338] sm:$0xff] %v10733_v53  ;;  %v9024_v45 = vpop.f32.mrb[208].mxu0  ;;  %v17031_v53 = vld [vmem:[#allocation72_spill] sm:$0xff] }
 0xaf5   : > { %v12044_v43 = vadd.f32 %v9024_v45, %v7679_v50  ;;  %v9026_v40 = vpop.f32.mrb[209].mxu0  ;;  %v7711_v50 = vadd.f32 %v17031_v53, %v15700_v44 }
 0xaf6   : > { %v12046_v61 = vadd.f32 %v9026_v40, %v7681_v13  ;;  %v9028_v38 = vpop.f32.mrb[210].mxu0  ;;  %v17032_v13 = vld [vmem:[#allocation75_spill] sm:$0xff] }
 0xaf7   : > { %v12048_v62 = vadd.f32 %v9028_v38, %v7683_v27  ;;  %v9030_v25 = vpop.f32.mrb[211].mxu0  ;;  %v7713_v45 = vadd.f32 %v17032_v13, %v15695_v7 }
 0xaf8   : > { %v10734_v33 = vpack.c.bf16 %v12046_v61, %v12044_v43  ;;  %v12050_v26 = vadd.f32 %v9030_v25, %v7685_v12  ;;  %v17033_v43 = vld [vmem:[#allocation74_spill] sm:$0xff] }
 0xaf9   : > { %v7715_v40 = vadd.f32 %v17033_v43, %v15700_v44 }
 0xafa   : > { %10015 = vst [vmem:[%s15719_s16 + $0x340] sm:$0xff] %v10734_v33  ;;  %v10735_v32 = vpack.c.bf16 %v12050_v26, %v12048_v62  ;;  %v7719_v33 = vadd.f32 %v16144_v56, %v15695_v7  ;;  %v17034_v26 = vld [vmem:[#allocation77_spill] sm:$0xff] }
 0xafc   : > { %10016 = vst [vmem:[%s15719_s16 + $0x348] sm:$0xff] %v10735_v32  ;;  %v9034_v39 = vpop.f32.mrb[212].mxu0  ;;  %v7721_v32 = vadd.f32 %v17034_v26, %v15700_v44 }
 0xafd   : > { %v12052_v24 = vadd.f32 %v9034_v39, %v7689_v10  ;;  %v9036_v0 = vpop.f32.mrb[213].mxu0 }
 0xafe   : > { %v12054_v59 = vadd.f32 %v9036_v0, %v7691_v11  ;;  %v9038_v5 = vpop.f32.mrb[214].mxu0  ;;  %v7723_v11 = vadd.f32 %v17035_v3, %v15695_v7 }
 0xaff   : > { %v12056_v30 = vadd.f32 %v9038_v5, %v7693_v8  ;;  %v9040_v16 = vpop.f32.mrb[215].mxu0  ;;  %v17036_v8 = vld [vmem:[#allocation79_spill] sm:$0xff] }
 0xb00   : > { %v10736_v60 = vpack.c.bf16 %v12054_v59, %v12052_v24  ;;  %v12058_v28 = vadd.f32 %v9040_v16, %v7695_v48  ;;  %v7725_v24 = vadd.f32 %v17036_v8, %v15700_v44  ;;  %v7729_v16 = vadd.f32 %v16160_v17, %v15695_v7 }
 0xb02   : > { %10017 = vst [vmem:[%s15719_s16 + $0x350] sm:$0xff] %v10736_v60  ;;  %v10737_v6 = vpack.c.bf16 %v12058_v28, %v12056_v30  ;;  %v17037_v60 = vld [vmem:[#allocation78_spill] sm:$0xff] }
 0xb03   : > { %v7731_v28 = vadd.f32 %v17037_v60, %v15700_v44  ;;  %v17048_v60 = vld [vmem:[#allocation90_spill] sm:$0xff] }
 0xb04   : > { %10018 = vst [vmem:[%s15719_s16 + $0x358] sm:$0xff] %v10737_v6  ;;  %v9044_v23 = vpop.f32.mrb[216].mxu0 }
 0xb05   : > { %v12060_v14 = vadd.f32 %v9044_v23, %v7699_v20  ;;  %v9046_v42 = vpop.f32.mrb[217].mxu0  ;;  %v17038_v20 = vld [vmem:[#allocation81_spill] sm:$0xff] }
 0xb06   : > { %v12062_v2 = vadd.f32 %v9046_v42, %v7701_v4  ;;  %v9048_v35 = vpop.f32.mrb[218].mxu0  ;;  %v7733_v18 = vadd.f32 %v17038_v20, %v15695_v7 }
 0xb07   : > { %v12064_v15 = vadd.f32 %v9048_v35, %v7703_v57  ;;  %v9050_v46 = vpop.f32.mrb[219].mxu0  ;;  %v7735_v57 = vadd.f32 %v17039_v36, %v15700_v44 }
 0xb08   : > { %v10738_v58 = vpack.c.bf16 %v12062_v2, %v12060_v14  ;;  %v12066_v54 = vadd.f32 %v9050_v46, %v7705_v19  ;;  %v17040_v46 = vld [vmem:[#allocation82_spill] sm:$0xff] }
 0xb0a   : > { %10019 = vst [vmem:[%s15719_s16 + $0x360] sm:$0xff] %v10738_v58  ;;  %v10739_v22 = vpack.c.bf16 %v12066_v54, %v12064_v15  ;;  %v7739_v15 = vadd.f32 %v16176_v41, %v15695_v7  ;;  %v7741_v58 = vadd.f32 %v17040_v46, %v15700_v44 }
 0xb0c   : > { %10020 = vst [vmem:[%s15719_s16 + $0x368] sm:$0xff] %v10739_v22  ;;  %v9054_v63 = vpop.f32.mrb[220].mxu0  ;;  %v17041_v22 = vld [vmem:[#allocation25_spill] sm:$0xff] }
 0xb0d   : > { %v12068_v34 = vadd.f32 %v9054_v63, %v7709_v1  ;;  %v9056_v27 = vpop.f32.mrb[221].mxu0  ;;  %v7743_v1 = vadd.f32 %v17041_v22, %v15695_v7  ;;  %v17042_v63 = vld [vmem:[#allocation84_spill] sm:$0xff] }
 0xb0e   : > { %v12070_v37 = vadd.f32 %v9056_v27, %v7711_v50  ;;  %v9058_v12 = vpop.f32.mrb[222].mxu0  ;;  %v7745_v13 = vadd.f32 %v17042_v63, %v15700_v44  ;;  %v7779_v63 = vadd.f32 %v16240_v49, %v15695_v7 }
 0xb0f   : > { %v12072_v61 = vadd.f32 %v9058_v12, %v7713_v45  ;;  %v9060_v38 = vpop.f32.mrb[223].mxu0  ;;  %v7749_v12 = vadd.f32 %v16192_v47, %v15695_v7 }
 0xb10   : > { %v10740_v62 = vpack.c.bf16 %v12070_v37, %v12068_v34  ;;  %v12074_v31 = vadd.f32 %v9060_v38, %v7715_v40 }
 0xb12   : > { %10021 = vst [vmem:[%s15719_s16 + $0x370] sm:$0xff] %v10740_v62  ;;  %v10741_v25 = vpack.c.bf16 %v12074_v31, %v12072_v61  ;;  %v17043_v61 = vld [vmem:[#allocation83_spill] sm:$0xff]  ;;  %v17044_v31 = vld [vmem:[#allocation86_spill] sm:$0xff] }
 0xb13   : > { %v7751_v38 = vadd.f32 %v17043_v61, %v15700_v44 }
 0xb14   : > { %10022 = vst [vmem:[%s15719_s16 + $0x378] sm:$0xff] %v10741_v25  ;;  %v9064_v10 = vpop.f32.mrb[224].mxu0  ;;  %v7753_v25 = vadd.f32 %v17044_v31, %v15695_v7 }
 0xb15   : > { %v12076_v39 = vadd.f32 %v9064_v10, %v7719_v33  ;;  %v9066_v29 = vpop.f32.mrb[225].mxu0 }
 0xb16   : > { %v12078_v0 = vadd.f32 %v9066_v29, %v7721_v32  ;;  %v9068_v55 = vpop.f32.mrb[226].mxu0  ;;  %v17045_v32 = vld [vmem:[#allocation85_spill] sm:$0xff] }
 0xb17   : > { %v12080_v48 = vadd.f32 %v9068_v55, %v7723_v11  ;;  %v9070_v59 = vpop.f32.mrb[227].mxu0  ;;  %v7755_v10 = vadd.f32 %v17045_v32, %v15700_v44  ;;  %v17046_v55 = vld [vmem:[#allocation88_spill] sm:$0xff]  ;;  %v17055_v32 = vld [vmem:[#allocation95_spill] sm:$0xff] }
 0xb18   : > { %v10742_v5 = vpack.c.bf16 %v12078_v0, %v12076_v39  ;;  %v12082_v56 = vadd.f32 %v9070_v59, %v7725_v24  ;;  %v7759_v0 = vadd.f32 %v16208_v9, %v15695_v7 }
 0xb1a   : > { %10023 = vst [vmem:[%s15719_s16 + $0x380] sm:$0xff] %v10742_v5  ;;  %v10743_v30 = vpack.c.bf16 %v12082_v56, %v12080_v48  ;;  %v7761_v48 = vadd.f32 %v17046_v55, %v15700_v44  ;;  %v17047_v5 = vld [vmem:[#allocation87_spill] sm:$0xff] }
 0xb1b   : > { %v7763_v56 = vadd.f32 %v17047_v5, %v15695_v7 }
 0xb1c   : > { %10024 = vst [vmem:[%s15719_s16 + $0x388] sm:$0xff] %v10743_v30  ;;  %v9074_v6 = vpop.f32.mrb[228].mxu0 }
 0xb1d   : > { %v12084_v4 = vadd.f32 %v9074_v6, %v7729_v16  ;;  %v9076_v23 = vpop.f32.mrb[229].mxu0 }
 0xb1e   : > { %v12086_v14 = vadd.f32 %v9076_v23, %v7731_v28  ;;  %v9078_v42 = vpop.f32.mrb[230].mxu0  ;;  %v7765_v28 = vadd.f32 %v17048_v60, %v15700_v44 }
 0xb1f   : > { %v12088_v51 = vadd.f32 %v9078_v42, %v7733_v18  ;;  %v9080_v19 = vpop.f32.mrb[231].mxu0 }
 0xb20   : > { %v10744_v2 = vpack.c.bf16 %v12086_v14, %v12084_v4  ;;  %v12090_v17 = vadd.f32 %v9080_v19, %v7735_v57  ;;  %v7769_v57 = vadd.f32 %v16224_v52, %v15695_v7  ;;  %v17049_v14 = vld [vmem:[#allocation89_spill] sm:$0xff]  ;;  %v17050_v19 = vld [vmem:[#allocation92_spill] sm:$0xff] }
 0xb21   : > { %v7771_v42 = vadd.f32 %v17049_v14, %v15700_v44 }
 0xb22   : > { %10025 = vst [vmem:[%s15719_s16 + $0x390] sm:$0xff] %v10744_v2  ;;  %v10745_v35 = vpack.c.bf16 %v12090_v17, %v12088_v51  ;;  %v7773_v2 = vadd.f32 %v17050_v19, %v15695_v7 }
 0xb24   : > { %10026 = vst [vmem:[%s15719_s16 + $0x398] sm:$0xff] %v10745_v35  ;;  %v9084_v54 = vpop.f32.mrb[232].mxu0 }
 0xb25   : > { %v12092_v53 = vadd.f32 %v9084_v54, %v7739_v15  ;;  %v9086_v50 = vpop.f32.mrb[233].mxu0  ;;  %v17051_v15 = vld [vmem:[#allocation91_spill] sm:$0xff] }
 0xb26   : > { %v12094_v45 = vadd.f32 %v9086_v50, %v7741_v58  ;;  %v9088_v34 = vpop.f32.mrb[234].mxu0  ;;  %v7775_v46 = vadd.f32 %v17051_v15, %v15700_v44 }
 0xb27   : > { %v12096_v27 = vadd.f32 %v9088_v34, %v7743_v1  ;;  %v9090_v43 = vpop.f32.mrb[235].mxu0 }
 0xb28   : > { %v10746_v40 = vpack.c.bf16 %v12094_v45, %v12092_v53  ;;  %v12098_v41 = vadd.f32 %v9090_v43, %v7745_v13  ;;  %v17052_v13 = vld [vmem:[#allocation94_spill] sm:$0xff] }
 0xb29   : > { %v7781_v45 = vadd.f32 %v17052_v13, %v15700_v44 }
 0xb2a   : > { %10027 = vst [vmem:[%s15719_s16 + $0x3a0] sm:$0xff] %v10746_v40  ;;  %v10747_v37 = vpack.c.bf16 %v12098_v41, %v12096_v27  ;;  %v17053_v27 = vld [vmem:[#allocation93_spill] sm:$0xff] }
 0xb2b   : > { %v7783_v43 = vadd.f32 %v17053_v27, %v15695_v7 }
 0xb2c   : > { %10028 = vst [vmem:[%s15719_s16 + $0x3a8] sm:$0xff] %v10747_v37  ;;  %v9094_v62 = vpop.f32.mrb[236].mxu0  ;;  %v17054_v37 = vld [vmem:[#allocation96_spill] sm:$0xff] }
 0xb2d   : > { %v12100_v33 = vadd.f32 %v9094_v62, %v7749_v12  ;;  %v9096_v26 = vpop.f32.mrb[237].mxu0  ;;  %v7785_v12 = vadd.f32 %v17054_v37, %v15700_v44 }
 0xb2e   : > { %v12102_v3 = vadd.f32 %v9096_v26, %v7751_v38  ;;  %v9098_v11 = vpop.f32.mrb[238].mxu0  ;;  %v7789_v26 = vadd.f32 %v16256_v21, %v15695_v7 }
 0xb2f   : > { %v12104_v39 = vadd.f32 %v9098_v11, %v7753_v25  ;;  %v9100_v29 = vpop.f32.mrb[239].mxu0  ;;  %v17056_v11 = vld [vmem:[#allocation98_spill] sm:$0xff] }
 0xb30   : > { %v10748_v8 = vpack.c.bf16 %v12102_v3, %v12100_v33  ;;  %v12106_v47 = vadd.f32 %v9100_v29, %v7755_v10  ;;  %v7791_v10 = vadd.f32 %v17055_v32, %v15700_v44 }
 0xb32   : > { %10029 = vst [vmem:[%s15719_s16 + $0x3b0] sm:$0xff] %v10748_v8  ;;  %v10749_v24 = vpack.c.bf16 %v12106_v47, %v12104_v39  ;;  %v7793_v39 = vadd.f32 %v17056_v11, %v15695_v7  ;;  %v17057_v47 = vld [vmem:[#allocation97_spill] sm:$0xff] }
 0xb34   : > { %10030 = vst [vmem:[%s15719_s16 + $0x3b8] sm:$0xff] %v10749_v24  ;;  %v9104_v59 = vpop.f32.mrb[240].mxu0  ;;  %v7795_v24 = vadd.f32 %v17057_v47, %v15700_v44 }
 0xb35   : > { %v12108_v30 = vadd.f32 %v9104_v59, %v7759_v0  ;;  %v9106_v16 = vpop.f32.mrb[241].mxu0 }
 0xb36   : > { %v12110_v6 = vadd.f32 %v9106_v16, %v7761_v48  ;;  %v9108_v20 = vpop.f32.mrb[242].mxu0 }
 0xb37   : > { %v12112_v18 = vadd.f32 %v9108_v20, %v7763_v56  ;;  %v9110_v4 = vpop.f32.mrb[243].mxu0 }
 0xb38   : > { %v10750_v23 = vpack.c.bf16 %v12110_v6, %v12108_v30  ;;  %v12114_v9 = vadd.f32 %v9110_v4, %v7765_v28 }
 0xb3a   : > { %10031 = vst [vmem:[%s15719_s16 + $0x3c0] sm:$0xff] %v10750_v23  ;;  %v10751_v36 = vpack.c.bf16 %v12114_v9, %v12112_v18 }
 0xb3c   : > { %10032 = vst [vmem:[%s15719_s16 + $0x3c8] sm:$0xff] %v10751_v36  ;;  %v9114_v51 = vpop.f32.mrb[244].mxu0 }
 0xb3d   : > { %v12116_v17 = vadd.f32 %v9114_v51, %v7769_v57  ;;  %v9116_v35 = vpop.f32.mrb[245].mxu0 }
 0xb3e   : > { %v12118_v58 = vadd.f32 %v9116_v35, %v7771_v42  ;;  %v9118_v54 = vpop.f32.mrb[246].mxu0 }
 0xb3f   : > { %v12120_v22 = vadd.f32 %v9118_v54, %v7773_v2  ;;  %v9120_v1 = vpop.f32.mrb[247].mxu0 }
 0xb40   : > { %v10752_v53 = vpack.c.bf16 %v12118_v58, %v12116_v17  ;;  %v12122_v52 = vadd.f32 %v9120_v1, %v7775_v46 }
 0xb42   : > { %10033 = vst [vmem:[%s15719_s16 + $0x3d0] sm:$0xff] %v10752_v53  ;;  %v10753_v50 = vpack.c.bf16 %v12122_v52, %v12120_v22 }
 0xb44   : > { %10034 = vst [vmem:[%s15719_s16 + $0x3d8] sm:$0xff] %v10753_v50  ;;  %v9124_v34 = vpop.f32.mrb[248].mxu0 }
 0xb45   : > { %v12124_v40 = vadd.f32 %v9124_v34, %v7779_v63  ;;  %v9126_v41 = vpop.f32.mrb[249].mxu0 }
 0xb46   : > { %v12126_v61 = vadd.f32 %v9126_v41, %v7781_v45  ;;  %v9128_v38 = vpop.f32.mrb[250].mxu0 }
 0xb47   : > { %v12128_v62 = vadd.f32 %v9128_v38, %v7783_v43  ;;  %v9130_v31 = vpop.f32.mrb[251].mxu0 }
 0xb48   : > { %v10754_v49 = vpack.c.bf16 %v12126_v61, %v12124_v40  ;;  %v12130_v25 = vadd.f32 %v9130_v31, %v7785_v12 }
 0xb4a   : > { %10035 = vst [vmem:[%s15719_s16 + $0x3e0] sm:$0xff] %v10754_v49  ;;  %v10755_v33 = vpack.c.bf16 %v12130_v25, %v12128_v62 }
 0xb4c   : > { %10036 = vst [vmem:[%s15719_s16 + $0x3e8] sm:$0xff] %v10755_v33  ;;  %v9134_v3 = vpop.f32.mrb[252].mxu0 }
 0xb4d   : > { %v12132_v29 = vadd.f32 %v9134_v3, %v7789_v26  ;;  %v9136_v8 = vpop.f32.mrb[253].mxu0 }
 0xb4e   : > { %v12134_v0 = vadd.f32 %v9136_v8, %v7791_v10  ;;  %v9138_v55 = vpop.f32.mrb[254].mxu0 }
 0xb4f   : > { %v12136_v21 = vadd.f32 %v9138_v55, %v7793_v39  ;;  %v9140_v48 = vpop.f32.mrb[255].mxu0 }
 0xb50   : > { %v10756_v59 = vpack.c.bf16 %v12134_v0, %v12132_v29  ;;  %v12138_v5 = vadd.f32 %v9140_v48, %v7795_v24 }
 0xb52   : > { %10037 = vst [vmem:[%s15719_s16 + $0x3f0] sm:$0xff] %v10756_v59  ;;  %v10757_v7 = vpack.c.bf16 %v12138_v5, %v12136_v21 }
 0xb54   : > { %10038 = vst [vmem:[%s15719_s16 + $0x3f8] sm:$0xff] %v10757_v7 }
 0xb55   : > { %13165 = shalt.err (!%p13162_p0)
}
 0xb56   : > { %s13166_s20 = scalar_lea.hbm %s16578_s23, 16384  ;;  %s13170_s1 = scalar_lea.hbm %s16635_s9, 32768 }
 0xb57   : > { %p13167_p2 = scmp.ne.s32.totalorder %s16578_s23, %s13166_s20  ;;  %p13171_p11 = scmp.lt.u32.totalorder %s16578_s23, %s16635_s9 }
 0xb58   : > { %p13172_p6 = scmp.lt.u32.totalorder %s13170_s1, %s13166_s20  ;;  %p13174_p5 = scmp.lt.u32.totalorder %s13166_s20, %s16578_s23 }
 0xb59   : > { %p13168_p9 = pnand %p13167_p2, %p17058_p7 }
 0xb5a   : > { %p13173_p12 = por %p13172_p6, %p13171_p11 }
 0xb5b   : > { %p13169_p10 = pneg %p13168_p9 }
 0xb5c   : > { %p13175_p4 = por %p13174_p5, %p13173_p12 }
 0xb5e   : > { %p13176_p1 = pnand %p13175_p4, %p13169_p10 }
 0xb60   : > { %13179 = shalt.err (!%p13176_p1)
}
 0xb61   : > { %s13255_s15 = smov 128   ;;  %s13256_s28 = smov 8  }
 0xb62   : > { %12565 = dma.vmem_to_hbm [thread:$0]  (%p17058_p7), %s16580_s26, 16384, %s16578_s23, %s10040_s18, %s13255_s15, %s13255_s15, %s13256_s28  }
 0xb63 PF: > { %s10069_s29 = sand.u32 1, %s13222_s30   ;;  %p17059_p3 = scmp.ne.s32.totalorder %s16703_s24, 0 }
 0xb64   : > { %p17060_p8 = scmp.ge.s32.totalorder %s13234_s12, 2  ;;  %s10070_s14 = scalar_lea.sflag [#allocation4], %s10069_s29 }
 0xb66   : > { %p12597_p13 = pnand %p17060_p8, %p17059_p3 }
 0xb68   : > { %13217 = dma.done.wait (!%p12597_p13), %s10070_s14, 16384  }
 0xb69   : > { %13219 = vsyncadd (!%p12597_p13), %s10070_s14, 4294950912  ;;  %p26_p0 = scmp.ge.s32.totalorder %s13529_s27, 4   ;;  %s17061_s30 = smov %s13226_s10 }
 0xb6a   : > { %s17062_s10 = smov %s13230_s11  ;;  %s17063_s11 = smov %s13540_s17 }
 0xb6b   : > { %s17064_s12 = smov %s13529_s27  ;;  %28 = sbr.rel (!%p26_p0) target bundleno = 11 (0xb), region = 135 }
 0xb72   :  { %10075 = vsyncpa [#allocation3], 1 }
 0xb73   :  { %10077 = vsyncpa [#allocation3 + $0x1], 1 }
 0xb74   :  { %10078 = vsyncpa [#allocation6], 1 }
 0xb75   :  { %10079 = vsyncpa [#allocation9], 1 }
 0xb76   :  { %10080 = vsyncpa [#allocation12], 1 }
 0xb77   :  { %10081 = vsyncpa [#allocation15], 1 }
 0xb78   :  { %10082 = vsyncpa [#allocation4], 1 }
 0xb79   :  { %10084 = vsyncpa [#allocation4 + $0x1], 1 }

</bundles_post_ra>
